<compile_context>
chip_gen: v7x
topology: tpu7x:2x2x1
jax: 0.10.0
libtpu: 0.0.40
codegen_flags: <defaults>
</compile_context>

<pallas_src>
import functools

import jax
import jax.numpy as jnp
import numpy as np
from jax.experimental import pallas as pl
from jax.experimental.pallas import tpu as pltpu

BN_EPS = 1e-5
BN_SCALE = 1.0 / (1.0 + BN_EPS) ** 0.5   # gamma=1, beta=0, mean=0, var=1 (eval)
_VMEM_LIMIT = 32 * 1024 * 1024


def _round_up(x, m):
    return (x + m - 1) // m * m


# ---------------------------------------------------------------------------
# Fused stem kernel: 7x7/2 conv + folded BN + ReLU + 3x3 neighbourhood max.
# Input is the 4-way polyphase split of the zero-padded image, each phase
# padded to 8 channel rows (sublane aligned), flattened to (32, FLAT).
# ---------------------------------------------------------------------------
def _stem_kernel(xph_ref, w_ref, mask_ref, o_ref, p_ref, ys_ref, *,
                 wrow, mv, guard):
    # 49-tap im2col into VMEM (deep-K = 49 * 8 = 392), then ONE matmul.
    for i in range(7):
        for j in range(7):
            ph = (i % 2) * 2 + (j % 2)
            off = (i // 2) * wrow + (j // 2)
            t = i * 7 + j
            p_ref[8 * t:8 * t + 8, :] = xph_ref[8 * ph:8 * ph + 8, off:off + mv]
    y = jnp.dot(w_ref[...], p_ref[...], preferred_element_type=jnp.float32)
    y = jnp.maximum(y, 0.0) * mask_ref[...]     # ReLU; zero the garbage columns
    # 3x3 neighbourhood max (stride-1) for the maxpool, on a zero-guarded copy
    # (zero guards are exact here because the inputs are post-ReLU >= 0).
    ys_ref[...] = jnp.zeros_like(ys_ref)
    ys_ref[:, guard:guard + mv] = y
    m = None
    for dr in (-1, 0, 1):
        for dc in (-1, 0, 1):
            s = guard + dr * wrow + dc
            v = ys_ref[:, s:s + mv]
            m = v if m is None else jnp.maximum(m, v)
    o_ref[...] = m.astype(o_ref.dtype)


# ---------------------------------------------------------------------------
# Fused bottleneck block kernel (one image per grid step).
#   conv1(1x1)+BN+ReLU -> conv2(3x3 dilated)+BN+ReLU -> conv3(1x1)+BN
#   + downsample(1x1)+BN + residual + ReLU, all in VMEM.
# Stride-2 blocks: stride-2/dilation-2 conv == dilation-1 conv on the even-even
# phase; the phase subsample of the block input is a one-hot matmul (sub_ref).
# Zero padding: zero pad *rows* in the b scratch + lane masks for the
# horizontal taps, so the im2col needs only contiguous static slices.
# ---------------------------------------------------------------------------
def _make_block_kernel(*, width, wp, me, we, de, has_down, has_sub):
    offs = tuple(i * de * we + (j - 1) * de for i in range(3) for j in range(3))
    base = de + de * we     # scratch column where the a1 interior starts

    def kernel(*refs):
        x_ref, w1_ref, w2_ref, w3_ref, m_ref = refs[:5]
        k = 5
        wd_ref = sub_ref = None
        if has_down:
            wd_ref = refs[k]
            k += 1
        if has_sub:
            sub_ref = refs[k]
            k += 1
        o_ref, b_ref, p_ref = refs[k], refs[k + 1], refs[k + 2]

        x = x_ref[...]                                        # (cin, Min) bf16
        if has_sub:
            xw = jnp.dot(x, sub_ref[...],
                         preferred_element_type=jnp.float32).astype(jnp.bfloat16)
        else:
            xw = x                                            # (cin, Me)

        # conv1 (1x1) + folded BN1 + ReLU; w1 is zero-padded to wp output rows.
        a1 = jnp.maximum(
            jnp.dot(w1_ref[...], xw, preferred_element_type=jnp.float32),
            0.0).astype(jnp.bfloat16)                         # (wp, Me)

        # conv2 (3x3 dilated) as ONE deep-K matmul on an in-VMEM im2col.
        b_ref[...] = jnp.zeros_like(b_ref)
        b_ref[:, base:base + me] = a1
        ml = m_ref[0:1, :]
        mr = m_ref[1:2, :]
        for t, off in enumerate(offs):
            v = b_ref[:, de + off:de + off + me]              # (wp, Me) bf16
            j = t % 3
            if j == 0:
                v = v * ml
            elif j == 2:
                v = v * mr
            p_ref[t * wp:(t + 1) * wp, :] = v
        y2 = jnp.maximum(
            jnp.dot(w2_ref[...], p_ref[...], preferred_element_type=jnp.float32),
            0.0).astype(jnp.bfloat16)                         # (width, Me)

        # conv3 (1x1) + folded BN3 + residual + ReLU (f32 epilogue).
        out = jnp.dot(w3_ref[...], y2, preferred_element_type=jnp.float32)
        if has_down:
            ident = jnp.dot(wd_ref[...], xw, preferred_element_type=jnp.float32)
        else:
            ident = xw.astype(jnp.float32)
        o_ref[...] = jnp.maximum(out + ident, 0.0).astype(o_ref.dtype)

    return kernel


# ---------------------------------------------------------------------------
# Wrappers
# ---------------------------------------------------------------------------
def stem_and_pool(params, x):
    """conv1(7x7/2)+BN+ReLU+maxpool(3x3/2).  One Pallas kernel per image."""
    N, cin, H, W = x.shape
    assert cin == 3 and H % 2 == 0 and W % 2 == 0
    Hph, Wph = (H + 6) // 2, (W + 6) // 2       # per-phase spatial size
    Ho, Wo = H // 2, W // 2                     # stem conv output size
    MV = Ho * Wph                               # computed flat columns
    FLAT = _round_up(Hph * Wph + 3, 128)
    G = Wph + 1

    # Polyphase split of the zero-padded input (4 phases x 8 padded channels).
    xp = jnp.pad(x, ((0, 0), (0, 0), (3, 3), (3, 3)))
    phases = []
    for pi in (0, 1):
        for pj in (0, 1):
            ph = xp[:, :, pi::2, pj::2]                           # (N,3,Hph,Wph)
            phases.append(jnp.pad(ph, ((0, 0), (0, 5), (0, 0), (0, 0))))
    xph = jnp.concatenate(phases, axis=1).reshape(N, 32, Hph * Wph)
    xph = jnp.pad(xph, ((0, 0), (0, 0), (0, FLAT - Hph * Wph)))
    xph = xph.astype(jnp.bfloat16)

    col = np.arange(MV) % Wph
    mask = jnp.asarray((col < Wo).astype(np.float32)[None, :])    # (1, MV)

    kernel = functools.partial(_stem_kernel, wrow=Wph, mv=MV, guard=G)
    flops = 2 * N * 16 * 392 * MV
    bytes_acc = int(xph.size) * 2 + int(params["stem_w"].size) * 2 \
        + int(mask.size) * 4 + N * 16 * MV * 2

    stem_out = pl.pallas_call(
        kernel,
        out_shape=jax.ShapeDtypeStruct((N, 16, MV), jnp.bfloat16),
        grid=(N,),
        in_specs=[
            pl.BlockSpec((None, 32, FLAT), lambda n: (n, 0, 0)),
            pl.BlockSpec((16, 392), lambda n: (0, 0)),
            pl.BlockSpec((1, MV), lambda n: (0, 0)),
        ],
        out_specs=pl.BlockSpec((None, 16, MV), lambda n: (n, 0, 0)),
        scratch_shapes=[pltpu.VMEM((392, MV), jnp.bfloat16),
                        pltpu.VMEM((16, G + MV + G), jnp.float32)],
        compiler_params=pltpu.CompilerParams(
            dimension_semantics=("parallel",),
            vmem_limit_bytes=_VMEM_LIMIT),
        cost_estimate=pl.CostEstimate(flops=flops, transcendentals=0,
                                      bytes_accessed=bytes_acc),
    )(xph, params["stem_w"], mask)

    # Stride-2 decimation of the in-kernel 3x3 max map -> maxpool output.
    m9 = stem_out.reshape(N, 16, Ho, Wph)
    pooled = m9[:, :, 0:Ho:2, 0:Wo:2]                             # (N,16,Ho/2,Wo/2)
    Hq, Wq = Ho // 2, Wo // 2
    return pooled.reshape(N, 16, Hq * Wq), Hq, Wq


def bottleneck_block(x, blk, H, W):
    """One fused Pallas call for a whole Bottleneck block."""
    N, cin, Min = x.shape
    assert Min == H * W and cin == blk["cin"]
    stride, d = blk["stride"], blk["dilation"]
    width, wp, cout4 = blk["width"], blk["wp"], blk["cout4"]
    if stride == 2:
        assert d == 2 and H % 2 == 0 and W % 2 == 0
        He, We, de = H // 2, W // 2, 1          # even-even phase, dilation 1
    else:
        He, We, de = H, W, d
    Me = He * We
    BW = (He + 2 * de) * We + 2 * de
    has_down = blk["wd"] is not None
    has_sub = stride == 2

    wo = np.arange(Me) % We
    masks = jnp.asarray(
        np.stack([(wo >= de), (wo < We - de)]).astype(np.float32),
        dtype=jnp.bfloat16)                                       # (2, Me)

    args = [x, blk["w1"], blk["w2"], blk["w3"], masks]
    in_specs = [
        pl.BlockSpec((None, cin, Min), lambda n: (n, 0, 0)),
        pl.BlockSpec((wp, cin), lambda n: (0, 0)),
        pl.BlockSpec((width, 9 * wp), lambda n: (0, 0)),
        pl.BlockSpec((cout4, width), lambda n: (0, 0)),
        pl.BlockSpec((2, Me), lambda n: (0, 0)),
    ]
    if has_down:
        args.append(blk["wd"])
        in_specs.append(pl.BlockSpec((cout4, cin), lambda n: (0, 0)))
    if has_sub:
        sub = np.zeros((Min, Me), np.float32)
        for r in range(He):
            for c in range(We):
                sub[2 * r * W + 2 * c, r * We + c] = 1.0
        args.append(jnp.asarray(sub, dtype=jnp.bfloat16))
        in_specs.append(pl.BlockSpec((Min, Me), lambda n: (0, 0)))

    kernel = _make_block_kernel(width=width, wp=wp, me=Me, we=We, de=de,
                                has_down=has_down, has_sub=has_sub)
    flops = 2 * N * Me * (wp * cin + width * 9 * wp + cout4 * width
                          + (cout4 * cin if has_down else 0)
                          + (cin * Min if has_sub else 0))
    bytes_acc = sum(int(a.size) * 2 for a in args) + N * cout4 * Me * 2

    out = pl.pallas_call(
        kernel,
        out_shape=jax.ShapeDtypeStruct((N, cout4, Me), jnp.bfloat16),
        grid=(N,),
        in_specs=in_specs,
        out_specs=pl.BlockSpec((None, cout4, Me), lambda n: (n, 0, 0)),
        scratch_shapes=[pltpu.VMEM((wp, BW), jnp.bfloat16),
                        pltpu.VMEM((9 * wp, Me), jnp.bfloat16)],
        compiler_params=pltpu.CompilerParams(
            # v7x: split big blocks over both TensorCores, keep tiny ones whole.
            dimension_semantics=("parallel",) if Me >= 128 else ("arbitrary",),
            vmem_limit_bytes=_VMEM_LIMIT),
        cost_estimate=pl.CostEstimate(flops=flops, transcendentals=0,
                                      bytes_accessed=int(bytes_acc)),
    )(*args)
    return out, He, We


# ---------------------------------------------------------------------------
# Parameters (deterministic init, BN folded into weights, matmul-ready layout)
# ---------------------------------------------------------------------------
def _kaiming(key, shape, fan_out):
    std = (2.0 / fan_out) ** 0.5
    return jax.random.normal(key, shape, jnp.float32) * std


def make_params(key, layers=(1, 1, 1, 1)):
    keys = iter(jax.random.split(key, 256))
    params = {}
    inplanes = 64 // 4          # 16
    expansion = 4
    base_width = 64 // 4        # 16
    dilation = 2                # module sets self.dilation = 2 and never changes it

    # Stem 7x7: (16, 49 taps * 8 padded-channel slots), BN1 scale folded.
    w = _kaiming(next(keys), (inplanes, 3, 7, 7), inplanes * 49) * BN_SCALE
    w = jnp.transpose(w, (0, 2, 3, 1))                   # (16,7,7,3)
    w = jnp.pad(w, ((0, 0), (0, 0), (0, 0), (0, 5)))     # pad cin 3 -> 8
    params["stem_w"] = w.reshape(inplanes, 49 * 8).astype(jnp.bfloat16)

    planes_list = [64 // 4, 128 // 4, 256 // 4, 512 // 4]
    strides = [1, 2, 2, 2]
    for name, planes, stride, n_blocks in zip(
            ["layer1", "layer2", "layer3", "layer4"], planes_list, strides, layers):
        blocks = []
        for b in range(n_blocks):
            s = stride if b == 0 else 1
            width = planes * base_width // 64            # = planes // 4
            wp = _round_up(width, 8)
            cout4 = planes * expansion
            blk = {"stride": s, "dilation": dilation, "width": width,
                   "wp": wp, "cout4": cout4, "cin": inplanes}

            w1 = _kaiming(next(keys), (width, inplanes), width) * BN_SCALE
            blk["w1"] = jnp.pad(w1, ((0, wp - width), (0, 0))).astype(jnp.bfloat16)

            w2 = _kaiming(next(keys), (width, width, 3, 3), width * 9) * BN_SCALE
            w2 = jnp.transpose(w2, (0, 2, 3, 1))          # (out, kh, kw, in)
            w2 = jnp.pad(w2, ((0, 0), (0, 0), (0, 0), (0, wp - width)))
            blk["w2"] = w2.reshape(width, 9 * wp).astype(jnp.bfloat16)

            w3 = _kaiming(next(keys), (cout4, width), cout4) * BN_SCALE
            blk["w3"] = w3.astype(jnp.bfloat16)

            if b == 0 and (s != 1 or inplanes != cout4):
                wd = _kaiming(next(keys), (cout4, inplanes), cout4) * BN_SCALE
                blk["wd"] = wd.astype(jnp.bfloat16)
            else:
                blk["wd"] = None
            blocks.append(blk)
            inplanes = cout4
        params[name] = blocks
    return params


# ---------------------------------------------------------------------------
# Model forward (returns [layer3_out, layer4_out] in NCHW f32, like PyTorch)
# ---------------------------------------------------------------------------
def resnet_forward(params, x):
    N = x.shape[0]
    feat, h, w = stem_and_pool(params, x)
    outs = {}
    for name in ("layer1", "layer2", "layer3", "layer4"):
        for blk in params[name]:
            feat, h, w = bottleneck_block(feat, blk, h, w)
        if name in ("layer3", "layer4"):
            outs[name] = feat.reshape(N, feat.shape[1], h, w).astype(jnp.float32)
    return [outs["layer3"], outs["layer4"]]


# ---------------------------------------------------------------------------
if __name__ == "__main__":
    key = jax.random.PRNGKey(0)
    pkey, xkey = jax.random.split(key)

    # Small ResNet(Bottleneck, [1,1,1,1]) instantiation of the module.
    params = make_params(pkey, layers=(1, 1, 1, 1))
    x = jax.random.normal(xkey, (2, 3, 64, 64), jnp.float32)   # NCHW, like PyTorch

    fwd = jax.jit(functools.partial(resnet_forward, params))
    outs = fwd(x)
    for o in outs:
        jax.block_until_ready(o)

    assert outs[0].shape == (2, 256, 4, 4), outs[0].shape
    assert outs[1].shape == (2, 512, 2, 2), outs[1].shape
    print("KERNEL_OK")
</pallas_src>

<mosaic_0001>
module attributes {stable_mosaic.version = 11 : i64} {
  func.func @_stem_kernel(%arg0: i32, %arg1: memref<1x32x1280xbf16, #tpu.memory_space<vmem>>, %arg2: memref<16x392xbf16, #tpu.memory_space<vmem>>, %arg3: memref<1x1120xf32, #tpu.memory_space<vmem>>, %arg4: memref<1x16x1120xbf16, #tpu.memory_space<vmem>>, %arg5: memref<392x1120xbf16, #tpu.memory_space<vmem>>, %arg6: memref<16x1192xf32, #tpu.memory_space<vmem>>) attributes {dimension_semantics = [#tpu.dimension_semantics<parallel>], iteration_bounds = array<i64: 2>, scalar_prefetch = 0 : i64, scratch_operands = 2 : i64, tpu.core_type = #tpu.core_type<tc>, window_params = [{transform_indices = @transform_0, window_bounds = array<i64: 1, 32, 1280>}, {pipeline_mode = #tpu.pipeline_mode<synchronous>, transform_indices = @transform_1, window_bounds = array<i64: 16, 392>}, {pipeline_mode = #tpu.pipeline_mode<synchronous>, transform_indices = @transform_2, window_bounds = array<i64: 1, 1120>}, {transform_indices = @transform_3, window_bounds = array<i64: 1, 16, 1120>}]} {
    %c0 = arith.constant 0 : index
    %c0_0 = arith.constant 0 : index
    %c0_1 = arith.constant 0 : index
    %0 = vector.load %arg1[%c0, %c0_0, %c0_1] : memref<1x32x1280xbf16, #tpu.memory_space<vmem>>, vector<1x8x1120xbf16>
    %1 = vector.shape_cast %0 : vector<1x8x1120xbf16> to vector<8x1120xbf16>
    %c0_2 = arith.constant 0 : index
    %c0_3 = arith.constant 0 : index
    %2 = vector.load %arg5[%c0_2, %c0_3] : memref<392x1120xbf16, #tpu.memory_space<vmem>>, vector<8x1120xbf16>
    tpu.vector_store %arg5[%c0_2, %c0_3], %1 {strides = array<i32>} : memref<392x1120xbf16, #tpu.memory_space<vmem>>, vector<8x1120xbf16>,
    %c0_4 = arith.constant 0 : index
    %c8 = arith.constant 8 : index
    %c0_5 = arith.constant 0 : index
    %3 = vector.load %arg1[%c0_4, %c8, %c0_5] : memref<1x32x1280xbf16, #tpu.memory_space<vmem>>, vector<1x8x1120xbf16>
    %4 = vector.shape_cast %3 : vector<1x8x1120xbf16> to vector<8x1120xbf16>
    %c8_6 = arith.constant 8 : index
    %c0_7 = arith.constant 0 : index
    %5 = vector.load %arg5[%c8_6, %c0_7] : memref<392x1120xbf16, #tpu.memory_space<vmem>>, vector<8x1120xbf16>
    tpu.vector_store %arg5[%c8_6, %c0_7], %4 {strides = array<i32>} : memref<392x1120xbf16, #tpu.memory_space<vmem>>, vector<8x1120xbf16>,
    %c0_8 = arith.constant 0 : index
    %c0_9 = arith.constant 0 : index
    %c1 = arith.constant 1 : index
    %6 = vector.load %arg1[%c0_8, %c0_9, %c1] : memref<1x32x1280xbf16, #tpu.memory_space<vmem>>, vector<1x8x1120xbf16>
    %7 = vector.shape_cast %6 : vector<1x8x1120xbf16> to vector<8x1120xbf16>
    %c16 = arith.constant 16 : index
    %c0_10 = arith.constant 0 : index
    %8 = vector.load %arg5[%c16, %c0_10] : memref<392x1120xbf16, #tpu.memory_space<vmem>>, vector<8x1120xbf16>
    tpu.vector_store %arg5[%c16, %c0_10], %7 {strides = array<i32>} : memref<392x1120xbf16, #tpu.memory_space<vmem>>, vector<8x1120xbf16>,
    %c0_11 = arith.constant 0 : index
    %c8_12 = arith.constant 8 : index
    %c1_13 = arith.constant 1 : index
    %9 = vector.load %arg1[%c0_11, %c8_12, %c1_13] : memref<1x32x1280xbf16, #tpu.memory_space<vmem>>, vector<1x8x1120xbf16>
    %10 = vector.shape_cast %9 : vector<1x8x1120xbf16> to vector<8x1120xbf16>
    %c24 = arith.constant 24 : index
    %c0_14 = arith.constant 0 : index
    %11 = vector.load %arg5[%c24, %c0_14] : memref<392x1120xbf16, #tpu.memory_space<vmem>>, vector<8x1120xbf16>
    tpu.vector_store %arg5[%c24, %c0_14], %10 {strides = array<i32>} : memref<392x1120xbf16, #tpu.memory_space<vmem>>, vector<8x1120xbf16>,
    %c0_15 = arith.constant 0 : index
    %c0_16 = arith.constant 0 : index
    %c2 = arith.constant 2 : index
    %12 = vector.load %arg1[%c0_15, %c0_16, %c2] : memref<1x32x1280xbf16, #tpu.memory_space<vmem>>, vector<1x8x1120xbf16>
    %13 = vector.shape_cast %12 : vector<1x8x1120xbf16> to vector<8x1120xbf16>
    %c32 = arith.constant 32 : index
    %c0_17 = arith.constant 0 : index
    %14 = vector.load %arg5[%c32, %c0_17] : memref<392x1120xbf16, #tpu.memory_space<vmem>>, vector<8x1120xbf16>
    tpu.vector_store %arg5[%c32, %c0_17], %13 {strides = array<i32>} : memref<392x1120xbf16, #tpu.memory_space<vmem>>, vector<8x1120xbf16>,
    %c0_18 = arith.constant 0 : index
    %c8_19 = arith.constant 8 : index
    %c2_20 = arith.constant 2 : index
    %15 = vector.load %arg1[%c0_18, %c8_19, %c2_20] : memref<1x32x1280xbf16, #tpu.memory_space<vmem>>, vector<1x8x1120xbf16>
    %16 = vector.shape_cast %15 : vector<1x8x1120xbf16> to vector<8x1120xbf16>
    %c40 = arith.constant 40 : index
    %c0_21 = arith.constant 0 : index
    %17 = vector.load %arg5[%c40, %c0_21] : memref<392x1120xbf16, #tpu.memory_space<vmem>>, vector<8x1120xbf16>
    tpu.vector_store %arg5[%c40, %c0_21], %16 {strides = array<i32>} : memref<392x1120xbf16, #tpu.memory_space<vmem>>, vector<8x1120xbf16>,
    %c0_22 = arith.constant 0 : index
    %c0_23 = arith.constant 0 : index
    %c3 = arith.constant 3 : index
    %18 = vector.load %arg1[%c0_22, %c0_23, %c3] : memref<1x32x1280xbf16, #tpu.memory_space<vmem>>, vector<1x8x1120xbf16>
    %19 = vector.shape_cast %18 : vector<1x8x1120xbf16> to vector<8x1120xbf16>
    %c48 = arith.constant 48 : index
    %c0_24 = arith.constant 0 : index
    %20 = vector.load %arg5[%c48, %c0_24] : memref<392x1120xbf16, #tpu.memory_space<vmem>>, vector<8x1120xbf16>
    tpu.vector_store %arg5[%c48, %c0_24], %19 {strides = array<i32>} : memref<392x1120xbf16, #tpu.memory_space<vmem>>, vector<8x1120xbf16>,
    %c0_25 = arith.constant 0 : index
    %c16_26 = arith.constant 16 : index
    %c0_27 = arith.constant 0 : index
    %21 = vector.load %arg1[%c0_25, %c16_26, %c0_27] : memref<1x32x1280xbf16, #tpu.memory_space<vmem>>, vector<1x8x1120xbf16>
    %22 = vector.shape_cast %21 : vector<1x8x1120xbf16> to vector<8x1120xbf16>
    %c56 = arith.constant 56 : index
    %c0_28 = arith.constant 0 : index
    %23 = vector.load %arg5[%c56, %c0_28] : memref<392x1120xbf16, #tpu.memory_space<vmem>>, vector<8x1120xbf16>
    tpu.vector_store %arg5[%c56, %c0_28], %22 {strides = array<i32>} : memref<392x1120xbf16, #tpu.memory_space<vmem>>, vector<8x1120xbf16>,
    %c0_29 = arith.constant 0 : index
    %c24_30 = arith.constant 24 : index
    %c0_31 = arith.constant 0 : index
    %24 = vector.load %arg1[%c0_29, %c24_30, %c0_31] : memref<1x32x1280xbf16, #tpu.memory_space<vmem>>, vector<1x8x1120xbf16>
    %25 = vector.shape_cast %24 : vector<1x8x1120xbf16> to vector<8x1120xbf16>
    %c64 = arith.constant 64 : index
    %c0_32 = arith.constant 0 : index
    %26 = vector.load %arg5[%c64, %c0_32] : memref<392x1120xbf16, #tpu.memory_space<vmem>>, vector<8x1120xbf16>
    tpu.vector_store %arg5[%c64, %c0_32], %25 {strides = array<i32>} : memref<392x1120xbf16, #tpu.memory_space<vmem>>, vector<8x1120xbf16>,
    %c0_33 = arith.constant 0 : index
    %c16_34 = arith.constant 16 : index
    %c1_35 = arith.constant 1 : index
    %27 = vector.load %arg1[%c0_33, %c16_34, %c1_35] : memref<1x32x1280xbf16, #tpu.memory_space<vmem>>, vector<1x8x1120xbf16>
    %28 = vector.shape_cast %27 : vector<1x8x1120xbf16> to vector<8x1120xbf16>
    %c72 = arith.constant 72 : index
    %c0_36 = arith.constant 0 : index
    %29 = vector.load %arg5[%c72, %c0_36] : memref<392x1120xbf16, #tpu.memory_space<vmem>>, vector<8x1120xbf16>
    tpu.vector_store %arg5[%c72, %c0_36], %28 {strides = array<i32>} : memref<392x1120xbf16, #tpu.memory_space<vmem>>, vector<8x1120xbf16>,
    %c0_37 = arith.constant 0 : index
    %c24_38 = arith.constant 24 : index
    %c1_39 = arith.constant 1 : index
    %30 = vector.load %arg1[%c0_37, %c24_38, %c1_39] : memref<1x32x1280xbf16, #tpu.memory_space<vmem>>, vector<1x8x1120xbf16>
    %31 = vector.shape_cast %30 : vector<1x8x1120xbf16> to vector<8x1120xbf16>
    %c80 = arith.constant 80 : index
    %c0_40 = arith.constant 0 : index
    %32 = vector.load %arg5[%c80, %c0_40] : memref<392x1120xbf16, #tpu.memory_space<vmem>>, vector<8x1120xbf16>
    tpu.vector_store %arg5[%c80, %c0_40], %31 {strides = array<i32>} : memref<392x1120xbf16, #tpu.memory_space<vmem>>, vector<8x1120xbf16>,
    %c0_41 = arith.constant 0 : index
    %c16_42 = arith.constant 16 : index
    %c2_43 = arith.constant 2 : index
    %33 = vector.load %arg1[%c0_41, %c16_42, %c2_43] : memref<1x32x1280xbf16, #tpu.memory_space<vmem>>, vector<1x8x1120xbf16>
    %34 = vector.shape_cast %33 : vector<1x8x1120xbf16> to vector<8x1120xbf16>
    %c88 = arith.constant 88 : index
    %c0_44 = arith.constant 0 : index
    %35 = vector.load %arg5[%c88, %c0_44] : memref<392x1120xbf16, #tpu.memory_space<vmem>>, vector<8x1120xbf16>
    tpu.vector_store %arg5[%c88, %c0_44], %34 {strides = array<i32>} : memref<392x1120xbf16, #tpu.memory_space<vmem>>, vector<8x1120xbf16>,
    %c0_45 = arith.constant 0 : index
    %c24_46 = arith.constant 24 : index
    %c2_47 = arith.constant 2 : index
    %36 = vector.load %arg1[%c0_45, %c24_46, %c2_47] : memref<1x32x1280xbf16, #tpu.memory_space<vmem>>, vector<1x8x1120xbf16>
    %37 = vector.shape_cast %36 : vector<1x8x1120xbf16> to vector<8x1120xbf16>
    %c96 = arith.constant 96 : index
    %c0_48 = arith.constant 0 : index
    %38 = vector.load %arg5[%c96, %c0_48] : memref<392x1120xbf16, #tpu.memory_space<vmem>>, vector<8x1120xbf16>
    tpu.vector_store %arg5[%c96, %c0_48], %37 {strides = array<i32>} : memref<392x1120xbf16, #tpu.memory_space<vmem>>, vector<8x1120xbf16>,
    %c0_49 = arith.constant 0 : index
    %c16_50 = arith.constant 16 : index
    %c3_51 = arith.constant 3 : index
    %39 = vector.load %arg1[%c0_49, %c16_50, %c3_51] : memref<1x32x1280xbf16, #tpu.memory_space<vmem>>, vector<1x8x1120xbf16>
    %40 = vector.shape_cast %39 : vector<1x8x1120xbf16> to vector<8x1120xbf16>
    %c104 = arith.constant 104 : index
    %c0_52 = arith.constant 0 : index
    %41 = vector.load %arg5[%c104, %c0_52] : memref<392x1120xbf16, #tpu.memory_space<vmem>>, vector<8x1120xbf16>
    tpu.vector_store %arg5[%c104, %c0_52], %40 {strides = array<i32>} : memref<392x1120xbf16, #tpu.memory_space<vmem>>, vector<8x1120xbf16>,
    %c0_53 = arith.constant 0 : index
    %c0_54 = arith.constant 0 : index
    %c35 = arith.constant 35 : index
    %42 = vector.load %arg1[%c0_53, %c0_54, %c35] : memref<1x32x1280xbf16, #tpu.memory_space<vmem>>, vector<1x8x1120xbf16>
    %43 = vector.shape_cast %42 : vector<1x8x1120xbf16> to vector<8x1120xbf16>
    %c112 = arith.constant 112 : index
    %c0_55 = arith.constant 0 : index
    %44 = vector.load %arg5[%c112, %c0_55] : memref<392x1120xbf16, #tpu.memory_space<vmem>>, vector<8x1120xbf16>
    tpu.vector_store %arg5[%c112, %c0_55], %43 {strides = array<i32>} : memref<392x1120xbf16, #tpu.memory_space<vmem>>, vector<8x1120xbf16>,
    %c0_56 = arith.constant 0 : index
    %c8_57 = arith.constant 8 : index
    %c35_58 = arith.constant 35 : index
    %45 = vector.load %arg1[%c0_56, %c8_57, %c35_58] : memref<1x32x1280xbf16, #tpu.memory_space<vmem>>, vector<1x8x1120xbf16>
    %46 = vector.shape_cast %45 : vector<1x8x1120xbf16> to vector<8x1120xbf16>
    %c120 = arith.constant 120 : index
    %c0_59 = arith.constant 0 : index
    %47 = vector.load %arg5[%c120, %c0_59] : memref<392x1120xbf16, #tpu.memory_space<vmem>>, vector<8x1120xbf16>
    tpu.vector_store %arg5[%c120, %c0_59], %46 {strides = array<i32>} : memref<392x1120xbf16, #tpu.memory_space<vmem>>, vector<8x1120xbf16>,
    %c0_60 = arith.constant 0 : index
    %c0_61 = arith.constant 0 : index
    %c36 = arith.constant 36 : index
    %48 = vector.load %arg1[%c0_60, %c0_61, %c36] : memref<1x32x1280xbf16, #tpu.memory_space<vmem>>, vector<1x8x1120xbf16>
    %49 = vector.shape_cast %48 : vector<1x8x1120xbf16> to vector<8x1120xbf16>
    %c128 = arith.constant 128 : index
    %c0_62 = arith.constant 0 : index
    %50 = vector.load %arg5[%c128, %c0_62] : memref<392x1120xbf16, #tpu.memory_space<vmem>>, vector<8x1120xbf16>
    tpu.vector_store %arg5[%c128, %c0_62], %49 {strides = array<i32>} : memref<392x1120xbf16, #tpu.memory_space<vmem>>, vector<8x1120xbf16>,
    %c0_63 = arith.constant 0 : index
    %c8_64 = arith.constant 8 : index
    %c36_65 = arith.constant 36 : index
    %51 = vector.load %arg1[%c0_63, %c8_64, %c36_65] : memref<1x32x1280xbf16, #tpu.memory_space<vmem>>, vector<1x8x1120xbf16>
    %52 = vector.shape_cast %51 : vector<1x8x1120xbf16> to vector<8x1120xbf16>
    %c136 = arith.constant 136 : index
    %c0_66 = arith.constant 0 : index
    %53 = vector.load %arg5[%c136, %c0_66] : memref<392x1120xbf16, #tpu.memory_space<vmem>>, vector<8x1120xbf16>
    tpu.vector_store %arg5[%c136, %c0_66], %52 {strides = array<i32>} : memref<392x1120xbf16, #tpu.memory_space<vmem>>, vector<8x1120xbf16>,
    %c0_67 = arith.constant 0 : index
    %c0_68 = arith.constant 0 : index
    %c37 = arith.constant 37 : index
    %54 = vector.load %arg1[%c0_67, %c0_68, %c37] : memref<1x32x1280xbf16, #tpu.memory_space<vmem>>, vector<1x8x1120xbf16>
    %55 = vector.shape_cast %54 : vector<1x8x1120xbf16> to vector<8x1120xbf16>
    %c144 = arith.constant 144 : index
    %c0_69 = arith.constant 0 : index
    %56 = vector.load %arg5[%c144, %c0_69] : memref<392x1120xbf16, #tpu.memory_space<vmem>>, vector<8x1120xbf16>
    tpu.vector_store %arg5[%c144, %c0_69], %55 {strides = array<i32>} : memref<392x1120xbf16, #tpu.memory_space<vmem>>, vector<8x1120xbf16>,
    %c0_70 = arith.constant 0 : index
    %c8_71 = arith.constant 8 : index
    %c37_72 = arith.constant 37 : index
    %57 = vector.load %arg1[%c0_70, %c8_71, %c37_72] : memref<1x32x1280xbf16, #tpu.memory_space<vmem>>, vector<1x8x1120xbf16>
    %58 = vector.shape_cast %57 : vector<1x8x1120xbf16> to vector<8x1120xbf16>
    %c152 = arith.constant 152 : index
    %c0_73 = arith.constant 0 : index
    %59 = vector.load %arg5[%c152, %c0_73] : memref<392x1120xbf16, #tpu.memory_space<vmem>>, vector<8x1120xbf16>
    tpu.vector_store %arg5[%c152, %c0_73], %58 {strides = array<i32>} : memref<392x1120xbf16, #tpu.memory_space<vmem>>, vector<8x1120xbf16>,
    %c0_74 = arith.constant 0 : index
    %c0_75 = arith.constant 0 : index
    %c38 = arith.constant 38 : index
    %60 = vector.load %arg1[%c0_74, %c0_75, %c38] : memref<1x32x1280xbf16, #tpu.memory_space<vmem>>, vector<1x8x1120xbf16>
    %61 = vector.shape_cast %60 : vector<1x8x1120xbf16> to vector<8x1120xbf16>
    %c160 = arith.constant 160 : index
    %c0_76 = arith.constant 0 : index
    %62 = vector.load %arg5[%c160, %c0_76] : memref<392x1120xbf16, #tpu.memory_space<vmem>>, vector<8x1120xbf16>
    tpu.vector_store %arg5[%c160, %c0_76], %61 {strides = array<i32>} : memref<392x1120xbf16, #tpu.memory_space<vmem>>, vector<8x1120xbf16>,
    %c0_77 = arith.constant 0 : index
    %c16_78 = arith.constant 16 : index
    %c35_79 = arith.constant 35 : index
    %63 = vector.load %arg1[%c0_77, %c16_78, %c35_79] : memref<1x32x1280xbf16, #tpu.memory_space<vmem>>, vector<1x8x1120xbf16>
    %64 = vector.shape_cast %63 : vector<1x8x1120xbf16> to vector<8x1120xbf16>
    %c168 = arith.constant 168 : index
    %c0_80 = arith.constant 0 : index
    %65 = vector.load %arg5[%c168, %c0_80] : memref<392x1120xbf16, #tpu.memory_space<vmem>>, vector<8x1120xbf16>
    tpu.vector_store %arg5[%c168, %c0_80], %64 {strides = array<i32>} : memref<392x1120xbf16, #tpu.memory_space<vmem>>, vector<8x1120xbf16>,
    %c0_81 = arith.constant 0 : index
    %c24_82 = arith.constant 24 : index
    %c35_83 = arith.constant 35 : index
    %66 = vector.load %arg1[%c0_81, %c24_82, %c35_83] : memref<1x32x1280xbf16, #tpu.memory_space<vmem>>, vector<1x8x1120xbf16>
    %67 = vector.shape_cast %66 : vector<1x8x1120xbf16> to vector<8x1120xbf16>
    %c176 = arith.constant 176 : index
    %c0_84 = arith.constant 0 : index
    %68 = vector.load %arg5[%c176, %c0_84] : memref<392x1120xbf16, #tpu.memory_space<vmem>>, vector<8x1120xbf16>
    tpu.vector_store %arg5[%c176, %c0_84], %67 {strides = array<i32>} : memref<392x1120xbf16, #tpu.memory_space<vmem>>, vector<8x1120xbf16>,
    %c0_85 = arith.constant 0 : index
    %c16_86 = arith.constant 16 : index
    %c36_87 = arith.constant 36 : index
    %69 = vector.load %arg1[%c0_85, %c16_86, %c36_87] : memref<1x32x1280xbf16, #tpu.memory_space<vmem>>, vector<1x8x1120xbf16>
    %70 = vector.shape_cast %69 : vector<1x8x1120xbf16> to vector<8x1120xbf16>
    %c184 = arith.constant 184 : index
    %c0_88 = arith.constant 0 : index
    %71 = vector.load %arg5[%c184, %c0_88] : memref<392x1120xbf16, #tpu.memory_space<vmem>>, vector<8x1120xbf16>
    tpu.vector_store %arg5[%c184, %c0_88], %70 {strides = array<i32>} : memref<392x1120xbf16, #tpu.memory_space<vmem>>, vector<8x1120xbf16>,
    %c0_89 = arith.constant 0 : index
    %c24_90 = arith.constant 24 : index
    %c36_91 = arith.constant 36 : index
    %72 = vector.load %arg1[%c0_89, %c24_90, %c36_91] : memref<1x32x1280xbf16, #tpu.memory_space<vmem>>, vector<1x8x1120xbf16>
    %73 = vector.shape_cast %72 : vector<1x8x1120xbf16> to vector<8x1120xbf16>
    %c192 = arith.constant 192 : index
    %c0_92 = arith.constant 0 : index
    %74 = vector.load %arg5[%c192, %c0_92] : memref<392x1120xbf16, #tpu.memory_space<vmem>>, vector<8x1120xbf16>
    tpu.vector_store %arg5[%c192, %c0_92], %73 {strides = array<i32>} : memref<392x1120xbf16, #tpu.memory_space<vmem>>, vector<8x1120xbf16>,
    %c0_93 = arith.constant 0 : index
    %c16_94 = arith.constant 16 : index
    %c37_95 = arith.constant 37 : index
    %75 = vector.load %arg1[%c0_93, %c16_94, %c37_95] : memref<1x32x1280xbf16, #tpu.memory_space<vmem>>, vector<1x8x1120xbf16>
    %76 = vector.shape_cast %75 : vector<1x8x1120xbf16> to vector<8x1120xbf16>
    %c200 = arith.constant 200 : index
    %c0_96 = arith.constant 0 : index
    %77 = vector.load %arg5[%c200, %c0_96] : memref<392x1120xbf16, #tpu.memory_space<vmem>>, vector<8x1120xbf16>
    tpu.vector_store %arg5[%c200, %c0_96], %76 {strides = array<i32>} : memref<392x1120xbf16, #tpu.memory_space<vmem>>, vector<8x1120xbf16>,
    %c0_97 = arith.constant 0 : index
    %c24_98 = arith.constant 24 : index
    %c37_99 = arith.constant 37 : index
    %78 = vector.load %arg1[%c0_97, %c24_98, %c37_99] : memref<1x32x1280xbf16, #tpu.memory_space<vmem>>, vector<1x8x1120xbf16>
    %79 = vector.shape_cast %78 : vector<1x8x1120xbf16> to vector<8x1120xbf16>
    %c208 = arith.constant 208 : index
    %c0_100 = arith.constant 0 : index
    %80 = vector.load %arg5[%c208, %c0_100] : memref<392x1120xbf16, #tpu.memory_space<vmem>>, vector<8x1120xbf16>
    tpu.vector_store %arg5[%c208, %c0_100], %79 {strides = array<i32>} : memref<392x1120xbf16, #tpu.memory_space<vmem>>, vector<8x1120xbf16>,
    %c0_101 = arith.constant 0 : index
    %c16_102 = arith.constant 16 : index
    %c38_103 = arith.constant 38 : index
    %81 = vector.load %arg1[%c0_101, %c16_102, %c38_103] : memref<1x32x1280xbf16, #tpu.memory_space<vmem>>, vector<1x8x1120xbf16>
    %82 = vector.shape_cast %81 : vector<1x8x1120xbf16> to vector<8x1120xbf16>
    %c216 = arith.constant 216 : index
    %c0_104 = arith.constant 0 : index
    %83 = vector.load %arg5[%c216, %c0_104] : memref<392x1120xbf16, #tpu.memory_space<vmem>>, vector<8x1120xbf16>
    tpu.vector_store %arg5[%c216, %c0_104], %82 {strides = array<i32>} : memref<392x1120xbf16, #tpu.memory_space<vmem>>, vector<8x1120xbf16>,
    %c0_105 = arith.constant 0 : index
    %c0_106 = arith.constant 0 : index
    %c70 = arith.constant 70 : index
    %84 = vector.load %arg1[%c0_105, %c0_106, %c70] : memref<1x32x1280xbf16, #tpu.memory_space<vmem>>, vector<1x8x1120xbf16>
    %85 = vector.shape_cast %84 : vector<1x8x1120xbf16> to vector<8x1120xbf16>
    %c224 = arith.constant 224 : index
    %c0_107 = arith.constant 0 : index
    %86 = vector.load %arg5[%c224, %c0_107] : memref<392x1120xbf16, #tpu.memory_space<vmem>>, vector<8x1120xbf16>
    tpu.vector_store %arg5[%c224, %c0_107], %85 {strides = array<i32>} : memref<392x1120xbf16, #tpu.memory_space<vmem>>, vector<8x1120xbf16>,
    %c0_108 = arith.constant 0 : index
    %c8_109 = arith.constant 8 : index
    %c70_110 = arith.constant 70 : index
    %87 = vector.load %arg1[%c0_108, %c8_109, %c70_110] : memref<1x32x1280xbf16, #tpu.memory_space<vmem>>, vector<1x8x1120xbf16>
    %88 = vector.shape_cast %87 : vector<1x8x1120xbf16> to vector<8x1120xbf16>
    %c232 = arith.constant 232 : index
    %c0_111 = arith.constant 0 : index
    %89 = vector.load %arg5[%c232, %c0_111] : memref<392x1120xbf16, #tpu.memory_space<vmem>>, vector<8x1120xbf16>
    tpu.vector_store %arg5[%c232, %c0_111], %88 {strides = array<i32>} : memref<392x1120xbf16, #tpu.memory_space<vmem>>, vector<8x1120xbf16>,
    %c0_112 = arith.constant 0 : index
    %c0_113 = arith.constant 0 : index
    %c71 = arith.constant 71 : index
    %90 = vector.load %arg1[%c0_112, %c0_113, %c71] : memref<1x32x1280xbf16, #tpu.memory_space<vmem>>, vector<1x8x1120xbf16>
    %91 = vector.shape_cast %90 : vector<1x8x1120xbf16> to vector<8x1120xbf16>
    %c240 = arith.constant 240 : index
    %c0_114 = arith.constant 0 : index
    %92 = vector.load %arg5[%c240, %c0_114] : memref<392x1120xbf16, #tpu.memory_space<vmem>>, vector<8x1120xbf16>
    tpu.vector_store %arg5[%c240, %c0_114], %91 {strides = array<i32>} : memref<392x1120xbf16, #tpu.memory_space<vmem>>, vector<8x1120xbf16>,
    %c0_115 = arith.constant 0 : index
    %c8_116 = arith.constant 8 : index
    %c71_117 = arith.constant 71 : index
    %93 = vector.load %arg1[%c0_115, %c8_116, %c71_117] : memref<1x32x1280xbf16, #tpu.memory_space<vmem>>, vector<1x8x1120xbf16>
    %94 = vector.shape_cast %93 : vector<1x8x1120xbf16> to vector<8x1120xbf16>
    %c248 = arith.constant 248 : index
    %c0_118 = arith.constant 0 : index
    %95 = vector.load %arg5[%c248, %c0_118] : memref<392x1120xbf16, #tpu.memory_space<vmem>>, vector<8x1120xbf16>
    tpu.vector_store %arg5[%c248, %c0_118], %94 {strides = array<i32>} : memref<392x1120xbf16, #tpu.memory_space<vmem>>, vector<8x1120xbf16>,
    %c0_119 = arith.constant 0 : index
    %c0_120 = arith.constant 0 : index
    %c72_121 = arith.constant 72 : index
    %96 = vector.load %arg1[%c0_119, %c0_120, %c72_121] : memref<1x32x1280xbf16, #tpu.memory_space<vmem>>, vector<1x8x1120xbf16>
    %97 = vector.shape_cast %96 : vector<1x8x1120xbf16> to vector<8x1120xbf16>
    %c256 = arith.constant 256 : index
    %c0_122 = arith.constant 0 : index
    %98 = vector.load %arg5[%c256, %c0_122] : memref<392x1120xbf16, #tpu.memory_space<vmem>>, vector<8x1120xbf16>
    tpu.vector_store %arg5[%c256, %c0_122], %97 {strides = array<i32>} : memref<392x1120xbf16, #tpu.memory_space<vmem>>, vector<8x1120xbf16>,
    %c0_123 = arith.constant 0 : index
    %c8_124 = arith.constant 8 : index
    %c72_125 = arith.constant 72 : index
    %99 = vector.load %arg1[%c0_123, %c8_124, %c72_125] : memref<1x32x1280xbf16, #tpu.memory_space<vmem>>, vector<1x8x1120xbf16>
    %100 = vector.shape_cast %99 : vector<1x8x1120xbf16> to vector<8x1120xbf16>
    %c264 = arith.constant 264 : index
    %c0_126 = arith.constant 0 : index
    %101 = vector.load %arg5[%c264, %c0_126] : memref<392x1120xbf16, #tpu.memory_space<vmem>>, vector<8x1120xbf16>
    tpu.vector_store %arg5[%c264, %c0_126], %100 {strides = array<i32>} : memref<392x1120xbf16, #tpu.memory_space<vmem>>, vector<8x1120xbf16>,
    %c0_127 = arith.constant 0 : index
    %c0_128 = arith.constant 0 : index
    %c73 = arith.constant 73 : index
    %102 = vector.load %arg1[%c0_127, %c0_128, %c73] : memref<1x32x1280xbf16, #tpu.memory_space<vmem>>, vector<1x8x1120xbf16>
    %103 = vector.shape_cast %102 : vector<1x8x1120xbf16> to vector<8x1120xbf16>
    %c272 = arith.constant 272 : index
    %c0_129 = arith.constant 0 : index
    %104 = vector.load %arg5[%c272, %c0_129] : memref<392x1120xbf16, #tpu.memory_space<vmem>>, vector<8x1120xbf16>
    tpu.vector_store %arg5[%c272, %c0_129], %103 {strides = array<i32>} : memref<392x1120xbf16, #tpu.memory_space<vmem>>, vector<8x1120xbf16>,
    %c0_130 = arith.constant 0 : index
    %c16_131 = arith.constant 16 : index
    %c70_132 = arith.constant 70 : index
    %105 = vector.load %arg1[%c0_130, %c16_131, %c70_132] : memref<1x32x1280xbf16, #tpu.memory_space<vmem>>, vector<1x8x1120xbf16>
    %106 = vector.shape_cast %105 : vector<1x8x1120xbf16> to vector<8x1120xbf16>
    %c280 = arith.constant 280 : index
    %c0_133 = arith.constant 0 : index
    %107 = vector.load %arg5[%c280, %c0_133] : memref<392x1120xbf16, #tpu.memory_space<vmem>>, vector<8x1120xbf16>
    tpu.vector_store %arg5[%c280, %c0_133], %106 {strides = array<i32>} : memref<392x1120xbf16, #tpu.memory_space<vmem>>, vector<8x1120xbf16>,
    %c0_134 = arith.constant 0 : index
    %c24_135 = arith.constant 24 : index
    %c70_136 = arith.constant 70 : index
    %108 = vector.load %arg1[%c0_134, %c24_135, %c70_136] : memref<1x32x1280xbf16, #tpu.memory_space<vmem>>, vector<1x8x1120xbf16>
    %109 = vector.shape_cast %108 : vector<1x8x1120xbf16> to vector<8x1120xbf16>
    %c288 = arith.constant 288 : index
    %c0_137 = arith.constant 0 : index
    %110 = vector.load %arg5[%c288, %c0_137] : memref<392x1120xbf16, #tpu.memory_space<vmem>>, vector<8x1120xbf16>
    tpu.vector_store %arg5[%c288, %c0_137], %109 {strides = array<i32>} : memref<392x1120xbf16, #tpu.memory_space<vmem>>, vector<8x1120xbf16>,
    %c0_138 = arith.constant 0 : index
    %c16_139 = arith.constant 16 : index
    %c71_140 = arith.constant 71 : index
    %111 = vector.load %arg1[%c0_138, %c16_139, %c71_140] : memref<1x32x1280xbf16, #tpu.memory_space<vmem>>, vector<1x8x1120xbf16>
    %112 = vector.shape_cast %111 : vector<1x8x1120xbf16> to vector<8x1120xbf16>
    %c296 = arith.constant 296 : index
    %c0_141 = arith.constant 0 : index
    %113 = vector.load %arg5[%c296, %c0_141] : memref<392x1120xbf16, #tpu.memory_space<vmem>>, vector<8x1120xbf16>
    tpu.vector_store %arg5[%c296, %c0_141], %112 {strides = array<i32>} : memref<392x1120xbf16, #tpu.memory_space<vmem>>, vector<8x1120xbf16>,
    %c0_142 = arith.constant 0 : index
    %c24_143 = arith.constant 24 : index
    %c71_144 = arith.constant 71 : index
    %114 = vector.load %arg1[%c0_142, %c24_143, %c71_144] : memref<1x32x1280xbf16, #tpu.memory_space<vmem>>, vector<1x8x1120xbf16>
    %115 = vector.shape_cast %114 : vector<1x8x1120xbf16> to vector<8x1120xbf16>
    %c304 = arith.constant 304 : index
    %c0_145 = arith.constant 0 : index
    %116 = vector.load %arg5[%c304, %c0_145] : memref<392x1120xbf16, #tpu.memory_space<vmem>>, vector<8x1120xbf16>
    tpu.vector_store %arg5[%c304, %c0_145], %115 {strides = array<i32>} : memref<392x1120xbf16, #tpu.memory_space<vmem>>, vector<8x1120xbf16>,
    %c0_146 = arith.constant 0 : index
    %c16_147 = arith.constant 16 : index
    %c72_148 = arith.constant 72 : index
    %117 = vector.load %arg1[%c0_146, %c16_147, %c72_148] : memref<1x32x1280xbf16, #tpu.memory_space<vmem>>, vector<1x8x1120xbf16>
    %118 = vector.shape_cast %117 : vector<1x8x1120xbf16> to vector<8x1120xbf16>
    %c312 = arith.constant 312 : index
    %c0_149 = arith.constant 0 : index
    %119 = vector.load %arg5[%c312, %c0_149] : memref<392x1120xbf16, #tpu.memory_space<vmem>>, vector<8x1120xbf16>
    tpu.vector_store %arg5[%c312, %c0_149], %118 {strides = array<i32>} : memref<392x1120xbf16, #tpu.memory_space<vmem>>, vector<8x1120xbf16>,
    %c0_150 = arith.constant 0 : index
    %c24_151 = arith.constant 24 : index
    %c72_152 = arith.constant 72 : index
    %120 = vector.load %arg1[%c0_150, %c24_151, %c72_152] : memref<1x32x1280xbf16, #tpu.memory_space<vmem>>, vector<1x8x1120xbf16>
    %121 = vector.shape_cast %120 : vector<1x8x1120xbf16> to vector<8x1120xbf16>
    %c320 = arith.constant 320 : index
    %c0_153 = arith.constant 0 : index
    %122 = vector.load %arg5[%c320, %c0_153] : memref<392x1120xbf16, #tpu.memory_space<vmem>>, vector<8x1120xbf16>
    tpu.vector_store %arg5[%c320, %c0_153], %121 {strides = array<i32>} : memref<392x1120xbf16, #tpu.memory_space<vmem>>, vector<8x1120xbf16>,
    %c0_154 = arith.constant 0 : index
    %c16_155 = arith.constant 16 : index
    %c73_156 = arith.constant 73 : index
    %123 = vector.load %arg1[%c0_154, %c16_155, %c73_156] : memref<1x32x1280xbf16, #tpu.memory_space<vmem>>, vector<1x8x1120xbf16>
    %124 = vector.shape_cast %123 : vector<1x8x1120xbf16> to vector<8x1120xbf16>
    %c328 = arith.constant 328 : index
    %c0_157 = arith.constant 0 : index
    %125 = vector.load %arg5[%c328, %c0_157] : memref<392x1120xbf16, #tpu.memory_space<vmem>>, vector<8x1120xbf16>
    tpu.vector_store %arg5[%c328, %c0_157], %124 {strides = array<i32>} : memref<392x1120xbf16, #tpu.memory_space<vmem>>, vector<8x1120xbf16>,
    %c0_158 = arith.constant 0 : index
    %c0_159 = arith.constant 0 : index
    %c105 = arith.constant 105 : index
    %126 = vector.load %arg1[%c0_158, %c0_159, %c105] : memref<1x32x1280xbf16, #tpu.memory_space<vmem>>, vector<1x8x1120xbf16>
    %127 = vector.shape_cast %126 : vector<1x8x1120xbf16> to vector<8x1120xbf16>
    %c336 = arith.constant 336 : index
    %c0_160 = arith.constant 0 : index
    %128 = vector.load %arg5[%c336, %c0_160] : memref<392x1120xbf16, #tpu.memory_space<vmem>>, vector<8x1120xbf16>
    tpu.vector_store %arg5[%c336, %c0_160], %127 {strides = array<i32>} : memref<392x1120xbf16, #tpu.memory_space<vmem>>, vector<8x1120xbf16>,
    %c0_161 = arith.constant 0 : index
    %c8_162 = arith.constant 8 : index
    %c105_163 = arith.constant 105 : index
    %129 = vector.load %arg1[%c0_161, %c8_162, %c105_163] : memref<1x32x1280xbf16, #tpu.memory_space<vmem>>, vector<1x8x1120xbf16>
    %130 = vector.shape_cast %129 : vector<1x8x1120xbf16> to vector<8x1120xbf16>
    %c344 = arith.constant 344 : index
    %c0_164 = arith.constant 0 : index
    %131 = vector.load %arg5[%c344, %c0_164] : memref<392x1120xbf16, #tpu.memory_space<vmem>>, vector<8x1120xbf16>
    tpu.vector_store %arg5[%c344, %c0_164], %130 {strides = array<i32>} : memref<392x1120xbf16, #tpu.memory_space<vmem>>, vector<8x1120xbf16>,
    %c0_165 = arith.constant 0 : index
    %c0_166 = arith.constant 0 : index
    %c106 = arith.constant 106 : index
    %132 = vector.load %arg1[%c0_165, %c0_166, %c106] : memref<1x32x1280xbf16, #tpu.memory_space<vmem>>, vector<1x8x1120xbf16>
    %133 = vector.shape_cast %132 : vector<1x8x1120xbf16> to vector<8x1120xbf16>
    %c352 = arith.constant 352 : index
    %c0_167 = arith.constant 0 : index
    %134 = vector.load %arg5[%c352, %c0_167] : memref<392x1120xbf16, #tpu.memory_space<vmem>>, vector<8x1120xbf16>
    tpu.vector_store %arg5[%c352, %c0_167], %133 {strides = array<i32>} : memref<392x1120xbf16, #tpu.memory_space<vmem>>, vector<8x1120xbf16>,
    %c0_168 = arith.constant 0 : index
    %c8_169 = arith.constant 8 : index
    %c106_170 = arith.constant 106 : index
    %135 = vector.load %arg1[%c0_168, %c8_169, %c106_170] : memref<1x32x1280xbf16, #tpu.memory_space<vmem>>, vector<1x8x1120xbf16>
    %136 = vector.shape_cast %135 : vector<1x8x1120xbf16> to vector<8x1120xbf16>
    %c360 = arith.constant 360 : index
    %c0_171 = arith.constant 0 : index
    %137 = vector.load %arg5[%c360, %c0_171] : memref<392x1120xbf16, #tpu.memory_space<vmem>>, vector<8x1120xbf16>
    tpu.vector_store %arg5[%c360, %c0_171], %136 {strides = array<i32>} : memref<392x1120xbf16, #tpu.memory_space<vmem>>, vector<8x1120xbf16>,
    %c0_172 = arith.constant 0 : index
    %c0_173 = arith.constant 0 : index
    %c107 = arith.constant 107 : index
    %138 = vector.load %arg1[%c0_172, %c0_173, %c107] : memref<1x32x1280xbf16, #tpu.memory_space<vmem>>, vector<1x8x1120xbf16>
    %139 = vector.shape_cast %138 : vector<1x8x1120xbf16> to vector<8x1120xbf16>
    %c368 = arith.constant 368 : index
    %c0_174 = arith.constant 0 : index
    %140 = vector.load %arg5[%c368, %c0_174] : memref<392x1120xbf16, #tpu.memory_space<vmem>>, vector<8x1120xbf16>
    tpu.vector_store %arg5[%c368, %c0_174], %139 {strides = array<i32>} : memref<392x1120xbf16, #tpu.memory_space<vmem>>, vector<8x1120xbf16>,
    %c0_175 = arith.constant 0 : index
    %c8_176 = arith.constant 8 : index
    %c107_177 = arith.constant 107 : index
    %141 = vector.load %arg1[%c0_175, %c8_176, %c107_177] : memref<1x32x1280xbf16, #tpu.memory_space<vmem>>, vector<1x8x1120xbf16>
    %142 = vector.shape_cast %141 : vector<1x8x1120xbf16> to vector<8x1120xbf16>
    %c376 = arith.constant 376 : index
    %c0_178 = arith.constant 0 : index
    %143 = vector.load %arg5[%c376, %c0_178] : memref<392x1120xbf16, #tpu.memory_space<vmem>>, vector<8x1120xbf16>
    tpu.vector_store %arg5[%c376, %c0_178], %142 {strides = array<i32>} : memref<392x1120xbf16, #tpu.memory_space<vmem>>, vector<8x1120xbf16>,
    %c0_179 = arith.constant 0 : index
    %c0_180 = arith.constant 0 : index
    %c108 = arith.constant 108 : index
    %144 = vector.load %arg1[%c0_179, %c0_180, %c108] : memref<1x32x1280xbf16, #tpu.memory_space<vmem>>, vector<1x8x1120xbf16>
    %145 = vector.shape_cast %144 : vector<1x8x1120xbf16> to vector<8x1120xbf16>
    %c384 = arith.constant 384 : index
    %c0_181 = arith.constant 0 : index
    %146 = vector.load %arg5[%c384, %c0_181] : memref<392x1120xbf16, #tpu.memory_space<vmem>>, vector<8x1120xbf16>
    tpu.vector_store %arg5[%c384, %c0_181], %145 {strides = array<i32>} : memref<392x1120xbf16, #tpu.memory_space<vmem>>, vector<8x1120xbf16>,
    %c0_182 = arith.constant 0 : index
    %c0_183 = arith.constant 0 : index
    %147 = vector.load %arg2[%c0_182, %c0_183] : memref<16x392xbf16, #tpu.memory_space<vmem>>, vector<16x392xbf16>
    %c0_184 = arith.constant 0 : index
    %c0_185 = arith.constant 0 : index
    %148 = vector.load %arg5[%c0_184, %c0_185] : memref<392x1120xbf16, #tpu.memory_space<vmem>>, vector<392x1120xbf16>
    %cst = arith.constant dense<0.000000e+00> : vector<16x1120xf32>
    %149 = tpu.matmul %147, %148, %cst {dimension_numbers = #tpu.dot_dimension_numbers<[1], [0], [0], [1], [0, 0, 1, 1], [], []>} : vector<16x392xbf16>, vector<392x1120xbf16>, vector<16x1120xf32> -> vector<16x1120xf32>
    %cst_186 = arith.constant 0.000000e+00 : f32
    %150 = vector.broadcast %cst_186 : f32 to vector<16x1120xf32>
    %151 = arith.maximumf %149, %150 : vector<16x1120xf32>
    %c0_187 = arith.constant 0 : index
    %c0_188 = arith.constant 0 : index
    %152 = vector.load %arg3[%c0_187, %c0_188] : memref<1x1120xf32, #tpu.memory_space<vmem>>, vector<1x1120xf32>
    %153 = vector.broadcast %152 : vector<1x1120xf32> to vector<16x1120xf32>
    %154 = arith.mulf %151, %153 : vector<16x1120xf32>
    %cst_189 = arith.constant 0.000000e+00 : f32
    %155 = vector.broadcast %cst_189 : f32 to vector<16x1192xf32>
    %c0_190 = arith.constant 0 : index
    %c0_191 = arith.constant 0 : index
    %156 = vector.load %arg6[%c0_190, %c0_191] : memref<16x1192xf32, #tpu.memory_space<vmem>>, vector<16x1192xf32>
    tpu.vector_store %arg6[%c0_190, %c0_191], %155 {strides = array<i32>} : memref<16x1192xf32, #tpu.memory_space<vmem>>, vector<16x1192xf32>,
    %c0_192 = arith.constant 0 : index
    %c36_193 = arith.constant 36 : index
    %157 = vector.load %arg6[%c0_192, %c36_193] : memref<16x1192xf32, #tpu.memory_space<vmem>>, vector<16x1120xf32>
    tpu.vector_store %arg6[%c0_192, %c36_193], %154 {strides = array<i32>} : memref<16x1192xf32, #tpu.memory_space<vmem>>, vector<16x1120xf32>,
    %c0_194 = arith.constant 0 : index
    %c0_195 = arith.constant 0 : index
    %158 = vector.load %arg6[%c0_194, %c0_195] : memref<16x1192xf32, #tpu.memory_space<vmem>>, vector<16x1120xf32>
    %c0_196 = arith.constant 0 : index
    %c1_197 = arith.constant 1 : index
    %159 = vector.load %arg6[%c0_196, %c1_197] : memref<16x1192xf32, #tpu.memory_space<vmem>>, vector<16x1120xf32>
    %160 = arith.maximumf %158, %159 : vector<16x1120xf32>
    %c0_198 = arith.constant 0 : index
    %c2_199 = arith.constant 2 : index
    %161 = vector.load %arg6[%c0_198, %c2_199] : memref<16x1192xf32, #tpu.memory_space<vmem>>, vector<16x1120xf32>
    %162 = arith.maximumf %160, %161 : vector<16x1120xf32>
    %c0_200 = arith.constant 0 : index
    %c35_201 = arith.constant 35 : index
    %163 = vector.load %arg6[%c0_200, %c35_201] : memref<16x1192xf32, #tpu.memory_space<vmem>>, vector<16x1120xf32>
    %164 = arith.maximumf %162, %163 : vector<16x1120xf32>
    %c0_202 = arith.constant 0 : index
    %c36_203 = arith.constant 36 : index
    %165 = vector.load %arg6[%c0_202, %c36_203] : memref<16x1192xf32, #tpu.memory_space<vmem>>, vector<16x1120xf32>
    %166 = arith.maximumf %164, %165 : vector<16x1120xf32>
    %c0_204 = arith.constant 0 : index
    %c37_205 = arith.constant 37 : index
    %167 = vector.load %arg6[%c0_204, %c37_205] : memref<16x1192xf32, #tpu.memory_space<vmem>>, vector<16x1120xf32>
    %168 = arith.maximumf %166, %167 : vector<16x1120xf32>
    %c0_206 = arith.constant 0 : index
    %c70_207 = arith.constant 70 : index
    %169 = vector.load %arg6[%c0_206, %c70_207] : memref<16x1192xf32, #tpu.memory_space<vmem>>, vector<16x1120xf32>
    %170 = arith.maximumf %168, %169 : vector<16x1120xf32>
    %c0_208 = arith.constant 0 : index
    %c71_209 = arith.constant 71 : index
    %171 = vector.load %arg6[%c0_208, %c71_209] : memref<16x1192xf32, #tpu.memory_space<vmem>>, vector<16x1120xf32>
    %172 = arith.maximumf %170, %171 : vector<16x1120xf32>
    %c0_210 = arith.constant 0 : index
    %c72_211 = arith.constant 72 : index
    %173 = vector.load %arg6[%c0_210, %c72_211] : memref<16x1192xf32, #tpu.memory_space<vmem>>, vector<16x1120xf32>
    %174 = arith.maximumf %172, %173 : vector<16x1120xf32>
    %175 = arith.truncf %174 : vector<16x1120xf32> to vector<16x1120xbf16>
    %c0_212 = arith.constant 0 : index
    %c0_213 = arith.constant 0 : index
    %c0_214 = arith.constant 0 : index
    %176 = vector.load %arg4[%c0_212, %c0_213, %c0_214] : memref<1x16x1120xbf16, #tpu.memory_space<vmem>>, vector<1x16x1120xbf16>
    %177 = vector.shape_cast %176 : vector<1x16x1120xbf16> to vector<16x1120xbf16>
    %178 = vector.shape_cast %175 : vector<16x1120xbf16> to vector<1x16x1120xbf16>
    tpu.vector_store %arg4[%c0_212, %c0_213, %c0_214], %178 {strides = array<i32>} : memref<1x16x1120xbf16, #tpu.memory_space<vmem>>, vector<1x16x1120xbf16>,
    return
  }
  func.func @transform_0(%arg0: i32) -> (i32, i32, i32) {
    %c0_i32 = arith.constant 0 : i32
    %c0_i32_0 = arith.constant 0 : i32
    %c0_i32_1 = arith.constant 0 : i32
    return %arg0, %c0_i32, %c0_i32_0 : i32, i32, i32
  }
  func.func @transform_1(%arg0: i32) -> (i32, i32) {
    %c0_i32 = arith.constant 0 : i32
    %c0_i32_0 = arith.constant 0 : i32
    %c0_i32_1 = arith.constant 0 : i32
    return %c0_i32, %c0_i32_0 : i32, i32
  }
  func.func @transform_2(%arg0: i32) -> (i32, i32) {
    %c0_i32 = arith.constant 0 : i32
    %c0_i32_0 = arith.constant 0 : i32
    %c0_i32_1 = arith.constant 0 : i32
    return %c0_i32, %c0_i32_0 : i32, i32
  }
  func.func @transform_3(%arg0: i32) -> (i32, i32, i32) {
    %c0_i32 = arith.constant 0 : i32
    %c0_i32_0 = arith.constant 0 : i32
    %c0_i32_1 = arith.constant 0 : i32
    return %arg0, %c0_i32, %c0_i32_0 : i32, i32, i32
  }
}

module attributes {stable_mosaic.version = 11 : i64} {
  func.func @kernel(%arg0: i32, %arg1: memref<1x16x256xbf16, #tpu.memory_space<vmem>>, %arg2: memref<8x16xbf16, #tpu.memory_space<vmem>>, %arg3: memref<4x72xbf16, #tpu.memory_space<vmem>>, %arg4: memref<64x4xbf16, #tpu.memory_space<vmem>>, %arg5: memref<2x256xbf16, #tpu.memory_space<vmem>>, %arg6: memref<64x16xbf16, #tpu.memory_space<vmem>>, %arg7: memref<1x64x256xbf16, #tpu.memory_space<vmem>>, %arg8: memref<8x324xbf16, #tpu.memory_space<vmem>>, %arg9: memref<72x256xbf16, #tpu.memory_space<vmem>>) attributes {dimension_semantics = [#tpu.dimension_semantics<parallel>], iteration_bounds = array<i64: 2>, scalar_prefetch = 0 : i64, scratch_operands = 2 : i64, tpu.core_type = #tpu.core_type<tc>, window_params = [{transform_indices = @transform_0, window_bounds = array<i64: 1, 16, 256>}, {pipeline_mode = #tpu.pipeline_mode<synchronous>, transform_indices = @transform_1, window_bounds = array<i64: 8, 16>}, {pipeline_mode = #tpu.pipeline_mode<synchronous>, transform_indices = @transform_2, window_bounds = array<i64: 4, 72>}, {pipeline_mode = #tpu.pipeline_mode<synchronous>, transform_indices = @transform_3, window_bounds = array<i64: 64, 4>}, {pipeline_mode = #tpu.pipeline_mode<synchronous>, transform_indices = @transform_4, window_bounds = array<i64: 2, 256>}, {pipeline_mode = #tpu.pipeline_mode<synchronous>, transform_indices = @transform_5, window_bounds = array<i64: 64, 16>}, {transform_indices = @transform_6, window_bounds = array<i64: 1, 64, 256>}]} {
    %c0 = arith.constant 0 : index
    %c0_0 = arith.constant 0 : index
    %c0_1 = arith.constant 0 : index
    %0 = vector.load %arg1[%c0, %c0_0, %c0_1] : memref<1x16x256xbf16, #tpu.memory_space<vmem>>, vector<1x16x256xbf16>
    %1 = vector.shape_cast %0 : vector<1x16x256xbf16> to vector<16x256xbf16>
    %c0_2 = arith.constant 0 : index
    %c0_3 = arith.constant 0 : index
    %2 = vector.load %arg2[%c0_2, %c0_3] : memref<8x16xbf16, #tpu.memory_space<vmem>>, vector<8x16xbf16>
    %cst = arith.constant dense<0.000000e+00> : vector<8x256xf32>
    %3 = tpu.matmul %2, %1, %cst {dimension_numbers = #tpu.dot_dimension_numbers<[1], [0], [0], [1], [0, 0, 1, 1], [], []>} : vector<8x16xbf16>, vector<16x256xbf16>, vector<8x256xf32> -> vector<8x256xf32>
    %cst_4 = arith.constant 0.000000e+00 : f32
    %4 = vector.broadcast %cst_4 : f32 to vector<8x256xf32>
    %5 = arith.maximumf %3, %4 : vector<8x256xf32>
    %6 = arith.truncf %5 : vector<8x256xf32> to vector<8x256xbf16>
    %cst_5 = arith.constant 0.000000e+00 : bf16
    %7 = vector.broadcast %cst_5 : bf16 to vector<8x324xbf16>
    %c0_6 = arith.constant 0 : index
    %c0_7 = arith.constant 0 : index
    %8 = vector.load %arg8[%c0_6, %c0_7] : memref<8x324xbf16, #tpu.memory_space<vmem>>, vector<8x324xbf16>
    tpu.vector_store %arg8[%c0_6, %c0_7], %7 {strides = array<i32>} : memref<8x324xbf16, #tpu.memory_space<vmem>>, vector<8x324xbf16>,
    %c0_8 = arith.constant 0 : index
    %c34 = arith.constant 34 : index
    %9 = vector.load %arg8[%c0_8, %c34] : memref<8x324xbf16, #tpu.memory_space<vmem>>, vector<8x256xbf16>
    tpu.vector_store %arg8[%c0_8, %c34], %6 {strides = array<i32>} : memref<8x324xbf16, #tpu.memory_space<vmem>>, vector<8x256xbf16>,
    %c0_9 = arith.constant 0 : index
    %c0_10 = arith.constant 0 : index
    %10 = vector.load %arg5[%c0_9, %c0_10] : memref<2x256xbf16, #tpu.memory_space<vmem>>, vector<1x256xbf16>
    %c1 = arith.constant 1 : index
    %c0_11 = arith.constant 0 : index
    %11 = vector.load %arg5[%c1, %c0_11] : memref<2x256xbf16, #tpu.memory_space<vmem>>, vector<1x256xbf16>
    %c0_12 = arith.constant 0 : index
    %c0_13 = arith.constant 0 : index
    %12 = vector.load %arg8[%c0_12, %c0_13] : memref<8x324xbf16, #tpu.memory_space<vmem>>, vector<8x256xbf16>
    %13 = vector.broadcast %10 : vector<1x256xbf16> to vector<8x256xbf16>
    %14 = arith.mulf %12, %13 : vector<8x256xbf16>
    %c0_14 = arith.constant 0 : index
    %c0_15 = arith.constant 0 : index
    %15 = vector.load %arg9[%c0_14, %c0_15] : memref<72x256xbf16, #tpu.memory_space<vmem>>, vector<8x256xbf16>
    tpu.vector_store %arg9[%c0_14, %c0_15], %14 {strides = array<i32>} : memref<72x256xbf16, #tpu.memory_space<vmem>>, vector<8x256xbf16>,
    %c0_16 = arith.constant 0 : index
    %c2 = arith.constant 2 : index
    %16 = vector.load %arg8[%c0_16, %c2] : memref<8x324xbf16, #tpu.memory_space<vmem>>, vector<8x256xbf16>
    %c8 = arith.constant 8 : index
    %c0_17 = arith.constant 0 : index
    %17 = vector.load %arg9[%c8, %c0_17] : memref<72x256xbf16, #tpu.memory_space<vmem>>, vector<8x256xbf16>
    tpu.vector_store %arg9[%c8, %c0_17], %16 {strides = array<i32>} : memref<72x256xbf16, #tpu.memory_space<vmem>>, vector<8x256xbf16>,
    %c0_18 = arith.constant 0 : index
    %c4 = arith.constant 4 : index
    %18 = vector.load %arg8[%c0_18, %c4] : memref<8x324xbf16, #tpu.memory_space<vmem>>, vector<8x256xbf16>
    %19 = vector.broadcast %11 : vector<1x256xbf16> to vector<8x256xbf16>
    %20 = arith.mulf %18, %19 : vector<8x256xbf16>
    %c16 = arith.constant 16 : index
    %c0_19 = arith.constant 0 : index
    %21 = vector.load %arg9[%c16, %c0_19] : memref<72x256xbf16, #tpu.memory_space<vmem>>, vector<8x256xbf16>
    tpu.vector_store %arg9[%c16, %c0_19], %20 {strides = array<i32>} : memref<72x256xbf16, #tpu.memory_space<vmem>>, vector<8x256xbf16>,
    %c0_20 = arith.constant 0 : index
    %c32 = arith.constant 32 : index
    %22 = vector.load %arg8[%c0_20, %c32] : memref<8x324xbf16, #tpu.memory_space<vmem>>, vector<8x256xbf16>
    %23 = vector.broadcast %10 : vector<1x256xbf16> to vector<8x256xbf16>
    %24 = arith.mulf %22, %23 : vector<8x256xbf16>
    %c24 = arith.constant 24 : index
    %c0_21 = arith.constant 0 : index
    %25 = vector.load %arg9[%c24, %c0_21] : memref<72x256xbf16, #tpu.memory_space<vmem>>, vector<8x256xbf16>
    tpu.vector_store %arg9[%c24, %c0_21], %24 {strides = array<i32>} : memref<72x256xbf16, #tpu.memory_space<vmem>>, vector<8x256xbf16>,
    %c0_22 = arith.constant 0 : index
    %c34_23 = arith.constant 34 : index
    %26 = vector.load %arg8[%c0_22, %c34_23] : memref<8x324xbf16, #tpu.memory_space<vmem>>, vector<8x256xbf16>
    %c32_24 = arith.constant 32 : index
    %c0_25 = arith.constant 0 : index
    %27 = vector.load %arg9[%c32_24, %c0_25] : memref<72x256xbf16, #tpu.memory_space<vmem>>, vector<8x256xbf16>
    tpu.vector_store %arg9[%c32_24, %c0_25], %26 {strides = array<i32>} : memref<72x256xbf16, #tpu.memory_space<vmem>>, vector<8x256xbf16>,
    %c0_26 = arith.constant 0 : index
    %c36 = arith.constant 36 : index
    %28 = vector.load %arg8[%c0_26, %c36] : memref<8x324xbf16, #tpu.memory_space<vmem>>, vector<8x256xbf16>
    %29 = vector.broadcast %11 : vector<1x256xbf16> to vector<8x256xbf16>
    %30 = arith.mulf %28, %29 : vector<8x256xbf16>
    %c40 = arith.constant 40 : index
    %c0_27 = arith.constant 0 : index
    %31 = vector.load %arg9[%c40, %c0_27] : memref<72x256xbf16, #tpu.memory_space<vmem>>, vector<8x256xbf16>
    tpu.vector_store %arg9[%c40, %c0_27], %30 {strides = array<i32>} : memref<72x256xbf16, #tpu.memory_space<vmem>>, vector<8x256xbf16>,
    %c0_28 = arith.constant 0 : index
    %c64 = arith.constant 64 : index
    %32 = vector.load %arg8[%c0_28, %c64] : memref<8x324xbf16, #tpu.memory_space<vmem>>, vector<8x256xbf16>
    %33 = vector.broadcast %10 : vector<1x256xbf16> to vector<8x256xbf16>
    %34 = arith.mulf %32, %33 : vector<8x256xbf16>
    %c48 = arith.constant 48 : index
    %c0_29 = arith.constant 0 : index
    %35 = vector.load %arg9[%c48, %c0_29] : memref<72x256xbf16, #tpu.memory_space<vmem>>, vector<8x256xbf16>
    tpu.vector_store %arg9[%c48, %c0_29], %34 {strides = array<i32>} : memref<72x256xbf16, #tpu.memory_space<vmem>>, vector<8x256xbf16>,
    %c0_30 = arith.constant 0 : index
    %c66 = arith.constant 66 : index
    %36 = vector.load %arg8[%c0_30, %c66] : memref<8x324xbf16, #tpu.memory_space<vmem>>, vector<8x256xbf16>
    %c56 = arith.constant 56 : index
    %c0_31 = arith.constant 0 : index
    %37 = vector.load %arg9[%c56, %c0_31] : memref<72x256xbf16, #tpu.memory_space<vmem>>, vector<8x256xbf16>
    tpu.vector_store %arg9[%c56, %c0_31], %36 {strides = array<i32>} : memref<72x256xbf16, #tpu.memory_space<vmem>>, vector<8x256xbf16>,
    %c0_32 = arith.constant 0 : index
    %c68 = arith.constant 68 : index
    %38 = vector.load %arg8[%c0_32, %c68] : memref<8x324xbf16, #tpu.memory_space<vmem>>, vector<8x256xbf16>
    %39 = vector.broadcast %11 : vector<1x256xbf16> to vector<8x256xbf16>
    %40 = arith.mulf %38, %39 : vector<8x256xbf16>
    %c64_33 = arith.constant 64 : index
    %c0_34 = arith.constant 0 : index
    %41 = vector.load %arg9[%c64_33, %c0_34] : memref<72x256xbf16, #tpu.memory_space<vmem>>, vector<8x256xbf16>
    tpu.vector_store %arg9[%c64_33, %c0_34], %40 {strides = array<i32>} : memref<72x256xbf16, #tpu.memory_space<vmem>>, vector<8x256xbf16>,
    %c0_35 = arith.constant 0 : index
    %c0_36 = arith.constant 0 : index
    %42 = vector.load %arg3[%c0_35, %c0_36] : memref<4x72xbf16, #tpu.memory_space<vmem>>, vector<4x72xbf16>
    %c0_37 = arith.constant 0 : index
    %c0_38 = arith.constant 0 : index
    %43 = vector.load %arg9[%c0_37, %c0_38] : memref<72x256xbf16, #tpu.memory_space<vmem>>, vector<72x256xbf16>
    %cst_39 = arith.constant dense<0.000000e+00> : vector<4x256xf32>
    %44 = tpu.matmul %42, %43, %cst_39 {dimension_numbers = #tpu.dot_dimension_numbers<[1], [0], [0], [1], [0, 0, 1, 1], [], []>} : vector<4x72xbf16>, vector<72x256xbf16>, vector<4x256xf32> -> vector<4x256xf32>
    %cst_40 = arith.constant 0.000000e+00 : f32
    %45 = vector.broadcast %cst_40 : f32 to vector<4x256xf32>
    %46 = arith.maximumf %44, %45 : vector<4x256xf32>
    %47 = arith.truncf %46 : vector<4x256xf32> to vector<4x256xbf16>
    %c0_41 = arith.constant 0 : index
    %c0_42 = arith.constant 0 : index
    %48 = vector.load %arg4[%c0_41, %c0_42] : memref<64x4xbf16, #tpu.memory_space<vmem>>, vector<64x4xbf16>
    %cst_43 = arith.constant dense<0.000000e+00> : vector<64x256xf32>
    %49 = tpu.matmul %48, %47, %cst_43 {dimension_numbers = #tpu.dot_dimension_numbers<[1], [0], [0], [1], [0, 0, 1, 1], [], []>} : vector<64x4xbf16>, vector<4x256xbf16>, vector<64x256xf32> -> vector<64x256xf32>
    %c0_44 = arith.constant 0 : index
    %c0_45 = arith.constant 0 : index
    %50 = vector.load %arg6[%c0_44, %c0_45] : memref<64x16xbf16, #tpu.memory_space<vmem>>, vector<64x16xbf16>
    %cst_46 = arith.constant dense<0.000000e+00> : vector<64x256xf32>
    %51 = tpu.matmul %50, %1, %cst_46 {dimension_numbers = #tpu.dot_dimension_numbers<[1], [0], [0], [1], [0, 0, 1, 1], [], []>} : vector<64x16xbf16>, vector<16x256xbf16>, vector<64x256xf32> -> vector<64x256xf32>
    %52 = arith.addf %49, %51 : vector<64x256xf32>
    %cst_47 = arith.constant 0.000000e+00 : f32
    %53 = vector.broadcast %cst_47 : f32 to vector<64x256xf32>
    %54 = arith.maximumf %52, %53 : vector<64x256xf32>
    %55 = arith.truncf %54 : vector<64x256xf32> to vector<64x256xbf16>
    %c0_48 = arith.constant 0 : index
    %c0_49 = arith.constant 0 : index
    %c0_50 = arith.constant 0 : index
    %56 = vector.load %arg7[%c0_48, %c0_49, %c0_50] : memref<1x64x256xbf16, #tpu.memory_space<vmem>>, vector<1x64x256xbf16>
    %57 = vector.shape_cast %56 : vector<1x64x256xbf16> to vector<64x256xbf16>
    %58 = vector.shape_cast %55 : vector<64x256xbf16> to vector<1x64x256xbf16>
    tpu.vector_store %arg7[%c0_48, %c0_49, %c0_50], %58 {strides = array<i32>} : memref<1x64x256xbf16, #tpu.memory_space<vmem>>, vector<1x64x256xbf16>,
    return
  }
  func.func @transform_0(%arg0: i32) -> (i32, i32, i32) {
    %c0_i32 = arith.constant 0 : i32
    %c0_i32_0 = arith.constant 0 : i32
    %c0_i32_1 = arith.constant 0 : i32
    return %arg0, %c0_i32, %c0_i32_0 : i32, i32, i32
  }
  func.func @transform_1(%arg0: i32) -> (i32, i32) {
    %c0_i32 = arith.constant 0 : i32
    %c0_i32_0 = arith.constant 0 : i32
    %c0_i32_1 = arith.constant 0 : i32
    return %c0_i32, %c0_i32_0 : i32, i32
  }
  func.func @transform_2(%arg0: i32) -> (i32, i32) {
    %c0_i32 = arith.constant 0 : i32
    %c0_i32_0 = arith.constant 0 : i32
    %c0_i32_1 = arith.constant 0 : i32
    return %c0_i32, %c0_i32_0 : i32, i32
  }
  func.func @transform_3(%arg0: i32) -> (i32, i32) {
    %c0_i32 = arith.constant 0 : i32
    %c0_i32_0 = arith.constant 0 : i32
    %c0_i32_1 = arith.constant 0 : i32
    return %c0_i32, %c0_i32_0 : i32, i32
  }
  func.func @transform_4(%arg0: i32) -> (i32, i32) {
    %c0_i32 = arith.constant 0 : i32
    %c0_i32_0 = arith.constant 0 : i32
    %c0_i32_1 = arith.constant 0 : i32
    return %c0_i32, %c0_i32_0 : i32, i32
  }
  func.func @transform_5(%arg0: i32) -> (i32, i32) {
    %c0_i32 = arith.constant 0 : i32
    %c0_i32_0 = arith.constant 0 : i32
    %c0_i32_1 = arith.constant 0 : i32
    return %c0_i32, %c0_i32_0 : i32, i32
  }
  func.func @transform_6(%arg0: i32) -> (i32, i32, i32) {
    %c0_i32 = arith.constant 0 : i32
    %c0_i32_0 = arith.constant 0 : i32
    %c0_i32_1 = arith.constant 0 : i32
    return %arg0, %c0_i32, %c0_i32_0 : i32, i32, i32
  }
}

module attributes {stable_mosaic.version = 11 : i64} {
  func.func @kernel(%arg0: i32, %arg1: memref<1x64x256xbf16, #tpu.memory_space<vmem>>, %arg2: memref<8x64xbf16, #tpu.memory_space<vmem>>, %arg3: memref<8x72xbf16, #tpu.memory_space<vmem>>, %arg4: memref<128x8xbf16, #tpu.memory_space<vmem>>, %arg5: memref<2x64xbf16, #tpu.memory_space<vmem>>, %arg6: memref<128x64xbf16, #tpu.memory_space<vmem>>, %arg7: memref<256x64xbf16, #tpu.memory_space<vmem>>, %arg8: memref<1x128x64xbf16, #tpu.memory_space<vmem>>, %arg9: memref<8x82xbf16, #tpu.memory_space<vmem>>, %arg10: memref<72x64xbf16, #tpu.memory_space<vmem>>) attributes {dimension_semantics = [#tpu.dimension_semantics<arbitrary>], iteration_bounds = array<i64: 2>, scalar_prefetch = 0 : i64, scratch_operands = 2 : i64, tpu.core_type = #tpu.core_type<tc>, window_params = [{transform_indices = @transform_0, window_bounds = array<i64: 1, 64, 256>}, {pipeline_mode = #tpu.pipeline_mode<synchronous>, transform_indices = @transform_1, window_bounds = array<i64: 8, 64>}, {pipeline_mode = #tpu.pipeline_mode<synchronous>, transform_indices = @transform_2, window_bounds = array<i64: 8, 72>}, {pipeline_mode = #tpu.pipeline_mode<synchronous>, transform_indices = @transform_3, window_bounds = array<i64: 128, 8>}, {pipeline_mode = #tpu.pipeline_mode<synchronous>, transform_indices = @transform_4, window_bounds = array<i64: 2, 64>}, {pipeline_mode = #tpu.pipeline_mode<synchronous>, transform_indices = @transform_5, window_bounds = array<i64: 128, 64>}, {pipeline_mode = #tpu.pipeline_mode<synchronous>, transform_indices = @transform_6, window_bounds = array<i64: 256, 64>}, {transform_indices = @transform_7, window_bounds = array<i64: 1, 128, 64>}]} {
    %c0 = arith.constant 0 : index
    %c0_0 = arith.constant 0 : index
    %c0_1 = arith.constant 0 : index
    %0 = vector.load %arg1[%c0, %c0_0, %c0_1] : memref<1x64x256xbf16, #tpu.memory_space<vmem>>, vector<1x64x256xbf16>
    %1 = vector.shape_cast %0 : vector<1x64x256xbf16> to vector<64x256xbf16>
    %c0_2 = arith.constant 0 : index
    %c0_3 = arith.constant 0 : index
    %2 = vector.load %arg7[%c0_2, %c0_3] : memref<256x64xbf16, #tpu.memory_space<vmem>>, vector<256x64xbf16>
    %cst = arith.constant dense<0.000000e+00> : vector<64x64xf32>
    %3 = tpu.matmul %1, %2, %cst {dimension_numbers = #tpu.dot_dimension_numbers<[1], [0], [0], [1], [0, 0, 1, 1], [], []>} : vector<64x256xbf16>, vector<256x64xbf16>, vector<64x64xf32> -> vector<64x64xf32>
    %4 = arith.truncf %3 : vector<64x64xf32> to vector<64x64xbf16>
    %c0_4 = arith.constant 0 : index
    %c0_5 = arith.constant 0 : index
    %5 = vector.load %arg2[%c0_4, %c0_5] : memref<8x64xbf16, #tpu.memory_space<vmem>>, vector<8x64xbf16>
    %cst_6 = arith.constant dense<0.000000e+00> : vector<8x64xf32>
    %6 = tpu.matmul %5, %4, %cst_6 {dimension_numbers = #tpu.dot_dimension_numbers<[1], [0], [0], [1], [0, 0, 1, 1], [], []>} : vector<8x64xbf16>, vector<64x64xbf16>, vector<8x64xf32> -> vector<8x64xf32>
    %cst_7 = arith.constant 0.000000e+00 : f32
    %7 = vector.broadcast %cst_7 : f32 to vector<8x64xf32>
    %8 = arith.maximumf %6, %7 : vector<8x64xf32>
    %9 = arith.truncf %8 : vector<8x64xf32> to vector<8x64xbf16>
    %cst_8 = arith.constant 0.000000e+00 : bf16
    %10 = vector.broadcast %cst_8 : bf16 to vector<8x82xbf16>
    %c0_9 = arith.constant 0 : index
    %c0_10 = arith.constant 0 : index
    %11 = vector.load %arg9[%c0_9, %c0_10] : memref<8x82xbf16, #tpu.memory_space<vmem>>, vector<8x82xbf16>
    tpu.vector_store %arg9[%c0_9, %c0_10], %10 {strides = array<i32>} : memref<8x82xbf16, #tpu.memory_space<vmem>>, vector<8x82xbf16>,
    %c0_11 = arith.constant 0 : index
    %c9 = arith.constant 9 : index
    %12 = vector.load %arg9[%c0_11, %c9] : memref<8x82xbf16, #tpu.memory_space<vmem>>, vector<8x64xbf16>
    tpu.vector_store %arg9[%c0_11, %c9], %9 {strides = array<i32>} : memref<8x82xbf16, #tpu.memory_space<vmem>>, vector<8x64xbf16>,
    %c0_12 = arith.constant 0 : index
    %c0_13 = arith.constant 0 : index
    %13 = vector.load %arg5[%c0_12, %c0_13] : memref<2x64xbf16, #tpu.memory_space<vmem>>, vector<1x64xbf16>
    %c1 = arith.constant 1 : index
    %c0_14 = arith.constant 0 : index
    %14 = vector.load %arg5[%c1, %c0_14] : memref<2x64xbf16, #tpu.memory_space<vmem>>, vector<1x64xbf16>
    %c0_15 = arith.constant 0 : index
    %c0_16 = arith.constant 0 : index
    %15 = vector.load %arg9[%c0_15, %c0_16] : memref<8x82xbf16, #tpu.memory_space<vmem>>, vector<8x64xbf16>
    %16 = vector.broadcast %13 : vector<1x64xbf16> to vector<8x64xbf16>
    %17 = arith.mulf %15, %16 : vector<8x64xbf16>
    %c0_17 = arith.constant 0 : index
    %c0_18 = arith.constant 0 : index
    %18 = vector.load %arg10[%c0_17, %c0_18] : memref<72x64xbf16, #tpu.memory_space<vmem>>, vector<8x64xbf16>
    tpu.vector_store %arg10[%c0_17, %c0_18], %17 {strides = array<i32>} : memref<72x64xbf16, #tpu.memory_space<vmem>>, vector<8x64xbf16>,
    %c0_19 = arith.constant 0 : index
    %c1_20 = arith.constant 1 : index
    %19 = vector.load %arg9[%c0_19, %c1_20] : memref<8x82xbf16, #tpu.memory_space<vmem>>, vector<8x64xbf16>
    %c8 = arith.constant 8 : index
    %c0_21 = arith.constant 0 : index
    %20 = vector.load %arg10[%c8, %c0_21] : memref<72x64xbf16, #tpu.memory_space<vmem>>, vector<8x64xbf16>
    tpu.vector_store %arg10[%c8, %c0_21], %19 {strides = array<i32>} : memref<72x64xbf16, #tpu.memory_space<vmem>>, vector<8x64xbf16>,
    %c0_22 = arith.constant 0 : index
    %c2 = arith.constant 2 : index
    %21 = vector.load %arg9[%c0_22, %c2] : memref<8x82xbf16, #tpu.memory_space<vmem>>, vector<8x64xbf16>
    %22 = vector.broadcast %14 : vector<1x64xbf16> to vector<8x64xbf16>
    %23 = arith.mulf %21, %22 : vector<8x64xbf16>
    %c16 = arith.constant 16 : index
    %c0_23 = arith.constant 0 : index
    %24 = vector.load %arg10[%c16, %c0_23] : memref<72x64xbf16, #tpu.memory_space<vmem>>, vector<8x64xbf16>
    tpu.vector_store %arg10[%c16, %c0_23], %23 {strides = array<i32>} : memref<72x64xbf16, #tpu.memory_space<vmem>>, vector<8x64xbf16>,
    %c0_24 = arith.constant 0 : index
    %c8_25 = arith.constant 8 : index
    %25 = vector.load %arg9[%c0_24, %c8_25] : memref<8x82xbf16, #tpu.memory_space<vmem>>, vector<8x64xbf16>
    %26 = vector.broadcast %13 : vector<1x64xbf16> to vector<8x64xbf16>
    %27 = arith.mulf %25, %26 : vector<8x64xbf16>
    %c24 = arith.constant 24 : index
    %c0_26 = arith.constant 0 : index
    %28 = vector.load %arg10[%c24, %c0_26] : memref<72x64xbf16, #tpu.memory_space<vmem>>, vector<8x64xbf16>
    tpu.vector_store %arg10[%c24, %c0_26], %27 {strides = array<i32>} : memref<72x64xbf16, #tpu.memory_space<vmem>>, vector<8x64xbf16>,
    %c0_27 = arith.constant 0 : index
    %c9_28 = arith.constant 9 : index
    %29 = vector.load %arg9[%c0_27, %c9_28] : memref<8x82xbf16, #tpu.memory_space<vmem>>, vector<8x64xbf16>
    %c32 = arith.constant 32 : index
    %c0_29 = arith.constant 0 : index
    %30 = vector.load %arg10[%c32, %c0_29] : memref<72x64xbf16, #tpu.memory_space<vmem>>, vector<8x64xbf16>
    tpu.vector_store %arg10[%c32, %c0_29], %29 {strides = array<i32>} : memref<72x64xbf16, #tpu.memory_space<vmem>>, vector<8x64xbf16>,
    %c0_30 = arith.constant 0 : index
    %c10 = arith.constant 10 : index
    %31 = vector.load %arg9[%c0_30, %c10] : memref<8x82xbf16, #tpu.memory_space<vmem>>, vector<8x64xbf16>
    %32 = vector.broadcast %14 : vector<1x64xbf16> to vector<8x64xbf16>
    %33 = arith.mulf %31, %32 : vector<8x64xbf16>
    %c40 = arith.constant 40 : index
    %c0_31 = arith.constant 0 : index
    %34 = vector.load %arg10[%c40, %c0_31] : memref<72x64xbf16, #tpu.memory_space<vmem>>, vector<8x64xbf16>
    tpu.vector_store %arg10[%c40, %c0_31], %33 {strides = array<i32>} : memref<72x64xbf16, #tpu.memory_space<vmem>>, vector<8x64xbf16>,
    %c0_32 = arith.constant 0 : index
    %c16_33 = arith.constant 16 : index
    %35 = vector.load %arg9[%c0_32, %c16_33] : memref<8x82xbf16, #tpu.memory_space<vmem>>, vector<8x64xbf16>
    %36 = vector.broadcast %13 : vector<1x64xbf16> to vector<8x64xbf16>
    %37 = arith.mulf %35, %36 : vector<8x64xbf16>
    %c48 = arith.constant 48 : index
    %c0_34 = arith.constant 0 : index
    %38 = vector.load %arg10[%c48, %c0_34] : memref<72x64xbf16, #tpu.memory_space<vmem>>, vector<8x64xbf16>
    tpu.vector_store %arg10[%c48, %c0_34], %37 {strides = array<i32>} : memref<72x64xbf16, #tpu.memory_space<vmem>>, vector<8x64xbf16>,
    %c0_35 = arith.constant 0 : index
    %c17 = arith.constant 17 : index
    %39 = vector.load %arg9[%c0_35, %c17] : memref<8x82xbf16, #tpu.memory_space<vmem>>, vector<8x64xbf16>
    %c56 = arith.constant 56 : index
    %c0_36 = arith.constant 0 : index
    %40 = vector.load %arg10[%c56, %c0_36] : memref<72x64xbf16, #tpu.memory_space<vmem>>, vector<8x64xbf16>
    tpu.vector_store %arg10[%c56, %c0_36], %39 {strides = array<i32>} : memref<72x64xbf16, #tpu.memory_space<vmem>>, vector<8x64xbf16>,
    %c0_37 = arith.constant 0 : index
    %c18 = arith.constant 18 : index
    %41 = vector.load %arg9[%c0_37, %c18] : memref<8x82xbf16, #tpu.memory_space<vmem>>, vector<8x64xbf16>
    %42 = vector.broadcast %14 : vector<1x64xbf16> to vector<8x64xbf16>
    %43 = arith.mulf %41, %42 : vector<8x64xbf16>
    %c64 = arith.constant 64 : index
    %c0_38 = arith.constant 0 : index
    %44 = vector.load %arg10[%c64, %c0_38] : memref<72x64xbf16, #tpu.memory_space<vmem>>, vector<8x64xbf16>
    tpu.vector_store %arg10[%c64, %c0_38], %43 {strides = array<i32>} : memref<72x64xbf16, #tpu.memory_space<vmem>>, vector<8x64xbf16>,
    %c0_39 = arith.constant 0 : index
    %c0_40 = arith.constant 0 : index
    %45 = vector.load %arg3[%c0_39, %c0_40] : memref<8x72xbf16, #tpu.memory_space<vmem>>, vector<8x72xbf16>
    %c0_41 = arith.constant 0 : index
    %c0_42 = arith.constant 0 : index
    %46 = vector.load %arg10[%c0_41, %c0_42] : memref<72x64xbf16, #tpu.memory_space<vmem>>, vector<72x64xbf16>
    %cst_43 = arith.constant dense<0.000000e+00> : vector<8x64xf32>
    %47 = tpu.matmul %45, %46, %cst_43 {dimension_numbers = #tpu.dot_dimension_numbers<[1], [0], [0], [1], [0, 0, 1, 1], [], []>} : vector<8x72xbf16>, vector<72x64xbf16>, vector<8x64xf32> -> vector<8x64xf32>
    %cst_44 = arith.constant 0.000000e+00 : f32
    %48 = vector.broadcast %cst_44 : f32 to vector<8x64xf32>
    %49 = arith.maximumf %47, %48 : vector<8x64xf32>
    %50 = arith.truncf %49 : vector<8x64xf32> to vector<8x64xbf16>
    %c0_45 = arith.constant 0 : index
    %c0_46 = arith.constant 0 : index
    %51 = vector.load %arg4[%c0_45, %c0_46] : memref<128x8xbf16, #tpu.memory_space<vmem>>, vector<128x8xbf16>
    %cst_47 = arith.constant dense<0.000000e+00> : vector<128x64xf32>
    %52 = tpu.matmul %51, %50, %cst_47 {dimension_numbers = #tpu.dot_dimension_numbers<[1], [0], [0], [1], [0, 0, 1, 1], [], []>} : vector<128x8xbf16>, vector<8x64xbf16>, vector<128x64xf32> -> vector<128x64xf32>
    %c0_48 = arith.constant 0 : index
    %c0_49 = arith.constant 0 : index
    %53 = vector.load %arg6[%c0_48, %c0_49] : memref<128x64xbf16, #tpu.memory_space<vmem>>, vector<128x64xbf16>
    %cst_50 = arith.constant dense<0.000000e+00> : vector<128x64xf32>
    %54 = tpu.matmul %53, %4, %cst_50 {dimension_numbers = #tpu.dot_dimension_numbers<[1], [0], [0], [1], [0, 0, 1, 1], [], []>} : vector<128x64xbf16>, vector<64x64xbf16>, vector<128x64xf32> -> vector<128x64xf32>
    %55 = arith.addf %52, %54 : vector<128x64xf32>
    %cst_51 = arith.constant 0.000000e+00 : f32
    %56 = vector.broadcast %cst_51 : f32 to vector<128x64xf32>
    %57 = arith.maximumf %55, %56 : vector<128x64xf32>
    %58 = arith.truncf %57 : vector<128x64xf32> to vector<128x64xbf16>
    %c0_52 = arith.constant 0 : index
    %c0_53 = arith.constant 0 : index
    %c0_54 = arith.constant 0 : index
    %59 = vector.load %arg8[%c0_52, %c0_53, %c0_54] : memref<1x128x64xbf16, #tpu.memory_space<vmem>>, vector<1x128x64xbf16>
    %60 = vector.shape_cast %59 : vector<1x128x64xbf16> to vector<128x64xbf16>
    %61 = vector.shape_cast %58 : vector<128x64xbf16> to vector<1x128x64xbf16>
    tpu.vector_store %arg8[%c0_52, %c0_53, %c0_54], %61 {strides = array<i32>} : memref<1x128x64xbf16, #tpu.memory_space<vmem>>, vector<1x128x64xbf16>,
    return
  }
  func.func @transform_0(%arg0: i32) -> (i32, i32, i32) {
    %c0_i32 = arith.constant 0 : i32
    %c0_i32_0 = arith.constant 0 : i32
    %c0_i32_1 = arith.constant 0 : i32
    return %arg0, %c0_i32, %c0_i32_0 : i32, i32, i32
  }
  func.func @transform_1(%arg0: i32) -> (i32, i32) {
    %c0_i32 = arith.constant 0 : i32
    %c0_i32_0 = arith.constant 0 : i32
    %c0_i32_1 = arith.constant 0 : i32
    return %c0_i32, %c0_i32_0 : i32, i32
  }
  func.func @transform_2(%arg0: i32) -> (i32, i32) {
    %c0_i32 = arith.constant 0 : i32
    %c0_i32_0 = arith.constant 0 : i32
    %c0_i32_1 = arith.constant 0 : i32
    return %c0_i32, %c0_i32_0 : i32, i32
  }
  func.func @transform_3(%arg0: i32) -> (i32, i32) {
    %c0_i32 = arith.constant 0 : i32
    %c0_i32_0 = arith.constant 0 : i32
    %c0_i32_1 = arith.constant 0 : i32
    return %c0_i32, %c0_i32_0 : i32, i32
  }
  func.func @transform_4(%arg0: i32) -> (i32, i32) {
    %c0_i32 = arith.constant 0 : i32
    %c0_i32_0 = arith.constant 0 : i32
    %c0_i32_1 = arith.constant 0 : i32
    return %c0_i32, %c0_i32_0 : i32, i32
  }
  func.func @transform_5(%arg0: i32) -> (i32, i32) {
    %c0_i32 = arith.constant 0 : i32
    %c0_i32_0 = arith.constant 0 : i32
    %c0_i32_1 = arith.constant 0 : i32
    return %c0_i32, %c0_i32_0 : i32, i32
  }
  func.func @transform_6(%arg0: i32) -> (i32, i32) {
    %c0_i32 = arith.constant 0 : i32
    %c0_i32_0 = arith.constant 0 : i32
    %c0_i32_1 = arith.constant 0 : i32
    return %c0_i32, %c0_i32_0 : i32, i32
  }
  func.func @transform_7(%arg0: i32) -> (i32, i32, i32) {
    %c0_i32 = arith.constant 0 : i32
    %c0_i32_0 = arith.constant 0 : i32
    %c0_i32_1 = arith.constant 0 : i32
    return %arg0, %c0_i32, %c0_i32_0 : i32, i32, i32
  }
}

module attributes {stable_mosaic.version = 11 : i64} {
  func.func @kernel(%arg0: i32, %arg1: memref<1x128x64xbf16, #tpu.memory_space<vmem>>, %arg2: memref<16x128xbf16, #tpu.memory_space<vmem>>, %arg3: memref<16x144xbf16, #tpu.memory_space<vmem>>, %arg4: memref<256x16xbf16, #tpu.memory_space<vmem>>, %arg5: memref<2x16xbf16, #tpu.memory_space<vmem>>, %arg6: memref<256x128xbf16, #tpu.memory_space<vmem>>, %arg7: memref<64x16xbf16, #tpu.memory_space<vmem>>, %arg8: memref<1x256x16xbf16, #tpu.memory_space<vmem>>, %arg9: memref<16x26xbf16, #tpu.memory_space<vmem>>, %arg10: memref<144x16xbf16, #tpu.memory_space<vmem>>) attributes {dimension_semantics = [#tpu.dimension_semantics<arbitrary>], iteration_bounds = array<i64: 2>, scalar_prefetch = 0 : i64, scratch_operands = 2 : i64, tpu.core_type = #tpu.core_type<tc>, window_params = [{transform_indices = @transform_0, window_bounds = array<i64: 1, 128, 64>}, {pipeline_mode = #tpu.pipeline_mode<synchronous>, transform_indices = @transform_1, window_bounds = array<i64: 16, 128>}, {pipeline_mode = #tpu.pipeline_mode<synchronous>, transform_indices = @transform_2, window_bounds = array<i64: 16, 144>}, {pipeline_mode = #tpu.pipeline_mode<synchronous>, transform_indices = @transform_3, window_bounds = array<i64: 256, 16>}, {pipeline_mode = #tpu.pipeline_mode<synchronous>, transform_indices = @transform_4, window_bounds = array<i64: 2, 16>}, {pipeline_mode = #tpu.pipeline_mode<synchronous>, transform_indices = @transform_5, window_bounds = array<i64: 256, 128>}, {pipeline_mode = #tpu.pipeline_mode<synchronous>, transform_indices = @transform_6, window_bounds = array<i64: 64, 16>}, {transform_indices = @transform_7, window_bounds = array<i64: 1, 256, 16>}]} {
    %c0 = arith.constant 0 : index
    %c0_0 = arith.constant 0 : index
    %c0_1 = arith.constant 0 : index
    %0 = vector.load %arg1[%c0, %c0_0, %c0_1] : memref<1x128x64xbf16, #tpu.memory_space<vmem>>, vector<1x128x64xbf16>
    %1 = vector.shape_cast %0 : vector<1x128x64xbf16> to vector<128x64xbf16>
    %c0_2 = arith.constant 0 : index
    %c0_3 = arith.constant 0 : index
    %2 = vector.load %arg7[%c0_2, %c0_3] : memref<64x16xbf16, #tpu.memory_space<vmem>>, vector<64x16xbf16>
    %cst = arith.constant dense<0.000000e+00> : vector<128x16xf32>
    %3 = tpu.matmul %1, %2, %cst {dimension_numbers = #tpu.dot_dimension_numbers<[1], [0], [0], [1], [0, 0, 1, 1], [], []>} : vector<128x64xbf16>, vector<64x16xbf16>, vector<128x16xf32> -> vector<128x16xf32>
    %4 = arith.truncf %3 : vector<128x16xf32> to vector<128x16xbf16>
    %c0_4 = arith.constant 0 : index
    %c0_5 = arith.constant 0 : index
    %5 = vector.load %arg2[%c0_4, %c0_5] : memref<16x128xbf16, #tpu.memory_space<vmem>>, vector<16x128xbf16>
    %cst_6 = arith.constant dense<0.000000e+00> : vector<16x16xf32>
    %6 = tpu.matmul %5, %4, %cst_6 {dimension_numbers = #tpu.dot_dimension_numbers<[1], [0], [0], [1], [0, 0, 1, 1], [], []>} : vector<16x128xbf16>, vector<128x16xbf16>, vector<16x16xf32> -> vector<16x16xf32>
    %cst_7 = arith.constant 0.000000e+00 : f32
    %7 = vector.broadcast %cst_7 : f32 to vector<16x16xf32>
    %8 = arith.maximumf %6, %7 : vector<16x16xf32>
    %9 = arith.truncf %8 : vector<16x16xf32> to vector<16x16xbf16>
    %cst_8 = arith.constant 0.000000e+00 : bf16
    %10 = vector.broadcast %cst_8 : bf16 to vector<16x26xbf16>
    %c0_9 = arith.constant 0 : index
    %c0_10 = arith.constant 0 : index
    %11 = vector.load %arg9[%c0_9, %c0_10] : memref<16x26xbf16, #tpu.memory_space<vmem>>, vector<16x26xbf16>
    tpu.vector_store %arg9[%c0_9, %c0_10], %10 {strides = array<i32>} : memref<16x26xbf16, #tpu.memory_space<vmem>>, vector<16x26xbf16>,
    %c0_11 = arith.constant 0 : index
    %c5 = arith.constant 5 : index
    %12 = vector.load %arg9[%c0_11, %c5] : memref<16x26xbf16, #tpu.memory_space<vmem>>, vector<16x16xbf16>
    tpu.vector_store %arg9[%c0_11, %c5], %9 {strides = array<i32>} : memref<16x26xbf16, #tpu.memory_space<vmem>>, vector<16x16xbf16>,
    %c0_12 = arith.constant 0 : index
    %c0_13 = arith.constant 0 : index
    %13 = vector.load %arg5[%c0_12, %c0_13] : memref<2x16xbf16, #tpu.memory_space<vmem>>, vector<1x16xbf16>
    %c1 = arith.constant 1 : index
    %c0_14 = arith.constant 0 : index
    %14 = vector.load %arg5[%c1, %c0_14] : memref<2x16xbf16, #tpu.memory_space<vmem>>, vector<1x16xbf16>
    %c0_15 = arith.constant 0 : index
    %c0_16 = arith.constant 0 : index
    %15 = vector.load %arg9[%c0_15, %c0_16] : memref<16x26xbf16, #tpu.memory_space<vmem>>, vector<16x16xbf16>
    %16 = vector.broadcast %13 : vector<1x16xbf16> to vector<16x16xbf16>
    %17 = arith.mulf %15, %16 : vector<16x16xbf16>
    %c0_17 = arith.constant 0 : index
    %c0_18 = arith.constant 0 : index
    %18 = vector.load %arg10[%c0_17, %c0_18] : memref<144x16xbf16, #tpu.memory_space<vmem>>, vector<16x16xbf16>
    tpu.vector_store %arg10[%c0_17, %c0_18], %17 {strides = array<i32>} : memref<144x16xbf16, #tpu.memory_space<vmem>>, vector<16x16xbf16>,
    %c0_19 = arith.constant 0 : index
    %c1_20 = arith.constant 1 : index
    %19 = vector.load %arg9[%c0_19, %c1_20] : memref<16x26xbf16, #tpu.memory_space<vmem>>, vector<16x16xbf16>
    %c16 = arith.constant 16 : index
    %c0_21 = arith.constant 0 : index
    %20 = vector.load %arg10[%c16, %c0_21] : memref<144x16xbf16, #tpu.memory_space<vmem>>, vector<16x16xbf16>
    tpu.vector_store %arg10[%c16, %c0_21], %19 {strides = array<i32>} : memref<144x16xbf16, #tpu.memory_space<vmem>>, vector<16x16xbf16>,
    %c0_22 = arith.constant 0 : index
    %c2 = arith.constant 2 : index
    %21 = vector.load %arg9[%c0_22, %c2] : memref<16x26xbf16, #tpu.memory_space<vmem>>, vector<16x16xbf16>
    %22 = vector.broadcast %14 : vector<1x16xbf16> to vector<16x16xbf16>
    %23 = arith.mulf %21, %22 : vector<16x16xbf16>
    %c32 = arith.constant 32 : index
    %c0_23 = arith.constant 0 : index
    %24 = vector.load %arg10[%c32, %c0_23] : memref<144x16xbf16, #tpu.memory_space<vmem>>, vector<16x16xbf16>
    tpu.vector_store %arg10[%c32, %c0_23], %23 {strides = array<i32>} : memref<144x16xbf16, #tpu.memory_space<vmem>>, vector<16x16xbf16>,
    %c0_24 = arith.constant 0 : index
    %c4 = arith.constant 4 : index
    %25 = vector.load %arg9[%c0_24, %c4] : memref<16x26xbf16, #tpu.memory_space<vmem>>, vector<16x16xbf16>
    %26 = vector.broadcast %13 : vector<1x16xbf16> to vector<16x16xbf16>
    %27 = arith.mulf %25, %26 : vector<16x16xbf16>
    %c48 = arith.constant 48 : index
    %c0_25 = arith.constant 0 : index
    %28 = vector.load %arg10[%c48, %c0_25] : memref<144x16xbf16, #tpu.memory_space<vmem>>, vector<16x16xbf16>
    tpu.vector_store %arg10[%c48, %c0_25], %27 {strides = array<i32>} : memref<144x16xbf16, #tpu.memory_space<vmem>>, vector<16x16xbf16>,
    %c0_26 = arith.constant 0 : index
    %c5_27 = arith.constant 5 : index
    %29 = vector.load %arg9[%c0_26, %c5_27] : memref<16x26xbf16, #tpu.memory_space<vmem>>, vector<16x16xbf16>
    %c64 = arith.constant 64 : index
    %c0_28 = arith.constant 0 : index
    %30 = vector.load %arg10[%c64, %c0_28] : memref<144x16xbf16, #tpu.memory_space<vmem>>, vector<16x16xbf16>
    tpu.vector_store %arg10[%c64, %c0_28], %29 {strides = array<i32>} : memref<144x16xbf16, #tpu.memory_space<vmem>>, vector<16x16xbf16>,
    %c0_29 = arith.constant 0 : index
    %c6 = arith.constant 6 : index
    %31 = vector.load %arg9[%c0_29, %c6] : memref<16x26xbf16, #tpu.memory_space<vmem>>, vector<16x16xbf16>
    %32 = vector.broadcast %14 : vector<1x16xbf16> to vector<16x16xbf16>
    %33 = arith.mulf %31, %32 : vector<16x16xbf16>
    %c80 = arith.constant 80 : index
    %c0_30 = arith.constant 0 : index
    %34 = vector.load %arg10[%c80, %c0_30] : memref<144x16xbf16, #tpu.memory_space<vmem>>, vector<16x16xbf16>
    tpu.vector_store %arg10[%c80, %c0_30], %33 {strides = array<i32>} : memref<144x16xbf16, #tpu.memory_space<vmem>>, vector<16x16xbf16>,
    %c0_31 = arith.constant 0 : index
    %c8 = arith.constant 8 : index
    %35 = vector.load %arg9[%c0_31, %c8] : memref<16x26xbf16, #tpu.memory_space<vmem>>, vector<16x16xbf16>
    %36 = vector.broadcast %13 : vector<1x16xbf16> to vector<16x16xbf16>
    %37 = arith.mulf %35, %36 : vector<16x16xbf16>
    %c96 = arith.constant 96 : index
    %c0_32 = arith.constant 0 : index
    %38 = vector.load %arg10[%c96, %c0_32] : memref<144x16xbf16, #tpu.memory_space<vmem>>, vector<16x16xbf16>
    tpu.vector_store %arg10[%c96, %c0_32], %37 {strides = array<i32>} : memref<144x16xbf16, #tpu.memory_space<vmem>>, vector<16x16xbf16>,
    %c0_33 = arith.constant 0 : index
    %c9 = arith.constant 9 : index
    %39 = vector.load %arg9[%c0_33, %c9] : memref<16x26xbf16, #tpu.memory_space<vmem>>, vector<16x16xbf16>
    %c112 = arith.constant 112 : index
    %c0_34 = arith.constant 0 : index
    %40 = vector.load %arg10[%c112, %c0_34] : memref<144x16xbf16, #tpu.memory_space<vmem>>, vector<16x16xbf16>
    tpu.vector_store %arg10[%c112, %c0_34], %39 {strides = array<i32>} : memref<144x16xbf16, #tpu.memory_space<vmem>>, vector<16x16xbf16>,
    %c0_35 = arith.constant 0 : index
    %c10 = arith.constant 10 : index
    %41 = vector.load %arg9[%c0_35, %c10] : memref<16x26xbf16, #tpu.memory_space<vmem>>, vector<16x16xbf16>
    %42 = vector.broadcast %14 : vector<1x16xbf16> to vector<16x16xbf16>
    %43 = arith.mulf %41, %42 : vector<16x16xbf16>
    %c128 = arith.constant 128 : index
    %c0_36 = arith.constant 0 : index
    %44 = vector.load %arg10[%c128, %c0_36] : memref<144x16xbf16, #tpu.memory_space<vmem>>, vector<16x16xbf16>
    tpu.vector_store %arg10[%c128, %c0_36], %43 {strides = array<i32>} : memref<144x16xbf16, #tpu.memory_space<vmem>>, vector<16x16xbf16>,
    %c0_37 = arith.constant 0 : index
    %c0_38 = arith.constant 0 : index
    %45 = vector.load %arg3[%c0_37, %c0_38] : memref<16x144xbf16, #tpu.memory_space<vmem>>, vector<16x144xbf16>
    %c0_39 = arith.constant 0 : index
    %c0_40 = arith.constant 0 : index
    %46 = vector.load %arg10[%c0_39, %c0_40] : memref<144x16xbf16, #tpu.memory_space<vmem>>, vector<144x16xbf16>
    %cst_41 = arith.constant dense<0.000000e+00> : vector<16x16xf32>
    %47 = tpu.matmul %45, %46, %cst_41 {dimension_numbers = #tpu.dot_dimension_numbers<[1], [0], [0], [1], [0, 0, 1, 1], [], []>} : vector<16x144xbf16>, vector<144x16xbf16>, vector<16x16xf32> -> vector<16x16xf32>
    %cst_42 = arith.constant 0.000000e+00 : f32
    %48 = vector.broadcast %cst_42 : f32 to vector<16x16xf32>
    %49 = arith.maximumf %47, %48 : vector<16x16xf32>
    %50 = arith.truncf %49 : vector<16x16xf32> to vector<16x16xbf16>
    %c0_43 = arith.constant 0 : index
    %c0_44 = arith.constant 0 : index
    %51 = vector.load %arg4[%c0_43, %c0_44] : memref<256x16xbf16, #tpu.memory_space<vmem>>, vector<256x16xbf16>
    %cst_45 = arith.constant dense<0.000000e+00> : vector<256x16xf32>
    %52 = tpu.matmul %51, %50, %cst_45 {dimension_numbers = #tpu.dot_dimension_numbers<[1], [0], [0], [1], [0, 0, 1, 1], [], []>} : vector<256x16xbf16>, vector<16x16xbf16>, vector<256x16xf32> -> vector<256x16xf32>
    %c0_46 = arith.constant 0 : index
    %c0_47 = arith.constant 0 : index
    %53 = vector.load %arg6[%c0_46, %c0_47] : memref<256x128xbf16, #tpu.memory_space<vmem>>, vector<256x128xbf16>
    %cst_48 = arith.constant dense<0.000000e+00> : vector<256x16xf32>
    %54 = tpu.matmul %53, %4, %cst_48 {dimension_numbers = #tpu.dot_dimension_numbers<[1], [0], [0], [1], [0, 0, 1, 1], [], []>} : vector<256x128xbf16>, vector<128x16xbf16>, vector<256x16xf32> -> vector<256x16xf32>
    %55 = arith.addf %52, %54 : vector<256x16xf32>
    %cst_49 = arith.constant 0.000000e+00 : f32
    %56 = vector.broadcast %cst_49 : f32 to vector<256x16xf32>
    %57 = arith.maximumf %55, %56 : vector<256x16xf32>
    %58 = arith.truncf %57 : vector<256x16xf32> to vector<256x16xbf16>
    %c0_50 = arith.constant 0 : index
    %c0_51 = arith.constant 0 : index
    %c0_52 = arith.constant 0 : index
    %59 = vector.load %arg8[%c0_50, %c0_51, %c0_52] : memref<1x256x16xbf16, #tpu.memory_space<vmem>>, vector<1x256x16xbf16>
    %60 = vector.shape_cast %59 : vector<1x256x16xbf16> to vector<256x16xbf16>
    %61 = vector.shape_cast %58 : vector<256x16xbf16> to vector<1x256x16xbf16>
    tpu.vector_store %arg8[%c0_50, %c0_51, %c0_52], %61 {strides = array<i32>} : memref<1x256x16xbf16, #tpu.memory_space<vmem>>, vector<1x256x16xbf16>,
    return
  }
  func.func @transform_0(%arg0: i32) -> (i32, i32, i32) {
    %c0_i32 = arith.constant 0 : i32
    %c0_i32_0 = arith.constant 0 : i32
    %c0_i32_1 = arith.constant 0 : i32
    return %arg0, %c0_i32, %c0_i32_0 : i32, i32, i32
  }
  func.func @transform_1(%arg0: i32) -> (i32, i32) {
    %c0_i32 = arith.constant 0 : i32
    %c0_i32_0 = arith.constant 0 : i32
    %c0_i32_1 = arith.constant 0 : i32
    return %c0_i32, %c0_i32_0 : i32, i32
  }
  func.func @transform_2(%arg0: i32) -> (i32, i32) {
    %c0_i32 = arith.constant 0 : i32
    %c0_i32_0 = arith.constant 0 : i32
    %c0_i32_1 = arith.constant 0 : i32
    return %c0_i32, %c0_i32_0 : i32, i32
  }
  func.func @transform_3(%arg0: i32) -> (i32, i32) {
    %c0_i32 = arith.constant 0 : i32
    %c0_i32_0 = arith.constant 0 : i32
    %c0_i32_1 = arith.constant 0 : i32
    return %c0_i32, %c0_i32_0 : i32, i32
  }
  func.func @transform_4(%arg0: i32) -> (i32, i32) {
    %c0_i32 = arith.constant 0 : i32
    %c0_i32_0 = arith.constant 0 : i32
    %c0_i32_1 = arith.constant 0 : i32
    return %c0_i32, %c0_i32_0 : i32, i32
  }
  func.func @transform_5(%arg0: i32) -> (i32, i32) {
    %c0_i32 = arith.constant 0 : i32
    %c0_i32_0 = arith.constant 0 : i32
    %c0_i32_1 = arith.constant 0 : i32
    return %c0_i32, %c0_i32_0 : i32, i32
  }
  func.func @transform_6(%arg0: i32) -> (i32, i32) {
    %c0_i32 = arith.constant 0 : i32
    %c0_i32_0 = arith.constant 0 : i32
    %c0_i32_1 = arith.constant 0 : i32
    return %c0_i32, %c0_i32_0 : i32, i32
  }
  func.func @transform_7(%arg0: i32) -> (i32, i32, i32) {
    %c0_i32 = arith.constant 0 : i32
    %c0_i32_0 = arith.constant 0 : i32
    %c0_i32_1 = arith.constant 0 : i32
    return %arg0, %c0_i32, %c0_i32_0 : i32, i32, i32
  }
}

module attributes {stable_mosaic.version = 11 : i64} {
  func.func @kernel(%arg0: i32, %arg1: memref<1x256x16xbf16, #tpu.memory_space<vmem>>, %arg2: memref<32x256xbf16, #tpu.memory_space<vmem>>, %arg3: memref<32x288xbf16, #tpu.memory_space<vmem>>, %arg4: memref<512x32xbf16, #tpu.memory_space<vmem>>, %arg5: memref<2x4xbf16, #tpu.memory_space<vmem>>, %arg6: memref<512x256xbf16, #tpu.memory_space<vmem>>, %arg7: memref<16x4xbf16, #tpu.memory_space<vmem>>, %arg8: memref<1x512x4xbf16, #tpu.memory_space<vmem>>, %arg9: memref<32x10xbf16, #tpu.memory_space<vmem>>, %arg10: memref<288x4xbf16, #tpu.memory_space<vmem>>) attributes {dimension_semantics = [#tpu.dimension_semantics<arbitrary>], iteration_bounds = array<i64: 2>, scalar_prefetch = 0 : i64, scratch_operands = 2 : i64, tpu.core_type = #tpu.core_type<tc>, window_params = [{transform_indices = @transform_0, window_bounds = array<i64: 1, 256, 16>}, {pipeline_mode = #tpu.pipeline_mode<synchronous>, transform_indices = @transform_1, window_bounds = array<i64: 32, 256>}, {pipeline_mode = #tpu.pipeline_mode<synchronous>, transform_indices = @transform_2, window_bounds = array<i64: 32, 288>}, {pipeline_mode = #tpu.pipeline_mode<synchronous>, transform_indices = @transform_3, window_bounds = array<i64: 512, 32>}, {pipeline_mode = #tpu.pipeline_mode<synchronous>, transform_indices = @transform_4, window_bounds = array<i64: 2, 4>}, {pipeline_mode = #tpu.pipeline_mode<synchronous>, transform_indices = @transform_5, window_bounds = array<i64: 512, 256>}, {pipeline_mode = #tpu.pipeline_mode<synchronous>, transform_indices = @transform_6, window_bounds = array<i64: 16, 4>}, {transform_indices = @transform_7, window_bounds = array<i64: 1, 512, 4>}]} {
    %c0 = arith.constant 0 : index
    %c0_0 = arith.constant 0 : index
    %c0_1 = arith.constant 0 : index
    %0 = vector.load %arg1[%c0, %c0_0, %c0_1] : memref<1x256x16xbf16, #tpu.memory_space<vmem>>, vector<1x256x16xbf16>
    %1 = vector.shape_cast %0 : vector<1x256x16xbf16> to vector<256x16xbf16>
    %c0_2 = arith.constant 0 : index
    %c0_3 = arith.constant 0 : index
    %2 = vector.load %arg7[%c0_2, %c0_3] : memref<16x4xbf16, #tpu.memory_space<vmem>>, vector<16x4xbf16>
    %cst = arith.constant dense<0.000000e+00> : vector<256x4xf32>
    %3 = tpu.matmul %1, %2, %cst {dimension_numbers = #tpu.dot_dimension_numbers<[1], [0], [0], [1], [0, 0, 1, 1], [], []>} : vector<256x16xbf16>, vector<16x4xbf16>, vector<256x4xf32> -> vector<256x4xf32>
    %4 = arith.truncf %3 : vector<256x4xf32> to vector<256x4xbf16>
    %c0_4 = arith.constant 0 : index
    %c0_5 = arith.constant 0 : index
    %5 = vector.load %arg2[%c0_4, %c0_5] : memref<32x256xbf16, #tpu.memory_space<vmem>>, vector<32x256xbf16>
    %cst_6 = arith.constant dense<0.000000e+00> : vector<32x4xf32>
    %6 = tpu.matmul %5, %4, %cst_6 {dimension_numbers = #tpu.dot_dimension_numbers<[1], [0], [0], [1], [0, 0, 1, 1], [], []>} : vector<32x256xbf16>, vector<256x4xbf16>, vector<32x4xf32> -> vector<32x4xf32>
    %cst_7 = arith.constant 0.000000e+00 : f32
    %7 = vector.broadcast %cst_7 : f32 to vector<32x4xf32>
    %8 = arith.maximumf %6, %7 : vector<32x4xf32>
    %9 = arith.truncf %8 : vector<32x4xf32> to vector<32x4xbf16>
    %cst_8 = arith.constant 0.000000e+00 : bf16
    %10 = vector.broadcast %cst_8 : bf16 to vector<32x10xbf16>
    %c0_9 = arith.constant 0 : index
    %c0_10 = arith.constant 0 : index
    %11 = vector.load %arg9[%c0_9, %c0_10] : memref<32x10xbf16, #tpu.memory_space<vmem>>, vector<32x10xbf16>
    tpu.vector_store %arg9[%c0_9, %c0_10], %10 {strides = array<i32>} : memref<32x10xbf16, #tpu.memory_space<vmem>>, vector<32x10xbf16>,
    %c0_11 = arith.constant 0 : index
    %c3 = arith.constant 3 : index
    %12 = vector.load %arg9[%c0_11, %c3] : memref<32x10xbf16, #tpu.memory_space<vmem>>, vector<32x4xbf16>
    tpu.vector_store %arg9[%c0_11, %c3], %9 {strides = array<i32>} : memref<32x10xbf16, #tpu.memory_space<vmem>>, vector<32x4xbf16>,
    %c0_12 = arith.constant 0 : index
    %c0_13 = arith.constant 0 : index
    %13 = vector.load %arg5[%c0_12, %c0_13] : memref<2x4xbf16, #tpu.memory_space<vmem>>, vector<1x4xbf16>
    %c1 = arith.constant 1 : index
    %c0_14 = arith.constant 0 : index
    %14 = vector.load %arg5[%c1, %c0_14] : memref<2x4xbf16, #tpu.memory_space<vmem>>, vector<1x4xbf16>
    %c0_15 = arith.constant 0 : index
    %c0_16 = arith.constant 0 : index
    %15 = vector.load %arg9[%c0_15, %c0_16] : memref<32x10xbf16, #tpu.memory_space<vmem>>, vector<32x4xbf16>
    %16 = vector.broadcast %13 : vector<1x4xbf16> to vector<32x4xbf16>
    %17 = arith.mulf %15, %16 : vector<32x4xbf16>
    %c0_17 = arith.constant 0 : index
    %c0_18 = arith.constant 0 : index
    %18 = vector.load %arg10[%c0_17, %c0_18] : memref<288x4xbf16, #tpu.memory_space<vmem>>, vector<32x4xbf16>
    tpu.vector_store %arg10[%c0_17, %c0_18], %17 {strides = array<i32>} : memref<288x4xbf16, #tpu.memory_space<vmem>>, vector<32x4xbf16>,
    %c0_19 = arith.constant 0 : index
    %c1_20 = arith.constant 1 : index
    %19 = vector.load %arg9[%c0_19, %c1_20] : memref<32x10xbf16, #tpu.memory_space<vmem>>, vector<32x4xbf16>
    %c32 = arith.constant 32 : index
    %c0_21 = arith.constant 0 : index
    %20 = vector.load %arg10[%c32, %c0_21] : memref<288x4xbf16, #tpu.memory_space<vmem>>, vector<32x4xbf16>
    tpu.vector_store %arg10[%c32, %c0_21], %19 {strides = array<i32>} : memref<288x4xbf16, #tpu.memory_space<vmem>>, vector<32x4xbf16>,
    %c0_22 = arith.constant 0 : index
    %c2 = arith.constant 2 : index
    %21 = vector.load %arg9[%c0_22, %c2] : memref<32x10xbf16, #tpu.memory_space<vmem>>, vector<32x4xbf16>
    %22 = vector.broadcast %14 : vector<1x4xbf16> to vector<32x4xbf16>
    %23 = arith.mulf %21, %22 : vector<32x4xbf16>
    %c64 = arith.constant 64 : index
    %c0_23 = arith.constant 0 : index
    %24 = vector.load %arg10[%c64, %c0_23] : memref<288x4xbf16, #tpu.memory_space<vmem>>, vector<32x4xbf16>
    tpu.vector_store %arg10[%c64, %c0_23], %23 {strides = array<i32>} : memref<288x4xbf16, #tpu.memory_space<vmem>>, vector<32x4xbf16>,
    %c0_24 = arith.constant 0 : index
    %c2_25 = arith.constant 2 : index
    %25 = vector.load %arg9[%c0_24, %c2_25] : memref<32x10xbf16, #tpu.memory_space<vmem>>, vector<32x4xbf16>
    %26 = vector.broadcast %13 : vector<1x4xbf16> to vector<32x4xbf16>
    %27 = arith.mulf %25, %26 : vector<32x4xbf16>
    %c96 = arith.constant 96 : index
    %c0_26 = arith.constant 0 : index
    %28 = vector.load %arg10[%c96, %c0_26] : memref<288x4xbf16, #tpu.memory_space<vmem>>, vector<32x4xbf16>
    tpu.vector_store %arg10[%c96, %c0_26], %27 {strides = array<i32>} : memref<288x4xbf16, #tpu.memory_space<vmem>>, vector<32x4xbf16>,
    %c0_27 = arith.constant 0 : index
    %c3_28 = arith.constant 3 : index
    %29 = vector.load %arg9[%c0_27, %c3_28] : memref<32x10xbf16, #tpu.memory_space<vmem>>, vector<32x4xbf16>
    %c128 = arith.constant 128 : index
    %c0_29 = arith.constant 0 : index
    %30 = vector.load %arg10[%c128, %c0_29] : memref<288x4xbf16, #tpu.memory_space<vmem>>, vector<32x4xbf16>
    tpu.vector_store %arg10[%c128, %c0_29], %29 {strides = array<i32>} : memref<288x4xbf16, #tpu.memory_space<vmem>>, vector<32x4xbf16>,
    %c0_30 = arith.constant 0 : index
    %c4 = arith.constant 4 : index
    %31 = vector.load %arg9[%c0_30, %c4] : memref<32x10xbf16, #tpu.memory_space<vmem>>, vector<32x4xbf16>
    %32 = vector.broadcast %14 : vector<1x4xbf16> to vector<32x4xbf16>
    %33 = arith.mulf %31, %32 : vector<32x4xbf16>
    %c160 = arith.constant 160 : index
    %c0_31 = arith.constant 0 : index
    %34 = vector.load %arg10[%c160, %c0_31] : memref<288x4xbf16, #tpu.memory_space<vmem>>, vector<32x4xbf16>
    tpu.vector_store %arg10[%c160, %c0_31], %33 {strides = array<i32>} : memref<288x4xbf16, #tpu.memory_space<vmem>>, vector<32x4xbf16>,
    %c0_32 = arith.constant 0 : index
    %c4_33 = arith.constant 4 : index
    %35 = vector.load %arg9[%c0_32, %c4_33] : memref<32x10xbf16, #tpu.memory_space<vmem>>, vector<32x4xbf16>
    %36 = vector.broadcast %13 : vector<1x4xbf16> to vector<32x4xbf16>
    %37 = arith.mulf %35, %36 : vector<32x4xbf16>
    %c192 = arith.constant 192 : index
    %c0_34 = arith.constant 0 : index
    %38 = vector.load %arg10[%c192, %c0_34] : memref<288x4xbf16, #tpu.memory_space<vmem>>, vector<32x4xbf16>
    tpu.vector_store %arg10[%c192, %c0_34], %37 {strides = array<i32>} : memref<288x4xbf16, #tpu.memory_space<vmem>>, vector<32x4xbf16>,
    %c0_35 = arith.constant 0 : index
    %c5 = arith.constant 5 : index
    %39 = vector.load %arg9[%c0_35, %c5] : memref<32x10xbf16, #tpu.memory_space<vmem>>, vector<32x4xbf16>
    %c224 = arith.constant 224 : index
    %c0_36 = arith.constant 0 : index
    %40 = vector.load %arg10[%c224, %c0_36] : memref<288x4xbf16, #tpu.memory_space<vmem>>, vector<32x4xbf16>
    tpu.vector_store %arg10[%c224, %c0_36], %39 {strides = array<i32>} : memref<288x4xbf16, #tpu.memory_space<vmem>>, vector<32x4xbf16>,
    %c0_37 = arith.constant 0 : index
    %c6 = arith.constant 6 : index
    %41 = vector.load %arg9[%c0_37, %c6] : memref<32x10xbf16, #tpu.memory_space<vmem>>, vector<32x4xbf16>
    %42 = vector.broadcast %14 : vector<1x4xbf16> to vector<32x4xbf16>
    %43 = arith.mulf %41, %42 : vector<32x4xbf16>
    %c256 = arith.constant 256 : index
    %c0_38 = arith.constant 0 : index
    %44 = vector.load %arg10[%c256, %c0_38] : memref<288x4xbf16, #tpu.memory_space<vmem>>, vector<32x4xbf16>
    tpu.vector_store %arg10[%c256, %c0_38], %43 {strides = array<i32>} : memref<288x4xbf16, #tpu.memory_space<vmem>>, vector<32x4xbf16>,
    %c0_39 = arith.constant 0 : index
    %c0_40 = arith.constant 0 : index
    %45 = vector.load %arg3[%c0_39, %c0_40] : memref<32x288xbf16, #tpu.memory_space<vmem>>, vector<32x288xbf16>
    %c0_41 = arith.constant 0 : index
    %c0_42 = arith.constant 0 : index
    %46 = vector.load %arg10[%c0_41, %c0_42] : memref<288x4xbf16, #tpu.memory_space<vmem>>, vector<288x4xbf16>
    %cst_43 = arith.constant dense<0.000000e+00> : vector<32x4xf32>
    %47 = tpu.matmul %45, %46, %cst_43 {dimension_numbers = #tpu.dot_dimension_numbers<[1], [0], [0], [1], [0, 0, 1, 1], [], []>} : vector<32x288xbf16>, vector<288x4xbf16>, vector<32x4xf32> -> vector<32x4xf32>
    %cst_44 = arith.constant 0.000000e+00 : f32
    %48 = vector.broadcast %cst_44 : f32 to vector<32x4xf32>
    %49 = arith.maximumf %47, %48 : vector<32x4xf32>
    %50 = arith.truncf %49 : vector<32x4xf32> to vector<32x4xbf16>
    %c0_45 = arith.constant 0 : index
    %c0_46 = arith.constant 0 : index
    %51 = vector.load %arg4[%c0_45, %c0_46] : memref<512x32xbf16, #tpu.memory_space<vmem>>, vector<512x32xbf16>
    %cst_47 = arith.constant dense<0.000000e+00> : vector<512x4xf32>
    %52 = tpu.matmul %51, %50, %cst_47 {dimension_numbers = #tpu.dot_dimension_numbers<[1], [0], [0], [1], [0, 0, 1, 1], [], []>} : vector<512x32xbf16>, vector<32x4xbf16>, vector<512x4xf32> -> vector<512x4xf32>
    %c0_48 = arith.constant 0 : index
    %c0_49 = arith.constant 0 : index
    %53 = vector.load %arg6[%c0_48, %c0_49] : memref<512x256xbf16, #tpu.memory_space<vmem>>, vector<512x256xbf16>
    %cst_50 = arith.constant dense<0.000000e+00> : vector<512x4xf32>
    %54 = tpu.matmul %53, %4, %cst_50 {dimension_numbers = #tpu.dot_dimension_numbers<[1], [0], [0], [1], [0, 0, 1, 1], [], []>} : vector<512x256xbf16>, vector<256x4xbf16>, vector<512x4xf32> -> vector<512x4xf32>
    %55 = arith.addf %52, %54 : vector<512x4xf32>
    %cst_51 = arith.constant 0.000000e+00 : f32
    %56 = vector.broadcast %cst_51 : f32 to vector<512x4xf32>
    %57 = arith.maximumf %55, %56 : vector<512x4xf32>
    %58 = arith.truncf %57 : vector<512x4xf32> to vector<512x4xbf16>
    %c0_52 = arith.constant 0 : index
    %c0_53 = arith.constant 0 : index
    %c0_54 = arith.constant 0 : index
    %59 = vector.load %arg8[%c0_52, %c0_53, %c0_54] : memref<1x512x4xbf16, #tpu.memory_space<vmem>>, vector<1x512x4xbf16>
    %60 = vector.shape_cast %59 : vector<1x512x4xbf16> to vector<512x4xbf16>
    %61 = vector.shape_cast %58 : vector<512x4xbf16> to vector<1x512x4xbf16>
    tpu.vector_store %arg8[%c0_52, %c0_53, %c0_54], %61 {strides = array<i32>} : memref<1x512x4xbf16, #tpu.memory_space<vmem>>, vector<1x512x4xbf16>,
    return
  }
  func.func @transform_0(%arg0: i32) -> (i32, i32, i32) {
    %c0_i32 = arith.constant 0 : i32
    %c0_i32_0 = arith.constant 0 : i32
    %c0_i32_1 = arith.constant 0 : i32
    return %arg0, %c0_i32, %c0_i32_0 : i32, i32, i32
  }
  func.func @transform_1(%arg0: i32) -> (i32, i32) {
    %c0_i32 = arith.constant 0 : i32
    %c0_i32_0 = arith.constant 0 : i32
    %c0_i32_1 = arith.constant 0 : i32
    return %c0_i32, %c0_i32_0 : i32, i32
  }
  func.func @transform_2(%arg0: i32) -> (i32, i32) {
    %c0_i32 = arith.constant 0 : i32
    %c0_i32_0 = arith.constant 0 : i32
    %c0_i32_1 = arith.constant 0 : i32
    return %c0_i32, %c0_i32_0 : i32, i32
  }
  func.func @transform_3(%arg0: i32) -> (i32, i32) {
    %c0_i32 = arith.constant 0 : i32
    %c0_i32_0 = arith.constant 0 : i32
    %c0_i32_1 = arith.constant 0 : i32
    return %c0_i32, %c0_i32_0 : i32, i32
  }
  func.func @transform_4(%arg0: i32) -> (i32, i32) {
    %c0_i32 = arith.constant 0 : i32
    %c0_i32_0 = arith.constant 0 : i32
    %c0_i32_1 = arith.constant 0 : i32
    return %c0_i32, %c0_i32_0 : i32, i32
  }
  func.func @transform_5(%arg0: i32) -> (i32, i32) {
    %c0_i32 = arith.constant 0 : i32
    %c0_i32_0 = arith.constant 0 : i32
    %c0_i32_1 = arith.constant 0 : i32
    return %c0_i32, %c0_i32_0 : i32, i32
  }
  func.func @transform_6(%arg0: i32) -> (i32, i32) {
    %c0_i32 = arith.constant 0 : i32
    %c0_i32_0 = arith.constant 0 : i32
    %c0_i32_1 = arith.constant 0 : i32
    return %c0_i32, %c0_i32_0 : i32, i32
  }
  func.func @transform_7(%arg0: i32) -> (i32, i32, i32) {
    %c0_i32 = arith.constant 0 : i32
    %c0_i32_0 = arith.constant 0 : i32
    %c0_i32_1 = arith.constant 0 : i32
    return %arg0, %c0_i32, %c0_i32_0 : i32, i32, i32
  }
}

</mosaic_0001>

<bundles_post_ra>
// kernel: resnet_forward.6
= control target key start
LH: loop header
LB: loop body
LE: loop exit
PB: predicated region body
PF: predicated region fallthrough
CT: control target
= control target key end

     0   :  { %s1215_s21 = smov 0   ;;  %s1343_s0 = inlined_call_operand.vmem [shape: bf16[2,16,256], index: 0, kind: input, shape index: {}]   ;;  %s1344_s1 = inlined_call_operand.vmem [shape: bf16[8,16], index: 1, kind: input, shape index: {}]   ;;  %s1345_s2 = inlined_call_operand.vmem [shape: bf16[4,72], index: 2, kind: input, shape index: {}]   ;;  %s1346_s3 = inlined_call_operand.vmem [shape: bf16[64,4], index: 3, kind: input, shape index: {}]   ;;  %s1347_s4 = inlined_call_operand.vmem [shape: bf16[2,256], index: 4, kind: input, shape index: {}]   ;;  %s1348_s5 = inlined_call_operand.vmem [shape: bf16[64,16], index: 5, kind: input, shape index: {}]   ;;  %s1349_s6 = inlined_call_operand.vmem [shape: bf16[2,64,256], index: 6, kind: output, shape index: {}]  }
   0x1 LB: > { %s1039_s22 = sadd.s32 4294967295, %s1163_s21   ;;  %p1043_p0 = scmp.ge.s32.totalorder %s1163_s21, 1  ;;  %s1163_s21 = sphi %s1215_s21, %s16_s21  }
   0x2   : > { %p212_p1 = scmp.lt.s32.totalorder %s1163_s21, 3 }
   0x4   : > { %p213_p2 = pnand %p1043_p0, %p212_p1 }
   0x5   : > { %p242_p3 = scmp.lt.s32.totalorder (!%p213_p2), %s1039_s22, 1  ;;  %v1165_v0 = vmov (!%p213_p2), 0   ;;  %v255_v3 = vld [vmem:[%s1344_s1] sm:$0xf] (!%p213_p2)  ;;  %vm266_vm0 = vcmask (!%p213_p2), 130048   ;;  %v350_v6 = vlaneseq (!%p213_p2)  ;;  %s1167_s7 = smov (!%p213_p2), 32  }
   0x6   : > { %216 = sbr.rel (%p213_p2) target bundleno = 984 (0x3d8), region = 44  ;;  %302 = vmatprep.mubr.bf16.mxu0 (!%p213_p2), %v1165_v0  ;;  %315 = vst [vmem:[#allocation2] sm:$0xff] (!%p213_p2), %v1165_v0  ;;  %665 = vmatprep.mubr.bf16.mxu1 (!%p213_p2), %v1165_v0  ;;  %v1166_v4 = vmov (!%p213_p2), 1966171168   ;;  %s1168_s8 = smov (!%p213_p2), 36   ;;  %vm316_vm1 = vcmask (!%p213_p2), 551936  }
   0x7   : > { %v348_v5 = vunpack.c.l.s4 (!%p213_p2), %v1166_v4  ;;  %v351_v8 = vshrl.u32 (!%p213_p2), %v350_v6, 7  ;;  %v1052_v9 = vld.sshfl [vmem:[%s1347_s4] sm:$0x11 pattern:$0x75316420] (!%p213_p2)  ;;  %s1169_s9 = smov (!%p213_p2), 68  }
   0x8   : > { %v346_v10 = vcombine.high (!%p213_p2), %v1052_v9, %v1052_v9  ;;  %317 = vst.msk [vmem:[#allocation2 + $0x8] sm:$0xf] (!%p213_p2), %vm316_vm1, %v1165_v0  ;;  %s1170_s10 = smov (!%p213_p2), 34   ;;  %s1171_s11 = smov (!%p213_p2), 4   ;;  %vm330_vm2 = vcmask (!%p213_p2), 1043728   ;;  %vm331_vm3 = vcmask (!%p213_p2), 1047556  }
   0x9   : > { %v349_v7 = vunpack.c.0.s8 (!%p213_p2), %v348_v5  ;;  %v366_v15 = vsub.s32 (!%p213_p2), 0, %v351_v8  ;;  %s1172_s12 = smov (!%p213_p2), 64   ;;  %vm326_vm4 = vcmask (!%p213_p2), 277504   ;;  %vm334_vm5 = vcmask (!%p213_p2), 273408   ;;  %vm332_vm6 = vmor (!%p213_p2), %vm331_vm3, %vm330_vm2  ;;  %s1173_s13 = smov (!%p213_p2), 126  }
   0xa   : > { %s1174_s14 = smov (!%p213_p2), 94   ;;  %vm423_vm7 = vcmask (!%p213_p2), 31744   ;;  %s1175_s15 = smov (!%p213_p2), 62   ;;  %vm447_vm8 = vcmask (!%p213_p2), 261120   ;;  %vm486_vm9 = vcmask (!%p213_p2), 293888   ;;  %vm510_vm10 = vcmask (!%p213_p2), 523264  }
   0xb   : > { %v352_v11 = vsub.s32 (!%p213_p2), %v349_v7, %v351_v8  ;;  %s1176_s16 = smov (!%p213_p2), 124   ;;  %s1177_s17 = smov (!%p213_p2), 96   ;;  %vm548_vm11 = vcmask (!%p213_p2), 556032   ;;  %vm393_vm12 = vcmask (!%p213_p2), 1043456   ;;  %vm395_vm13 = vcmask (!%p213_p2), 1031168  }
   0xc   : > { %s1178_s18 = smov (!%p213_p2), 92   ;;  %vm438_vm14 = vcmask (!%p213_p2), 1014784   ;;  %vm462_vm15 = vcmask (!%p213_p2), 785408   ;;  %vm477_vm1 = vcmask (!%p213_p2), 769024   ;;  %vm501_vm2 = vcmask (!%p213_p2), 752640  }
   0xd   : > { %s1351_s22 = smov (!%p242_p3, %s1039_s22), 1  ;;  %v353_v12 = vrot.slane %v1052_v9, %v352_v11  ;;  %v360_v13 = vrot.slane %v346_v10, %v352_v11  ;;  %v1149_v9 = vld [vmem:[%s1348_s5] sm:$0xff]   ;;  %vm539_vm3 = vcmask 506880  }
   0xe   : > { %s1094_s23 = sshll.u32 %s1351_s22, 4 }
   0xf   : > { %s246_s26 = scalar_lea.vmem %s1343_s0, %s1094_s23  ;;  %v362_v14 = vpack.i.b16 %v353_v12, %v353_v12  ;;  %v369_v16 = vpack.i.b16 %v360_v13, %v360_v13  ;;  %v401_v19 = vshrl.u32 %v353_v12, 16  ;;  %v408_v20 = vshrl.u32 %v360_v13, 16  ;;  %s1179_s23 = smov 60  }
  0x10   : > { %v1232_v1 = vld [vmem:[%s246_s26 + $0x4] ss:$8 sps:$4 sm:$0xff]   ;;  %v1234_v2 = vld [vmem:[%s246_s26] ss:$8 sps:$4 sm:$0xff]  }
  0x11   : > { %270 = vmatprep.subr.bf16.mxu0 %v1232_v1  ;;  %v367_v17 = vrot.slane %v362_v14, %v366_v15  ;;  %v374_v18 = vrot.slane %v369_v16, %v366_v15  ;;  %v402_v22 = vpack.i.b16 %v401_v19, %v401_v19  ;;  %v409_v23 = vpack.i.b16 %v408_v20, %v408_v20 }
  0x12   : > { %271 = vmatpush1.bf16.msra.mxu0 %v1234_v2 }
  0x13   : > { %726 = vmatprep.subr.bf16.mxu0 %v1232_v1  ;;  %v1248_v21 = vcombine.low %v367_v17, %v374_v18  ;;  %v407_v24 = vrot.slane %v402_v22, %v366_v15  ;;  %v414_v25 = vrot.slane %v409_v23, %v366_v15 }
  0x15   : > { %1050 = vmatmul.mubr.msk.bf16.vlgmr.msra.gmra.mrb[0].mxu0 %vm266_vm0, %v255_v3  ;;  %444 = vrot.lane.b32.xlu1 %v1248_v21, %s1167_s7  ;;  %v1054_v26 = vcombine.low %v407_v24, %v414_v25 }
  0x16   : > { %727 = vmatpush1.bf16.msra.mxu0 %v1234_v2  ;;  %758 = vmatprep.mubr.bf16.mxu0 %v1165_v0 }
  0x19   : > { %483 = vrot.lane.b32.xlu1 %v1054_v26, %s1168_s8 }
  0x1d   : > { %545 = vrot.lane.b32.xlu1 %v1054_v26, %s1169_s9  ;;  %1071 = vmatmul.mubr.msk.bf16.vlgmr.msra.gmra.mrb[4].mxu0 %vm266_vm0, %v1149_v9 }
  0x1e   : > { %871 = vmatprep.mubr.bf16.mxu0 %v1165_v0 }
  0x87   : > { %v445_v42 = vpop.permute.xlu1 %444 }
  0x88   : > { %v446_v45 = vrot.slane %v445_v42, 4 }
  0x8a   : > { %v448_v51 = vsel %vm447_vm8, %v446_v45, %v445_v42 }
  0x8b   : > { %v484_v48 = vpop.permute.xlu1 %483 }
  0x8c   : > { %v485_v52 = vrot.slane %v484_v48, 4 }
  0x8e   : > { %v487_v57 = vsel %vm486_vm9, %v485_v52, %v484_v48 }
  0x8f   : > { %v546_v59 = vpop.permute.xlu1 %545 }
  0x90   : > { %v547_v63 = vrot.slane %v546_v59, 4 }
  0x92   : > { %v549_v7 = vsel %vm548_vm11, %v547_v63, %v546_v59 }
  0xe8   : > { %v304_v27 = vpop.f32.mrb[0].mxu0 }
  0xe9   : > { %v311_v28 = vmax.f32 %v304_v27, 0.0  ;;  %v306_v29 = vpop.f32.mrb[1].mxu0 }
  0xea   : > { %v312_v30 = vmax.f32 %v306_v29, 0.0  ;;  %v308_v31 = vpop.f32.mrb[2].mxu0 }
  0xeb   : > { %v309_v32 = vpop.f32.mrb[3].mxu0 }
  0xec   : > { %v1096_v33 = vpack.c.bf16 %v312_v30, %v311_v28 }
  0xee   : > { %323 = vrot.lane.b32.xlu0 %v1096_v33, %s1170_s10 }
  0xf2   : > { %420 = vrot.lane.b32.xlu0 %v1054_v26, %s1171_s11 }
  0xf6   : > { %507 = vrot.lane.b32.xlu0 %v1248_v21, %s1172_s12 }
 0x160   : > { %v324_v34 = vpop.permute.xlu0 %323 }
 0x161   : > { %v325_v35 = vrot.slane %v324_v34, 4 }
 0x163   : > { %v327_v36 = vsel %vm326_vm4, %v325_v35, %v324_v34  ;;  %335 = vst.msk [vmem:[#allocation2 + $0x8] sm:$0xf] %vm334_vm5, %v325_v35  ;;  %vm563_vm4 = vcmask 490496   ;;  %vm622_vm5 = vcmask 588800  }
 0x164   : > { %333 = vst.msk [vmem:[#allocation2] sm:$0xff] %vm332_vm6, %v327_v36  ;;  %v421_v39 = vpop.permute.xlu0 %420  ;;  %vm832_vm6 = vcmask 1041408  }
 0x165   : > { %v422_v41 = vrot.slane %v421_v39, 4 }
 0x167   : > { %v424_v46 = vsel %vm423_vm7, %v422_v41, %v421_v39 }
 0x168   : > { %v508_v53 = vpop.permute.xlu0 %507 }
 0x169   : > { %v509_v58 = vrot.slane %v508_v53, 4 }
 0x16a   : > { %v384_v38 = vld [vmem:[#allocation2 + $0x8] sm:$0xf] }
 0x16b   : > { %v1254_v37 = vld [vmem:[#allocation2] sm:$0xff]  ;;  %389 = vrot.lane.b32.xlu1 %v384_v38, %s1173_s13  ;;  %v467_v40 = vld [vmem:[#allocation2 + $0x8] sm:$0xf]  ;;  %v511_v3 = vsel %vm510_vm10, %v509_v58, %v508_v53 }
 0x16c   : > { %387 = vrot.lane.b32.xlu0 %v1254_v37, %s1173_s13  ;;  %v400_v43 = vld [vmem:[#allocation2 + $0x8] sm:$0xf]  ;;  %v427_v49 = vmul.bf16 %v1254_v37, %v424_v46  ;;  %v451_v56 = vmul.bf16 %v1254_v37, %v448_v51  ;;  %v490_v61 = vmul.bf16 %v487_v57, %v1254_v37  ;;  %v514_v6 = vmul.bf16 %v511_v3, %v1254_v37 }
 0x16d   : > { %v529_v44 = vld [vmem:[#allocation2 + $0x8] sm:$0xf]  ;;  %v428_v47 = vmul.bf16 %v422_v41, %v400_v43  ;;  %v552_v10 = vmul.bf16 %v549_v7, %v1254_v37  ;;  %v381_v16 = vmul.bf16 %v1248_v21, %v1254_v37 }
 0x16e   : > { %v443_v50 = vld [vmem:[#allocation2 + $0x8] sm:$0xf] }
 0x16f   : > { %472 = vrot.lane.b32.xlu1 %v467_v40, %s1174_s14  ;;  %v452_v54 = vmul.bf16 %v446_v45, %v443_v50  ;;  %v482_v55 = vld [vmem:[#allocation2 + $0x8] sm:$0xf] }
 0x170   : > { %470 = vrot.lane.b32.xlu0 %v1254_v37, %s1174_s14  ;;  %v491_v60 = vmul.bf16 %v485_v52, %v482_v55  ;;  %v506_v62 = vld [vmem:[#allocation2 + $0x8] sm:$0xf] }
 0x171   : > { %v515_v4 = vmul.bf16 %v509_v58, %v506_v62  ;;  %v544_v5 = vld [vmem:[#allocation2 + $0x8] sm:$0xf] }
 0x172   : > { %v553_v8 = vmul.bf16 %v547_v63, %v544_v5 }
 0x173   : > { %534 = vrot.lane.b32.xlu1 %v529_v44, %s1175_s15 }
 0x174   : > { %532 = vrot.lane.b32.xlu0 %v1254_v37, %s1175_s15 }
 0x177   : > { %433 = vrot.lane.b32.xlu1 %v428_v47, %s1176_s16 }
 0x178   : > { %431 = vrot.lane.b32.xlu0 %v427_v49, %s1176_s16  ;;  %s1095_s16 = sshll.u32 %s1351_s22, 6 }
 0x179   : > { %s1330_s19 = scalar_lea.vmem %s1349_s6, %s1095_s16 }
 0x17b   : > { %457 = vrot.lane.b32.xlu1 %v452_v54, %s1177_s17 }
 0x17c   : > { %455 = vrot.lane.b32.xlu0 %v451_v56, %s1177_s17 }
 0x17f   : > { %496 = vrot.lane.b32.xlu1 %v491_v60, %s1178_s18 }
 0x180   : > { %494 = vrot.lane.b32.xlu0 %v490_v61, %s1178_s18 }
 0x183   : > { %520 = vrot.lane.b32.xlu1 %v515_v4, %s1172_s12 }
 0x184   : > { %518 = vrot.lane.b32.xlu0 %v514_v6, %s1172_s12 }
 0x187   : > { %558 = vrot.lane.b32.xlu1 %v553_v8, %s1179_s23 }
 0x188   : > { %556 = vrot.lane.b32.xlu0 %v552_v10, %s1179_s23  ;;  %v567_v10 = vld [vmem:[%s1345_s2] sm:$0x3] }
 0x1dd   : > { %v390_v11 = vpop.permute.xlu1 %389 }
 0x1de   : > { %v392_v12 = vrot.slane %v390_v11, 4  ;;  %v388_v13 = vpop.permute.xlu0 %387  ;;  %v1151_v11 = vld [vmem:[%s1348_s5 + $0x8] sm:$0xff]  }
 0x1df   : > { %v391_v14 = vrot.slane %v388_v13, 4 }
 0x1e1   : > { %v473_v15 = vpop.permute.xlu1 %472  ;;  %v394_v17 = vsel %vm393_vm12, %v391_v14, %v392_v12  ;;  %v1153_v12 = vld [vmem:[%s1348_s5 + $0x10] sm:$0xff]  }
 0x1e2   : > { %v471_v18 = vpop.permute.xlu0 %470  ;;  %v396_v19 = vsel %vm395_vm13, %v388_v13, %v394_v17  ;;  %v475_v29 = vrot.slane %v473_v15, 4 }
 0x1e3   : > { %v1056_v20 = vcombine.high %v381_v16, %v396_v19  ;;  %v1055_v22 = vcombine.low %v381_v16, %v396_v19  ;;  %v474_v30 = vrot.slane %v471_v18, 4 }
 0x1e5   : > { %v535_v23 = vpop.permute.xlu1 %534  ;;  %633 = vmatprep.subr.bf16.mxu1 %v1056_v20  ;;  %v476_v35 = vsel %vm393_vm12, %v474_v30, %v475_v29 }
 0x1e6   : > { %634 = vmatpush1.bf16.msra.mxu1 %v1055_v22  ;;  %v533_v24 = vpop.permute.xlu0 %532  ;;  %v537_v38 = vrot.slane %v535_v23, 4  ;;  %v478_v49 = vsel %vm477_vm1, %v471_v18, %v476_v35  ;;  %v1150_v22 = vld [vmem:[%s1346_s3] sm:$0xff]   ;;  %v1152_v23 = vld [vmem:[%s1346_s3 + $0x8] sm:$0xff]  }
 0x1e7   : > { %v536_v43 = vrot.slane %v533_v24, 4 }
 0x1e9   : > { %v434_v25 = vpop.permute.xlu1 %433  ;;  %v538_v53 = vsel %vm393_vm12, %v536_v43, %v537_v38 }
 0x1ea   : > { %v432_v26 = vpop.permute.xlu0 %431  ;;  %v436_v27 = vrot.slane %v434_v25, 4  ;;  %v540_v59 = vsel %vm539_vm3, %v533_v24, %v538_v53  ;;  %v1154_v24 = vld [vmem:[%s1346_s3 + $0x10] sm:$0xff]   ;;  %v1156_v25 = vld [vmem:[%s1346_s3 + $0x18] sm:$0xff]  }
 0x1eb   : > { %v435_v28 = vrot.slane %v432_v26, 4 }
 0x1ed   : > { %v458_v31 = vpop.permute.xlu1 %457  ;;  %v437_v21 = vsel %vm393_vm12, %v435_v28, %v436_v27 }
 0x1ee   : > { %v460_v32 = vrot.slane %v458_v31, 4  ;;  %v456_v33 = vpop.permute.xlu0 %455  ;;  %v439_v39 = vsel %vm438_vm14, %v432_v26, %v437_v21 }
 0x1ef   : > { %v459_v34 = vrot.slane %v456_v33, 4 }
 0x1f1   : > { %v461_v36 = vsel %vm393_vm12, %v459_v34, %v460_v32  ;;  %v497_v37 = vpop.permute.xlu1 %496 }
 0x1f2   : > { %v463_v40 = vsel %vm462_vm15, %v456_v33, %v461_v36  ;;  %v499_v41 = vrot.slane %v497_v37, 4  ;;  %v495_v42 = vpop.permute.xlu0 %494 }
 0x1f3   : > { %v1057_v44 = vcombine.low %v439_v39, %v463_v40  ;;  %v1058_v45 = vcombine.high %v439_v39, %v463_v40  ;;  %v498_v46 = vrot.slane %v495_v42, 4 }
 0x1f5   : > { %v500_v47 = vsel %vm393_vm12, %v498_v46, %v499_v41  ;;  %v521_v48 = vpop.permute.xlu1 %520  ;;  %635 = vmatprep.subr.bf16.mxu1 %v1058_v45 }
 0x1f6   : > { %v502_v50 = vsel %vm501_vm2, %v495_v42, %v500_v47  ;;  %v523_v51 = vrot.slane %v521_v48, 4  ;;  %636 = vmatpush1.bf16.msra.mxu1 %v1057_v44  ;;  %v519_v52 = vpop.permute.xlu0 %518 }
 0x1f7   : > { %v1059_v54 = vcombine.low %v478_v49, %v502_v50  ;;  %v1060_v55 = vcombine.high %v478_v49, %v502_v50  ;;  %v522_v56 = vrot.slane %v519_v52, 4 }
 0x1f9   : > { %v524_v57 = vsel %vm393_vm12, %v522_v56, %v523_v51  ;;  %v559_v58 = vpop.permute.xlu1 %558  ;;  %637 = vmatprep.subr.bf16.mxu1 %v1060_v55 }
 0x1fa   : > { %v525_v60 = vsel %vm510_vm10, %v519_v52, %v524_v57  ;;  %v561_v61 = vrot.slane %v559_v58, 4  ;;  %638 = vmatpush1.bf16.msra.mxu1 %v1059_v54  ;;  %v557_v62 = vpop.permute.xlu0 %556 }
 0x1fb   : > { %v1061_v63 = vcombine.low %v525_v60, %v540_v59  ;;  %v1062_v3 = vcombine.high %v525_v60, %v540_v59  ;;  %v560_v4 = vrot.slane %v557_v62, 4 }
 0x1fd   : > { %v562_v5 = vsel %vm393_vm12, %v560_v4, %v561_v61  ;;  %639 = vmatprep.subr.bf16.mxu1 %v1062_v3 }
 0x1fe   : > { %v564_v6 = vsel %vm563_vm4, %v557_v62, %v562_v5  ;;  %640 = vmatpush1.bf16.msra.mxu1 %v1061_v63 }
 0x1ff   : > { %v1063_v7 = vcombine.low %v564_v6, %v564_v6  ;;  %v1064_v8 = vcombine.high %v564_v6, %v564_v6 }
 0x201   : > { %1065 = vmatprep.subr.msk.bf16.mxu1 %vm393_vm12, %v1064_v8  ;;  %v628_v9 = vsel %vm393_vm12, %v1063_v7, 0 }
 0x202   : > { %642 = vmatpush1.bf16.msra.mxu1 %v628_v9 }
 0x203   : > { %1105 = vmatprep.subr.bf16.mxu1 %v1232_v1  ;;  %v1155_v1 = vld [vmem:[%s1348_s5 + $0x18] sm:$0xff]  }
 0x205   : > { %1066 = vmatmul.mubr.msk.bf16.vlgmr.msra.gmra.mrb[0].mxu1 %vm622_vm5, %v567_v10 }
 0x206   : > { %1106 = vmatpush1.bf16.msra.mxu1 %v1234_v2  ;;  %768 = vmatprep.mubr.bf16.mxu1 %v1165_v0 }
 0x20d   : > { %1072 = vmatmul.mubr.msk.bf16.vlgmr.msra.gmra.mrb[4].mxu1 %vm266_vm0, %v1151_v11 }
 0x20e   : > { %778 = vmatprep.mubr.bf16.mxu1 %v1165_v0 }
 0x215   : > { %1073 = vmatmul.mubr.msk.bf16.gmra.mrb[8].mxu1 %vm266_vm0, %v1153_v12 }
 0x216   : > { %788 = vmatprep.mubr.bf16.mxu1 %v1165_v0 }
 0x21d   : > { %1074 = vmatmul.mubr.msk.bf16.gmra.mrb[12].mxu1 %vm266_vm0, %v1155_v1 }
 0x2d8   : > { %v667_v2 = vpop.f32.mrb[0].mxu1 }
 0x2d9   : > { %v674_v13 = vmax.f32 %v667_v2, 0.0  ;;  %v669_v14 = vpop.f32.mrb[1].mxu1 }
 0x2da   : > { %v675_v15 = vmax.f32 %v669_v14, 0.0  ;;  %v671_v16 = vpop.f32.mrb[2].mxu1 }
 0x2db   : > { %v676_v17 = vpack.c.bf16 %v674_v13, %v674_v13  ;;  %v672_v18 = vpop.f32.mrb[3].mxu1 }
 0x2dc   : > { %v677_v19 = vpack.c.bf16 %v675_v15, %v675_v15 }
 0x2dd   : > { %v834_v20 = vsel %vm832_vm6, %v676_v17, 0 }
 0x2de   : > { %1079 = vmatprep.subr.msk.bf16.mxu0 %vm832_vm6, %v677_v19 }
 0x2df   : > { %840 = vmatpush1.bf16.msra.mxu0 %v834_v20 }
 0x2e0   : > { %v770_v26 = vpop.f32.mrb[4].mxu1 }
 0x2e1   : > { %v772_v27 = vpop.f32.mrb[5].mxu1 }
 0x2e2   : > { %1080 = vmatmul.mubr.msk.bf16.vlgmr.msra.gmra.mrb[4].mxu0 %vm423_vm7, %v1150_v22  ;;  %v774_v28 = vpop.f32.mrb[6].mxu1 }
 0x2e3   : > { %881 = vmatprep.mubr.bf16.mxu0 %v1165_v0  ;;  %v776_v29 = vpop.f32.mrb[7].mxu1 }
 0x2e8   : > { %v780_v30 = vpop.f32.mrb[8].mxu1 }
 0x2e9   : > { %v782_v31 = vpop.f32.mrb[9].mxu1 }
 0x2ea   : > { %1081 = vmatmul.mubr.msk.bf16.gmra.mrb[8].mxu0 %vm423_vm7, %v1152_v23  ;;  %v784_v32 = vpop.f32.mrb[10].mxu1 }
 0x2eb   : > { %891 = vmatprep.mubr.bf16.mxu0 %v1165_v0  ;;  %v786_v33 = vpop.f32.mrb[11].mxu1 }
 0x2f0   : > { %v790_v21 = vpop.f32.mrb[12].mxu1 }
 0x2f1   : > { %v792_v34 = vpop.f32.mrb[13].mxu1 }
 0x2f2   : > { %1082 = vmatmul.mubr.msk.bf16.gmra.mrb[12].mxu0 %vm423_vm7, %v1154_v24  ;;  %v794_v35 = vpop.f32.mrb[14].mxu1 }
 0x2f3   : > { %901 = vmatprep.mubr.bf16.mxu0 %v1165_v0  ;;  %v796_v36 = vpop.f32.mrb[15].mxu1 }
 0x2fa   : > { %1083 = vmatmul.mubr.msk.bf16.gmra.mrb[16].mxu0 %vm423_vm7, %v1156_v25 }
 0x3b5   : > { %v873_v0 = vpop.f32.mrb[4].mxu0 }
 0x3b6   : > { %v912_v37 = vmax.f32 %v873_v0, 0.0  ;;  %v875_v38 = vpop.f32.mrb[5].mxu0 }
 0x3b7   : > { %v913_v39 = vmax.f32 %v875_v38, 0.0  ;;  %v877_v40 = vpop.f32.mrb[6].mxu0 }
 0x3b8   : > { %v914_v41 = vmax.f32 %v877_v40, 0.0  ;;  %v879_v42 = vpop.f32.mrb[7].mxu0 }
 0x3b9   : > { %v1097_v43 = vpack.c.bf16 %v913_v39, %v912_v37  ;;  %v915_v44 = vmax.f32 %v879_v42, 0.0 }
 0x3bb   : > { %976 = vst [vmem:[%s1330_s19] sm:$0xff] %v1097_v43  ;;  %v1098_v45 = vpack.c.bf16 %v915_v44, %v914_v41 }
 0x3bd   : > { %977 = vst [vmem:[%s1330_s19 + $0x8] sm:$0xff] %v1098_v45  ;;  %v883_v46 = vpop.f32.mrb[8].mxu0 }
 0x3be   : > { %v884_v47 = vadd.f32 %v883_v46, %v770_v26  ;;  %v885_v48 = vpop.f32.mrb[9].mxu0 }
 0x3bf   : > { %v886_v49 = vadd.f32 %v885_v48, %v772_v27  ;;  %v887_v50 = vpop.f32.mrb[10].mxu0 }
 0x3c0   : > { %v916_v51 = vmax.f32 %v884_v47, 0.0  ;;  %v888_v52 = vadd.f32 %v887_v50, %v774_v28  ;;  %v889_v53 = vpop.f32.mrb[11].mxu0 }
 0x3c1   : > { %v917_v54 = vmax.f32 %v886_v49, 0.0  ;;  %v890_v55 = vadd.f32 %v889_v53, %v776_v29 }
 0x3c2   : > { %v918_v56 = vmax.f32 %v888_v52, 0.0 }
 0x3c3   : > { %v1099_v57 = vpack.c.bf16 %v917_v54, %v916_v51  ;;  %v919_v58 = vmax.f32 %v890_v55, 0.0 }
 0x3c5   : > { %978 = vst [vmem:[%s1330_s19 + $0x10] sm:$0xff] %v1099_v57  ;;  %v1100_v59 = vpack.c.bf16 %v919_v58, %v918_v56  ;;  %v893_v60 = vpop.f32.mrb[12].mxu0 }
 0x3c6   : > { %v894_v61 = vadd.f32 %v893_v60, %v780_v30  ;;  %v895_v62 = vpop.f32.mrb[13].mxu0 }
 0x3c7   : > { %979 = vst [vmem:[%s1330_s19 + $0x18] sm:$0xff] %v1100_v59  ;;  %v896_v63 = vadd.f32 %v895_v62, %v782_v31  ;;  %v897_v3 = vpop.f32.mrb[14].mxu0 }
 0x3c8   : > { %v920_v4 = vmax.f32 %v894_v61, 0.0  ;;  %v898_v5 = vadd.f32 %v897_v3, %v784_v32  ;;  %v899_v6 = vpop.f32.mrb[15].mxu0 }
 0x3c9   : > { %v921_v7 = vmax.f32 %v896_v63, 0.0  ;;  %v900_v8 = vadd.f32 %v899_v6, %v786_v33 }
 0x3ca   : > { %v922_v9 = vmax.f32 %v898_v5, 0.0 }
 0x3cb   : > { %v1101_v10 = vpack.c.bf16 %v921_v7, %v920_v4  ;;  %v923_v11 = vmax.f32 %v900_v8, 0.0 }
 0x3cd   : > { %980 = vst [vmem:[%s1330_s19 + $0x20] sm:$0xff] %v1101_v10  ;;  %v1102_v12 = vpack.c.bf16 %v923_v11, %v922_v9  ;;  %v903_v1 = vpop.f32.mrb[16].mxu0 }
 0x3ce   : > { %v904_v2 = vadd.f32 %v903_v1, %v790_v21  ;;  %v905_v13 = vpop.f32.mrb[17].mxu0 }
 0x3cf   : > { %981 = vst [vmem:[%s1330_s19 + $0x28] sm:$0xff] %v1102_v12  ;;  %v906_v14 = vadd.f32 %v905_v13, %v792_v34  ;;  %v907_v15 = vpop.f32.mrb[18].mxu0 }
 0x3d0   : > { %v924_v16 = vmax.f32 %v904_v2, 0.0  ;;  %v908_v17 = vadd.f32 %v907_v15, %v794_v35  ;;  %v909_v18 = vpop.f32.mrb[19].mxu0 }
 0x3d1   : > { %v925_v19 = vmax.f32 %v906_v14, 0.0  ;;  %v910_v20 = vadd.f32 %v909_v18, %v796_v36 }
 0x3d2   : > { %v926_v22 = vmax.f32 %v908_v17, 0.0 }
 0x3d3   : > { %v1103_v23 = vpack.c.bf16 %v925_v19, %v924_v16  ;;  %v927_v24 = vmax.f32 %v910_v20, 0.0 }
 0x3d5   : > { %982 = vst [vmem:[%s1330_s19 + $0x30] sm:$0xff] %v1103_v23  ;;  %v1104_v25 = vpack.c.bf16 %v927_v24, %v926_v22 }
 0x3d7   : > { %983 = vst [vmem:[%s1330_s19 + $0x38] sm:$0xff] %v1104_v25 }
 0x3d8 PF: > { %s16_s21 = sadd.s32 1, %s1163_s21  }
 0x3d9   : > { %p13_p4 = scmp.ge.s32.totalorder %s16_s21, 4  }
 0x3db   :  { %15 = sbr.rel (!%p13_p4) target bundleno = 1 (0x1), region = 74 }

// kernel: resnet_forward.7
= control target key start
LH: loop header
LB: loop body
LE: loop exit
PB: predicated region body
PF: predicated region fallthrough
CT: control target
= control target key end

     0   :  { %s1687_s24 = smov 0   ;;  %s1930_s0 = inlined_call_operand.vmem [shape: bf16[2,64,256], index: 0, kind: input, shape index: {}]   ;;  %s1931_s1 = inlined_call_operand.vmem [shape: bf16[8,64], index: 1, kind: input, shape index: {}]   ;;  %s1932_s2 = inlined_call_operand.vmem [shape: bf16[8,72], index: 2, kind: input, shape index: {}]   ;;  %s1933_s3 = inlined_call_operand.vmem [shape: bf16[128,8], index: 3, kind: input, shape index: {}]   ;;  %s1934_s4 = inlined_call_operand.vmem [shape: bf16[2,64], index: 4, kind: input, shape index: {}]   ;;  %s1935_s5 = inlined_call_operand.vmem [shape: bf16[128,64], index: 5, kind: input, shape index: {}]   ;;  %s1936_s6 = inlined_call_operand.vmem [shape: bf16[256,64], index: 6, kind: input, shape index: {}]   ;;  %s1937_s7 = inlined_call_operand.vmem [shape: bf16[2,128,64], index: 7, kind: output, shape index: {}]  }
   0x1 LB: > { %s1271_s25 = sadd.s32 4294967295, %s1628_s24   ;;  %p1275_p0 = scmp.ge.s32.totalorder %s1628_s24, 1  ;;  %s1628_s24 = sphi %s1687_s24, %s17_s24  }
   0x2   : > { %p237_p1 = scmp.lt.s32.totalorder %s1628_s24, 3 }
   0x4   : > { %p238_p2 = pnand %p1275_p0, %p237_p1 }
   0x5   : > { %v1573_v0 = vld [vmem:[%s1936_s6 + $0x40] sm:$0xff] (!%p238_p2)   ;;  %v1575_v2 = vld [vmem:[%s1936_s6 + $0x48] sm:$0xff] (!%p238_p2)   ;;  %p269_p3 = scmp.lt.s32.totalorder (!%p238_p2), %s1271_s25, 1  ;;  %v1577_v4 = vld [vmem:[%s1936_s6 + $0x50] sm:$0xff] (!%p238_p2)   ;;  %v1630_v24 = vmov (!%p238_p2), 0.0   ;;  %vm1631_vm0 = vmmov (!%p238_p2), 0   ;;  %v587_v54 = vlaneseq (!%p238_p2) }
   0x6   : > { %241 = sbr.rel (%p238_p2) target bundleno = 1231 (0x4cf), region = 48  ;;  %v1574_v1 = vld [vmem:[%s1936_s6] sm:$0xff] (!%p238_p2)   ;;  %1383 = vmatprep.subr.bf16.mxu0 (!%p238_p2), %v1573_v0  ;;  %v1576_v3 = vld [vmem:[%s1936_s6 + $0x8] sm:$0xff] (!%p238_p2)   ;;  %v1578_v5 = vld [vmem:[%s1936_s6 + $0x10] sm:$0xff] (!%p238_p2)   ;;  %1455 = vmatprep.subr.bf16.mxu1 (!%p238_p2), %v1630_v24  ;;  %vm526_vm1 = vcmask (!%p238_p2), 523264   ;;  %s1632_s23 = smov (!%p238_p2), 8  }
   0x7   : > { %1384 = vmatpush3.bf16.msra.mxu0 (!%p238_p2), %v1574_v1  ;;  %v1579_v6 = vld [vmem:[%s1936_s6 + $0x58] sm:$0xff] (!%p238_p2)   ;;  %v1581_v8 = vld [vmem:[%s1936_s6 + $0x60] sm:$0xff] (!%p238_p2)   ;;  %v1583_v10 = vld [vmem:[%s1936_s6 + $0x68] sm:$0xff] (!%p238_p2)   ;;  %1463 = vmatprep.mubr.msk.bf16.mxu1 (!%p238_p2), %vm1631_vm0, %v1630_v24  ;;  %v588_v55 = vshrl.u32 (!%p238_p2), %v587_v54, 7  ;;  %s1634_s27 = smov (!%p238_p2), 18   ;;  %vm572_vm2 = vcmask (!%p238_p2), 666624  }
   0x8   : > { %1385 = vmatprep.subr.bf16.mxu0 (!%p238_p2), %v1575_v2  ;;  %v1580_v7 = vld [vmem:[%s1936_s6 + $0x18] sm:$0xff] (!%p238_p2)   ;;  %v1582_v9 = vld [vmem:[%s1936_s6 + $0x20] sm:$0xff] (!%p238_p2)   ;;  %v1584_v12 = vld [vmem:[%s1936_s6 + $0x28] sm:$0xff] (!%p238_p2)   ;;  %v1635_v1 = vmov (!%p238_p2), 0   ;;  %s1636_s28 = smov (!%p238_p2), 9   ;;  %s1637_s29 = smov (!%p238_p2), 2  }
   0x9   : > { %v1585_v13 = vld [vmem:[%s1936_s6 + $0x70] sm:$0xff] (!%p238_p2)   ;;  %v1587_v15 = vld [vmem:[%s1936_s6 + $0x78] sm:$0xff] (!%p238_p2)   ;;  %v525_v53 = vld [vmem:[%s1931_s1] sm:$0xf] (!%p238_p2)  ;;  %v589_v58 = vsub.s32 (!%p238_p2), 0, %v588_v55  ;;  %s1638_s30 = smov (!%p238_p2), 16  }
   0xa   : > { %v1586_v14 = vld [vmem:[%s1936_s6 + $0x30] sm:$0xff] (!%p238_p2)   ;;  %v1588_v16 = vld [vmem:[%s1936_s6 + $0x38] sm:$0xff] (!%p238_p2)   ;;  %v582_v56 = vld [vmem:[%s1934_s4] sm:$0x1] (!%p238_p2)  ;;  %573 = vst.msk [vmem:[#allocation2] sm:$0xf] (!%p238_p2), %vm572_vm2, %v1635_v1 }
   0xb   : > { %1386 = vmatpush3.bf16.msra.mxu0 (!%p238_p2), %v1576_v3  ;;  %v585_v57 = vpack.i.b16 (!%p238_p2), %v582_v56, %v582_v56  ;;  %v601_v60 = vshrl.u32 (!%p238_p2), %v582_v56, 16  ;;  %vm580_vm3 = vcmask (!%p238_p2), 592968   ;;  %vm592_vm4 = vcmask (!%p238_p2), 519168   ;;  %s1639_s8 = smov (!%p238_p2), 127   ;;  %s1640_s9 = smov (!%p238_p2), 126   ;;  %v1620_v1 = vld [vmem:[%s1933_s3 + $0x30] sm:$0xff] (!%p238_p2)  }
   0xc   : > { %1387 = vmatprep.subr.bf16.mxu0 (!%p238_p2), %v1577_v4  ;;  %s1641_s10 = smov (!%p238_p2), 120   ;;  %s1642_s11 = smov (!%p238_p2), 119   ;;  %vm716_vm5 = vcmask (!%p238_p2), 1043456   ;;  %vm712_vm6 = vcmask (!%p238_p2), 588800   ;;  %vm995_vm7 = vcmask (!%p238_p2), 64512  }
   0xd   : > { %s1939_s25 = smov (!%p269_p3, %s1271_s25), 1  ;;  %v590_v59 = vrot.slane %v585_v57, %v589_v58  ;;  %v602_v62 = vpack.i.b16 %v601_v60, %v601_v60  ;;  %s1643_s12 = smov 118   ;;  %v1609_v60 = vld [vmem:[%s1933_s3 + $0x8] sm:$0xff]  }
   0xe   : > { %s1364_s19 = sshll.u32 %s1939_s25, 6  ;;  %s1644_s13 = smov 112  }
   0xf   : > { %1388 = vmatpush3.bf16.msra.mxu0 %v1578_v5  ;;  %s1730_s26 = scalar_lea.vmem %s1930_s0, %s1364_s19  ;;  %v1307_v61 = vcombine.low %v590_v59, %v590_v59  ;;  %v607_v63 = vrot.slane %v602_v62, %v589_v58  ;;  %s1645_s14 = smov 111   ;;  %v1613_v62 = vld [vmem:[%s1933_s3 + $0x18] sm:$0xff]  }
  0x10   : > { %1389 = vmatprep.subr.bf16.mxu0 %v1579_v6  ;;  %v1591_v11 = vld [vmem:[%s1730_s26 + $0x4] ss:$8 sps:$4 sm:$0xff]   ;;  %v1589_v17 = vld [vmem:[%s1730_s26] ss:$8 sps:$4 sm:$0xff]   ;;  %v1592_v18 = vld [vmem:[%s1730_s26 + $0x14] ss:$8 sps:$4 sm:$0xff]  }
  0x11   : > { %488 = vmatprep.mubr.bf16.mxu0 %v1591_v11  ;;  %v1594_v19 = vld [vmem:[%s1730_s26 + $0x10] ss:$8 sps:$4 sm:$0xff]   ;;  %v1595_v20 = vld [vmem:[%s1730_s26 + $0x24] ss:$8 sps:$4 sm:$0xff]   ;;  %v1597_v21 = vld [vmem:[%s1730_s26 + $0x20] ss:$8 sps:$4 sm:$0xff]   ;;  %624 = vrot.lane.b32.xlu1 %v1307_v61, %s1632_s23  ;;  %v1306_v0 = vcombine.low %v607_v63, %v607_v63 }
  0x12   : > { %v1598_v22 = vld [vmem:[%s1730_s26 + $0x34] ss:$8 sps:$4 sm:$0xff]   ;;  %v1600_v23 = vld [vmem:[%s1730_s26 + $0x30] ss:$8 sps:$4 sm:$0xff]   ;;  %s1633_s26 = smov 10   ;;  %s1646_s15 = smov 110  }
  0x13   : > { %1390 = vmatpush3.bf16.msra.mxu0 %v1580_v7  ;;  %v1616_v63 = vld [vmem:[%s1933_s3 + $0x20] sm:$0xff]  }
  0x14   : > { %1391 = vmatprep.subr.bf16.mxu0 %v1581_v8 }
  0x15   : > { %640 = vrot.lane.b32.xlu1 %v1306_v0, %s1633_s26 }
  0x17   : > { %1392 = vmatpush3.bf16.msra.mxu0 %v1582_v9 }
  0x18   : > { %1393 = vmatprep.subr.bf16.mxu0 %v1583_v10 }
  0x19   : > { %666 = vrot.lane.b32.xlu1 %v1306_v0, %s1634_s27 }
  0x1b   : > { %1394 = vmatpush3.bf16.msra.mxu0 %v1584_v12 }
  0x1c   : > { %1395 = vmatprep.subr.bf16.mxu0 %v1585_v13 }
  0x1f   : > { %1396 = vmatpush3.bf16.msra.mxu0 %v1586_v14 }
  0x20   : > { %1397 = vmatprep.subr.bf16.mxu0 %v1587_v15 }
  0x23   : > { %1398 = vmatpush3.bf16.msra.mxu0 %v1588_v16 }
  0x26   : > { %489 = vmatmul.mubr.bf16.vlgmr.msra.gmra.mrb[0].mxu0 %v1589_v17 }
  0x27   : > { %496 = vmatprep.mubr.bf16.mxu0 %v1592_v18 }
  0x2e   : > { %497 = vmatmul.mubr.bf16.gmra.mrb[4].mxu0 %v1594_v19 }
  0x2f   : > { %504 = vmatprep.mubr.bf16.mxu0 %v1595_v20 }
  0x36   : > { %505 = vmatmul.mubr.bf16.gmra.mrb[8].mxu0 %v1597_v21 }
  0x37   : > { %512 = vmatprep.mubr.bf16.mxu0 %v1598_v22 }
  0x3e   : > { %513 = vmatmul.mubr.bf16.gmra.mrb[12].mxu0 %v1600_v23 }
  0x83   : > { %v625_v9 = vpop.permute.xlu1 %624 }
  0x87   : > { %v641_v17 = vpop.permute.xlu1 %640 }
  0xf9   : > { %v1399_v25 = vpop.f32.mrb[0].mxu0 }
  0xfa   : > { %v1400_v26 = vpop.f32.mrb[1].mxu0 }
  0xfb   : > { %v1401_v27 = vadd.f32 %v1400_v26, %v1399_v25  ;;  %v1402_v28 = vpop.f32.mrb[2].mxu0  ;;  %v667_v26 = vpop.permute.xlu1 %666 }
  0xfc   : > { %v1403_v29 = vpop.f32.mrb[3].mxu0 }
  0xfd   : > { %v1404_v30 = vadd.f32 %v1403_v29, %v1402_v28 }
  0xff   : > { %v1764_v31 = vpack.c.bf16 %v1404_v30, %v1401_v27 }
 0x101   : > { %v1405_v32 = vpop.f32.mrb[4].mxu0  ;;  %1456 = vmatpush3.bf16.msra.mxu1 %v1764_v31  ;;  %1481 = vmatprep.subr.bf16.mxu0 %v1764_v31 }
 0x102   : > { %v1406_v33 = vpop.f32.mrb[5].mxu0  ;;  %1482 = vmatpush3.bf16.msra.mxu0 %v1764_v31  ;;  %1457 = vmatprep.subr.bf16.mxu1 %v1630_v24 }
 0x103   : > { %v1407_v34 = vadd.f32 %v1406_v33, %v1405_v32  ;;  %v1408_v35 = vpop.f32.mrb[6].mxu0 }
 0x104   : > { %v1409_v36 = vpop.f32.mrb[7].mxu0 }
 0x105   : > { %v1410_v37 = vadd.f32 %v1409_v36, %v1408_v35 }
 0x107   : > { %v1770_v38 = vpack.c.bf16 %v1410_v37, %v1407_v34 }
 0x109   : > { %v1411_v39 = vpop.f32.mrb[8].mxu0  ;;  %1458 = vmatpush3.bf16.msra.mxu1 %v1770_v38  ;;  %1483 = vmatprep.subr.bf16.mxu0 %v1770_v38 }
 0x10a   : > { %v1412_v40 = vpop.f32.mrb[9].mxu0  ;;  %1484 = vmatpush3.bf16.msra.mxu0 %v1770_v38  ;;  %1459 = vmatprep.subr.bf16.mxu1 %v1630_v24 }
 0x10b   : > { %v1413_v41 = vadd.f32 %v1412_v40, %v1411_v39  ;;  %v1414_v42 = vpop.f32.mrb[10].mxu0 }
 0x10c   : > { %v1415_v43 = vpop.f32.mrb[11].mxu0 }
 0x10d   : > { %v1416_v44 = vadd.f32 %v1415_v43, %v1414_v42 }
 0x10f   : > { %v1776_v45 = vpack.c.bf16 %v1416_v44, %v1413_v41 }
 0x111   : > { %v1417_v46 = vpop.f32.mrb[12].mxu0  ;;  %1460 = vmatpush3.bf16.msra.mxu1 %v1776_v45  ;;  %1485 = vmatprep.subr.bf16.mxu0 %v1776_v45 }
 0x112   : > { %v1418_v47 = vpop.f32.mrb[13].mxu0  ;;  %1486 = vmatpush3.bf16.msra.mxu0 %v1776_v45  ;;  %1461 = vmatprep.subr.bf16.mxu1 %v1630_v24 }
 0x113   : > { %v1419_v48 = vadd.f32 %v1418_v47, %v1417_v46  ;;  %v1420_v49 = vpop.f32.mrb[14].mxu0  ;;  %v675_v47 = vld [vmem:[%s1932_s2] sm:$0xf] }
 0x114   : > { %v1421_v50 = vpop.f32.mrb[15].mxu0 }
 0x115   : > { %v1422_v51 = vadd.f32 %v1421_v50, %v1420_v49  ;;  %v1614_v49 = vld [vmem:[%s1935_s5 + $0x10] sm:$0xff]   ;;  %v1615_v50 = vld [vmem:[%s1935_s5 + $0x18] sm:$0xff]  }
 0x117   : > { %v1782_v52 = vpack.c.bf16 %v1422_v51, %v1419_v48  ;;  %v1611_v48 = vld [vmem:[%s1935_s5 + $0x8] sm:$0xff]   ;;  %v1618_v51 = vld [vmem:[%s1935_s5 + $0x20] sm:$0xff]  }
 0x119   : > { %1462 = vmatpush3.bf16.msra.mxu1 %v1782_v52  ;;  %1487 = vmatprep.subr.bf16.mxu0 %v1782_v52 }
 0x11a   : > { %1488 = vmatpush3.bf16.msra.mxu0 %v1782_v52  ;;  %1467 = vmatprep.subr.bf16.mxu1 %v1630_v24 }
 0x11c   : > { %1464 = vmatmul.mubr.msk.bf16.vlgmr.msra.gmra.mrb[0].mxu1 %vm526_vm1, %v525_v53 }
 0x11d   : > { %1477 = vmatprep.mubr.msk.bf16.mxu1 %vm1631_vm0, %v1630_v24 }
 0x1ef   : > { %v564_v2 = vpop.f32.mrb[0].mxu1 }
 0x1f0   : > { %v570_v3 = vmax.f32 %v564_v2, 0.0  ;;  %v1465_v4 = vpop.f32.mrb[1].mxu1  ;;  %v1621_v2 = vld [vmem:[%s1933_s3 + $0x38] sm:$0xff]  }
 0x1f1   : > { %v567_v5 = vpop.f32.mrb[2].mxu1 }
 0x1f2   : > { %v1366_v6 = vpack.c.bf16 %v570_v3, %v570_v3  ;;  %v1466_v7 = vpop.f32.mrb[3].mxu1 }
 0x1f4   : > { %577 = vrot.lane.b32.xlu0 %v1366_v6, %s1636_s28 }
 0x1f8   : > { %611 = vrot.lane.b32.xlu0 %v1306_v0, %s1637_s29  ;;  %v1617_v0 = vld [vmem:[%s1933_s3 + $0x28] sm:$0xff]  }
 0x1fc   : > { %650 = vrot.lane.b32.xlu0 %v1307_v61, %s1638_s30  ;;  %v1612_v61 = vld [vmem:[%s1933_s3 + $0x10] sm:$0xff]  }
 0x266   : > { %v578_v8 = vpop.permute.xlu0 %577 }
 0x267   : > { %581 = vst.msk [vmem:[#allocation2] sm:$0xf] %vm580_vm3, %v578_v8 }
 0x26a   : > { %v612_v12 = vpop.permute.xlu0 %611 }
 0x26e   : > { %v583_v10 = vld [vmem:[#allocation2] sm:$0xf]  ;;  %v651_v21 = vpop.permute.xlu0 %650 }
 0x26f   : > { %v600_v11 = vld [vmem:[#allocation2] sm:$0xf]  ;;  %v591_v13 = vmul.bf16 %v590_v59, %v583_v10 }
 0x270   : > { %v614_v14 = vmul.bf16 %v612_v12, %v600_v11  ;;  %v594_v15 = vld [vmem:[#allocation2] sm:$0xf] }
 0x271   : > { %596 = vrot.lane.b32.xlu0 %v594_v15, %s1639_s8  ;;  %v620_v16 = vld [vmem:[#allocation2] sm:$0xf]  ;;  %593 = vst.msk [vmem:[#allocation3] sm:$0xf] %vm592_vm4, %v591_v13 }
 0x272   : > { %616 = vrot.lane.b32.xlu1 %v614_v14, %s1640_s9  ;;  %v627_v18 = vmul.bf16 %v625_v9, %v620_v16  ;;  %v639_v19 = vld [vmem:[#allocation2] sm:$0xf] }
 0x273   : > { %v649_v20 = vld [vmem:[#allocation2] sm:$0xf]  ;;  %v643_v23 = vmul.bf16 %v641_v17, %v639_v19 }
 0x274   : > { %v633_v22 = vld [vmem:[#allocation2] sm:$0xf]  ;;  %v653_v25 = vmul.bf16 %v651_v21, %v649_v20 }
 0x275   : > { %629 = vrot.lane.b32.xlu0 %v627_v18, %s1641_s10  ;;  %v665_v27 = vld [vmem:[#allocation2] sm:$0xf] }
 0x276   : > { %635 = vrot.lane.b32.xlu1 %v633_v22, %s1642_s11  ;;  %v669_v28 = vmul.bf16 %v667_v26, %v665_v27  ;;  %v659_v29 = vld [vmem:[#allocation2] sm:$0xf] }
 0x279   : > { %645 = vrot.lane.b32.xlu0 %v643_v23, %s1643_s12  ;;  %s1893_s12 = scalar_lea.vmem %s1937_s7, %s1364_s19 }
 0x27a   : > { %655 = vrot.lane.b32.xlu1 %v653_v25, %s1644_s13 }
 0x27d   : > { %661 = vrot.lane.b32.xlu0 %v659_v29, %s1645_s14 }
 0x27e   : > { %671 = vrot.lane.b32.xlu1 %v669_v28, %s1646_s15 }
 0x2e3   : > { %v597_v30 = vpop.permute.xlu0 %596 }
 0x2e4   : > { %599 = vst.msk [vmem:[#allocation3 + $0x4] sm:$0xf] %vm592_vm4, %v597_v30  ;;  %v617_v32 = vpop.permute.xlu1 %616 }
 0x2e5   : > { %619 = vst.msk [vmem:[#allocation3 + $0x8] sm:$0xf] %vm592_vm4, %v617_v32 }
 0x2e7   : > { %v630_v33 = vpop.permute.xlu0 %629 }
 0x2e8   : > { %632 = vst.msk [vmem:[#allocation3 + $0xc] sm:$0xf] %vm592_vm4, %v630_v33  ;;  %v636_v34 = vpop.permute.xlu1 %635 }
 0x2e9   : > { %638 = vst.msk [vmem:[#allocation3 + $0x10] sm:$0xf] %vm592_vm4, %v636_v34 }
 0x2eb   : > { %v646_v35 = vpop.permute.xlu0 %645  ;;  %v1601_v36 = vld [vmem:[#allocation3] sm:$0xff]  }
 0x2ec   : > { %648 = vst.msk [vmem:[#allocation3 + $0x14] sm:$0xf] %vm592_vm4, %v646_v35  ;;  %v656_v37 = vpop.permute.xlu1 %655  ;;  %1468 = vmatpush3.bf16.msra.mxu1 %v1601_v36 }
 0x2ed   : > { %658 = vst.msk [vmem:[#allocation3 + $0x18] sm:$0xf] %vm592_vm4, %v656_v37  ;;  %1469 = vmatprep.subr.bf16.mxu1 %v1630_v24 }
 0x2ef   : > { %v662_v39 = vpop.permute.xlu0 %661  ;;  %v1602_v40 = vld [vmem:[#allocation3 + $0x8] sm:$0xff]  }
 0x2f0   : > { %664 = vst.msk [vmem:[#allocation3 + $0x1c] sm:$0xf] %vm592_vm4, %v662_v39  ;;  %v672_v41 = vpop.permute.xlu1 %671  ;;  %1470 = vmatpush3.bf16.msra.mxu1 %v1602_v40 }
 0x2f1   : > { %674 = vst.msk [vmem:[#allocation3 + $0x20] sm:$0xf] %vm592_vm4, %v672_v41  ;;  %1471 = vmatprep.subr.bf16.mxu1 %v1630_v24 }
 0x2f3   : > { %v1603_v42 = vld [vmem:[#allocation3 + $0x10] sm:$0xff]  }
 0x2f4   : > { %1472 = vmatpush3.bf16.msra.mxu1 %v1603_v42 }
 0x2f5   : > { %1473 = vmatprep.subr.bf16.mxu1 %v1630_v24 }
 0x2f7   : > { %v1604_v43 = vld [vmem:[#allocation3 + $0x18] sm:$0xff]  }
 0x2f8   : > { %v1605_v44 = vld [vmem:[#allocation3 + $0x20] ss:$0 sps:$4 sm:$0xff]   ;;  %1474 = vmatpush3.bf16.msra.mxu1 %v1604_v43 }
 0x2f9   : > { %1475 = vmatprep.subr.bf16.mxu1 %v1630_v24  ;;  %v718_v46 = vsel %vm716_vm5, %v1605_v44, 0  ;;  %v1606_v24 = vld [vmem:[%s1935_s5 + $0x30] sm:$0xff]  }
 0x2fc   : > { %1476 = vmatpush3.bf16.msra.mxu1 %v718_v46 }
 0x2fd   : > { %1523 = vmatprep.subr.bf16.mxu1 %v1764_v31 }
 0x2ff   : > { %1478 = vmatmul.mubr.msk.bf16.vlgmr.msra.gmra.mrb[4].mxu1 %vm712_vm6, %v675_v47 }
 0x300   : > { %1527 = vmatpush3.bf16.msra.mxu1 %v1764_v31  ;;  %v1607_v31 = vld [vmem:[%s1935_s5 + $0x38] sm:$0xff]   ;;  %1501 = vmatprep.mubr.msk.bf16.mxu1 %vm526_vm1, %v1606_v24 }
 0x301   : > { %1524 = vmatprep.subr.bf16.mxu1 %v1770_v38 }
 0x304   : > { %1528 = vmatpush3.bf16.msra.mxu1 %v1770_v38  ;;  %v1608_v38 = vld [vmem:[%s1933_s3] sm:$0xff]  }
 0x305   : > { %1525 = vmatprep.subr.bf16.mxu1 %v1776_v45 }
 0x308   : > { %1529 = vmatpush3.bf16.msra.mxu1 %v1776_v45  ;;  %v1610_v45 = vld [vmem:[%s1935_s5] sm:$0xff]  }
 0x309   : > { %1526 = vmatprep.subr.bf16.mxu1 %v1782_v52  ;;  %1489 = vmatprep.mubr.msk.bf16.mxu0 %vm526_vm1, %v1610_v45 }
 0x30a   : > { %1490 = vmatmul.mubr.msk.bf16.vlgmr.msra.gmra.mrb[16].mxu0 %vm526_vm1, %v1611_v48 }
 0x30b   : > { %1493 = vmatprep.mubr.msk.bf16.mxu0 %vm526_vm1, %v1614_v49 }
 0x30c   : > { %1530 = vmatpush3.bf16.msra.mxu1 %v1782_v52  ;;  %v1619_v52 = vld [vmem:[%s1935_s5 + $0x28] sm:$0xff]  }
 0x30f   : > { %1502 = vmatmul.mubr.msk.bf16.vlgmr.msra.gmra.mrb[8].mxu1 %vm526_vm1, %v1607_v31 }
 0x310   : > { %1507 = vmatprep.mubr.msk.bf16.mxu1 %vm995_vm7, %v1608_v38 }
 0x312   : > { %1494 = vmatmul.mubr.msk.bf16.gmra.mrb[20].mxu0 %vm526_vm1, %v1615_v50 }
 0x313   : > { %1497 = vmatprep.mubr.msk.bf16.mxu0 %vm526_vm1, %v1618_v51 }
 0x31a   : > { %1498 = vmatmul.mubr.msk.bf16.gmra.mrb[24].mxu0 %vm526_vm1, %v1619_v52 }
 0x3d2   : > { %v754_v53 = vpop.f32.mrb[4].mxu1 }
 0x3d3   : > { %v760_v54 = vmax.f32 %v754_v53, 0.0  ;;  %v1479_v55 = vpop.f32.mrb[5].mxu1 }
 0x3d4   : > { %v757_v56 = vpop.f32.mrb[6].mxu1 }
 0x3d5   : > { %v761_v57 = vpack.c.bf16 %v760_v54, %v760_v54  ;;  %v1480_v58 = vpop.f32.mrb[7].mxu1 }
 0x3d7   : > { %v1021_v59 = vsel %vm716_vm5, %v761_v57, 0  ;;  %1547 = vmatprep.subr.msk.bf16.mxu1 %vm716_vm5, %v761_v57 }
 0x3d8   : > { %1506 = vmatpush3.bf16.msra.mxu1 %v1021_v59 }
 0x3db   : > { %1508 = vmatmul.mubr.msk.bf16.vlgmr.msra.gmra.mrb[12].mxu1 %vm995_vm7, %v1609_v60 }
 0x3dc   : > { %1511 = vmatprep.mubr.msk.bf16.mxu1 %vm995_vm7, %v1612_v61 }
 0x3dd   : > { %v1491_v3 = vpop.f32.mrb[16].mxu0 }
 0x3de   : > { %v892_v4 = vpop.f32.mrb[17].mxu0 }
 0x3df   : > { %v1492_v5 = vpop.f32.mrb[18].mxu0 }
 0x3e0   : > { %v895_v6 = vpop.f32.mrb[19].mxu0 }
 0x3e3   : > { %1512 = vmatmul.mubr.msk.bf16.gmra.mrb[16].mxu1 %vm995_vm7, %v1613_v62 }
 0x3e4   : > { %1515 = vmatprep.mubr.msk.bf16.mxu1 %vm995_vm7, %v1616_v63 }
 0x3e5   : > { %v1495_v7 = vpop.f32.mrb[20].mxu0 }
 0x3e6   : > { %v908_v8 = vpop.f32.mrb[21].mxu0 }
 0x3e7   : > { %v1496_v9 = vpop.f32.mrb[22].mxu0 }
 0x3e8   : > { %v911_v10 = vpop.f32.mrb[23].mxu0 }
 0x3eb   : > { %1516 = vmatmul.mubr.msk.bf16.gmra.mrb[20].mxu1 %vm995_vm7, %v1617_v0 }
 0x3ec   : > { %1519 = vmatprep.mubr.msk.bf16.mxu1 %vm995_vm7, %v1620_v1 }
 0x3ed   : > { %v1499_v11 = vpop.f32.mrb[24].mxu0 }
 0x3ee   : > { %v924_v12 = vpop.f32.mrb[25].mxu0 }
 0x3ef   : > { %v1500_v13 = vpop.f32.mrb[26].mxu0 }
 0x3f0   : > { %v927_v14 = vpop.f32.mrb[27].mxu0 }
 0x3f3   : > { %1520 = vmatmul.mubr.msk.bf16.gmra.mrb[8].mxu1 %vm995_vm7, %v1621_v2 }
 0x4ae   : > { %v1509_v15 = vpop.f32.mrb[12].mxu1 }
 0x4af   : > { %v1066_v16 = vadd.f32 %v1509_v15, %v1491_v3  ;;  %v1057_v17 = vpop.f32.mrb[13].mxu1 }
 0x4b0   : > { %v1058_v18 = vadd.f32 %v1057_v17, %v892_v4  ;;  %v1510_v19 = vpop.f32.mrb[14].mxu1 }
 0x4b1   : > { %v1122_v20 = vmax.f32 %v1066_v16, 0.0  ;;  %v1069_v21 = vadd.f32 %v1510_v19, %v1492_v5  ;;  %v1060_v22 = vpop.f32.mrb[15].mxu1 }
 0x4b2   : > { %v1120_v23 = vmax.f32 %v1058_v18, 0.0  ;;  %v1061_v25 = vadd.f32 %v1060_v22, %v895_v6 }
 0x4b3   : > { %v1369_v26 = vpack.c.bf16 %v1122_v20, %v1122_v20  ;;  %v1123_v27 = vmax.f32 %v1069_v21, 0.0 }
 0x4b4   : > { %v1367_v28 = vpack.c.bf16 %v1120_v23, %v1120_v23  ;;  %v1121_v29 = vmax.f32 %v1061_v25, 0.0 }
 0x4b5   : > { %1202 = vst.msk [vmem:[%s1893_s12 + $0x8] sm:$0xf] %vm592_vm4, %v1369_v26  ;;  %v1370_v30 = vpack.c.bf16 %v1123_v27, %v1123_v27 }
 0x4b6   : > { %1200 = vst.msk [vmem:[%s1893_s12] sm:$0xf] %vm592_vm4, %v1367_v28  ;;  %v1368_v32 = vpack.c.bf16 %v1121_v29, %v1121_v29  ;;  %v1513_v33 = vpop.f32.mrb[16].mxu1 }
 0x4b7   : > { %1203 = vst.msk [vmem:[%s1893_s12 + $0xc] sm:$0xf] %vm592_vm4, %v1370_v30  ;;  %v1082_v34 = vadd.f32 %v1513_v33, %v1495_v7  ;;  %v1073_v35 = vpop.f32.mrb[17].mxu1 }
 0x4b8   : > { %1201 = vst.msk [vmem:[%s1893_s12 + $0x4] sm:$0xf] %vm592_vm4, %v1368_v32  ;;  %v1074_v36 = vadd.f32 %v1073_v35, %v908_v8  ;;  %v1514_v37 = vpop.f32.mrb[18].mxu1 }
 0x4b9   : > { %v1126_v39 = vmax.f32 %v1082_v34, 0.0  ;;  %v1085_v40 = vadd.f32 %v1514_v37, %v1496_v9  ;;  %v1076_v41 = vpop.f32.mrb[19].mxu1 }
 0x4ba   : > { %v1124_v42 = vmax.f32 %v1074_v36, 0.0  ;;  %v1077_v43 = vadd.f32 %v1076_v41, %v911_v10 }
 0x4bb   : > { %v1373_v44 = vpack.c.bf16 %v1126_v39, %v1126_v39  ;;  %v1127_v46 = vmax.f32 %v1085_v40, 0.0 }
 0x4bc   : > { %v1371_v47 = vpack.c.bf16 %v1124_v42, %v1124_v42  ;;  %v1125_v24 = vmax.f32 %v1077_v43, 0.0 }
 0x4bd   : > { %1206 = vst.msk [vmem:[%s1893_s12 + $0x18] sm:$0xf] %vm592_vm4, %v1373_v44  ;;  %v1374_v31 = vpack.c.bf16 %v1127_v46, %v1127_v46 }
 0x4be   : > { %1204 = vst.msk [vmem:[%s1893_s12 + $0x10] sm:$0xf] %vm592_vm4, %v1371_v47  ;;  %v1372_v38 = vpack.c.bf16 %v1125_v24, %v1125_v24  ;;  %v1517_v45 = vpop.f32.mrb[20].mxu1 }
 0x4bf   : > { %1207 = vst.msk [vmem:[%s1893_s12 + $0x1c] sm:$0xf] %vm592_vm4, %v1374_v31  ;;  %v1098_v48 = vadd.f32 %v1517_v45, %v1499_v11  ;;  %v1089_v49 = vpop.f32.mrb[21].mxu1 }
 0x4c0   : > { %1205 = vst.msk [vmem:[%s1893_s12 + $0x14] sm:$0xf] %vm592_vm4, %v1372_v38  ;;  %v1090_v50 = vadd.f32 %v1089_v49, %v924_v12  ;;  %v1518_v51 = vpop.f32.mrb[22].mxu1 }
 0x4c1   : > { %v1130_v52 = vmax.f32 %v1098_v48, 0.0  ;;  %v1101_v53 = vadd.f32 %v1518_v51, %v1500_v13  ;;  %v1092_v54 = vpop.f32.mrb[23].mxu1 }
 0x4c2   : > { %v1128_v55 = vmax.f32 %v1090_v50, 0.0  ;;  %v1093_v56 = vadd.f32 %v1092_v54, %v927_v14 }
 0x4c3   : > { %v1377_v57 = vpack.c.bf16 %v1130_v52, %v1130_v52  ;;  %v1131_v58 = vmax.f32 %v1101_v53, 0.0 }
 0x4c4   : > { %v1375_v59 = vpack.c.bf16 %v1128_v55, %v1128_v55  ;;  %v1129_v60 = vmax.f32 %v1093_v56, 0.0 }
 0x4c5   : > { %1210 = vst.msk [vmem:[%s1893_s12 + $0x28] sm:$0xf] %vm592_vm4, %v1377_v57  ;;  %v1378_v61 = vpack.c.bf16 %v1131_v58, %v1131_v58 }
 0x4c6   : > { %1208 = vst.msk [vmem:[%s1893_s12 + $0x20] sm:$0xf] %vm592_vm4, %v1375_v59  ;;  %v1376_v62 = vpack.c.bf16 %v1129_v60, %v1129_v60  ;;  %v1521_v63 = vpop.f32.mrb[8].mxu1 }
 0x4c7   : > { %1211 = vst.msk [vmem:[%s1893_s12 + $0x2c] sm:$0xf] %vm592_vm4, %v1378_v61  ;;  %v1134_v0 = vmax.f32 %v1521_v63, 0.0  ;;  %v1105_v1 = vpop.f32.mrb[9].mxu1 }
 0x4c8   : > { %1209 = vst.msk [vmem:[%s1893_s12 + $0x24] sm:$0xf] %vm592_vm4, %v1376_v62  ;;  %v1132_v2 = vmax.f32 %v1105_v1, 0.0  ;;  %v1522_v3 = vpop.f32.mrb[10].mxu1 }
 0x4c9   : > { %v1381_v4 = vpack.c.bf16 %v1134_v0, %v1134_v0  ;;  %v1135_v5 = vmax.f32 %v1522_v3, 0.0  ;;  %v1108_v6 = vpop.f32.mrb[11].mxu1 }
 0x4ca   : > { %v1379_v7 = vpack.c.bf16 %v1132_v2, %v1132_v2  ;;  %v1133_v8 = vmax.f32 %v1108_v6, 0.0 }
 0x4cb   : > { %1214 = vst.msk [vmem:[%s1893_s12 + $0x38] sm:$0xf] %vm592_vm4, %v1381_v4  ;;  %v1382_v9 = vpack.c.bf16 %v1135_v5, %v1135_v5 }
 0x4cc   : > { %1212 = vst.msk [vmem:[%s1893_s12 + $0x30] sm:$0xf] %vm592_vm4, %v1379_v7  ;;  %v1380_v10 = vpack.c.bf16 %v1133_v8, %v1133_v8 }
 0x4cd   : > { %1215 = vst.msk [vmem:[%s1893_s12 + $0x3c] sm:$0xf] %vm592_vm4, %v1382_v9 }
 0x4ce   : > { %1213 = vst.msk [vmem:[%s1893_s12 + $0x34] sm:$0xf] %vm592_vm4, %v1380_v10 }
 0x4cf PF: > { %s17_s24 = sadd.s32 1, %s1628_s24  }
 0x4d0   : > { %p14_p4 = scmp.ge.s32.totalorder %s17_s24, 4  }
 0x4d2   :  { %16 = sbr.rel (!%p14_p4) target bundleno = 1 (0x1), region = 78 }

// kernel: resnet_forward.5
= control target key start
LH: loop header
LB: loop body
LE: loop exit
PB: predicated region body
PF: predicated region fallthrough
CT: control target
= control target key end

     0   :  { %s6037_s12 = smov 0   ;;  %s8510_s0 = inlined_call_operand.vmem [shape: bf16[2,32,1280], index: 0, kind: input, shape index: {}]   ;;  %s8511_s1 = inlined_call_operand.vmem [shape: bf16[16,392], index: 1, kind: input, shape index: {}]   ;;  %s8512_s2 = inlined_call_operand.vmem [shape: f32[1,1120], index: 2, kind: input, shape index: {}]   ;;  %s8513_s3 = inlined_call_operand.vmem [shape: bf16[2,16,1120], index: 3, kind: output, shape index: {}]  }
   0x1 LB: > { %s5180_s13 = sadd.s32 4294967295, %s5997_s12   ;;  %p5184_p0 = scmp.ge.s32.totalorder %s5997_s12, 1  ;;  %s5997_s12 = sphi %s6037_s12, %s13_s12  }
   0x2   : > { %p137_p1 = scmp.lt.s32.totalorder %s5997_s12, 3 }
   0x4   : > { %p138_p2 = pnand %p5184_p0, %p137_p1 }
   0x6   : > { %141 = sbr.rel (%p138_p2) target bundleno = 1171 (0x493), region = 32 }
   0xd   : > { %p161_p3 = scmp.lt.s32.totalorder %s5180_s13, 1  ;;  %s5999_s18 = smov 127   ;;  %vm181_vm0 = vcmask 781312   ;;  %vm218_vm1 = vcmask 1043456   ;;  %vm220_vm2 = vcmask 1039360   ;;  %vm8530_vm3 = vcmask 1031168  }
   0xe   : > { %s6000_s19 = smov 126   ;;  %s6001_s20 = smov 125   ;;  %vm394_vm4 = vcmask 1022976   ;;  %vm673_vm5 = vcmask 760832   ;;  %vm762_vm6 = vcmask 752640   ;;  %vm851_vm7 = vcmask 744448  }
   0xf   : > { %s8674_s13 = smov (!%p161_p3, %s5180_s13), 1  ;;  %s6002_s21 = smov 93   ;;  %vm940_vm8 = vcmask 736256   ;;  %vm1293_vm9 = vcmask 474112   ;;  %vm1382_vm10 = vcmask 465920   ;;  %vm1471_vm11 = vcmask 457728  }
  0x10   : > { %s5486_s14 = smul.u32 160, %s8674_s13  ;;  %s6003_s22 = smov 92   ;;  %vm3594_vm12 = vcmask 64512   ;;  %vm1560_vm13 = vcmask 449536   ;;  %vm1913_vm14 = vcmask 187392   ;;  %vm2002_vm15 = vcmask 179200  }
  0x11   : > { %s6004_s23 = smov 91   ;;  %s6005_s24 = smov 90  }
  0x12   : > { %s6051_s17 = scalar_lea.vmem %s8510_s0, %s5486_s14  ;;  %s6006_s25 = smov 58  }
  0x13   : > { %v6054_v0 = vld [vmem:[%s6051_s17 + $0x10] sm:$0xff]  ;;  %v6057_v1 = vld [vmem:[%s6051_s17] sm:$0xff]  ;;  %v6064_v2 = vld [vmem:[%s6051_s17 + $0x8] sm:$0xff]  ;;  %s6007_s26 = smov 57   ;;  %s6008_s29 = smov 56  }
  0x14   : > { %207 = vrot.lane.b32.xlu1 %v6054_v0, %s5999_s18  ;;  %203 = vrot.lane.b32.xlu0 %v6057_v1, %s5999_s18  ;;  %v6067_v3 = vld [vmem:[%s6051_s17 + $0x28] sm:$0xff]  ;;  %v6070_v4 = vld [vmem:[%s6051_s17 + $0x18] sm:$0xff]  ;;  %s6009_s30 = smov 55   ;;  %s6010_s4 = smov 23  }
  0x15   : > { %v6073_v5 = vld [vmem:[%s6051_s17 + $0x30] sm:$0xff]  ;;  %v5192_v6 = vcombine.high %v6057_v1, %v6067_v3  ;;  %v5191_v7 = vcombine.low %v6057_v1, %v6067_v3  ;;  %v6091_v11 = vld [vmem:[%s6051_s17 + $0x58] sm:$0xff]  ;;  %v197_v12 = vld [vmem:[%s6051_s17 + $0x20] sm:$0xf]  ;;  %s6011_s5 = smov 22   ;;  %s6012_s6 = smov 21  }
  0x16   : > { %v5194_v8 = vcombine.high %v6064_v2, %v6073_v5  ;;  %v5193_v9 = vcombine.low %v6064_v2, %v6073_v5  ;;  %v6084_v10 = vld [vmem:[%s6051_s17 + $0x50] sm:$0xff]  ;;  %v6095_v13 = vld [vmem:[%s6051_s17 + $0x80] sm:$0xff]  ;;  %v6098_v14 = vld [vmem:[%s6051_s17 + $0x78] sm:$0xff]  ;;  %s6013_s7 = smov 20   ;;  %s6016_s9 = smov 36  }
  0x17   : > { %3626 = vmatprep.subr.bf16.mxu0 %v5192_v6  ;;  %v6104_v15 = vld [vmem:[%s6051_s17 + $0x38] sm:$0xff]  ;;  %v242_v16 = vld [vmem:[%s6051_s17 + $0x48] sm:$0xf]  ;;  %v6112_v17 = vld [vmem:[%s6051_s17 + $0x40] sm:$0xff]  ;;  %s5487_s14 = smul.u32 72, %s8674_s13 }
  0x18   : > { %209 = vrot.lane.b32.xlu1 %v6070_v4, %s5999_s18  ;;  %205 = vrot.lane.b32.xlu0 %v6064_v2, %s5999_s18  ;;  %v285_v18 = vld [vmem:[%s6051_s17 + $0x20] sm:$0xf]  ;;  %v329_v19 = vld [vmem:[%s6051_s17 + $0x48] sm:$0xf] }
  0x19   : > { %3712 = vmatprep.subr.bf16.mxu1 %v5194_v8  ;;  %3627 = vmatpush1.bf16.msra.mxu0 %v5191_v7  ;;  %v416_v20 = vld [vmem:[%s6051_s17 + $0x70] sm:$0xf]  ;;  %v414_v21 = vld [vmem:[%s6051_s17 + $0x60] sm:$0xff]  ;;  %v426_v22 = vld [vmem:[%s6051_s17 + $0x98] sm:$0xf]  ;;  %s7805_s16 = scalar_lea.vmem %s8513_s3, %s5487_s14 }
  0x1a   : > { %3713 = vmatpush1.bf16.msra.mxu1 %v5193_v9  ;;  %421 = vst.msk [vmem:[#allocation2 + $0x11c] sm:$0xf] %vm181_vm0, %v416_v20  ;;  %v372_v23 = vld [vmem:[%s6051_s17 + $0x20] sm:$0xf]  ;;  %419 = vst [vmem:[#allocation2 + $0x10c] sm:$0xff] %v414_v21  ;;  %v415_v24 = vld [vmem:[%s6051_s17 + $0x68] sm:$0xff] }
  0x1b   : > { %431 = vst.msk [vmem:[#allocation2 + $0x140] sm:$0xf] %vm181_vm0, %v426_v22  ;;  %v6156_v25 = vld [vmem:[%s6051_s17 + $0x60] sm:$0xff]  ;;  %420 = vst [vmem:[#allocation2 + $0x114] sm:$0xff] %v415_v24  ;;  %v436_v26 = vld [vmem:[%s6051_s17 + $0x70] sm:$0xf] }
  0x1c   : > { %248 = vrot.lane.b32.xlu1 %v6067_v3, %s5999_s18  ;;  %211 = vrot.lane.b32.xlu0 %v197_v12, %s5999_s18  ;;  %v435_v27 = vld [vmem:[%s6051_s17 + $0x68] sm:$0xff]  ;;  %v425_v28 = vld [vmem:[%s6051_s17 + $0x90] sm:$0xff] }
  0x1d   : > { %v424_v29 = vld [vmem:[%s6051_s17 + $0x88] sm:$0xff]  ;;  %430 = vst [vmem:[#allocation2 + $0x138] sm:$0xff] %v425_v28  ;;  %v478_v30 = vld [vmem:[%s6051_s17 + $0x90] sm:$0xff]  ;;  %v479_v32 = vld [vmem:[%s6051_s17 + $0x98] sm:$0xf] }
  0x1e   : > { %429 = vst [vmem:[#allocation2 + $0x130] sm:$0xff] %v424_v29  ;;  %v6174_v31 = vld [vmem:[%s6051_s17 + $0x88] sm:$0xff]  ;;  %v522_v33 = vld [vmem:[%s6051_s17 + $0x70] sm:$0xf]  ;;  %v565_v34 = vld [vmem:[%s6051_s17 + $0x98] sm:$0xf] }
  0x1f   : > { %v608_v35 = vld [vmem:[%s6051_s17 + $0x70] sm:$0xf]  ;;  %v6217_v36 = vld [vmem:[%s6051_s17 + $0x20] sm:$0xff]  ;;  %v6228_v37 = vld [vmem:[%s6051_s17 + $0x48] sm:$0xff] }
  0x20   : > { %252 = vrot.lane.b32.xlu1 %v6104_v15, %s5999_s18  ;;  %250 = vrot.lane.b32.xlu0 %v6073_v5, %s5999_s18 }
  0x24   : > { %256 = vrot.lane.b32.xlu1 %v242_v16, %s5999_s18  ;;  %254 = vrot.lane.b32.xlu0 %v6112_v17, %s5999_s18 }
  0x28   : > { %293 = vrot.lane.b32.xlu1 %v6064_v2, %s6000_s19  ;;  %291 = vrot.lane.b32.xlu0 %v6057_v1, %s6000_s19 }
  0x2c   : > { %297 = vrot.lane.b32.xlu1 %v6070_v4, %s6000_s19  ;;  %295 = vrot.lane.b32.xlu0 %v6054_v0, %s6000_s19 }
  0x30   : > { %335 = vrot.lane.b32.xlu1 %v6067_v3, %s6000_s19  ;;  %299 = vrot.lane.b32.xlu0 %v285_v18, %s6000_s19 }
  0x34   : > { %339 = vrot.lane.b32.xlu1 %v6104_v15, %s6000_s19  ;;  %337 = vrot.lane.b32.xlu0 %v6073_v5, %s6000_s19 }
  0x38   : > { %343 = vrot.lane.b32.xlu1 %v329_v19, %s6000_s19  ;;  %341 = vrot.lane.b32.xlu0 %v6112_v17, %s6000_s19 }
  0x3c   : > { %380 = vrot.lane.b32.xlu1 %v6064_v2, %s6001_s20  ;;  %378 = vrot.lane.b32.xlu0 %v6057_v1, %s6001_s20 }
  0x40   : > { %384 = vrot.lane.b32.xlu1 %v6070_v4, %s6001_s20  ;;  %382 = vrot.lane.b32.xlu0 %v6054_v0, %s6001_s20 }
  0x44   : > { %442 = vrot.lane.b32.xlu1 %v6084_v10, %s5999_s18  ;;  %386 = vrot.lane.b32.xlu0 %v372_v23, %s6001_s20 }
  0x48   : > { %446 = vrot.lane.b32.xlu1 %v6156_v25, %s5999_s18  ;;  %444 = vrot.lane.b32.xlu0 %v6091_v11, %s5999_s18 }
  0x4c   : > { %450 = vrot.lane.b32.xlu1 %v436_v26, %s5999_s18  ;;  %448 = vrot.lane.b32.xlu0 %v435_v27, %s5999_s18 }
  0x50   : > { %487 = vrot.lane.b32.xlu1 %v6095_v13, %s5999_s18  ;;  %485 = vrot.lane.b32.xlu0 %v6098_v14, %s5999_s18 }
  0x54   : > { %491 = vrot.lane.b32.xlu1 %v478_v30, %s5999_s18  ;;  %489 = vrot.lane.b32.xlu0 %v6174_v31, %s5999_s18 }
  0x58   : > { %528 = vrot.lane.b32.xlu1 %v6084_v10, %s6000_s19  ;;  %493 = vrot.lane.b32.xlu0 %v479_v32, %s5999_s18 }
  0x5c   : > { %532 = vrot.lane.b32.xlu1 %v6156_v25, %s6000_s19  ;;  %530 = vrot.lane.b32.xlu0 %v6091_v11, %s6000_s19 }
  0x60   : > { %536 = vrot.lane.b32.xlu1 %v522_v33, %s6000_s19  ;;  %534 = vrot.lane.b32.xlu0 %v435_v27, %s6000_s19 }
  0x64   : > { %573 = vrot.lane.b32.xlu1 %v6095_v13, %s6000_s19  ;;  %571 = vrot.lane.b32.xlu0 %v6098_v14, %s6000_s19 }
  0x68   : > { %577 = vrot.lane.b32.xlu1 %v478_v30, %s6000_s19  ;;  %575 = vrot.lane.b32.xlu0 %v6174_v31, %s6000_s19 }
  0x6c   : > { %614 = vrot.lane.b32.xlu1 %v6084_v10, %s6001_s20  ;;  %579 = vrot.lane.b32.xlu0 %v565_v34, %s6000_s19 }
  0x70   : > { %618 = vrot.lane.b32.xlu1 %v6156_v25, %s6001_s20  ;;  %616 = vrot.lane.b32.xlu0 %v6091_v11, %s6001_s20 }
  0x74   : > { %622 = vrot.lane.b32.xlu1 %v608_v35, %s6001_s20  ;;  %620 = vrot.lane.b32.xlu0 %v435_v27, %s6001_s20 }
  0x78   : > { %659 = vrot.lane.b32.xlu1 %v6064_v2, %s6002_s21  ;;  %657 = vrot.lane.b32.xlu0 %v6057_v1, %s6002_s21 }
  0x7c   : > { %663 = vrot.lane.b32.xlu1 %v6070_v4, %s6002_s21  ;;  %661 = vrot.lane.b32.xlu0 %v6054_v0, %s6002_s21 }
  0x80   : > { %702 = vrot.lane.b32.xlu1 %v6067_v3, %s6002_s21  ;;  %665 = vrot.lane.b32.xlu0 %v6217_v36, %s6002_s21 }
  0x84   : > { %706 = vrot.lane.b32.xlu1 %v6104_v15, %s6002_s21  ;;  %704 = vrot.lane.b32.xlu0 %v6073_v5, %s6002_s21 }
  0x86   : > { %v208_v38 = vpop.permute.xlu1 %207  ;;  %v204_v39 = vpop.permute.xlu0 %203 }
  0x87   : > { %v215_v42 = vrot.slane %v208_v38, 4  ;;  %v213_v43 = vrot.slane %v204_v39, 4 }
  0x88   : > { %710 = vrot.lane.b32.xlu1 %v6228_v37, %s6002_s21  ;;  %708 = vrot.lane.b32.xlu0 %v6112_v17, %s6002_s21 }
  0x8a   : > { %v210_v40 = vpop.permute.xlu1 %209  ;;  %v206_v41 = vpop.permute.xlu0 %205 }
  0x8b   : > { %v216_v44 = vrot.slane %v210_v40, 4  ;;  %v214_v45 = vrot.slane %v206_v41, 4 }
  0x8c   : > { %748 = vrot.lane.b32.xlu1 %v6064_v2, %s6003_s22  ;;  %746 = vrot.lane.b32.xlu0 %v6057_v1, %s6003_s22 }
  0x8d   : > { %v224_v46 = vsel %vm218_vm1, %v215_v42, %v216_v44  ;;  %v219_v47 = vsel %vm218_vm1, %v213_v43, %v214_v45  ;;  %v222_v48 = vsel %vm218_vm1, %v214_v45, %v215_v42 }
  0x8e   : > { %v225_v49 = vsel %vm220_vm2, %v208_v38, %v224_v46  ;;  %v221_v50 = vsel %vm220_vm2, %v204_v39, %v219_v47  ;;  %v223_v51 = vsel %vm220_vm2, %v206_v41, %v222_v48  ;;  %v249_v52 = vpop.permute.xlu1 %248  ;;  %v212_v53 = vpop.permute.xlu0 %211 }
  0x8f   : > { %235 = vst [vmem:[#allocation2 + $0x58] sm:$0xff] %v225_v49  ;;  %v217_v54 = vrot.slane %v212_v53, 4  ;;  %237 = vst.msk [vmem:[#allocation2 + $0x68] sm:$0xf] %vm181_vm0, %v212_v53  ;;  %v258_v59 = vrot.slane %v249_v52, 4 }
  0x90   : > { %752 = vrot.lane.b32.xlu1 %v6070_v4, %s6003_s22  ;;  %750 = vrot.lane.b32.xlu0 %v6054_v0, %s6003_s22 }
  0x91   : > { %v226_v55 = vsel %vm218_vm1, %v216_v44, %v217_v54 }
  0x92   : > { %v227_v56 = vsel %vm220_vm2, %v210_v40, %v226_v55  ;;  %v253_v57 = vpop.permute.xlu1 %252  ;;  %v251_v58 = vpop.permute.xlu0 %250 }
  0x93   : > { %236 = vst [vmem:[#allocation2 + $0x60] sm:$0xff] %v227_v56  ;;  %v260_v60 = vrot.slane %v253_v57, 4  ;;  %v259_v61 = vrot.slane %v251_v58, 4 }
  0x94   : > { %791 = vrot.lane.b32.xlu1 %v6067_v3, %s6003_s22  ;;  %754 = vrot.lane.b32.xlu0 %v6217_v36, %s6003_s22 }
  0x95   : > { %v263_v62 = vsel %vm218_vm1, %v258_v59, %v259_v61  ;;  %v265_v63 = vsel %vm218_vm1, %v259_v61, %v260_v60 }
  0x96   : > { %v264_v6 = vsel %vm220_vm2, %v249_v52, %v263_v62  ;;  %v266_v7 = vsel %vm220_vm2, %v251_v58, %v265_v63  ;;  %v257_v8 = vpop.permute.xlu1 %256  ;;  %v255_v9 = vpop.permute.xlu0 %254 }
  0x97   : > { %v262_v12 = vrot.slane %v257_v8, 4  ;;  %280 = vst.msk [vmem:[#allocation2 + $0x8c] sm:$0xf] %vm181_vm0, %v257_v8  ;;  %v261_v16 = vrot.slane %v255_v9, 4  ;;  %v5201_v18 = vcombine.high %v221_v50, %v264_v6  ;;  %v5203_v19 = vcombine.high %v223_v51, %v266_v7 }
  0x98   : > { %795 = vrot.lane.b32.xlu1 %v6104_v15, %s6003_s22  ;;  %793 = vrot.lane.b32.xlu0 %v6073_v5, %s6003_s22  ;;  %v5200_v20 = vcombine.low %v221_v50, %v264_v6  ;;  %v5202_v21 = vcombine.low %v223_v51, %v266_v7 }
  0x99   : > { %v267_v22 = vsel %vm218_vm1, %v260_v60, %v261_v16  ;;  %v269_v23 = vsel %vm218_vm1, %v261_v16, %v262_v12  ;;  %3628 = vmatprep.subr.bf16.mxu0 %v5201_v18  ;;  %3714 = vmatprep.subr.bf16.mxu1 %v5203_v19 }
  0x9a   : > { %v268_v24 = vsel %vm220_vm2, %v253_v57, %v267_v22  ;;  %v270_v26 = vsel %vm220_vm2, %v255_v9, %v269_v23  ;;  %v294_v27 = vpop.permute.xlu1 %293  ;;  %v292_v28 = vpop.permute.xlu0 %291  ;;  %3629 = vmatpush1.bf16.msra.mxu0 %v5200_v20  ;;  %3715 = vmatpush1.bf16.msra.mxu1 %v5202_v21 }
  0x9b   : > { %278 = vst [vmem:[#allocation2 + $0x7c] sm:$0xff] %v268_v24  ;;  %279 = vst [vmem:[#allocation2 + $0x84] sm:$0xff] %v270_v26  ;;  %v302_v29 = vrot.slane %v294_v27, 4  ;;  %v301_v30 = vrot.slane %v292_v28, 4 }
  0x9c   : > { %799 = vrot.lane.b32.xlu1 %v6228_v37, %s6003_s22  ;;  %797 = vrot.lane.b32.xlu0 %v6112_v17, %s6003_s22 }
  0x9d   : > { %v306_v32 = vsel %vm218_vm1, %v301_v30, %v302_v29 }
  0x9e   : > { %v308_v33 = vsel %vm8530_vm3, %v292_v28, %v306_v32  ;;  %v298_v34 = vpop.permute.xlu1 %297  ;;  %v296_v35 = vpop.permute.xlu0 %295 }
  0x9f   : > { %v304_v38 = vrot.slane %v298_v34, 4  ;;  %v303_v39 = vrot.slane %v296_v35, 4 }
  0xa0   : > { %837 = vrot.lane.b32.xlu1 %v6064_v2, %s6004_s23  ;;  %835 = vrot.lane.b32.xlu0 %v6057_v1, %s6004_s23 }
  0xa1   : > { %v309_v40 = vsel %vm218_vm1, %v302_v29, %v303_v39  ;;  %v311_v41 = vsel %vm218_vm1, %v303_v39, %v304_v38 }
  0xa2   : > { %v310_v42 = vsel %vm8530_vm3, %v294_v27, %v309_v40  ;;  %v312_v43 = vsel %vm8530_vm3, %v296_v35, %v311_v41  ;;  %v336_v44 = vpop.permute.xlu1 %335  ;;  %v300_v45 = vpop.permute.xlu0 %299 }
  0xa3   : > { %322 = vst [vmem:[#allocation2 + $0xa0] sm:$0xff] %v312_v43  ;;  %v305_v46 = vrot.slane %v300_v45, 4  ;;  %324 = vst.msk [vmem:[#allocation2 + $0xb0] sm:$0xf] %vm181_vm0, %v300_v45  ;;  %v345_v51 = vrot.slane %v336_v44, 4 }
  0xa4   : > { %841 = vrot.lane.b32.xlu1 %v6070_v4, %s6004_s23  ;;  %839 = vrot.lane.b32.xlu0 %v6054_v0, %s6004_s23 }
  0xa5   : > { %v313_v47 = vsel %vm218_vm1, %v304_v38, %v305_v46 }
  0xa6   : > { %v314_v48 = vsel %vm8530_vm3, %v298_v34, %v313_v47  ;;  %v340_v49 = vpop.permute.xlu1 %339  ;;  %v338_v50 = vpop.permute.xlu0 %337 }
  0xa7   : > { %323 = vst [vmem:[#allocation2 + $0xa8] sm:$0xff] %v314_v48  ;;  %v347_v52 = vrot.slane %v340_v49, 4  ;;  %v346_v53 = vrot.slane %v338_v50, 4 }
  0xa8   : > { %880 = vrot.lane.b32.xlu1 %v6067_v3, %s6004_s23  ;;  %843 = vrot.lane.b32.xlu0 %v6217_v36, %s6004_s23 }
  0xa9   : > { %v350_v4 = vsel %vm218_vm1, %v345_v51, %v346_v53  ;;  %v352_v54 = vsel %vm218_vm1, %v346_v53, %v347_v52 }
  0xaa   : > { %v351_v55 = vsel %vm8530_vm3, %v336_v44, %v350_v4  ;;  %v353_v56 = vsel %vm8530_vm3, %v338_v50, %v352_v54  ;;  %v344_v57 = vpop.permute.xlu1 %343  ;;  %v342_v58 = vpop.permute.xlu0 %341 }
  0xab   : > { %v349_v59 = vrot.slane %v344_v57, 4  ;;  %367 = vst.msk [vmem:[#allocation2 + $0xd4] sm:$0xf] %vm181_vm0, %v344_v57  ;;  %v348_v60 = vrot.slane %v342_v58, 4  ;;  %v5210_v61 = vcombine.high %v308_v33, %v351_v55  ;;  %v5212_v62 = vcombine.high %v310_v42, %v353_v56 }
  0xac   : > { %884 = vrot.lane.b32.xlu1 %v6104_v15, %s6004_s23  ;;  %882 = vrot.lane.b32.xlu0 %v6073_v5, %s6004_s23  ;;  %v5209_v3 = vcombine.low %v308_v33, %v351_v55  ;;  %v5211_v36 = vcombine.low %v310_v42, %v353_v56 }
  0xad   : > { %v354_v63 = vsel %vm218_vm1, %v347_v52, %v348_v60  ;;  %v356_v6 = vsel %vm218_vm1, %v348_v60, %v349_v59  ;;  %3630 = vmatprep.subr.bf16.mxu0 %v5210_v61  ;;  %3716 = vmatprep.subr.bf16.mxu1 %v5212_v62 }
  0xae   : > { %v355_v7 = vsel %vm8530_vm3, %v340_v49, %v354_v63  ;;  %v357_v8 = vsel %vm8530_vm3, %v342_v58, %v356_v6  ;;  %v381_v9 = vpop.permute.xlu1 %380  ;;  %v379_v12 = vpop.permute.xlu0 %378  ;;  %3631 = vmatpush1.bf16.msra.mxu0 %v5209_v3  ;;  %3717 = vmatpush1.bf16.msra.mxu1 %v5211_v36 }
  0xaf   : > { %365 = vst [vmem:[#allocation2 + $0xc4] sm:$0xff] %v355_v7  ;;  %366 = vst [vmem:[#allocation2 + $0xcc] sm:$0xff] %v357_v8  ;;  %v389_v15 = vrot.slane %v381_v9, 4  ;;  %v388_v5 = vrot.slane %v379_v12, 4 }
  0xb0   : > { %888 = vrot.lane.b32.xlu1 %v6228_v37, %s6004_s23  ;;  %886 = vrot.lane.b32.xlu0 %v6112_v17, %s6004_s23 }
  0xb1   : > { %v393_v16 = vsel %vm218_vm1, %v388_v5, %v389_v15 }
  0xb2   : > { %v395_v18 = vsel %vm394_vm4, %v379_v12, %v393_v16  ;;  %v385_v19 = vpop.permute.xlu1 %384  ;;  %v383_v20 = vpop.permute.xlu0 %382 }
  0xb3   : > { %v391_v21 = vrot.slane %v385_v19, 4  ;;  %v390_v22 = vrot.slane %v383_v20, 4  ;;  %v5219_v23 = vcombine.high %v395_v18, %v6084_v10  ;;  %v5218_v24 = vcombine.low %v395_v18, %v6084_v10 }
  0xb4   : > { %926 = vrot.lane.b32.xlu1 %v6064_v2, %s6005_s24  ;;  %924 = vrot.lane.b32.xlu0 %v6057_v1, %s6005_s24 }
  0xb5   : > { %v396_v17 = vsel %vm218_vm1, %v389_v15, %v390_v22  ;;  %v398_v37 = vsel %vm218_vm1, %v390_v22, %v391_v21  ;;  %3632 = vmatprep.subr.bf16.mxu0 %v5219_v23 }
  0xb6   : > { %v397_v26 = vsel %vm394_vm4, %v381_v9, %v396_v17  ;;  %v399_v27 = vsel %vm394_vm4, %v383_v20, %v398_v37  ;;  %v443_v28 = vpop.permute.xlu1 %442  ;;  %v387_v29 = vpop.permute.xlu0 %386  ;;  %3633 = vmatpush1.bf16.msra.mxu0 %v5218_v24 }
  0xb7   : > { %409 = vst [vmem:[#allocation2 + $0xe8] sm:$0xff] %v399_v27  ;;  %v392_v30 = vrot.slane %v387_v29, 4  ;;  %411 = vst.msk [vmem:[#allocation2 + $0xf8] sm:$0xf] %vm181_vm0, %v387_v29  ;;  %v5221_v2 = vcombine.high %v397_v26, %v6091_v11  ;;  %v5220_v1 = vcombine.low %v397_v26, %v6091_v11  ;;  %v452_v38 = vrot.slane %v443_v28, 4 }
  0xb8   : > { %971 = vrot.lane.b32.xlu1 %v6091_v11, %s6002_s21  ;;  %928 = vrot.lane.b32.xlu0 %v6054_v0, %s6005_s24 }
  0xb9   : > { %v400_v32 = vsel %vm218_vm1, %v391_v21, %v392_v30  ;;  %3718 = vmatprep.subr.bf16.mxu1 %v5221_v2 }
  0xba   : > { %v401_v33 = vsel %vm394_vm4, %v385_v19, %v400_v32  ;;  %v447_v34 = vpop.permute.xlu1 %446  ;;  %v445_v35 = vpop.permute.xlu0 %444  ;;  %3719 = vmatpush1.bf16.msra.mxu1 %v5220_v1 }
  0xbb   : > { %410 = vst [vmem:[#allocation2 + $0xf0] sm:$0xff] %v401_v33  ;;  %v454_v39 = vrot.slane %v447_v34, 4  ;;  %v453_v40 = vrot.slane %v445_v35, 4 }
  0xbc   : > { %969 = vrot.lane.b32.xlu1 %v6084_v10, %s6002_s21  ;;  %973 = vrot.lane.b32.xlu0 %v6156_v25, %s6002_s21 }
  0xbd   : > { %v457_v0 = vsel %vm218_vm1, %v452_v38, %v453_v40  ;;  %v459_v41 = vsel %vm218_vm1, %v453_v40, %v454_v39 }
  0xbe   : > { %v458_v42 = vsel %vm220_vm2, %v443_v28, %v457_v0  ;;  %v460_v43 = vsel %vm220_vm2, %v445_v35, %v459_v41  ;;  %v451_v44 = vpop.permute.xlu1 %450  ;;  %v449_v45 = vpop.permute.xlu0 %448 }
  0xbf   : > { %v456_v46 = vrot.slane %v451_v44, 4  ;;  %474 = vst.msk [vmem:[#allocation2 + $0x164] sm:$0xf] %vm181_vm0, %v451_v44  ;;  %v455_v47 = vrot.slane %v449_v45, 4  ;;  %v5228_v48 = vcombine.high %v6098_v14, %v458_v42  ;;  %v5230_v49 = vcombine.high %v6095_v13, %v460_v43 }
  0xc0   : > { %1017 = vrot.lane.b32.xlu1 %v6174_v31, %s6002_s21  ;;  %1015 = vrot.lane.b32.xlu0 %v6095_v13, %s6002_s21  ;;  %v5227_v50 = vcombine.low %v6098_v14, %v458_v42  ;;  %v5229_v51 = vcombine.low %v6095_v13, %v460_v43 }
  0xc1   : > { %v461_v52 = vsel %vm218_vm1, %v454_v39, %v455_v47  ;;  %v463_v53 = vsel %vm218_vm1, %v455_v47, %v456_v46  ;;  %3634 = vmatprep.subr.bf16.mxu0 %v5228_v48  ;;  %3720 = vmatprep.subr.bf16.mxu1 %v5230_v49 }
  0xc2   : > { %v462_v4 = vsel %vm220_vm2, %v447_v34, %v461_v52  ;;  %v464_v54 = vsel %vm220_vm2, %v449_v45, %v463_v53  ;;  %v488_v55 = vpop.permute.xlu1 %487  ;;  %v486_v56 = vpop.permute.xlu0 %485  ;;  %3635 = vmatpush1.bf16.msra.mxu0 %v5227_v50  ;;  %3721 = vmatpush1.bf16.msra.mxu1 %v5229_v51  ;;  %v6414_v53 = vld [vmem:[%s6051_s17 + $0x8] sm:$0xff] }
  0xc3   : > { %472 = vst [vmem:[#allocation2 + $0x154] sm:$0xff] %v462_v4  ;;  %473 = vst [vmem:[#allocation2 + $0x15c] sm:$0xff] %v464_v54  ;;  %v496_v57 = vrot.slane %v488_v55, 4  ;;  %v495_v58 = vrot.slane %v486_v56, 4 }
  0xc4   : > { %1061 = vrot.lane.b32.xlu1 %v6156_v25, %s6003_s22  ;;  %1059 = vrot.lane.b32.xlu0 %v6091_v11, %s6003_s22 }
  0xc5   : > { %v500_v59 = vsel %vm218_vm1, %v495_v58, %v496_v57 }
  0xc6   : > { %v501_v60 = vsel %vm220_vm2, %v486_v56, %v500_v59  ;;  %v492_v61 = vpop.permute.xlu1 %491  ;;  %v490_v62 = vpop.permute.xlu0 %489  ;;  %v6424_v59 = vld [vmem:[%s6051_s17 + $0x38] sm:$0xff] }
  0xc7   : > { %v498_v3 = vrot.slane %v492_v61, 4  ;;  %v497_v36 = vrot.slane %v490_v62, 4 }
  0xc8   : > { %1057 = vrot.lane.b32.xlu1 %v6084_v10, %s6003_s22  ;;  %1013 = vrot.lane.b32.xlu0 %v6098_v14, %s6002_s21 }
  0xc9   : > { %v502_v63 = vsel %vm218_vm1, %v496_v57, %v497_v36  ;;  %v504_v6 = vsel %vm218_vm1, %v497_v36, %v498_v3 }
  0xca   : > { %v503_v7 = vsel %vm220_vm2, %v488_v55, %v502_v63  ;;  %v505_v8 = vsel %vm220_vm2, %v490_v62, %v504_v6  ;;  %v529_v9 = vpop.permute.xlu1 %528  ;;  %v494_v12 = vpop.permute.xlu0 %493 }
  0xcb   : > { %515 = vst [vmem:[#allocation2 + $0x178] sm:$0xff] %v505_v8  ;;  %v499_v15 = vrot.slane %v494_v12, 4  ;;  %517 = vst.msk [vmem:[#allocation2 + $0x188] sm:$0xf] %vm181_vm0, %v494_v12  ;;  %v538_v20 = vrot.slane %v529_v9, 4 }
  0xcc   : > { %1105 = vrot.lane.b32.xlu1 %v6174_v31, %s6003_s22  ;;  %1103 = vrot.lane.b32.xlu0 %v6095_v13, %s6003_s22 }
  0xcd   : > { %v506_v5 = vsel %vm218_vm1, %v498_v3, %v499_v15 }
  0xce   : > { %v507_v16 = vsel %vm220_vm2, %v492_v61, %v506_v5  ;;  %v533_v18 = vpop.permute.xlu1 %532  ;;  %v531_v19 = vpop.permute.xlu0 %530 }
  0xcf   : > { %516 = vst [vmem:[#allocation2 + $0x180] sm:$0xff] %v507_v16  ;;  %v540_v21 = vrot.slane %v533_v18, 4  ;;  %v539_v22 = vrot.slane %v531_v19, 4  ;;  %v6439_v16 = vld [vmem:[%s6051_s17 + $0x28] sm:$0xff] }
  0xd0   : > { %1149 = vrot.lane.b32.xlu1 %v6156_v25, %s6004_s23  ;;  %1147 = vrot.lane.b32.xlu0 %v6091_v11, %s6004_s23 }
  0xd1   : > { %v543_v23 = vsel %vm218_vm1, %v538_v20, %v539_v22  ;;  %v545_v24 = vsel %vm218_vm1, %v539_v22, %v540_v21 }
  0xd2   : > { %v544_v17 = vsel %vm8530_vm3, %v529_v9, %v543_v23  ;;  %v546_v37 = vsel %vm8530_vm3, %v531_v19, %v545_v24  ;;  %v537_v26 = vpop.permute.xlu1 %536  ;;  %v535_v27 = vpop.permute.xlu0 %534 }
  0xd3   : > { %v542_v28 = vrot.slane %v537_v26, 4  ;;  %560 = vst.msk [vmem:[#allocation2 + $0x1ac] sm:$0xf] %vm181_vm0, %v537_v26  ;;  %v541_v29 = vrot.slane %v535_v27, 4  ;;  %v5237_v30 = vcombine.high %v501_v60, %v544_v17  ;;  %v5239_v2 = vcombine.high %v503_v7, %v546_v37 }
  0xd4   : > { %1145 = vrot.lane.b32.xlu1 %v6084_v10, %s6004_s23  ;;  %1101 = vrot.lane.b32.xlu0 %v6098_v14, %s6003_s22  ;;  %v5236_v1 = vcombine.low %v501_v60, %v544_v17  ;;  %v5238_v32 = vcombine.low %v503_v7, %v546_v37  ;;  %v6427_v60 = vld [vmem:[%s6051_s17 + $0x30] sm:$0xff] }
  0xd5   : > { %v547_v33 = vsel %vm218_vm1, %v540_v21, %v541_v29  ;;  %v549_v34 = vsel %vm218_vm1, %v541_v29, %v542_v28  ;;  %3636 = vmatprep.subr.bf16.mxu0 %v5237_v30  ;;  %3722 = vmatprep.subr.bf16.mxu1 %v5239_v2 }
  0xd6   : > { %v548_v35 = vsel %vm8530_vm3, %v533_v18, %v547_v33  ;;  %v550_v38 = vsel %vm8530_vm3, %v535_v27, %v549_v34  ;;  %v574_v39 = vpop.permute.xlu1 %573  ;;  %v572_v40 = vpop.permute.xlu0 %571  ;;  %3637 = vmatpush1.bf16.msra.mxu0 %v5236_v1  ;;  %3723 = vmatpush1.bf16.msra.mxu1 %v5238_v32  ;;  %v6442_v18 = vld [vmem:[%s6051_s17] sm:$0xff] }
  0xd7   : > { %558 = vst [vmem:[#allocation2 + $0x19c] sm:$0xff] %v548_v35  ;;  %559 = vst [vmem:[#allocation2 + $0x1a4] sm:$0xff] %v550_v38  ;;  %v582_v0 = vrot.slane %v574_v39, 4  ;;  %v581_v41 = vrot.slane %v572_v40, 4 }
  0xd8   : > { %1193 = vrot.lane.b32.xlu1 %v6174_v31, %s6004_s23  ;;  %1191 = vrot.lane.b32.xlu0 %v6095_v13, %s6004_s23 }
  0xd9   : > { %v586_v42 = vsel %vm218_vm1, %v581_v41, %v582_v0 }
  0xda   : > { %v587_v43 = vsel %vm8530_vm3, %v572_v40, %v586_v42  ;;  %v578_v44 = vpop.permute.xlu1 %577  ;;  %v576_v45 = vpop.permute.xlu0 %575 }
  0xdb   : > { %v584_v46 = vrot.slane %v578_v44, 4  ;;  %v583_v47 = vrot.slane %v576_v45, 4 }
  0xdc   : > { %1237 = vrot.lane.b32.xlu1 %v6156_v25, %s6005_s24  ;;  %1235 = vrot.lane.b32.xlu0 %v6091_v11, %s6005_s24  ;;  %v6411_v25 = vld [vmem:[%s6051_s17 + $0x10] sm:$0xff] }
  0xdd   : > { %v588_v31 = vsel %vm218_vm1, %v582_v0, %v583_v47  ;;  %v590_v13 = vsel %vm218_vm1, %v583_v47, %v584_v46 }
  0xde   : > { %v589_v48 = vsel %vm8530_vm3, %v574_v39, %v588_v31  ;;  %v591_v49 = vsel %vm8530_vm3, %v576_v45, %v590_v13  ;;  %v615_v50 = vpop.permute.xlu1 %614  ;;  %v580_v51 = vpop.permute.xlu0 %579  ;;  %v5904_v45 = vld [vmem:[%s8511_s1 + $0x4] ss:$16 sps:$4 sm:$0xff]  }
  0xdf   : > { %601 = vst [vmem:[#allocation2 + $0x1c0] sm:$0xff] %v591_v49  ;;  %v585_v52 = vrot.slane %v580_v51, 4  ;;  %603 = vst.msk [vmem:[#allocation2 + $0x1d0] sm:$0xf] %vm181_vm0, %v580_v51  ;;  %v624_v56 = vrot.slane %v615_v50, 4  ;;  %3744 = vmatprep.mubr.bf16.mxu1 %v5904_v45  ;;  %3658 = vmatprep.mubr.bf16.mxu0 %v5904_v45 }
  0xe0   : > { %1233 = vrot.lane.b32.xlu1 %v6084_v10, %s6005_s24  ;;  %1189 = vrot.lane.b32.xlu0 %v6098_v14, %s6004_s23 }
  0xe1   : > { %v592_v11 = vsel %vm218_vm1, %v584_v46, %v585_v52 }
  0xe2   : > { %v593_v4 = vsel %vm8530_vm3, %v578_v44, %v592_v11  ;;  %v619_v54 = vpop.permute.xlu1 %618  ;;  %v617_v55 = vpop.permute.xlu0 %616  ;;  %vm2180_vm3 = vcmask 162816  }
  0xe3   : > { %602 = vst [vmem:[#allocation2 + $0x1c8] sm:$0xff] %v593_v4  ;;  %v626_v57 = vrot.slane %v619_v54, 4  ;;  %v625_v58 = vrot.slane %v617_v55, 4 }
  0xe4   : > { %1281 = vrot.lane.b32.xlu1 %v6411_v25, %s6006_s25  ;;  %1279 = vrot.lane.b32.xlu0 %v6414_v53, %s6006_s25 }
  0xe5   : > { %v629_v10 = vsel %vm218_vm1, %v624_v56, %v625_v58  ;;  %v631_v14 = vsel %vm218_vm1, %v625_v58, %v626_v57 }
  0xe6   : > { %v630_v61 = vsel %vm394_vm4, %v615_v50, %v629_v10  ;;  %v632_v62 = vsel %vm394_vm4, %v617_v55, %v631_v14  ;;  %v623_v3 = vpop.permute.xlu1 %622  ;;  %v621_v36 = vpop.permute.xlu0 %620 }
  0xe7   : > { %v628_v63 = vrot.slane %v623_v3, 4  ;;  %646 = vst.msk [vmem:[#allocation2 + $0x1f4] sm:$0xf] %vm181_vm0, %v623_v3  ;;  %v627_v6 = vrot.slane %v621_v36, 4  ;;  %v5246_v7 = vcombine.high %v587_v43, %v630_v61  ;;  %v5248_v8 = vcombine.high %v589_v48, %v632_v62 }
  0xe8   : > { %1326 = vrot.lane.b32.xlu1 %v6424_v59, %s6006_s25  ;;  %1324 = vrot.lane.b32.xlu0 %v6427_v60, %s6006_s25  ;;  %v5245_v9 = vcombine.low %v587_v43, %v630_v61  ;;  %v5247_v12 = vcombine.low %v589_v48, %v632_v62 }
  0xe9   : > { %v633_v15 = vsel %vm218_vm1, %v626_v57, %v627_v6  ;;  %v635_v5 = vsel %vm218_vm1, %v627_v6, %v628_v63  ;;  %3638 = vmatprep.subr.bf16.mxu0 %v5246_v7  ;;  %3724 = vmatprep.subr.bf16.mxu1 %v5248_v8 }
  0xea   : > { %v634_v19 = vsel %vm394_vm4, %v619_v54, %v633_v15  ;;  %v636_v20 = vsel %vm394_vm4, %v621_v36, %v635_v5  ;;  %v660_v21 = vpop.permute.xlu1 %659  ;;  %v658_v22 = vpop.permute.xlu0 %657  ;;  %3639 = vmatpush1.bf16.msra.mxu0 %v5245_v9  ;;  %3725 = vmatpush1.bf16.msra.mxu1 %v5247_v12  ;;  %v6500_v12 = vld [vmem:[%s6051_s17 + $0x40] sm:$0xff]  ;;  %vm2091_vm4 = vcmask 171008  }
  0xeb   : > { %644 = vst [vmem:[#allocation2 + $0x1e4] sm:$0xff] %v634_v19  ;;  %645 = vst [vmem:[#allocation2 + $0x1ec] sm:$0xff] %v636_v20  ;;  %v668_v23 = vrot.slane %v660_v21, 4  ;;  %v667_v24 = vrot.slane %v658_v22, 4 }
  0xec   : > { %1322 = vrot.lane.b32.xlu1 %v6439_v16, %s6006_s25  ;;  %1277 = vrot.lane.b32.xlu0 %v6442_v18, %s6006_s25  ;;  %191 = vst [vmem:[#allocation2 + $0x3c] sm:$0xff] %v6500_v12 }
  0xed   : > { %v672_v17 = vsel %vm218_vm1, %v667_v24, %v668_v23 }
  0xee   : > { %v674_v37 = vsel %vm673_vm5, %v658_v22, %v672_v17  ;;  %v664_v26 = vpop.permute.xlu1 %663  ;;  %v662_v27 = vpop.permute.xlu0 %661 }
  0xef   : > { %v670_v28 = vrot.slane %v664_v26, 4  ;;  %v669_v29 = vrot.slane %v662_v27, 4 }
  0xf0   : > { %1370 = vrot.lane.b32.xlu1 %v6411_v25, %s6007_s26  ;;  %1368 = vrot.lane.b32.xlu0 %v6414_v53, %s6007_s26 }
  0xf1   : > { %v675_v30 = vsel %vm218_vm1, %v668_v23, %v669_v29  ;;  %v677_v2 = vsel %vm218_vm1, %v669_v29, %v670_v28 }
  0xf2   : > { %v676_v1 = vsel %vm673_vm5, %v660_v21, %v675_v30  ;;  %v678_v32 = vsel %vm673_vm5, %v662_v27, %v677_v2  ;;  %v703_v33 = vpop.permute.xlu1 %702  ;;  %v666_v34 = vpop.permute.xlu0 %665 }
  0xf3   : > { %689 = vst [vmem:[#allocation2 + $0x208] sm:$0xff] %v678_v32  ;;  %v671_v35 = vrot.slane %v666_v34, 4  ;;  %v712_v42 = vrot.slane %v703_v33, 4 }
  0xf4   : > { %1415 = vrot.lane.b32.xlu1 %v6424_v59, %s6007_s26  ;;  %1413 = vrot.lane.b32.xlu0 %v6427_v60, %s6007_s26 }
  0xf5   : > { %v679_v38 = vsel %vm218_vm1, %v670_v28, %v671_v35  ;;  %v681_v39 = vsel %vm673_vm5, %v666_v34, %v671_v35  ;;  %v6528_v34 = vld [vmem:[%s6051_s17 + $0x50] sm:$0xff] }
  0xf6   : > { %v680_v40 = vsel %vm673_vm5, %v664_v26, %v679_v38  ;;  %691 = vst.msk [vmem:[#allocation2 + $0x218] sm:$0xf] %vm181_vm0, %v681_v39  ;;  %v707_v0 = vpop.permute.xlu1 %706  ;;  %v705_v41 = vpop.permute.xlu0 %704  ;;  %v6517_v26 = vld [vmem:[%s6051_s17 + $0x58] sm:$0xff] }
  0xf7   : > { %690 = vst [vmem:[#allocation2 + $0x210] sm:$0xff] %v680_v40  ;;  %v714_v43 = vrot.slane %v707_v0, 4  ;;  %v713_v44 = vrot.slane %v705_v41, 4 }
  0xf8   : > { %1411 = vrot.lane.b32.xlu1 %v6439_v16, %s6007_s26  ;;  %1366 = vrot.lane.b32.xlu0 %v6442_v18, %s6007_s26 }
  0xf9   : > { %v717_v46 = vsel %vm218_vm1, %v712_v42, %v713_v44  ;;  %v719_v47 = vsel %vm218_vm1, %v713_v44, %v714_v43 }
  0xfa   : > { %v718_v31 = vsel %vm673_vm5, %v703_v33, %v717_v46  ;;  %v720_v13 = vsel %vm673_vm5, %v705_v41, %v719_v47  ;;  %v711_v48 = vpop.permute.xlu1 %710  ;;  %v709_v49 = vpop.permute.xlu0 %708 }
  0xfb   : > { %v716_v50 = vrot.slane %v711_v48, 4  ;;  %v715_v51 = vrot.slane %v709_v49, 4  ;;  %v5255_v52 = vcombine.high %v674_v37, %v718_v31  ;;  %v5257_v11 = vcombine.high %v676_v1, %v720_v13 }
  0xfc   : > { %1459 = vrot.lane.b32.xlu1 %v6411_v25, %s6008_s29  ;;  %1457 = vrot.lane.b32.xlu0 %v6414_v53, %s6008_s29  ;;  %v5254_v4 = vcombine.low %v674_v37, %v718_v31  ;;  %v5256_v54 = vcombine.low %v676_v1, %v720_v13  ;;  %v6514_v37 = vld [vmem:[%s6051_s17 + $0x60] sm:$0xff]  ;;  %v6540_v13 = vld [vmem:[%s6051_s17 + $0x88] sm:$0xff] }
  0xfd   : > { %v725_v55 = vsel %vm673_vm5, %v711_v48, %v716_v50  ;;  %v721_v56 = vsel %vm218_vm1, %v714_v43, %v715_v51  ;;  %v723_v57 = vsel %vm218_vm1, %v715_v51, %v716_v50  ;;  %3640 = vmatprep.subr.bf16.mxu0 %v5255_v52  ;;  %3726 = vmatprep.subr.bf16.mxu1 %v5257_v11  ;;  %v6543_v48 = vld [vmem:[%s6051_s17 + $0x80] sm:$0xff] }
  0xfe   : > { %735 = vst.msk [vmem:[#allocation2 + $0x23c] sm:$0xf] %vm181_vm0, %v725_v55  ;;  %v722_v58 = vsel %vm673_vm5, %v707_v0, %v721_v56  ;;  %v724_v10 = vsel %vm673_vm5, %v709_v49, %v723_v57  ;;  %v749_v14 = vpop.permute.xlu1 %748  ;;  %v747_v61 = vpop.permute.xlu0 %746  ;;  %3641 = vmatpush1.bf16.msra.mxu0 %v5254_v4  ;;  %3727 = vmatpush1.bf16.msra.mxu1 %v5256_v54 }
  0xff   : > { %733 = vst [vmem:[#allocation2 + $0x22c] sm:$0xff] %v722_v58  ;;  %734 = vst [vmem:[#allocation2 + $0x234] sm:$0xff] %v724_v10  ;;  %v757_v62 = vrot.slane %v749_v14, 4  ;;  %v756_v3 = vrot.slane %v747_v61, 4 }
 0x100   : > { %1504 = vrot.lane.b32.xlu1 %v6424_v59, %s6008_s29  ;;  %1502 = vrot.lane.b32.xlu0 %v6427_v60, %s6008_s29 }
 0x101   : > { %v761_v36 = vsel %vm218_vm1, %v756_v3, %v757_v62 }
 0x102   : > { %v763_v63 = vsel %vm762_vm6, %v747_v61, %v761_v36  ;;  %v753_v6 = vpop.permute.xlu1 %752  ;;  %v751_v7 = vpop.permute.xlu0 %750 }
 0x103   : > { %v759_v8 = vrot.slane %v753_v6, 4  ;;  %v758_v9 = vrot.slane %v751_v7, 4 }
 0x104   : > { %1500 = vrot.lane.b32.xlu1 %v6439_v16, %s6008_s29  ;;  %1455 = vrot.lane.b32.xlu0 %v6442_v18, %s6008_s29 }
 0x105   : > { %v764_v15 = vsel %vm218_vm1, %v757_v62, %v758_v9  ;;  %v766_v5 = vsel %vm218_vm1, %v758_v9, %v759_v8  ;;  %v6561_v62 = vld [vmem:[%s6051_s17 + $0x78] sm:$0xff] }
 0x106   : > { %v765_v19 = vsel %vm762_vm6, %v749_v14, %v764_v15  ;;  %v767_v20 = vsel %vm762_vm6, %v751_v7, %v766_v5  ;;  %v792_v21 = vpop.permute.xlu1 %791  ;;  %v755_v22 = vpop.permute.xlu0 %754 }
 0x107   : > { %778 = vst [vmem:[#allocation2 + $0x250] sm:$0xff] %v767_v20  ;;  %v760_v23 = vrot.slane %v755_v22, 4  ;;  %v801_v30 = vrot.slane %v792_v21, 4 }
 0x108   : > { %1548 = vrot.lane.b32.xlu1 %v6411_v25, %s6009_s30  ;;  %1546 = vrot.lane.b32.xlu0 %v6414_v53, %s6009_s30 }
 0x109   : > { %v768_v24 = vsel %vm218_vm1, %v759_v8, %v760_v23  ;;  %v770_v17 = vsel %vm762_vm6, %v755_v22, %v760_v23 }
 0x10a   : > { %v769_v27 = vsel %vm762_vm6, %v753_v6, %v768_v24  ;;  %780 = vst.msk [vmem:[#allocation2 + $0x260] sm:$0xf] %vm181_vm0, %v770_v17  ;;  %v796_v28 = vpop.permute.xlu1 %795  ;;  %v794_v29 = vpop.permute.xlu0 %793 }
 0x10b   : > { %779 = vst [vmem:[#allocation2 + $0x258] sm:$0xff] %v769_v27  ;;  %v803_v2 = vrot.slane %v796_v28, 4  ;;  %v802_v1 = vrot.slane %v794_v29, 4 }
 0x10c   : > { %1593 = vrot.lane.b32.xlu1 %v6514_v37, %s6006_s25  ;;  %1591 = vrot.lane.b32.xlu0 %v6517_v26, %s6006_s25 }
 0x10d   : > { %v806_v32 = vsel %vm218_vm1, %v801_v30, %v802_v1  ;;  %v808_v33 = vsel %vm218_vm1, %v802_v1, %v803_v2 }
 0x10e   : > { %v807_v35 = vsel %vm762_vm6, %v792_v21, %v806_v32  ;;  %v809_v38 = vsel %vm762_vm6, %v794_v29, %v808_v33  ;;  %v800_v39 = vpop.permute.xlu1 %799  ;;  %v798_v40 = vpop.permute.xlu0 %797 }
 0x10f   : > { %v805_v0 = vrot.slane %v800_v39, 4  ;;  %v804_v41 = vrot.slane %v798_v40, 4  ;;  %v5264_v42 = vcombine.high %v763_v63, %v807_v35  ;;  %v5266_v43 = vcombine.high %v765_v19, %v809_v38 }
 0x110   : > { %1589 = vrot.lane.b32.xlu1 %v6528_v34, %s6006_s25  ;;  %1544 = vrot.lane.b32.xlu0 %v6442_v18, %s6009_s30  ;;  %v5263_v44 = vcombine.low %v763_v63, %v807_v35  ;;  %v5265_v45 = vcombine.low %v765_v19, %v809_v38 }
 0x111   : > { %v814_v46 = vsel %vm762_vm6, %v800_v39, %v805_v0  ;;  %v810_v47 = vsel %vm218_vm1, %v803_v2, %v804_v41  ;;  %v812_v31 = vsel %vm218_vm1, %v804_v41, %v805_v0  ;;  %3642 = vmatprep.subr.bf16.mxu0 %v5264_v42  ;;  %3728 = vmatprep.subr.bf16.mxu1 %v5266_v43 }
 0x112   : > { %824 = vst.msk [vmem:[#allocation2 + $0x284] sm:$0xf] %vm181_vm0, %v814_v46  ;;  %v811_v49 = vsel %vm762_vm6, %v796_v28, %v810_v47  ;;  %v813_v50 = vsel %vm762_vm6, %v798_v40, %v812_v31  ;;  %v838_v51 = vpop.permute.xlu1 %837  ;;  %v836_v52 = vpop.permute.xlu0 %835  ;;  %3643 = vmatpush1.bf16.msra.mxu0 %v5263_v44  ;;  %3729 = vmatpush1.bf16.msra.mxu1 %v5265_v45 }
 0x113   : > { %822 = vst [vmem:[#allocation2 + $0x274] sm:$0xff] %v811_v49  ;;  %823 = vst [vmem:[#allocation2 + $0x27c] sm:$0xff] %v813_v50  ;;  %v846_v11 = vrot.slane %v838_v51, 4  ;;  %v845_v4 = vrot.slane %v836_v52, 4 }
 0x114   : > { %1637 = vrot.lane.b32.xlu1 %v6540_v13, %s6006_s25  ;;  %1635 = vrot.lane.b32.xlu0 %v6543_v48, %s6006_s25 }
 0x115   : > { %v850_v54 = vsel %vm218_vm1, %v845_v4, %v846_v11 }
 0x116   : > { %v852_v55 = vsel %vm851_vm7, %v836_v52, %v850_v54  ;;  %v842_v56 = vpop.permute.xlu1 %841  ;;  %v840_v57 = vpop.permute.xlu0 %839 }
 0x117   : > { %v848_v58 = vrot.slane %v842_v56, 4  ;;  %v847_v10 = vrot.slane %v840_v57, 4 }
 0x118   : > { %1681 = vrot.lane.b32.xlu1 %v6514_v37, %s6007_s26  ;;  %1679 = vrot.lane.b32.xlu0 %v6517_v26, %s6007_s26 }
 0x119   : > { %v853_v14 = vsel %vm218_vm1, %v846_v11, %v847_v10  ;;  %v855_v61 = vsel %vm218_vm1, %v847_v10, %v848_v58 }
 0x11a   : > { %v854_v3 = vsel %vm851_vm7, %v838_v51, %v853_v14  ;;  %v856_v36 = vsel %vm851_vm7, %v840_v57, %v855_v61  ;;  %v881_v63 = vpop.permute.xlu1 %880  ;;  %v844_v6 = vpop.permute.xlu0 %843 }
 0x11b   : > { %867 = vst [vmem:[#allocation2 + $0x298] sm:$0xff] %v856_v36  ;;  %v849_v7 = vrot.slane %v844_v6, 4  ;;  %v890_v20 = vrot.slane %v881_v63, 4 }
 0x11c   : > { %1677 = vrot.lane.b32.xlu1 %v6528_v34, %s6007_s26  ;;  %1633 = vrot.lane.b32.xlu0 %v6561_v62, %s6006_s25 }
 0x11d   : > { %v857_v8 = vsel %vm218_vm1, %v848_v58, %v849_v7  ;;  %v859_v9 = vsel %vm851_vm7, %v844_v6, %v849_v7 }
 0x11e   : > { %v858_v15 = vsel %vm851_vm7, %v842_v56, %v857_v8  ;;  %869 = vst.msk [vmem:[#allocation2 + $0x2a8] sm:$0xf] %vm181_vm0, %v859_v9  ;;  %v885_v5 = vpop.permute.xlu1 %884  ;;  %v883_v19 = vpop.permute.xlu0 %882 }
 0x11f   : > { %868 = vst [vmem:[#allocation2 + $0x2a0] sm:$0xff] %v858_v15  ;;  %v892_v21 = vrot.slane %v885_v5, 4  ;;  %v891_v22 = vrot.slane %v883_v19, 4 }
 0x120   : > { %1725 = vrot.lane.b32.xlu1 %v6540_v13, %s6007_s26  ;;  %1723 = vrot.lane.b32.xlu0 %v6543_v48, %s6007_s26 }
 0x121   : > { %v895_v23 = vsel %vm218_vm1, %v890_v20, %v891_v22  ;;  %v897_v24 = vsel %vm218_vm1, %v891_v22, %v892_v21 }
 0x122   : > { %v896_v17 = vsel %vm851_vm7, %v881_v63, %v895_v23  ;;  %v898_v27 = vsel %vm851_vm7, %v883_v19, %v897_v24  ;;  %v889_v28 = vpop.permute.xlu1 %888  ;;  %v887_v29 = vpop.permute.xlu0 %886 }
 0x123   : > { %v894_v30 = vrot.slane %v889_v28, 4  ;;  %v893_v2 = vrot.slane %v887_v29, 4  ;;  %v5273_v1 = vcombine.high %v852_v55, %v896_v17  ;;  %v5275_v32 = vcombine.high %v854_v3, %v898_v27 }
 0x124   : > { %1769 = vrot.lane.b32.xlu1 %v6514_v37, %s6008_s29  ;;  %1767 = vrot.lane.b32.xlu0 %v6517_v26, %s6008_s29  ;;  %v5272_v33 = vcombine.low %v852_v55, %v896_v17  ;;  %v5274_v35 = vcombine.low %v854_v3, %v898_v27 }
 0x125   : > { %v903_v38 = vsel %vm851_vm7, %v889_v28, %v894_v30  ;;  %v899_v39 = vsel %vm218_vm1, %v892_v21, %v893_v2  ;;  %v901_v40 = vsel %vm218_vm1, %v893_v2, %v894_v30  ;;  %3644 = vmatprep.subr.bf16.mxu0 %v5273_v1  ;;  %3730 = vmatprep.subr.bf16.mxu1 %v5275_v32 }
 0x126   : > { %913 = vst.msk [vmem:[#allocation2 + $0x2cc] sm:$0xf] %vm181_vm0, %v903_v38  ;;  %v900_v0 = vsel %vm851_vm7, %v885_v5, %v899_v39  ;;  %v902_v41 = vsel %vm851_vm7, %v887_v29, %v901_v40  ;;  %v927_v42 = vpop.permute.xlu1 %926  ;;  %v925_v43 = vpop.permute.xlu0 %924  ;;  %3645 = vmatpush1.bf16.msra.mxu0 %v5272_v33  ;;  %3731 = vmatpush1.bf16.msra.mxu1 %v5274_v35 }
 0x127   : > { %911 = vst [vmem:[#allocation2 + $0x2bc] sm:$0xff] %v900_v0  ;;  %912 = vst [vmem:[#allocation2 + $0x2c4] sm:$0xff] %v902_v41  ;;  %v935_v44 = vrot.slane %v927_v42, 4  ;;  %v934_v45 = vrot.slane %v925_v43, 4 }
 0x128   : > { %1765 = vrot.lane.b32.xlu1 %v6528_v34, %s6008_s29  ;;  %1721 = vrot.lane.b32.xlu0 %v6561_v62, %s6007_s26 }
 0x129   : > { %v939_v46 = vsel %vm218_vm1, %v934_v45, %v935_v44 }
 0x12a   : > { %v941_v47 = vsel %vm940_vm8, %v925_v43, %v939_v46  ;;  %v972_v31 = vpop.permute.xlu1 %971  ;;  %v6597_v49 = vpop.permute.xlu0 %928 }
 0x12b   : > { %v936_v50 = vrot.slane %v6597_v49, 4  ;;  %v980_v54 = vrot.slane %v972_v31, 4 }
 0x12c   : > { %1813 = vrot.lane.b32.xlu1 %v6540_v13, %s6008_s29  ;;  %1811 = vrot.lane.b32.xlu0 %v6543_v48, %s6008_s29 }
 0x12d   : > { %v942_v51 = vsel %vm218_vm1, %v935_v44, %v936_v50 }
 0x12e   : > { %v943_v52 = vsel %vm940_vm8, %v927_v42, %v942_v51  ;;  %v970_v11 = vpop.permute.xlu1 %969  ;;  %v6608_v4 = vpop.permute.xlu0 %973 }
 0x12f   : > { %v979_v55 = vrot.slane %v970_v11, 4  ;;  %v981_v56 = vrot.slane %v6608_v4, 4 }
 0x130   : > { %1857 = vrot.lane.b32.xlu1 %v6514_v37, %s6009_s30  ;;  %1855 = vrot.lane.b32.xlu0 %v6517_v26, %s6009_s30 }
 0x131   : > { %v984_v13 = vsel %vm218_vm1, %v979_v55, %v980_v54  ;;  %v986_v48 = vsel %vm218_vm1, %v980_v54, %v981_v56 }
 0x132   : > { %v985_v57 = vsel %vm673_vm5, %v970_v11, %v984_v13  ;;  %v987_v58 = vsel %vm673_vm5, %v972_v31, %v986_v48  ;;  %v6621_v10 = vpop.permute.xlu1 %1017  ;;  %v1016_v14 = vpop.permute.xlu0 %1015 }
 0x133   : > { %v1025_v61 = vrot.slane %v6621_v10, 4  ;;  %v1024_v3 = vrot.slane %v1016_v14, 4  ;;  %v5282_v37 = vcombine.high %v941_v47, %v985_v57  ;;  %v5284_v36 = vcombine.high %v943_v52, %v987_v58 }
 0x134   : > { %1853 = vrot.lane.b32.xlu1 %v6528_v34, %s6009_s30  ;;  %1809 = vrot.lane.b32.xlu0 %v6561_v62, %s6008_s29  ;;  %v5281_v26 = vcombine.low %v941_v47, %v985_v57  ;;  %v5283_v63 = vcombine.low %v943_v52, %v987_v58 }
 0x135   : > { %v1030_v6 = vsel %vm218_vm1, %v1024_v3, %v1025_v61  ;;  %3646 = vmatprep.subr.bf16.mxu0 %v5282_v37  ;;  %3732 = vmatprep.subr.bf16.mxu1 %v5284_v36 }
 0x136   : > { %v1031_v7 = vsel %vm673_vm5, %v1016_v14, %v1030_v6  ;;  %v6632_v8 = vpop.permute.xlu1 %1061  ;;  %v1060_v9 = vpop.permute.xlu0 %1059  ;;  %3647 = vmatpush1.bf16.msra.mxu0 %v5281_v26  ;;  %3733 = vmatpush1.bf16.msra.mxu1 %v5283_v63 }
 0x137   : > { %v1069_v34 = vrot.slane %v6632_v8, 4  ;;  %v1068_v15 = vrot.slane %v1060_v9, 4 }
 0x138   : > { %1901 = vrot.lane.b32.xlu1 %v6411_v25, %s6010_s4  ;;  %1899 = vrot.lane.b32.xlu0 %v6414_v53, %s6010_s4 }
 0x139   : > { %v1074_v62 = vsel %vm218_vm1, %v1068_v15, %v1069_v34 }
 0x13a   : > { %v1075_v5 = vsel %vm762_vm6, %v1060_v9, %v1074_v62  ;;  %v1058_v19 = vpop.permute.xlu1 %1057  ;;  %v1014_v20 = vpop.permute.xlu0 %1013 }
 0x13b   : > { %v1067_v21 = vrot.slane %v1058_v19, 4  ;;  %v1023_v22 = vrot.slane %v1014_v20, 4  ;;  %v5293_v23 = vcombine.high %v1031_v7, %v1075_v5  ;;  %v5292_v24 = vcombine.low %v1031_v7, %v1075_v5 }
 0x13c   : > { %1946 = vrot.lane.b32.xlu1 %v6424_v59, %s6010_s4  ;;  %1944 = vrot.lane.b32.xlu0 %v6427_v60, %s6010_s4 }
 0x13d   : > { %v1072_v17 = vsel %vm218_vm1, %v1067_v21, %v1068_v15  ;;  %v1028_v27 = vsel %vm218_vm1, %v1023_v22, %v1024_v3  ;;  %3734 = vmatprep.subr.bf16.mxu1 %v5293_v23 }
 0x13e   : > { %v1073_v28 = vsel %vm762_vm6, %v1058_v19, %v1072_v17  ;;  %v1029_v29 = vsel %vm673_vm5, %v1014_v20, %v1028_v27  ;;  %v6651_v30 = vpop.permute.xlu1 %1105  ;;  %v1104_v2 = vpop.permute.xlu0 %1103  ;;  %3735 = vmatpush1.bf16.msra.mxu1 %v5292_v24 }
 0x13f   : > { %v1113_v1 = vrot.slane %v6651_v30, 4  ;;  %v1112_v32 = vrot.slane %v1104_v2, 4  ;;  %v5291_v33 = vcombine.high %v1029_v29, %v1073_v28  ;;  %v5290_v35 = vcombine.low %v1029_v29, %v1073_v28 }
 0x140   : > { %1942 = vrot.lane.b32.xlu1 %v6439_v16, %s6010_s4  ;;  %1897 = vrot.lane.b32.xlu0 %v6442_v18, %s6010_s4 }
 0x141   : > { %v1118_v38 = vsel %vm218_vm1, %v1112_v32, %v1113_v1  ;;  %3648 = vmatprep.subr.bf16.mxu0 %v5291_v33 }
 0x142   : > { %v1119_v39 = vsel %vm762_vm6, %v1104_v2, %v1118_v38  ;;  %v6662_v40 = vpop.permute.xlu1 %1149  ;;  %v1148_v0 = vpop.permute.xlu0 %1147  ;;  %3649 = vmatpush1.bf16.msra.mxu0 %v5290_v35  ;;  %v6715_v35 = vld [vmem:[%s6051_s17 + $0x18] sm:$0xff] }
 0x143   : > { %v1157_v41 = vrot.slane %v6662_v40, 4  ;;  %v1156_v42 = vrot.slane %v1148_v0, 4 }
 0x144   : > { %1990 = vrot.lane.b32.xlu1 %v6411_v25, %s6011_s5  ;;  %1988 = vrot.lane.b32.xlu0 %v6414_v53, %s6011_s5 }
 0x145   : > { %v1162_v43 = vsel %vm218_vm1, %v1156_v42, %v1157_v41 }
 0x146   : > { %v1163_v44 = vsel %vm851_vm7, %v1148_v0, %v1162_v43  ;;  %v1146_v45 = vpop.permute.xlu1 %1145  ;;  %v1102_v46 = vpop.permute.xlu0 %1101 }
 0x147   : > { %v1155_v47 = vrot.slane %v1146_v45, 4  ;;  %v1111_v31 = vrot.slane %v1102_v46, 4  ;;  %v5302_v51 = vcombine.high %v1119_v39, %v1163_v44  ;;  %v5301_v52 = vcombine.low %v1119_v39, %v1163_v44 }
 0x148   : > { %2035 = vrot.lane.b32.xlu1 %v6424_v59, %s6011_s5  ;;  %2033 = vrot.lane.b32.xlu0 %v6427_v60, %s6011_s5 }
 0x149   : > { %v1160_v11 = vsel %vm218_vm1, %v1155_v47, %v1156_v42  ;;  %v1116_v54 = vsel %vm218_vm1, %v1111_v31, %v1112_v32  ;;  %3736 = vmatprep.subr.bf16.mxu1 %v5302_v51  ;;  %v6744_v31 = vld [vmem:[%s6051_s17 + $0x18] sm:$0xff] }
 0x14a   : > { %v1161_v55 = vsel %vm851_vm7, %v1146_v45, %v1160_v11  ;;  %v1117_v13 = vsel %vm762_vm6, %v1102_v46, %v1116_v54  ;;  %v6681_v48 = vpop.permute.xlu1 %1193  ;;  %v1192_v57 = vpop.permute.xlu0 %1191  ;;  %3737 = vmatpush1.bf16.msra.mxu1 %v5301_v52  ;;  %v6729_v45 = vld [vmem:[%s6051_s17 + $0x10] sm:$0xff] }
 0x14b   : > { %v1201_v58 = vrot.slane %v6681_v48, 4  ;;  %v1200_v14 = vrot.slane %v1192_v57, 4  ;;  %v5300_v3 = vcombine.high %v1117_v13, %v1161_v55  ;;  %v5299_v37 = vcombine.low %v1117_v13, %v1161_v55 }
 0x14c   : > { %2031 = vrot.lane.b32.xlu1 %v6439_v16, %s6011_s5  ;;  %1986 = vrot.lane.b32.xlu0 %v6442_v18, %s6011_s5 }
 0x14d   : > { %v1206_v36 = vsel %vm218_vm1, %v1200_v14, %v1201_v58  ;;  %3650 = vmatprep.subr.bf16.mxu0 %v5300_v3  ;;  %v6756_v3 = vld [vmem:[%s6051_s17 + $0x68] sm:$0xff] }
 0x14e   : > { %v1207_v26 = vsel %vm851_vm7, %v1192_v57, %v1206_v36  ;;  %v6692_v63 = vpop.permute.xlu1 %1237  ;;  %v1236_v6 = vpop.permute.xlu0 %1235  ;;  %3651 = vmatpush1.bf16.msra.mxu0 %v5299_v37  ;;  %v6759_v37 = vld [vmem:[%s6051_s17 + $0x20] sm:$0xff] }
 0x14f   : > { %v1245_v7 = vrot.slane %v6692_v63, 4  ;;  %v1244_v9 = vrot.slane %v1236_v6, 4 }
 0x150   : > { %2079 = vrot.lane.b32.xlu1 %v6411_v25, %s6012_s6  ;;  %2077 = vrot.lane.b32.xlu0 %v6414_v53, %s6012_s6 }
 0x151   : > { %v1250_v15 = vsel %vm218_vm1, %v1244_v9, %v1245_v7 }
 0x152   : > { %v1251_v62 = vsel %vm940_vm8, %v1236_v6, %v1250_v15  ;;  %v1234_v5 = vpop.permute.xlu1 %1233  ;;  %v1190_v19 = vpop.permute.xlu0 %1189 }
 0x153   : > { %v1243_v20 = vrot.slane %v1234_v5, 4  ;;  %v1199_v21 = vrot.slane %v1190_v19, 4  ;;  %v5311_v22 = vcombine.high %v1207_v26, %v1251_v62  ;;  %v5310_v23 = vcombine.low %v1207_v26, %v1251_v62 }
 0x154   : > { %2124 = vrot.lane.b32.xlu1 %v6424_v59, %s6012_s6  ;;  %2122 = vrot.lane.b32.xlu0 %v6427_v60, %s6012_s6 }
 0x155   : > { %v1248_v24 = vsel %vm218_vm1, %v1243_v20, %v1244_v9  ;;  %v1204_v17 = vsel %vm218_vm1, %v1199_v21, %v1200_v14  ;;  %3738 = vmatprep.subr.bf16.mxu1 %v5311_v22  ;;  %v6774_v20 = vld [vmem:[%s6051_s17 + $0x90] sm:$0xff] }
 0x156   : > { %v1249_v27 = vsel %vm940_vm8, %v1234_v5, %v1248_v24  ;;  %v1205_v28 = vsel %vm851_vm7, %v1190_v19, %v1204_v17  ;;  %v6711_v29 = vpop.permute.xlu1 %1281  ;;  %v1280_v2 = vpop.permute.xlu0 %1279  ;;  %3739 = vmatpush1.bf16.msra.mxu1 %v5310_v23  ;;  %v6777_v21 = vld [vmem:[%s6051_s17 + $0x70] sm:$0xff] }
 0x157   : > { %v1289_v59 = vrot.slane %v6711_v29, 4  ;;  %v1288_v32 = vrot.slane %v1280_v2, 4  ;;  %v5309_v60 = vcombine.high %v1205_v28, %v1249_v27  ;;  %v5308_v33 = vcombine.low %v1205_v28, %v1249_v27 }
 0x158   : > { %2120 = vrot.lane.b32.xlu1 %v6439_v16, %s6012_s6  ;;  %2075 = vrot.lane.b32.xlu0 %v6442_v18, %s6012_s6  ;;  %v6732_v16 = vld [vmem:[%s6051_s17 + $0x38] sm:$0xff] }
 0x159   : > { %v1295_v38 = vsel %vm218_vm1, %v1288_v32, %v1289_v59  ;;  %3652 = vmatprep.subr.bf16.mxu0 %v5309_v60  ;;  %v5196_v46 = vcombine.high %v6729_v45, %v6732_v16  ;;  %v5195_v51 = vcombine.low %v6729_v45, %v6732_v16  ;;  %v5981_v45 = vld [vmem:[#allocation2 + $0x114] sm:$0xff] }
 0x15a   : > { %v1296_v39 = vsel %vm1293_vm9, %v1280_v2, %v1295_v38  ;;  %v6725_v0 = vpop.permute.xlu1 %1326  ;;  %v1325_v42 = vpop.permute.xlu0 %1324  ;;  %3653 = vmatpush1.bf16.msra.mxu0 %v5308_v33  ;;  %v6791_v2 = vld [vmem:[%s6051_s17 + $0x98] sm:$0xff] }
 0x15b   : > { %v8533_v43 = vrot.slane %v6725_v0, 4  ;;  %v1333_v44 = vrot.slane %v1325_v42, 4 }
 0x15c   : > { %2168 = vrot.lane.b32.xlu1 %v6411_v25, %s6013_s7  ;;  %2166 = vrot.lane.b32.xlu0 %v6414_v53, %s6013_s7 }
 0x15d   : > { %v1339_v47 = vsel %vm218_vm1, %v1333_v44, %v8533_v43 }
 0x15e   : > { %v1340_v52 = vsel %vm1293_vm9, %v1325_v42, %v1339_v47  ;;  %v1323_v25 = vpop.permute.xlu1 %1322  ;;  %v1278_v11 = vpop.permute.xlu0 %1277 }
 0x15f   : > { %v1332_v54 = vrot.slane %v1323_v25, 4  ;;  %v1287_v53 = vrot.slane %v1278_v11, 4  ;;  %v5320_v55 = vcombine.high %v1296_v39, %v1340_v52  ;;  %v5319_v13 = vcombine.low %v1296_v39, %v1340_v52 }
 0x160   : > { %930 = vrot.lane.b32.xlu1 %v6744_v31, %s6005_s24  ;;  %2164 = vrot.lane.b32.xlu0 %v6442_v18, %s6013_s7 }
 0x161   : > { %v1337_v57 = vsel %vm218_vm1, %v1332_v54, %v1333_v44  ;;  %v1292_v14 = vsel %vm218_vm1, %v1287_v53, %v1288_v32  ;;  %3740 = vmatprep.subr.bf16.mxu1 %v5320_v55 }
 0x162   : > { %v1338_v36 = vsel %vm1293_vm9, %v1323_v25, %v1337_v57  ;;  %v1294_v26 = vsel %vm1293_vm9, %v1278_v11, %v1292_v14  ;;  %v6763_v6 = vpop.permute.xlu1 %1370  ;;  %v1369_v9 = vpop.permute.xlu0 %1368  ;;  %3741 = vmatpush1.bf16.msra.mxu1 %v5319_v13  ;;  %v5906_v25 = vld [vmem:[%s8511_s1] ss:$16 sps:$4 sm:$0xff]   ;;  %v5907_v13 = vld [vmem:[%s8511_s1 + $0xc] ss:$16 sps:$4 sm:$0xff]  }
 0x163   : > { %v8532_v18 = vrot.slane %v6763_v6, 4  ;;  %v1377_v15 = vrot.slane %v1369_v9, 4  ;;  %v5318_v62 = vcombine.high %v1294_v26, %v1338_v36  ;;  %v5317_v5 = vcombine.low %v1294_v26, %v1338_v36 }
 0x164   : > { %975 = vrot.lane.b32.xlu1 %v6756_v3, %s6002_s21  ;;  %932 = vrot.lane.b32.xlu0 %v6759_v37, %s6005_s24 }
 0x165   : > { %v1384_v19 = vsel %vm218_vm1, %v1377_v15, %v8532_v18  ;;  %3654 = vmatprep.subr.bf16.mxu0 %v5318_v62 }
 0x166   : > { %v1385_v22 = vsel %vm1382_vm10, %v1369_v9, %v1384_v19  ;;  %v6780_v23 = vpop.permute.xlu1 %1415  ;;  %v1414_v24 = vpop.permute.xlu0 %1413  ;;  %3655 = vmatpush1.bf16.msra.mxu0 %v5317_v5 }
 0x167   : > { %v8524_v17 = vrot.slane %v6780_v23, 4  ;;  %v1422_v27 = vrot.slane %v1414_v24, 4 }
 0x168   : > { %1019 = vrot.lane.b32.xlu1 %v6774_v20, %s6002_s21  ;;  %977 = vrot.lane.b32.xlu0 %v6777_v21, %s6002_s21 }
 0x169   : > { %v1428_v28 = vsel %vm218_vm1, %v1422_v27, %v8524_v17 }
 0x16a   : > { %v1429_v32 = vsel %vm1382_vm10, %v1414_v24, %v1428_v28  ;;  %v1412_v60 = vpop.permute.xlu1 %1411  ;;  %v1367_v33 = vpop.permute.xlu0 %1366 }
 0x16b   : > { %v1421_v38 = vrot.slane %v1412_v60, 4  ;;  %v1376_v39 = vrot.slane %v1367_v33, 4  ;;  %v5329_v42 = vcombine.high %v1385_v22, %v1429_v32  ;;  %v5328_v44 = vcombine.low %v1385_v22, %v1429_v32 }
 0x16c   : > { %1063 = vrot.lane.b32.xlu1 %v6756_v3, %s6003_s22  ;;  %1021 = vrot.lane.b32.xlu0 %v6791_v2, %s6002_s21 }
 0x16d   : > { %v1426_v47 = vsel %vm218_vm1, %v1421_v38, %v1422_v27  ;;  %v1381_v52 = vsel %vm218_vm1, %v1376_v39, %v1377_v15  ;;  %3742 = vmatprep.subr.bf16.mxu1 %v5329_v42 }
 0x16e   : > { %v1427_v11 = vsel %vm1382_vm10, %v1412_v60, %v1426_v47  ;;  %v1383_v54 = vsel %vm1382_vm10, %v1367_v33, %v1381_v52  ;;  %v6805_v53 = vpop.permute.xlu1 %1459  ;;  %v1458_v55 = vpop.permute.xlu0 %1457  ;;  %3743 = vmatpush1.bf16.msra.mxu1 %v5328_v44 }
 0x16f   : > { %v8523_v57 = vrot.slane %v6805_v53, 4  ;;  %v1466_v14 = vrot.slane %v1458_v55, 4  ;;  %v5327_v36 = vcombine.high %v1383_v54, %v1427_v11  ;;  %v5326_v26 = vcombine.low %v1383_v54, %v1427_v11 }
 0x170   : > { %1107 = vrot.lane.b32.xlu1 %v6774_v20, %s6003_s22  ;;  %1065 = vrot.lane.b32.xlu0 %v6777_v21, %s6003_s22 }
 0x171   : > { %v1473_v9 = vsel %vm218_vm1, %v1466_v14, %v8523_v57  ;;  %3656 = vmatprep.subr.bf16.mxu0 %v5327_v36  ;;  %3745 = vmatmul.mubr.bf16.vlgmr.msra.gmra.mrb[0].mxu1 %v5906_v25 }
 0x172   : > { %v1474_v15 = vsel %vm1471_vm11, %v1458_v55, %v1473_v9  ;;  %v6819_v62 = vpop.permute.xlu1 %1504  ;;  %v1503_v5 = vpop.permute.xlu0 %1502  ;;  %3657 = vmatpush1.bf16.msra.mxu0 %v5326_v26  ;;  %5419 = vmatprep.mubr.msk.bf16.mxu1 %vm3594_vm12, %v5907_v13 }
 0x173   : > { %v8520_v19 = vrot.slane %v6819_v62, 4  ;;  %v1511_v22 = vrot.slane %v1503_v5, 4 }
 0x174   : > { %1151 = vrot.lane.b32.xlu1 %v6756_v3, %s6004_s23  ;;  %1109 = vrot.lane.b32.xlu0 %v6791_v2, %s6003_s22 }
 0x175   : > { %v1517_v24 = vsel %vm218_vm1, %v1511_v22, %v8520_v19  ;;  %3659 = vmatmul.mubr.bf16.vlgmr.msra.gmra.mrb[0].mxu0 %v5906_v25 }
 0x176   : > { %v1518_v27 = vsel %vm1471_vm11, %v1503_v5, %v1517_v24  ;;  %v1501_v28 = vpop.permute.xlu1 %1500  ;;  %v1456_v32 = vpop.permute.xlu0 %1455  ;;  %5417 = vmatprep.mubr.msk.bf16.mxu0 %vm3594_vm12, %v5907_v13 }
 0x177   : > { %v1510_v60 = vrot.slane %v1501_v28, 4  ;;  %v1465_v33 = vrot.slane %v1456_v32, 4  ;;  %v5337_v38 = vcombine.low %v1474_v15, %v1518_v27  ;;  %v5338_v39 = vcombine.high %v1474_v15, %v1518_v27 }
 0x178   : > { %1195 = vrot.lane.b32.xlu1 %v6774_v20, %s6004_s23  ;;  %1153 = vrot.lane.b32.xlu0 %v6777_v21, %s6004_s23 }
 0x179   : > { %v1515_v42 = vsel %vm218_vm1, %v1510_v60, %v1511_v22  ;;  %v1470_v44 = vsel %vm218_vm1, %v1465_v33, %v1466_v14  ;;  %3755 = vmatprep.subr.bf16.mxu1 %v5338_v39 }
 0x17a   : > { %v1516_v47 = vsel %vm1471_vm11, %v1501_v28, %v1515_v42  ;;  %v1472_v52 = vsel %vm1471_vm11, %v1456_v32, %v1470_v44  ;;  %v6840_v25 = vpop.permute.xlu1 %1548  ;;  %v1547_v11 = vpop.permute.xlu0 %1546  ;;  %3756 = vmatpush1.bf16.msra.mxu1 %v5337_v38 }
 0x17b   : > { %v8519_v54 = vrot.slane %v6840_v25, 4  ;;  %v1555_v55 = vrot.slane %v1547_v11, 4  ;;  %v5335_v13 = vcombine.low %v1472_v52, %v1516_v47  ;;  %v5336_v36 = vcombine.high %v1472_v52, %v1516_v47  ;;  %v6869_v47 = vld [vmem:[%s6051_s17 + $0x48] sm:$0xff] }
 0x17c   : > { %1239 = vrot.lane.b32.xlu1 %v6756_v3, %s6005_s24  ;;  %1197 = vrot.lane.b32.xlu0 %v6791_v2, %s6004_s23 }
 0x17d   : > { %v1562_v14 = vsel %vm218_vm1, %v1555_v55, %v8519_v54  ;;  %3669 = vmatprep.subr.bf16.mxu0 %v5336_v36 }
 0x17e   : > { %v1563_v26 = vsel %vm1560_vm13, %v1547_v11, %v1562_v14  ;;  %v6851_v9 = vpop.permute.xlu1 %1593  ;;  %v1592_v15 = vpop.permute.xlu0 %1591  ;;  %3670 = vmatpush1.bf16.msra.mxu0 %v5335_v13 }
 0x17f   : > { %v8516_v5 = vrot.slane %v6851_v9, 4  ;;  %v1600_v22 = vrot.slane %v1592_v15, 4 }
 0x180   : > { %1283 = vrot.lane.b32.xlu1 %v6744_v31, %s6006_s25  ;;  %1241 = vrot.lane.b32.xlu0 %v6777_v21, %s6005_s24 }
 0x181   : > { %v1606_v24 = vsel %vm218_vm1, %v1600_v22, %v8516_v5  ;;  %v6906_v5 = vld [vmem:[#allocation2 + $0x3c] sm:$0xff] }
 0x182   : > { %v1607_v27 = vsel %vm1293_vm9, %v1592_v15, %v1606_v24  ;;  %v1590_v28 = vpop.permute.xlu1 %1589  ;;  %v1545_v32 = vpop.permute.xlu0 %1544 }
 0x183   : > { %v1599_v60 = vrot.slane %v1590_v28, 4  ;;  %v1554_v33 = vrot.slane %v1545_v32, 4  ;;  %v5346_v38 = vcombine.low %v1563_v26, %v1607_v27  ;;  %v5347_v39 = vcombine.high %v1563_v26, %v1607_v27 }
 0x184   : > { %1328 = vrot.lane.b32.xlu1 %v6500_v12, %s6006_s25  ;;  %1285 = vrot.lane.b32.xlu0 %v6759_v37, %s6006_s25 }
 0x185   : > { %v1604_v42 = vsel %vm218_vm1, %v1599_v60, %v1600_v22  ;;  %v1559_v44 = vsel %vm218_vm1, %v1554_v33, %v1555_v55  ;;  %3757 = vmatprep.subr.bf16.mxu1 %v5347_v39 }
 0x186   : > { %v1605_v52 = vsel %vm1293_vm9, %v1590_v28, %v1604_v42  ;;  %v1561_v11 = vsel %vm1560_vm13, %v1545_v32, %v1559_v44  ;;  %v6873_v13 = vpop.permute.xlu1 %1637  ;;  %v1636_v36 = vpop.permute.xlu0 %1635  ;;  %3758 = vmatpush1.bf16.msra.mxu1 %v5346_v38 }
 0x187   : > { %v8515_v14 = vrot.slane %v6873_v13, 4  ;;  %v1644_v26 = vrot.slane %v1636_v36, 4  ;;  %v5344_v15 = vcombine.low %v1561_v11, %v1605_v52  ;;  %v5345_v24 = vcombine.high %v1561_v11, %v1605_v52 }
 0x188   : > { %1372 = vrot.lane.b32.xlu1 %v6744_v31, %s6007_s26  ;;  %1330 = vrot.lane.b32.xlu0 %v6869_v47, %s6006_s25 }
 0x189   : > { %v1650_v55 = vsel %vm218_vm1, %v1644_v26, %v8515_v14  ;;  %3671 = vmatprep.subr.bf16.mxu0 %v5345_v24 }
 0x18a   : > { %v1651_v22 = vsel %vm1293_vm9, %v1636_v36, %v1650_v55  ;;  %v6884_v27 = vpop.permute.xlu1 %1681  ;;  %v1680_v28 = vpop.permute.xlu0 %1679  ;;  %3672 = vmatpush1.bf16.msra.mxu0 %v5344_v15 }
 0x18b   : > { %v8514_v32 = vrot.slane %v6884_v27, 4  ;;  %v1688_v60 = vrot.slane %v1680_v28, 4 }
 0x18c   : > { %1417 = vrot.lane.b32.xlu1 %v6500_v12, %s6007_s26  ;;  %1374 = vrot.lane.b32.xlu0 %v6759_v37, %s6007_s26 }
 0x18d   : > { %v1694_v33 = vsel %vm218_vm1, %v1688_v60, %v8514_v32 }
 0x18e   : > { %v1695_v38 = vsel %vm1382_vm10, %v1680_v28, %v1694_v33  ;;  %v1678_v39 = vpop.permute.xlu1 %1677  ;;  %v1634_v42 = vpop.permute.xlu0 %1633 }
 0x18f   : > { %v1687_v44 = vrot.slane %v1678_v39, 4  ;;  %v1643_v52 = vrot.slane %v1634_v42, 4  ;;  %v5355_v11 = vcombine.low %v1651_v22, %v1695_v38  ;;  %v5356_v36 = vcombine.high %v1651_v22, %v1695_v38 }
 0x190   : > { %1461 = vrot.lane.b32.xlu1 %v6744_v31, %s6008_s29  ;;  %1419 = vrot.lane.b32.xlu0 %v6869_v47, %s6007_s26 }
 0x191   : > { %v1692_v12 = vsel %vm218_vm1, %v1687_v44, %v1688_v60  ;;  %v1648_v15 = vsel %vm218_vm1, %v1643_v52, %v1644_v26  ;;  %3759 = vmatprep.subr.bf16.mxu1 %v5356_v36 }
 0x192   : > { %v1693_v24 = vsel %vm1382_vm10, %v1678_v39, %v1692_v12  ;;  %v1649_v55 = vsel %vm1293_vm9, %v1634_v42, %v1648_v15  ;;  %v6903_v28 = vpop.permute.xlu1 %1725  ;;  %v1724_v33 = vpop.permute.xlu0 %1723  ;;  %3760 = vmatpush1.bf16.msra.mxu1 %v5355_v11 }
 0x193   : > { %v8518_v22 = vrot.slane %v6903_v28, 4  ;;  %v1732_v38 = vrot.slane %v1724_v33, 4  ;;  %v5353_v32 = vcombine.low %v1649_v55, %v1693_v24  ;;  %v5354_v14 = vcombine.high %v1649_v55, %v1693_v24 }
 0x194   : > { %1506 = vrot.lane.b32.xlu1 %v6906_v5, %s6008_s29  ;;  %1463 = vrot.lane.b32.xlu0 %v6759_v37, %s6008_s29 }
 0x195   : > { %v1738_v26 = vsel %vm218_vm1, %v1732_v38, %v8518_v22  ;;  %3673 = vmatprep.subr.bf16.mxu0 %v5354_v14 }
 0x196   : > { %v1739_v60 = vsel %vm1382_vm10, %v1724_v33, %v1738_v26  ;;  %v6916_v39 = vpop.permute.xlu1 %1769  ;;  %v1768_v42 = vpop.permute.xlu0 %1767  ;;  %3674 = vmatpush1.bf16.msra.mxu0 %v5353_v32 }
 0x197   : > { %v8517_v44 = vrot.slane %v6916_v39, 4  ;;  %v1776_v52 = vrot.slane %v1768_v42, 4 }
 0x198   : > { %1550 = vrot.lane.b32.xlu1 %v6744_v31, %s6009_s30  ;;  %1508 = vrot.lane.b32.xlu0 %v6869_v47, %s6008_s29 }
 0x199   : > { %v1782_v11 = vsel %vm218_vm1, %v1776_v52, %v8517_v44 }
 0x19a   : > { %v1783_v14 = vsel %vm1471_vm11, %v1768_v42, %v1782_v11  ;;  %v1766_v36 = vpop.permute.xlu1 %1765  ;;  %v1722_v12 = vpop.permute.xlu0 %1721 }
 0x19b   : > { %v1775_v15 = vrot.slane %v1766_v36, 4  ;;  %v1731_v24 = vrot.slane %v1722_v12, 4  ;;  %v5364_v32 = vcombine.low %v1739_v60, %v1783_v14  ;;  %v5365_v55 = vcombine.high %v1739_v60, %v1783_v14 }
 0x19c   : > { %1595 = vrot.lane.b32.xlu1 %v6756_v3, %s6006_s25  ;;  %1552 = vrot.lane.b32.xlu0 %v6759_v37, %s6009_s30 }
 0x19d   : > { %v1780_v33 = vsel %vm218_vm1, %v1775_v15, %v1776_v52  ;;  %v1736_v26 = vsel %vm218_vm1, %v1731_v24, %v1732_v38  ;;  %3761 = vmatprep.subr.bf16.mxu1 %v5365_v55 }
 0x19e   : > { %v1781_v44 = vsel %vm1471_vm11, %v1766_v36, %v1780_v33  ;;  %v1737_v42 = vsel %vm1382_vm10, %v1722_v12, %v1736_v26  ;;  %v6935_v11 = vpop.permute.xlu1 %1813  ;;  %v1812_v22 = vpop.permute.xlu0 %1811  ;;  %3762 = vmatpush1.bf16.msra.mxu1 %v5364_v32 }
 0x19f   : > { %v8522_v60 = vrot.slane %v6935_v11, 4  ;;  %v1820_v14 = vrot.slane %v1812_v22, 4  ;;  %v5362_v54 = vcombine.low %v1737_v42, %v1781_v44  ;;  %v5363_v19 = vcombine.high %v1737_v42, %v1781_v44 }
 0x1a0   : > { %1639 = vrot.lane.b32.xlu1 %v6774_v20, %s6006_s25  ;;  %1597 = vrot.lane.b32.xlu0 %v6777_v21, %s6006_s25 }
 0x1a1   : > { %v1826_v38 = vsel %vm218_vm1, %v1820_v14, %v8522_v60  ;;  %3675 = vmatprep.subr.bf16.mxu0 %v5363_v19 }
 0x1a2   : > { %v1827_v52 = vsel %vm1471_vm11, %v1812_v22, %v1826_v38  ;;  %v6946_v36 = vpop.permute.xlu1 %1857  ;;  %v1856_v12 = vpop.permute.xlu0 %1855  ;;  %3676 = vmatpush1.bf16.msra.mxu0 %v5362_v54 }
 0x1a3   : > { %v8521_v15 = vrot.slane %v6946_v36, 4  ;;  %v1864_v44 = vrot.slane %v1856_v12, 4 }
 0x1a4   : > { %1683 = vrot.lane.b32.xlu1 %v6756_v3, %s6007_s26  ;;  %1641 = vrot.lane.b32.xlu0 %v6791_v2, %s6006_s25 }
 0x1a5   : > { %v1870_v24 = vsel %vm218_vm1, %v1864_v44, %v8521_v15 }
 0x1a6   : > { %v1871_v19 = vsel %vm1560_vm13, %v1856_v12, %v1870_v24  ;;  %v1854_v22 = vpop.permute.xlu1 %1853  ;;  %v1810_v32 = vpop.permute.xlu0 %1809 }
 0x1a7   : > { %v1863_v55 = vrot.slane %v1854_v22, 4  ;;  %v1819_v33 = vrot.slane %v1810_v32, 4  ;;  %v5373_v54 = vcombine.low %v1827_v52, %v1871_v19  ;;  %v5374_v26 = vcombine.high %v1827_v52, %v1871_v19 }
 0x1a8   : > { %1727 = vrot.lane.b32.xlu1 %v6774_v20, %s6007_s26  ;;  %1685 = vrot.lane.b32.xlu0 %v6777_v21, %s6007_s26 }
 0x1a9   : > { %v1868_v42 = vsel %vm218_vm1, %v1863_v55, %v1864_v44  ;;  %v1824_v38 = vsel %vm218_vm1, %v1819_v33, %v1820_v14  ;;  %3763 = vmatprep.subr.bf16.mxu1 %v5374_v26 }
 0x1aa   : > { %v1869_v15 = vsel %vm1560_vm13, %v1854_v22, %v1868_v42  ;;  %v1825_v12 = vsel %vm1471_vm11, %v1810_v32, %v1824_v38  ;;  %v6965_v24 = vpop.permute.xlu1 %1901  ;;  %v1900_v60 = vpop.permute.xlu0 %1899  ;;  %3764 = vmatpush1.bf16.msra.mxu1 %v5373_v54 }
 0x1ab   : > { %v8526_v52 = vrot.slane %v6965_v24, 4  ;;  %v1908_v19 = vrot.slane %v1900_v60, 4  ;;  %v5371_v57 = vcombine.low %v1825_v12, %v1869_v15  ;;  %v5372_v17 = vcombine.high %v1825_v12, %v1869_v15 }
 0x1ac   : > { %1771 = vrot.lane.b32.xlu1 %v6756_v3, %s6008_s29  ;;  %1729 = vrot.lane.b32.xlu0 %v6791_v2, %s6007_s26 }
 0x1ad   : > { %v1915_v14 = vsel %vm218_vm1, %v1908_v19, %v8526_v52  ;;  %3677 = vmatprep.subr.bf16.mxu0 %v5372_v17 }
 0x1ae   : > { %v1916_v44 = vsel %vm1913_vm14, %v1900_v60, %v1915_v14  ;;  %v6976_v22 = vpop.permute.xlu1 %1946  ;;  %v1945_v32 = vpop.permute.xlu0 %1944  ;;  %3678 = vmatpush1.bf16.msra.mxu0 %v5371_v57 }
 0x1af   : > { %v8525_v55 = vrot.slane %v6976_v22, 4  ;;  %v1953_v15 = vrot.slane %v1945_v32, 4 }
 0x1b0   : > { %1815 = vrot.lane.b32.xlu1 %v6774_v20, %s6008_s29  ;;  %1773 = vrot.lane.b32.xlu0 %v6777_v21, %s6008_s29 }
 0x1b1   : > { %v1959_v33 = vsel %vm218_vm1, %v1953_v15, %v8525_v55 }
 0x1b2   : > { %v1960_v17 = vsel %vm1913_vm14, %v1945_v32, %v1959_v33  ;;  %v1943_v60 = vpop.permute.xlu1 %1942  ;;  %v1898_v54 = vpop.permute.xlu0 %1897 }
 0x1b3   : > { %v1952_v26 = vrot.slane %v1943_v60, 4  ;;  %v1907_v42 = vrot.slane %v1898_v54, 4  ;;  %v5382_v57 = vcombine.low %v1916_v44, %v1960_v17  ;;  %v5383_v38 = vcombine.high %v1916_v44, %v1960_v17 }
 0x1b4   : > { %1859 = vrot.lane.b32.xlu1 %v6756_v3, %s6009_s30  ;;  %1817 = vrot.lane.b32.xlu0 %v6791_v2, %s6008_s29 }
 0x1b5   : > { %v1957_v20 = vsel %vm218_vm1, %v1952_v26, %v1953_v15  ;;  %v1912_v12 = vsel %vm218_vm1, %v1907_v42, %v1908_v19  ;;  %3765 = vmatprep.subr.bf16.mxu1 %v5383_v38 }
 0x1b6   : > { %v1958_v14 = vsel %vm1913_vm14, %v1943_v60, %v1957_v20  ;;  %v1914_v32 = vsel %vm1913_vm14, %v1898_v54, %v1912_v12  ;;  %v6995_v33 = vpop.permute.xlu1 %1990  ;;  %v1989_v55 = vpop.permute.xlu0 %1988  ;;  %3766 = vmatpush1.bf16.msra.mxu1 %v5382_v57 }
 0x1b7   : > { %v8528_v44 = vrot.slane %v6995_v33, 4  ;;  %v1997_v3 = vrot.slane %v1989_v55, 4  ;;  %v5380_v17 = vcombine.low %v1914_v32, %v1958_v14  ;;  %v5381_v52 = vcombine.high %v1914_v32, %v1958_v14 }
 0x1b8   : > { %1903 = vrot.lane.b32.xlu1 %v6744_v31, %s6010_s4  ;;  %1861 = vrot.lane.b32.xlu0 %v6777_v21, %s6009_s30 }
 0x1b9   : > { %v2004_v2 = vsel %vm218_vm1, %v1997_v3, %v8528_v44  ;;  %3679 = vmatprep.subr.bf16.mxu0 %v5381_v52 }
 0x1ba   : > { %v2005_v19 = vsel %vm2002_vm15, %v1989_v55, %v2004_v2  ;;  %v7006_v15 = vpop.permute.xlu1 %2035  ;;  %v2034_v60 = vpop.permute.xlu0 %2033  ;;  %3680 = vmatpush1.bf16.msra.mxu0 %v5380_v17 }
 0x1bb   : > { %v8527_v54 = vrot.slane %v7006_v15, 4  ;;  %v2042_v26 = vrot.slane %v2034_v60, 4 }
 0x1bc   : > { %1948 = vrot.lane.b32.xlu1 %v6906_v5, %s6010_s4  ;;  %1905 = vrot.lane.b32.xlu0 %v6759_v37, %s6010_s4 }
 0x1bd   : > { %v2048_v21 = vsel %vm218_vm1, %v2042_v26, %v8527_v54 }
 0x1be   : > { %v2049_v52 = vsel %vm2002_vm15, %v2034_v60, %v2048_v21  ;;  %v2032_v55 = vpop.permute.xlu1 %2031  ;;  %v1987_v42 = vpop.permute.xlu0 %1986 }
 0x1bf   : > { %v2041_v57 = vrot.slane %v2032_v55, 4  ;;  %v1996_v38 = vrot.slane %v1987_v42, 4  ;;  %v5391_v20 = vcombine.low %v2005_v19, %v2049_v52  ;;  %v5392_v12 = vcombine.high %v2005_v19, %v2049_v52 }
 0x1c0   : > { %1992 = vrot.lane.b32.xlu1 %v6744_v31, %s6011_s5  ;;  %1950 = vrot.lane.b32.xlu0 %v6869_v47, %s6010_s4 }
 0x1c1   : > { %v2046_v14 = vsel %vm218_vm1, %v2041_v57, %v2042_v26  ;;  %v2001_v32 = vsel %vm218_vm1, %v1996_v38, %v1997_v3  ;;  %3767 = vmatprep.subr.bf16.mxu1 %v5392_v12  ;;  %v176_v57 = vld [vmem:[%s6051_s17 + $0x20] sm:$0xf]  ;;  %v187_v38 = vld [vmem:[%s6051_s17 + $0x48] sm:$0xf] }
 0x1c2   : > { %v2047_v17 = vsel %vm2002_vm15, %v2032_v55, %v2046_v14  ;;  %v2003_v2 = vsel %vm2002_vm15, %v1987_v42, %v2001_v32  ;;  %v7025_v60 = vpop.permute.xlu1 %2079  ;;  %v2078_v19 = vpop.permute.xlu0 %2077  ;;  %3768 = vmatpush1.bf16.msra.mxu1 %v5391_v20  ;;  %182 = vst.msk [vmem:[#allocation2 + $0x20] sm:$0xf] %vm181_vm0, %v176_v57  ;;  %192 = vst.msk [vmem:[#allocation2 + $0x44] sm:$0xf] %vm181_vm0, %v187_v38 }
 0x1c3   : > { %v8531_v21 = vrot.slane %v7025_v60, 4  ;;  %v2086_v52 = vrot.slane %v2078_v19, 4  ;;  %v5389_v54 = vcombine.low %v2003_v2, %v2047_v17  ;;  %v5390_v44 = vcombine.high %v2003_v2, %v2047_v17 }
 0x1c4   : > { %2037 = vrot.lane.b32.xlu1 %v6906_v5, %s6011_s5  ;;  %1994 = vrot.lane.b32.xlu0 %v6759_v37, %s6011_s5 }
 0x1c5   : > { %v2093_v3 = vsel %vm218_vm1, %v2086_v52, %v8531_v21  ;;  %3681 = vmatprep.subr.bf16.mxu0 %v5390_v44 }
 0x1c6   : > { %v2094_v26 = vsel %vm2091_vm4, %v2078_v19, %v2093_v3  ;;  %v7036_v55 = vpop.permute.xlu1 %2124  ;;  %v2123_v42 = vpop.permute.xlu0 %2122  ;;  %3682 = vmatpush1.bf16.msra.mxu0 %v5389_v54 }
 0x1c7   : > { %v8529_v20 = vrot.slane %v7036_v55, 4  ;;  %v2131_v12 = vrot.slane %v2123_v42, 4 }
 0x1c8   : > { %2081 = vrot.lane.b32.xlu1 %v6744_v31, %s6012_s6  ;;  %2039 = vrot.lane.b32.xlu0 %v6869_v47, %s6011_s5 }
 0x1c9   : > { %v2137_v44 = vsel %vm218_vm1, %v2131_v12, %v8529_v20 }
 0x1ca   : > { %v2138_v54 = vsel %vm2091_vm4, %v2123_v42, %v2137_v44  ;;  %v2121_v14 = vpop.permute.xlu1 %2120  ;;  %v2076_v32 = vpop.permute.xlu0 %2075 }
 0x1cb   : > { %v2130_v17 = vrot.slane %v2121_v14, 4  ;;  %v2085_v2 = vrot.slane %v2076_v32, 4  ;;  %v5400_v19 = vcombine.low %v2094_v26, %v2138_v54  ;;  %v5401_v3 = vcombine.high %v2094_v26, %v2138_v54 }
 0x1cc   : > { %2126 = vrot.lane.b32.xlu1 %v6906_v5, %s6012_s6  ;;  %2083 = vrot.lane.b32.xlu0 %v6759_v37, %s6012_s6 }
 0x1cd   : > { %v2135_v57 = vsel %vm218_vm1, %v2130_v17, %v2131_v12  ;;  %v2090_v38 = vsel %vm218_vm1, %v2085_v2, %v2086_v52  ;;  %3769 = vmatprep.subr.bf16.mxu1 %v5401_v3  ;;  %v5198_v17 = vcombine.high %v6715_v35, %v6906_v5 }
 0x1ce   : > { %v2136_v20 = vsel %vm2091_vm4, %v2121_v14, %v2135_v57  ;;  %v2092_v42 = vsel %vm2091_vm4, %v2076_v32, %v2090_v38  ;;  %v7059_v44 = vpop.permute.xlu1 %2168  ;;  %v2167_v21 = vpop.permute.xlu0 %2166  ;;  %3770 = vmatpush1.bf16.msra.mxu1 %v5400_v19 }
 0x1cf   : > { %v2176_v26 = vrot.slane %v7059_v44, 4  ;;  %v2175_v54 = vrot.slane %v2167_v21, 4  ;;  %v5398_v18 = vcombine.low %v2092_v42, %v2136_v20  ;;  %v5399_v43 = vcombine.high %v2092_v42, %v2136_v20 }
 0x1d0   : > { %2170 = vrot.lane.b32.xlu1 %v6744_v31, %s6013_s7  ;;  %2128 = vrot.lane.b32.xlu0 %v6869_v47, %s6012_s6 }
 0x1d1   : > { %v2182_v52 = vsel %vm218_vm1, %v2175_v54, %v2176_v26  ;;  %3683 = vmatprep.subr.bf16.mxu0 %v5399_v43 }
 0x1d2   : > { %v2183_v12 = vsel %vm2180_vm3, %v2167_v21, %v2182_v52  ;;  %v931_v14 = vpop.permute.xlu1 %930  ;;  %v2165_v32 = vpop.permute.xlu0 %2164  ;;  %3684 = vmatpush1.bf16.msra.mxu0 %v5398_v18  ;;  %v5909_v21 = vld [vmem:[%s8511_s1 + $0x8] ss:$16 sps:$4 sm:$0xff]  }
 0x1d3   : > { %v937_v20 = vrot.slane %v931_v14, 4  ;;  %v2174_v2 = vrot.slane %v2165_v32, 4  ;;  %v5410_v19 = vcombine.high %v2183_v12, %v2183_v12  ;;  %v5409_v31 = vcombine.low %v2183_v12, %v2183_v12 }
 0x1d4   : > { %2172 = vrot.lane.b32.xlu0 %v6759_v37, %s6013_s7 }
 0x1d5   : > { %v944_v47 = vsel %vm218_vm1, %v936_v50, %v937_v20  ;;  %v2179_v43 = vsel %vm218_vm1, %v2174_v2, %v2175_v54  ;;  %5418 = vmatprep.subr.msk.bf16.mxu1 %vm218_vm1, %v5410_v19  ;;  %v3606_v18 = vsel %vm218_vm1, %v5409_v31, 0  ;;  %v5197_v50 = vcombine.low %v6715_v35, %v6906_v5  ;;  %v5912_v31 = vld [vmem:[#allocation2 + $0x64] ss:$36 sps:$4 sm:$0xff]  }
 0x1d6   : > { %v7085_v3 = vsel %vm940_vm8, %v6597_v49, %v944_v47  ;;  %v2181_v37 = vsel %vm2180_vm3, %v2165_v32, %v2179_v43  ;;  %v976_v57 = vpop.permute.xlu1 %975  ;;  %v933_v38 = vpop.permute.xlu0 %932  ;;  %3772 = vmatpush1.bf16.msra.mxu1 %v3606_v18  ;;  %v5910_v43 = vld [vmem:[#allocation2 + $0x60] ss:$36 sps:$4 sm:$0xff]  }
 0x1d7   : > { %v982_v42 = vrot.slane %v976_v57, 4  ;;  %v938_v54 = vrot.slane %v933_v38, 4  ;;  %v5408_v52 = vcombine.high %v2181_v37, %v2181_v37  ;;  %3884 = vmatprep.subr.bf16.mxu1 %v5198_v17  ;;  %v5407_v12 = vcombine.low %v2181_v37, %v2181_v37 }
 0x1d9   : > { %v988_v2 = vsel %vm218_vm1, %v981_v56, %v982_v42  ;;  %v946_v49 = vsel %vm218_vm1, %v937_v20, %v938_v54  ;;  %v948_v19 = vsel %vm940_vm8, %v933_v38, %v938_v54  ;;  %5416 = vmatprep.subr.msk.bf16.mxu0 %vm218_vm1, %v5408_v52  ;;  %3788 = vmatmul.mubr.bf16.vlgmr.msra.gmra.mrb[0].mxu1 %v5909_v21  ;;  %v3600_v32 = vsel %vm218_vm1, %v5407_v12, 0  ;;  %v5917_v38 = vld [vmem:[#allocation2 + $0x5c] ss:$36 sps:$4 sm:$0xff]  }
 0x1da   : > { %v7099_v35 = vsel %vm673_vm5, %v6608_v4, %v988_v2  ;;  %v7102_v5 = vsel %vm940_vm8, %v931_v14, %v946_v49  ;;  %958 = vst.msk [vmem:[#allocation2 + $0x2f0] sm:$0xf] %vm181_vm0, %v948_v19  ;;  %v1020_v56 = vpop.permute.xlu1 %1019  ;;  %v978_v17 = vpop.permute.xlu0 %977  ;;  %3686 = vmatpush1.bf16.msra.mxu0 %v3600_v32  ;;  %3885 = vmatpush1.bf16.msra.mxu1 %v5197_v50  ;;  %v5980_v4 = vld [vmem:[%s8511_s1 + $0x4] ss:$16 sps:$4 sm:$0xff]   ;;  %v5920_v50 = vld [vmem:[#allocation2 + $0xac] ss:$36 sps:$4 sm:$0xff]  }
 0x1db   : > { %v1026_v20 = vrot.slane %v1020_v56, 4  ;;  %v983_v47 = vrot.slane %v978_v17, 4  ;;  %3886 = vmatprep.subr.bf16.mxu1 %v5912_v31  ;;  %3798 = vmatprep.subr.bf16.mxu0 %v5196_v46  ;;  %v5915_v2 = vld [vmem:[#allocation2 + $0x58] ss:$36 sps:$4 sm:$0xff]   ;;  %v5923_v32 = vld [vmem:[#allocation2 + $0xa4] ss:$36 sps:$4 sm:$0xff]  }
 0x1dc   : > { %3916 = vmatprep.mubr.bf16.mxu1 %v5980_v4 }
 0x1dd   : > { %v1032_v14 = vsel %vm218_vm1, %v1025_v61, %v1026_v20  ;;  %v990_v18 = vsel %vm218_vm1, %v982_v42, %v983_v47  ;;  %v992_v37 = vsel %vm673_vm5, %v978_v17, %v983_v47  ;;  %3702 = vmatmul.mubr.bf16.vlgmr.msra.gmra.mrb[0].mxu0 %v5909_v21  ;;  %v2236_v61 = vld [vmem:[#allocation2 + $0xf0] sm:$0xff] }
 0x1de   : > { %v7118_v46 = vsel %vm673_vm5, %v6621_v10, %v1032_v14  ;;  %v7121_v54 = vsel %vm673_vm5, %v976_v57, %v990_v18  ;;  %1002 = vst.msk [vmem:[#allocation2 + $0x314] sm:$0xf] %vm181_vm0, %v992_v37  ;;  %v1064_v52 = vpop.permute.xlu1 %1063  ;;  %v1022_v12 = vpop.permute.xlu0 %1021  ;;  %3799 = vmatpush1.bf16.msra.mxu0 %v5195_v51  ;;  %3887 = vmatpush1.bf16.msra.mxu1 %v5910_v43  ;;  %v5918_v10 = vld [vmem:[#allocation2 + $0xa8] ss:$36 sps:$4 sm:$0xff]   ;;  %v5921_v14 = vld [vmem:[#allocation2 + $0xa0] ss:$36 sps:$4 sm:$0xff]  }
 0x1df   : > { %v1070_v21 = vrot.slane %v1064_v52, 4  ;;  %v1027_v42 = vrot.slane %v1022_v12, 4  ;;  %3800 = vmatprep.subr.bf16.mxu0 %v5917_v38  ;;  %3888 = vmatprep.subr.bf16.mxu1 %v5920_v50  ;;  %v5225_v16 = vcombine.high %v2236_v61, %v5981_v45  ;;  %v2235_v51 = vld [vmem:[#allocation2 + $0xe8] sm:$0xff]  ;;  %v5224_v18 = vcombine.low %v2236_v61, %v5981_v45 }
 0x1e0   : > { %3830 = vmatprep.mubr.bf16.mxu0 %v5980_v4  ;;  %v5982_v37 = vld [vmem:[#allocation2 + $0x10c] sm:$0xff] }
 0x1e1   : > { %v1076_v57 = vsel %vm218_vm1, %v1069_v34, %v1070_v21  ;;  %v1034_v49 = vsel %vm218_vm1, %v1026_v20, %v1027_v42  ;;  %v1036_v19 = vsel %vm673_vm5, %v1022_v12, %v1027_v42  ;;  %v2251_v34 = vld [vmem:[#allocation2 + $0x15c] sm:$0xff]  ;;  %v5223_v38 = vcombine.high %v2235_v51, %v5982_v37 }
 0x1e2   : > { %v7134_v31 = vsel %vm762_vm6, %v6632_v8, %v1076_v57  ;;  %v7137_v17 = vsel %vm673_vm5, %v1020_v56, %v1034_v49  ;;  %1046 = vst.msk [vmem:[#allocation2 + $0x338] sm:$0xf] %vm181_vm0, %v1036_v19  ;;  %v1108_v47 = vpop.permute.xlu1 %1107  ;;  %v1066_v43 = vpop.permute.xlu0 %1065  ;;  %3801 = vmatpush1.bf16.msra.mxu0 %v5915_v2  ;;  %3889 = vmatpush1.bf16.msra.mxu1 %v5918_v10  ;;  %v5983_v12 = vld [vmem:[#allocation2 + $0x138] sm:$0xff] }
 0x1e3   : > { %v1114_v20 = vrot.slane %v1108_v47, 4  ;;  %v1071_v4 = vrot.slane %v1066_v43, 4  ;;  %3802 = vmatprep.subr.bf16.mxu0 %v5923_v32  ;;  %3890 = vmatprep.subr.bf16.mxu1 %v5225_v16  ;;  %v5234_v42 = vcombine.high %v5983_v12, %v2251_v34  ;;  %v5222_v19 = vcombine.low %v2235_v51, %v5982_v37  ;;  %v5984_v16 = vld [vmem:[#allocation2 + $0x130] sm:$0xff] }
 0x1e4   : > { %v5233_v32 = vcombine.low %v5983_v12, %v2251_v34 }
 0x1e5   : > { %v1120_v8 = vsel %vm218_vm1, %v1113_v1, %v1114_v20  ;;  %v1078_v56 = vsel %vm218_vm1, %v1070_v21, %v1071_v4  ;;  %v1080_v50 = vsel %vm762_vm6, %v1066_v43, %v1071_v4  ;;  %v2250_v1 = vld [vmem:[#allocation2 + $0x154] sm:$0xff]  ;;  %v5926_v4 = vld [vmem:[#allocation2 + $0x184] ss:$36 sps:$4 sm:$0xff]  }
 0x1e6   : > { %v7147_v2 = vsel %vm762_vm6, %v6651_v30, %v1120_v8  ;;  %v7150_v10 = vsel %vm762_vm6, %v1064_v52, %v1078_v56  ;;  %1090 = vst.msk [vmem:[#allocation2 + $0x35c] sm:$0xf] %vm181_vm0, %v1080_v50  ;;  %v1152_v61 = vpop.permute.xlu1 %1151  ;;  %v1110_v57 = vpop.permute.xlu0 %1109  ;;  %3803 = vmatpush1.bf16.msra.mxu0 %v5921_v14  ;;  %3891 = vmatpush1.bf16.msra.mxu1 %v5224_v18  ;;  %v5929_v56 = vld [vmem:[#allocation2 + $0x17c] ss:$36 sps:$4 sm:$0xff]   ;;  %v5932_v50 = vld [vmem:[#allocation2 + $0x1cc] ss:$36 sps:$4 sm:$0xff]  }
 0x1e7   : > { %v1158_v49 = vrot.slane %v1152_v61, 4  ;;  %v1115_v21 = vrot.slane %v1110_v57, 4  ;;  %3804 = vmatprep.subr.bf16.mxu0 %v5223_v38  ;;  %3892 = vmatprep.subr.bf16.mxu1 %v5234_v42  ;;  %v5232_v43 = vcombine.high %v5984_v16, %v2250_v1  ;;  %v5231_v37 = vcombine.low %v5984_v16, %v2250_v1  ;;  %v5924_v38 = vld [vmem:[#allocation2 + $0x180] ss:$36 sps:$4 sm:$0xff]  }
 0x1e9   : > { %v1164_v30 = vsel %vm218_vm1, %v1157_v41, %v1158_v49  ;;  %v1122_v52 = vsel %vm218_vm1, %v1114_v20, %v1115_v21  ;;  %v1124_v45 = vsel %vm762_vm6, %v1110_v57, %v1115_v21 }
 0x1ea   : > { %v7160_v14 = vsel %vm851_vm7, %v6662_v40, %v1164_v30  ;;  %v7163_v18 = vsel %vm762_vm6, %v1108_v47, %v1122_v52  ;;  %1134 = vst.msk [vmem:[#allocation2 + $0x380] sm:$0xf] %vm181_vm0, %v1124_v45  ;;  %v1196_v51 = vpop.permute.xlu1 %1195  ;;  %v1154_v34 = vpop.permute.xlu0 %1153  ;;  %3805 = vmatpush1.bf16.msra.mxu0 %v5222_v19  ;;  %3893 = vmatpush1.bf16.msra.mxu1 %v5233_v32  ;;  %v5930_v19 = vld [vmem:[#allocation2 + $0x1c8] ss:$36 sps:$4 sm:$0xff]   ;;  %v5938_v52 = vld [vmem:[#allocation2 + $0x214] ss:$36 sps:$4 sm:$0xff]  }
 0x1eb   : > { %v1202_v41 = vrot.slane %v1196_v51, 4  ;;  %v1159_v20 = vrot.slane %v1154_v34, 4  ;;  %3806 = vmatprep.subr.bf16.mxu0 %v5232_v43  ;;  %3894 = vmatprep.subr.bf16.mxu1 %v5926_v4  ;;  %v5935_v30 = vld [vmem:[#allocation2 + $0x1c4] ss:$36 sps:$4 sm:$0xff]  }
 0x1ed   : > { %v1208_v40 = vsel %vm218_vm1, %v1201_v58, %v1202_v41  ;;  %v1166_v8 = vsel %vm218_vm1, %v1158_v49, %v1159_v20  ;;  %v1168_v47 = vsel %vm851_vm7, %v1154_v34, %v1159_v20  ;;  %v5927_v49 = vld [vmem:[#allocation2 + $0x178] ss:$36 sps:$4 sm:$0xff]   ;;  %v5936_v20 = vld [vmem:[#allocation2 + $0x210] ss:$36 sps:$4 sm:$0xff]  }
 0x1ee   : > { %v7173_v12 = vsel %vm851_vm7, %v6681_v48, %v1208_v40  ;;  %v7176_v42 = vsel %vm851_vm7, %v1152_v61, %v1166_v8  ;;  %1178 = vst.msk [vmem:[#allocation2 + $0x3a4] sm:$0xf] %vm181_vm0, %v1168_v47  ;;  %v1240_v57 = vpop.permute.xlu1 %1239  ;;  %v1198_v1 = vpop.permute.xlu0 %1197  ;;  %3807 = vmatpush1.bf16.msra.mxu0 %v5231_v37  ;;  %3895 = vmatpush1.bf16.msra.mxu1 %v5924_v38  ;;  %v5941_v38 = vld [vmem:[#allocation2 + $0x20c] ss:$36 sps:$4 sm:$0xff]   ;;  %v5944_v40 = vld [vmem:[#allocation2 + $0x25c] ss:$36 sps:$4 sm:$0xff]  }
 0x1ef   : > { %v1246_v58 = vrot.slane %v1240_v57, 4  ;;  %v1203_v21 = vrot.slane %v1198_v1, 4  ;;  %3808 = vmatprep.subr.bf16.mxu0 %v5929_v56  ;;  %3896 = vmatprep.subr.bf16.mxu1 %v5932_v50 }
 0x1f1   : > { %v1252_v48 = vsel %vm218_vm1, %v1245_v7, %v1246_v58  ;;  %v1210_v32 = vsel %vm218_vm1, %v1202_v41, %v1203_v21  ;;  %v1212_v61 = vsel %vm851_vm7, %v1198_v1, %v1203_v21  ;;  %v5933_v41 = vld [vmem:[#allocation2 + $0x1c0] ss:$36 sps:$4 sm:$0xff]   ;;  %v5942_v21 = vld [vmem:[#allocation2 + $0x258] ss:$36 sps:$4 sm:$0xff]  }
 0x1f2   : > { %v7186_v45 = vsel %vm940_vm8, %v6692_v63, %v1252_v48  ;;  %v7189_v16 = vsel %vm851_vm7, %v1196_v51, %v1210_v32  ;;  %1222 = vst.msk [vmem:[#allocation2 + $0x3c8] sm:$0xf] %vm181_vm0, %v1212_v61  ;;  %v1284_v43 = vpop.permute.xlu1 %1283  ;;  %v1242_v4 = vpop.permute.xlu0 %1241  ;;  %3809 = vmatpush1.bf16.msra.mxu0 %v5927_v49  ;;  %3897 = vmatpush1.bf16.msra.mxu1 %v5930_v19  ;;  %v8574_v49 = vrot.slane %v6725_v0, 4  ;;  %v5947_v48 = vld [vmem:[#allocation2 + $0x254] ss:$36 sps:$4 sm:$0xff]  }
 0x1f3   : > { %v1290_v7 = vrot.slane %v1284_v43, 4  ;;  %v1247_v34 = vrot.slane %v1242_v4, 4  ;;  %3810 = vmatprep.subr.bf16.mxu0 %v5935_v30  ;;  %3898 = vmatprep.subr.bf16.mxu1 %v5938_v52  ;;  %v5950_v32 = vld [vmem:[#allocation2 + $0x2a4] ss:$36 sps:$4 sm:$0xff]  }
 0x1f5   : > { %v1297_v63 = vsel %vm218_vm1, %v1289_v59, %v1290_v7  ;;  %v1254_v37 = vsel %vm218_vm1, %v1246_v58, %v1247_v34  ;;  %v1256_v51 = vsel %vm940_vm8, %v1242_v4, %v1247_v34  ;;  %v5939_v58 = vld [vmem:[#allocation2 + $0x208] ss:$36 sps:$4 sm:$0xff]  }
 0x1f6   : > { %v7199_v8 = vsel %vm1293_vm9, %v6711_v29, %v1297_v63  ;;  %v7202_v47 = vsel %vm940_vm8, %v1240_v57, %v1254_v37  ;;  %1266 = vst.msk [vmem:[#allocation2 + $0x3ec] sm:$0xf] %vm181_vm0, %v1256_v51  ;;  %v1329_v56 = vpop.permute.xlu1 %1328  ;;  %v1286_v50 = vpop.permute.xlu0 %1285  ;;  %3811 = vmatpush1.bf16.msra.mxu0 %v5933_v41  ;;  %3899 = vmatpush1.bf16.msra.mxu1 %v5936_v20  ;;  %v5948_v20 = vld [vmem:[#allocation2 + $0x2a0] ss:$36 sps:$4 sm:$0xff]   ;;  %v8575_v63 = vrot.slane %v6763_v6, 4  ;;  %vm4146_vm8 = vcmask 326656  }
 0x1f7   : > { %v1335_v59 = vrot.slane %v1329_v56, 4  ;;  %v1291_v1 = vrot.slane %v1286_v50, 4  ;;  %3812 = vmatprep.subr.bf16.mxu0 %v5941_v38  ;;  %3900 = vmatprep.subr.bf16.mxu1 %v5944_v40  ;;  %v5953_v51 = vld [vmem:[#allocation2 + $0x29c] ss:$36 sps:$4 sm:$0xff]   ;;  %v5288_v38 = vcombine.high %v7102_v5, %v7121_v54 }
 0x1f9   : > { %v1341_v29 = vsel %vm218_vm1, %v8574_v49, %v1335_v59  ;;  %v1299_v19 = vsel %vm218_vm1, %v1290_v7, %v1291_v1  ;;  %v1301_v57 = vsel %vm1293_vm9, %v1286_v50, %v1291_v1  ;;  %v5945_v7 = vld [vmem:[#allocation2 + $0x250] ss:$36 sps:$4 sm:$0xff]   ;;  %v5951_v49 = vld [vmem:[#allocation2 + $0x298] ss:$36 sps:$4 sm:$0xff]  }
 0x1fa   : > { %v7212_v61 = vsel %vm1293_vm9, %v6725_v0, %v1341_v29  ;;  %v7215_v30 = vsel %vm1293_vm9, %v1284_v43, %v1299_v19  ;;  %1311 = vst.msk [vmem:[#allocation2 + $0x410] sm:$0xf] %vm181_vm0, %v1301_v57  ;;  %v1373_v52 = vpop.permute.xlu1 %1372  ;;  %v1331_v4 = vpop.permute.xlu0 %1330  ;;  %3813 = vmatpush1.bf16.msra.mxu0 %v5939_v58  ;;  %3901 = vmatpush1.bf16.msra.mxu1 %v5942_v21 }
 0x1fb   : > { %v1379_v34 = vrot.slane %v1373_v52, 4  ;;  %v1336_v41 = vrot.slane %v1331_v4, 4  ;;  %3814 = vmatprep.subr.bf16.mxu0 %v5947_v48  ;;  %3902 = vmatprep.subr.bf16.mxu1 %v5950_v32  ;;  %v5287_v29 = vcombine.low %v7102_v5, %v7121_v54  ;;  %v5297_v32 = vcombine.high %v7137_v17, %v7150_v10 }
 0x1fd   : > { %v1386_v0 = vsel %vm218_vm1, %v8575_v63, %v1379_v34  ;;  %v1343_v37 = vsel %vm218_vm1, %v1335_v59, %v1336_v41  ;;  %v1345_v43 = vsel %vm1293_vm9, %v1331_v4, %v1336_v41  ;;  %v8577_v63 = vrot.slane %v6805_v53, 4 }
 0x1fe   : > { %v7227_v40 = vsel %vm1382_vm10, %v6763_v6, %v1386_v0  ;;  %v7230_v50 = vsel %vm1293_vm9, %v1329_v56, %v1343_v37  ;;  %1355 = vst.msk [vmem:[#allocation2 + $0x434] sm:$0xf] %vm181_vm0, %v1345_v43  ;;  %v1418_v1 = vpop.permute.xlu1 %1417  ;;  %v1375_v58 = vpop.permute.xlu0 %1374  ;;  %3815 = vmatpush1.bf16.msra.mxu0 %v5945_v7  ;;  %3903 = vmatpush1.bf16.msra.mxu1 %v5948_v20  ;;  %v8576_v56 = vrot.slane %v6780_v23, 4 }
 0x1ff   : > { %v1424_v59 = vrot.slane %v1418_v1, 4  ;;  %v1380_v21 = vrot.slane %v1375_v58, 4  ;;  %3816 = vmatprep.subr.bf16.mxu0 %v5953_v51  ;;  %3904 = vmatprep.subr.bf16.mxu1 %v5288_v38  ;;  %v5286_v6 = vcombine.high %v7085_v3, %v7099_v35  ;;  %v5285_v20 = vcombine.low %v7085_v3, %v7099_v35 }
 0x200   : > { %v5306_v51 = vcombine.high %v7163_v18, %v7176_v42 }
 0x201   : > { %v1430_v19 = vsel %vm218_vm1, %v8576_v56, %v1424_v59  ;;  %v1388_v57 = vsel %vm218_vm1, %v1379_v34, %v1380_v21  ;;  %v1390_v48 = vsel %vm1382_vm10, %v1375_v58, %v1380_v21  ;;  %v8578_v21 = vrot.slane %v6819_v62, 4 }
 0x202   : > { %v7246_v4 = vsel %vm1382_vm10, %v6780_v23, %v1430_v19  ;;  %v7249_v5 = vsel %vm1382_vm10, %v1373_v52, %v1388_v57  ;;  %1400 = vst.msk [vmem:[#allocation2 + $0x458] sm:$0xf] %vm181_vm0, %v1390_v48  ;;  %v1462_v54 = vpop.permute.xlu1 %1461  ;;  %v1420_v41 = vpop.permute.xlu0 %1419  ;;  %3817 = vmatpush1.bf16.msra.mxu0 %v5951_v49  ;;  %3905 = vmatpush1.bf16.msra.mxu1 %v5287_v29 }
 0x203   : > { %v1468_v7 = vrot.slane %v1462_v54, 4  ;;  %v1425_v34 = vrot.slane %v1420_v41, 4  ;;  %3818 = vmatprep.subr.bf16.mxu0 %v5286_v6  ;;  %3906 = vmatprep.subr.bf16.mxu1 %v5297_v32  ;;  %v5296_v23 = vcombine.low %v7137_v17, %v7150_v10  ;;  %v5295_v52 = vcombine.high %v7118_v46, %v7134_v31 }
 0x204   : > { %v5315_v56 = vcombine.high %v7189_v16, %v7202_v47  ;;  %v5303_v48 = vcombine.low %v7147_v2, %v7160_v14  ;;  %v5313_v32 = vcombine.high %v7173_v12, %v7186_v45 }
 0x205   : > { %v1475_v0 = vsel %vm218_vm1, %v8577_v63, %v1468_v7  ;;  %v1432_v37 = vsel %vm218_vm1, %v1424_v59, %v1425_v34  ;;  %v1434_v43 = vsel %vm1382_vm10, %v1420_v41, %v1425_v34  ;;  %v5294_v59 = vcombine.low %v7118_v46, %v7134_v31 }
 0x206   : > { %v7267_v3 = vsel %vm1471_vm11, %v6805_v53, %v1475_v0  ;;  %v7270_v35 = vsel %vm1382_vm10, %v1418_v1, %v1432_v37  ;;  %1444 = vst.msk [vmem:[#allocation2 + $0x47c] sm:$0xf] %vm181_vm0, %v1434_v43  ;;  %v1507_v17 = vpop.permute.xlu1 %1506  ;;  %v1464_v10 = vpop.permute.xlu0 %1463  ;;  %3819 = vmatpush1.bf16.msra.mxu0 %v5285_v20  ;;  %3907 = vmatpush1.bf16.msra.mxu1 %v5296_v23  ;;  %v8580_v37 = vrot.slane %v6851_v9, 4 }
 0x207   : > { %v1513_v38 = vrot.slane %v1507_v17, 4  ;;  %v1469_v58 = vrot.slane %v1464_v10, 4  ;;  %3820 = vmatprep.subr.bf16.mxu0 %v5295_v52  ;;  %3908 = vmatprep.subr.bf16.mxu1 %v5306_v51  ;;  %v5305_v53 = vcombine.low %v7163_v18, %v7176_v42  ;;  %v5304_v1 = vcombine.high %v7147_v2, %v7160_v14 }
 0x208   : > { %v5324_v20 = vcombine.high %v7215_v30, %v7230_v50  ;;  %v5312_v63 = vcombine.low %v7173_v12, %v7186_v45  ;;  %v5323_v0 = vcombine.low %v7215_v30, %v7230_v50 }
 0x209   : > { %v1519_v49 = vsel %vm218_vm1, %v8578_v21, %v1513_v38  ;;  %v1477_v29 = vsel %vm218_vm1, %v1468_v7, %v1469_v58  ;;  %v1479_v6 = vsel %vm1471_vm11, %v1464_v10, %v1469_v58  ;;  %v5333_v10 = vcombine.high %v7249_v5, %v7270_v35 }
 0x20a   : > { %v7288_v46 = vsel %vm1471_vm11, %v6819_v62, %v1519_v49  ;;  %v7291_v31 = vsel %vm1471_vm11, %v1462_v54, %v1477_v29  ;;  %1489 = vst.msk [vmem:[#allocation2 + $0x4a0] sm:$0xf] %vm181_vm0, %v1479_v6  ;;  %v1551_v18 = vpop.permute.xlu1 %1550  ;;  %v1509_v42 = vpop.permute.xlu0 %1508  ;;  %3821 = vmatpush1.bf16.msra.mxu0 %v5294_v59  ;;  %3909 = vmatpush1.bf16.msra.mxu1 %v5305_v53  ;;  %v8579_v54 = vrot.slane %v6840_v25, 4 }
 0x20b   : > { %v1557_v19 = vrot.slane %v1551_v18, 4  ;;  %v1514_v57 = vrot.slane %v1509_v42, 4  ;;  %3822 = vmatprep.subr.bf16.mxu0 %v5304_v1  ;;  %3910 = vmatprep.subr.bf16.mxu1 %v5315_v56  ;;  %v5314_v62 = vcombine.low %v7189_v16, %v7202_v47  ;;  %v5321_v59 = vcombine.low %v7199_v8, %v7212_v61 }
 0x20c   : > { %v5331_v53 = vcombine.high %v7227_v40, %v7246_v4  ;;  %v8581_v1 = vrot.slane %v6873_v13, 4 }
 0x20d   : > { %v1564_v41 = vsel %vm218_vm1, %v8579_v54, %v1557_v19  ;;  %v1521_v7 = vsel %vm218_vm1, %v1513_v38, %v1514_v57  ;;  %v1523_v34 = vsel %vm1471_vm11, %v1509_v42, %v1514_v57  ;;  %v5330_v42 = vcombine.low %v7227_v40, %v7246_v4  ;;  %v7365_v54 = vld [vmem:[%s8511_s1] ss:$16 sps:$4 sm:$0xff]  }
 0x20e   : > { %v7309_v2 = vsel %vm1560_vm13, %v6840_v25, %v1564_v41  ;;  %v1522_v14 = vsel %vm1471_vm11, %v1507_v17, %v1521_v7  ;;  %1533 = vst.msk [vmem:[#allocation2 + $0x4c4] sm:$0xf] %vm181_vm0, %v1523_v34  ;;  %v1596_v16 = vpop.permute.xlu1 %1595  ;;  %v1553_v47 = vpop.permute.xlu0 %1552  ;;  %3823 = vmatpush1.bf16.msra.mxu0 %v5303_v48  ;;  %3911 = vmatpush1.bf16.msra.mxu1 %v5314_v62  ;;  %v8582_v57 = vrot.slane %v6884_v27, 4 }
 0x20f   : > { %v1602_v23 = vrot.slane %v1596_v16, 4  ;;  %v1558_v52 = vrot.slane %v1553_v47, 4  ;;  %3824 = vmatprep.subr.bf16.mxu0 %v5313_v32  ;;  %3912 = vmatprep.subr.bf16.mxu1 %v5324_v20  ;;  %v5322_v25 = vcombine.high %v7199_v8, %v7212_v61  ;;  %v5342_v6 = vcombine.high %v7291_v31, %v1522_v14 }
 0x211   : > { %v1608_v43 = vsel %vm218_vm1, %v8580_v37, %v1602_v23  ;;  %v1566_v51 = vsel %vm218_vm1, %v1557_v19, %v1558_v52  ;;  %v1568_v17 = vsel %vm1560_vm13, %v1553_v47, %v1558_v52  ;;  %v5341_v19 = vcombine.low %v7291_v31, %v1522_v14 }
 0x212   : > { %v7328_v12 = vsel %vm1293_vm9, %v6851_v9, %v1608_v43  ;;  %v7331_v45 = vsel %vm1560_vm13, %v1551_v18, %v1566_v51  ;;  %1578 = vst.msk [vmem:[#allocation2 + $0x4e8] sm:$0xf] %vm181_vm0, %v1568_v17  ;;  %v1640_v30 = vpop.permute.xlu1 %1639  ;;  %v1598_v50 = vpop.permute.xlu0 %1597  ;;  %3825 = vmatpush1.bf16.msra.mxu0 %v5312_v63  ;;  %3913 = vmatpush1.bf16.msra.mxu1 %v5323_v0  ;;  %v8583_v47 = vrot.slane %v6903_v28, 4 }
 0x213   : > { %v1646_v38 = vrot.slane %v1640_v30, 4  ;;  %v1603_v58 = vrot.slane %v1598_v50, 4  ;;  %3826 = vmatprep.subr.bf16.mxu0 %v5322_v25  ;;  %3914 = vmatprep.subr.bf16.mxu1 %v5333_v10  ;;  %v5332_v9 = vcombine.low %v7249_v5, %v7270_v35  ;;  %v5339_v14 = vcombine.low %v7267_v3, %v7288_v46 }
 0x215   : > { %v1652_v21 = vsel %vm218_vm1, %v8581_v1, %v1646_v38  ;;  %v1610_v49 = vsel %vm218_vm1, %v1602_v23, %v1603_v58  ;;  %v1612_v29 = vsel %vm1293_vm9, %v1598_v50, %v1603_v58 }
 0x216   : > { %v7348_v56 = vsel %vm1293_vm9, %v6873_v13, %v1652_v21  ;;  %v1611_v8 = vsel %vm1293_vm9, %v1596_v16, %v1610_v49  ;;  %1622 = vst.msk [vmem:[#allocation2 + $0x50c] sm:$0xf] %vm181_vm0, %v1612_v29  ;;  %v1684_v61 = vpop.permute.xlu1 %1683  ;;  %v1642_v5 = vpop.permute.xlu0 %1641  ;;  %3827 = vmatpush1.bf16.msra.mxu0 %v5321_v59  ;;  %3915 = vmatpush1.bf16.msra.mxu1 %v5332_v9  ;;  %v8585_v49 = vrot.slane %v6935_v11, 4 }
 0x217   : > { %v1690_v35 = vrot.slane %v1684_v61, 4  ;;  %v1647_v18 = vrot.slane %v1642_v5, 4  ;;  %3828 = vmatprep.subr.bf16.mxu0 %v5331_v53  ;;  %3927 = vmatprep.subr.bf16.mxu1 %v5342_v6  ;;  %v5340_v13 = vcombine.high %v7267_v3, %v7288_v46  ;;  %v5351_v40 = vcombine.high %v7331_v45, %v1611_v8 }
 0x218   : > { %v5350_v16 = vcombine.low %v7331_v45, %v1611_v8  ;;  %v5349_v3 = vcombine.high %v7309_v2, %v7328_v12  ;;  %v5348_v45 = vcombine.low %v7309_v2, %v7328_v12 }
 0x219   : > { %v1696_v48 = vsel %vm218_vm1, %v8582_v57, %v1690_v35  ;;  %v1654_v62 = vsel %vm218_vm1, %v1646_v38, %v1647_v18  ;;  %v1656_v32 = vsel %vm1293_vm9, %v1642_v5, %v1647_v18  ;;  %3917 = vmatmul.mubr.bf16.vlgmr.msra.gmra.mrb[4].mxu1 %v7365_v54 }
 0x21a   : > { %v1697_v4 = vsel %vm1382_vm10, %v6884_v27, %v1696_v48  ;;  %v1655_v31 = vsel %vm1293_vm9, %v1640_v30, %v1654_v62  ;;  %1666 = vst.msk [vmem:[#allocation2 + $0x530] sm:$0xf] %vm181_vm0, %v1656_v32  ;;  %v1728_v41 = vpop.permute.xlu1 %1727  ;;  %v1686_v7 = vpop.permute.xlu0 %1685  ;;  %3829 = vmatpush1.bf16.msra.mxu0 %v5330_v42  ;;  %3928 = vmatpush1.bf16.msra.mxu1 %v5341_v19  ;;  %v7379_v27 = vld [vmem:[%s8511_s1 + $0xc] ss:$16 sps:$4 sm:$0xff]   ;;  %v8586_v48 = vrot.slane %v6946_v36, 4 }
 0x21b   : > { %v1734_v34 = vrot.slane %v1728_v41, 4  ;;  %v1691_v20 = vrot.slane %v1686_v7, 4  ;;  %3841 = vmatprep.subr.bf16.mxu0 %v5340_v13  ;;  %3929 = vmatprep.subr.bf16.mxu1 %v5351_v40  ;;  %v5358_v58 = vcombine.high %v7348_v56, %v1697_v4  ;;  %v5357_v21 = vcombine.low %v7348_v56, %v1697_v4 }
 0x21c   : > { %5423 = vmatprep.mubr.msk.bf16.mxu1 %vm3594_vm12, %v7379_v27 }
 0x21d   : > { %v1740_v23 = vsel %vm218_vm1, %v8583_v47, %v1734_v34  ;;  %v1698_v52 = vsel %vm218_vm1, %v1690_v35, %v1691_v20  ;;  %v1700_v63 = vsel %vm1382_vm10, %v1686_v7, %v1691_v20  ;;  %3831 = vmatmul.mubr.bf16.vlgmr.msra.gmra.mrb[4].mxu0 %v7365_v54 }
 0x21e   : > { %v1741_v46 = vsel %vm1382_vm10, %v6903_v28, %v1740_v23  ;;  %v1699_v0 = vsel %vm1382_vm10, %v1684_v61, %v1698_v52  ;;  %1710 = vst.msk [vmem:[#allocation2 + $0x554] sm:$0xf] %vm181_vm0, %v1700_v63  ;;  %v1772_v25 = vpop.permute.xlu1 %1771  ;;  %v1730_v37 = vpop.permute.xlu0 %1729  ;;  %3842 = vmatpush1.bf16.msra.mxu0 %v5339_v14  ;;  %3930 = vmatpush1.bf16.msra.mxu1 %v5350_v16  ;;  %v8584_v28 = vrot.slane %v6916_v39, 4  ;;  %v8587_v16 = vrot.slane %v6965_v24, 4 }
 0x21f   : > { %v1778_v43 = vrot.slane %v1772_v25, 4  ;;  %v1735_v51 = vrot.slane %v1730_v37, 4  ;;  %3843 = vmatprep.subr.bf16.mxu0 %v5349_v3  ;;  %v5359_v17 = vcombine.low %v1655_v31, %v1699_v0  ;;  %v5360_v10 = vcombine.high %v1655_v31, %v1699_v0  ;;  %5421 = vmatprep.mubr.msk.bf16.mxu0 %vm3594_vm12, %v7379_v27 }
 0x221   : > { %v1784_v30 = vsel %vm218_vm1, %v8584_v28, %v1778_v43  ;;  %v1742_v50 = vsel %vm218_vm1, %v1734_v34, %v1735_v51  ;;  %v1744_v38 = vsel %vm1382_vm10, %v1730_v37, %v1735_v51  ;;  %3931 = vmatprep.subr.bf16.mxu1 %v5360_v10  ;;  %v8588_v51 = vrot.slane %v6976_v22, 4 }
 0x222   : > { %v1785_v59 = vsel %vm1471_vm11, %v6916_v39, %v1784_v30  ;;  %v1743_v9 = vsel %vm1382_vm10, %v1728_v41, %v1742_v50  ;;  %1754 = vst.msk [vmem:[#allocation2 + $0x578] sm:$0xf] %vm181_vm0, %v1744_v38  ;;  %v1816_v53 = vpop.permute.xlu1 %1815  ;;  %v1774_v2 = vpop.permute.xlu0 %1773  ;;  %3844 = vmatpush1.bf16.msra.mxu0 %v5348_v45  ;;  %3932 = vmatpush1.bf16.msra.mxu1 %v5359_v17 }
 0x223   : > { %v1822_v12 = vrot.slane %v1816_v53, 4  ;;  %v1779_v1 = vrot.slane %v1774_v2, 4  ;;  %3845 = vmatprep.subr.bf16.mxu0 %v5358_v58  ;;  %v5367_v8 = vcombine.high %v1741_v46, %v1785_v59  ;;  %v5366_v57 = vcombine.low %v1741_v46, %v1785_v59 }
 0x225   : > { %v1828_v29 = vsel %vm218_vm1, %v8585_v49, %v1822_v12  ;;  %v1786_v6 = vsel %vm218_vm1, %v1778_v43, %v1779_v1  ;;  %v1788_v39 = vsel %vm1471_vm11, %v1774_v2, %v1779_v1 }
 0x226   : > { %v1829_v61 = vsel %vm1471_vm11, %v6935_v11, %v1828_v29  ;;  %v1787_v5 = vsel %vm1471_vm11, %v1772_v25, %v1786_v6  ;;  %1798 = vst.msk [vmem:[#allocation2 + $0x59c] sm:$0xf] %vm181_vm0, %v1788_v39  ;;  %v1860_v35 = vpop.permute.xlu1 %1859  ;;  %v1818_v18 = vpop.permute.xlu0 %1817  ;;  %3846 = vmatpush1.bf16.msra.mxu0 %v5357_v21 }
 0x227   : > { %v1866_v56 = vrot.slane %v1860_v35, 4  ;;  %v1823_v42 = vrot.slane %v1818_v18, 4  ;;  %3847 = vmatprep.subr.bf16.mxu0 %v5367_v8  ;;  %v5368_v19 = vcombine.low %v1743_v9, %v1787_v5  ;;  %v5369_v13 = vcombine.high %v1743_v9, %v1787_v5 }
 0x228   : > { %v8590_v5 = vrot.slane %v7006_v15, 4 }
 0x229   : > { %v1872_v62 = vsel %vm218_vm1, %v8586_v48, %v1866_v56  ;;  %v1830_v32 = vsel %vm218_vm1, %v1822_v12, %v1823_v42  ;;  %v1832_v11 = vsel %vm1471_vm11, %v1818_v18, %v1823_v42  ;;  %3933 = vmatprep.subr.bf16.mxu1 %v5369_v13 }
 0x22a   : > { %v1873_v40 = vsel %vm1560_vm13, %v6946_v36, %v1872_v62  ;;  %v1831_v4 = vsel %vm1471_vm11, %v1816_v53, %v1830_v32  ;;  %1842 = vst.msk [vmem:[#allocation2 + $0x5c0] sm:$0xf] %vm181_vm0, %v1832_v11  ;;  %v1904_v31 = vpop.permute.xlu1 %1903  ;;  %v1862_v41 = vpop.permute.xlu0 %1861  ;;  %3848 = vmatpush1.bf16.msra.mxu0 %v5366_v57  ;;  %3934 = vmatpush1.bf16.msra.mxu1 %v5368_v19  ;;  %v8589_v53 = vrot.slane %v6995_v33, 4  ;;  %v8591_v11 = vrot.slane %v7025_v60, 4 }
 0x22b   : > { %v1910_v7 = vrot.slane %v1904_v31, 4  ;;  %v1867_v34 = vrot.slane %v1862_v41, 4  ;;  %v5375_v20 = vcombine.low %v1829_v61, %v1873_v40  ;;  %v5376_v14 = vcombine.high %v1829_v61, %v1873_v40 }
 0x22d   : > { %v1917_v47 = vsel %vm218_vm1, %v8587_v16, %v1910_v7  ;;  %v1874_v23 = vsel %vm218_vm1, %v1866_v56, %v1867_v34  ;;  %v1876_v36 = vsel %vm1560_vm13, %v1862_v41, %v1867_v34  ;;  %3849 = vmatprep.subr.bf16.mxu0 %v5376_v14 }
 0x22e   : > { %v1918_v52 = vsel %vm1913_vm14, %v6965_v24, %v1917_v47  ;;  %v1875_v63 = vsel %vm1560_vm13, %v1860_v35, %v1874_v23  ;;  %1886 = vst.msk [vmem:[#allocation2 + $0x5e4] sm:$0xf] %vm181_vm0, %v1876_v36  ;;  %v1949_v3 = vpop.permute.xlu1 %1948  ;;  %v1906_v46 = vpop.permute.xlu0 %1905  ;;  %3850 = vmatpush1.bf16.msra.mxu0 %v5375_v20  ;;  %v8592_v23 = vrot.slane %v7036_v55, 4 }
 0x22f   : > { %v1955_v0 = vrot.slane %v1949_v3, 4  ;;  %v1911_v25 = vrot.slane %v1906_v46, 4  ;;  %v5377_v37 = vcombine.low %v1831_v4, %v1875_v63  ;;  %v5378_v43 = vcombine.high %v1831_v4, %v1875_v63 }
 0x231   : > { %v1961_v17 = vsel %vm218_vm1, %v8588_v51, %v1955_v0  ;;  %v1919_v10 = vsel %vm218_vm1, %v1910_v7, %v1911_v25  ;;  %v1921_v45 = vsel %vm1913_vm14, %v1906_v46, %v1911_v25  ;;  %3935 = vmatprep.subr.bf16.mxu1 %v5378_v43 }
 0x232   : > { %v1962_v24 = vsel %vm1913_vm14, %v6976_v22, %v1961_v17  ;;  %v1920_v28 = vsel %vm1913_vm14, %v1904_v31, %v1919_v10  ;;  %1931 = vst.msk [vmem:[#allocation2 + $0x608] sm:$0xf] %vm181_vm0, %v1921_v45  ;;  %v1993_v30 = vpop.permute.xlu1 %1992  ;;  %v1951_v50 = vpop.permute.xlu0 %1950  ;;  %3936 = vmatpush1.bf16.msra.mxu1 %v5377_v37 }
 0x233   : > { %v1999_v38 = vrot.slane %v1993_v30, 4  ;;  %v1956_v58 = vrot.slane %v1951_v50, 4  ;;  %v5384_v59 = vcombine.low %v1918_v52, %v1962_v24  ;;  %v5385_v9 = vcombine.high %v1918_v52, %v1962_v24 }
 0x235   : > { %v2006_v2 = vsel %vm218_vm1, %v8589_v53, %v1999_v38  ;;  %v1963_v12 = vsel %vm218_vm1, %v1955_v0, %v1956_v58  ;;  %v1965_v1 = vsel %vm1913_vm14, %v1951_v50, %v1956_v58  ;;  %3851 = vmatprep.subr.bf16.mxu0 %v5385_v9 }
 0x236   : > { %v2007_v22 = vsel %vm2002_vm15, %v6995_v33, %v2006_v2  ;;  %v1964_v21 = vsel %vm1913_vm14, %v1949_v3, %v1963_v12  ;;  %1975 = vst.msk [vmem:[#allocation2 + $0x62c] sm:$0xf] %vm181_vm0, %v1965_v1  ;;  %v2038_v49 = vpop.permute.xlu1 %2037  ;;  %v1995_v29 = vpop.permute.xlu0 %1994  ;;  %3852 = vmatpush1.bf16.msra.mxu0 %v5384_v59  ;;  %v5954_v2 = vld [vmem:[#allocation2 + $0x260] ss:$36 sps:$4 sm:$0xff]  }
 0x237   : > { %v2044_v6 = vrot.slane %v2038_v49, 4  ;;  %v2000_v39 = vrot.slane %v1995_v29, 4  ;;  %v5386_v8 = vcombine.low %v1920_v28, %v1964_v21  ;;  %v5387_v61 = vcombine.high %v1920_v28, %v1964_v21 }
 0x239   : > { %v2050_v35 = vsel %vm218_vm1, %v8590_v5, %v2044_v6  ;;  %v2008_v18 = vsel %vm218_vm1, %v1999_v38, %v2000_v39  ;;  %v2010_v56 = vsel %vm2002_vm15, %v1995_v29, %v2000_v39  ;;  %3937 = vmatprep.subr.bf16.mxu1 %v5387_v61  ;;  %v5956_v29 = vld [vmem:[#allocation2 + $0x2a8] ss:$36 sps:$4 sm:$0xff]   ;;  %v5958_v39 = vld [vmem:[#allocation2 + $0x4a0] ss:$36 sps:$4 sm:$0xff]   ;;  %v5959_v5 = vld [vmem:[#allocation2 + $0x2f0] ss:$36 sps:$4 sm:$0xff]  }
 0x23a   : > { %v2051_v33 = vsel %vm2002_vm15, %v7006_v15, %v2050_v35  ;;  %v2009_v42 = vsel %vm2002_vm15, %v1993_v30, %v2008_v18  ;;  %2020 = vst.msk [vmem:[#allocation2 + $0x650] sm:$0xf] %vm181_vm0, %v2010_v56  ;;  %v2082_v19 = vpop.permute.xlu1 %2081  ;;  %v2040_v13 = vpop.permute.xlu0 %2039  ;;  %3938 = vmatpush1.bf16.msra.mxu1 %v5386_v8  ;;  %v5988_v8 = vld [vmem:[%s8511_s1 + $0x4] ss:$16 sps:$4 sm:$0xff]   ;;  %v5957_v61 = vld [vmem:[#allocation2 + $0x68] ss:$36 sps:$4 sm:$0xff]  }
 0x23b   : > { %v2088_v57 = vrot.slane %v2082_v19, 4  ;;  %v2045_v48 = vrot.slane %v2040_v13, 4  ;;  %v5393_v62 = vcombine.low %v2007_v22, %v2051_v33  ;;  %v5394_v32 = vcombine.high %v2007_v22, %v2051_v33  ;;  %v5955_v22 = vld [vmem:[#allocation2 + $0x20] ss:$36 sps:$4 sm:$0xff]   ;;  %v5961_v35 = vld [vmem:[#allocation2 + $0x4e8] ss:$36 sps:$4 sm:$0xff]  }
 0x23c   : > { %v5960_v18 = vld [vmem:[#allocation2 + $0xb0] ss:$36 sps:$4 sm:$0xff]   ;;  %v5962_v56 = vld [vmem:[#allocation2 + $0x338] ss:$36 sps:$4 sm:$0xff]  }
 0x23d   : > { %v2095_v40 = vsel %vm218_vm1, %v8591_v11, %v2088_v57  ;;  %v2052_v4 = vsel %vm218_vm1, %v2044_v6, %v2045_v48  ;;  %v2054_v31 = vsel %vm2002_vm15, %v2040_v13, %v2045_v48  ;;  %3853 = vmatprep.subr.bf16.mxu0 %v5394_v32  ;;  %v6014_v6 = vmov 0   ;;  %v5964_v33 = vld [vmem:[#allocation2 + $0x530] ss:$36 sps:$4 sm:$0xff]   ;;  %v5967_v13 = vld [vmem:[#allocation2 + $0x578] ss:$36 sps:$4 sm:$0xff]  }
 0x23e   : > { %v2096_v15 = vsel %vm2091_vm4, %v7025_v60, %v2095_v40  ;;  %v2053_v41 = vsel %vm2002_vm15, %v2038_v49, %v2052_v4  ;;  %2064 = vst.msk [vmem:[#allocation2 + $0x674] sm:$0xf] %vm181_vm0, %v2054_v31  ;;  %v2127_v7 = vpop.permute.xlu1 %2126  ;;  %v2084_v34 = vpop.permute.xlu0 %2083  ;;  %3854 = vmatpush1.bf16.msra.mxu0 %v5393_v62  ;;  %v7502_v49 = vld [vmem:[%s8511_s1 + $0x8] ss:$16 sps:$4 sm:$0xff]   ;;  %v5970_v48 = vld [vmem:[#allocation2 + $0x5c0] ss:$36 sps:$4 sm:$0xff]  }
 0x23f   : > { %v2133_v20 = vrot.slane %v2127_v7, 4  ;;  %v2089_v14 = vrot.slane %v2084_v34, 4  ;;  %v5395_v16 = vcombine.low %v2009_v42, %v2053_v41  ;;  %v5396_v47 = vcombine.high %v2009_v42, %v2053_v41  ;;  %v5963_v42 = vld [vmem:[#allocation2 + $0xf8] ss:$36 sps:$4 sm:$0xff]   ;;  %v5969_v62 = vld [vmem:[#allocation2 + $0x188] ss:$36 sps:$4 sm:$0xff]  }
 0x240   : > { %v5971_v32 = vld [vmem:[#allocation2 + $0x410] ss:$36 sps:$4 sm:$0xff]   ;;  %v5973_v11 = vld [vmem:[#allocation2 + $0x608] ss:$36 sps:$4 sm:$0xff]   ;;  %v5974_v4 = vld [vmem:[#allocation2 + $0x458] ss:$36 sps:$4 sm:$0xff]  }
 0x241   : > { %v2139_v36 = vsel %vm218_vm1, %v8592_v23, %v2133_v20  ;;  %v2097_v52 = vsel %vm218_vm1, %v2088_v57, %v2089_v14  ;;  %v2099_v63 = vsel %vm2091_vm4, %v2084_v34, %v2089_v14  ;;  %3939 = vmatprep.subr.bf16.mxu1 %v5396_v47  ;;  %v5966_v57 = vld [vmem:[#allocation2 + $0x140] ss:$36 sps:$4 sm:$0xff]   ;;  %v5972_v40 = vld [vmem:[#allocation2 + $0x1d0] ss:$36 sps:$4 sm:$0xff]  }
 0x242   : > { %v2140_v60 = vsel %vm2091_vm4, %v7036_v55, %v2139_v36  ;;  %v2098_v3 = vsel %vm2091_vm4, %v2082_v19, %v2097_v52  ;;  %2109 = vst.msk [vmem:[#allocation2 + $0x698] sm:$0xf] %vm181_vm0, %v2099_v63  ;;  %v2171_v46 = vpop.permute.xlu1 %2170  ;;  %v2129_v0 = vpop.permute.xlu0 %2128  ;;  %3940 = vmatpush1.bf16.msra.mxu1 %v5395_v16  ;;  %v5965_v19 = vld [vmem:[#allocation2 + $0x380] ss:$36 sps:$4 sm:$0xff]   ;;  %v6015_v16 = vmov 0.0  }
 0x243   : > { %v2177_v25 = vrot.slane %v2171_v46, 4  ;;  %v2134_v37 = vrot.slane %v2129_v0, 4  ;;  %v5402_v43 = vcombine.low %v2096_v15, %v2140_v60  ;;  %v5403_v51 = vcombine.high %v2096_v15, %v2140_v60  ;;  %v5975_v15 = vld [vmem:[#allocation2 + $0x218] ss:$36 sps:$4 sm:$0xff]   ;;  %4137 = vst [vmem:[#allocation3] sm:$0xff] %v6015_v16  ;;  %4148 = vst [vmem:[#allocation3 + $0x50] sm:$0xff] %v6015_v16 }
 0x244   : > { %4147 = vst.msk [vmem:[#allocation3 + $0x48] sm:$0xff] %vm4146_vm8, %v6015_v16  ;;  %4157 = vst.msk [vmem:[#allocation3 + $0x98] sm:$0xff] %vm4146_vm8, %v6015_v16 }
 0x245   : > { %v2184_v17 = vsel %vm218_vm1, %v2176_v26, %v2177_v25  ;;  %v2141_v10 = vsel %vm218_vm1, %v2133_v20, %v2134_v37  ;;  %v2143_v45 = vsel %vm2091_vm4, %v2129_v0, %v2134_v37  ;;  %3855 = vmatprep.subr.bf16.mxu0 %v5403_v51  ;;  %v5976_v31 = vld [vmem:[#allocation2 + $0x650] ss:$36 sps:$4 sm:$0xff]   ;;  %v4074_v20 = vlaneseq }
 0x246   : > { %v2185_v55 = vsel %vm2180_vm3, %v7059_v44, %v2184_v17  ;;  %v2142_v24 = vsel %vm2091_vm4, %v2127_v7, %v2141_v10  ;;  %2153 = vst.msk [vmem:[#allocation2 + $0x6bc] sm:$0xf] %vm181_vm0, %v2143_v45  ;;  %v2173_v28 = vpop.permute.xlu0 %2172  ;;  %3856 = vmatpush1.bf16.msra.mxu0 %v5402_v43  ;;  %vm4259_vm4 = vcmask 31744  }
 0x247   : > { %v2178_v30 = vrot.slane %v2173_v28, 4  ;;  %v5412_v50 = vcombine.high %v2185_v55, %v2185_v55  ;;  %v5404_v38 = vcombine.low %v2098_v3, %v2142_v24  ;;  %v5405_v58 = vcombine.high %v2098_v3, %v2142_v24 }
 0x248   : > { %v5411_v59 = vcombine.low %v2185_v55, %v2185_v55  ;;  %v4075_v14 = vshrl.u32 %v4074_v20, 7 }
 0x249   : > { %v2186_v26 = vsel %vm218_vm1, %v2177_v25, %v2178_v30  ;;  %v2188_v9 = vsel %vm2180_vm3, %v2173_v28, %v2178_v30  ;;  %5420 = vmatprep.subr.msk.bf16.mxu0 %vm218_vm1, %v5412_v50  ;;  %3941 = vmatprep.subr.bf16.mxu1 %v5405_v58 }
 0x24a   : > { %v2187_v44 = vsel %vm2180_vm3, %v2171_v46, %v2186_v26  ;;  %2198 = vst.msk [vmem:[#allocation2 + $0x6e0] sm:$0xf] %vm181_vm0, %v2188_v9  ;;  %v3612_v53 = vsel %vm218_vm1, %v5411_v59, 0  ;;  %3942 = vmatpush1.bf16.msra.mxu1 %v5404_v38  ;;  %v4076_v47 = vsub.s32 0, %v4075_v14  ;;  %v4080_v36 = vsub.s32 1, %v4075_v14 }
 0x24b   : > { %3858 = vmatpush1.bf16.msra.mxu0 %v3612_v53  ;;  %v5414_v12 = vcombine.high %v2187_v44, %v2187_v44  ;;  %v5413_v1 = vcombine.low %v2187_v44, %v2187_v44  ;;  %v4084_v60 = vsub.s32 2, %v4075_v14  ;;  %v4088_v0 = vsub.s32 3, %v4075_v14 }
 0x24c   : > { %5448 = vmatprep.subr.bf16.mxu0 %v5954_v2  ;;  %vm4212_vm3 = vcmask 293888  }
 0x24d   : > { %5422 = vmatprep.subr.msk.bf16.mxu1 %vm218_vm1, %v5414_v12  ;;  %v3618_v21 = vsel %vm218_vm1, %v5413_v1, 0  ;;  %v5977_v41 = vld [vmem:[#allocation2 + $0x698] ss:$36 sps:$4 sm:$0xff]  }
 0x24e   : > { %3874 = vmatmul.mubr.bf16.vlgmr.msra.gmra.mrb[4].mxu0 %v7502_v49  ;;  %3944 = vmatpush1.bf16.msra.mxu1 %v3618_v21  ;;  %v4092_v21 = vsub.s32 4, %v4075_v14 }
 0x24f   : > { %5449 = vmatpush3.bf16.msra.mxu0 %v5955_v22  ;;  %4011 = vmatprep.subr.bf16.mxu1 %v6014_v6 }
 0x250   : > { %5450 = vmatprep.subr.bf16.mxu0 %v5956_v29  ;;  %4002 = vmatprep.mubr.bf16.mxu0 %v5988_v8  ;;  %v4100_v29 = vsub.s32 6, %v4075_v14 }
 0x251   : > { %3960 = vmatmul.mubr.bf16.vlgmr.msra.gmra.mrb[4].mxu1 %v7502_v49  ;;  %v5978_v7 = vld [vmem:[#allocation2 + $0x6e0] ss:$0 sps:$4 sm:$0xff]  }
 0x252   : > { %4012 = vmatpush1.bf16.msra.mxu1 %v5958_v39  ;;  %5424 = vmatprep.mubr.msk.bf16.mxu1 %vm3594_vm12, %v7379_v27  ;;  %v5968_v27 = vld [vmem:[#allocation2 + $0x3c8] ss:$36 sps:$4 sm:$0xff]   ;;  %v3624_v34 = vsel %vm218_vm1, %v5978_v7, 0  ;;  %v4104_v39 = vsub.s32 7, %v4075_v14  ;;  %vm4249_vm1 = vcmask 1047840   ;;  %vm8593_vm12 = vcmask 1031168  }
 0x253   : > { %5451 = vmatpush3.bf16.msra.mxu0 %v5957_v61  ;;  %4013 = vmatprep.subr.bf16.mxu1 %v6014_v6  ;;  %vm8594_vm13 = vmmov %vm8593_vm12 }
 0x254   : > { %5452 = vmatprep.subr.bf16.mxu0 %v5959_v5  ;;  %vm8595_vm14 = vmmov %vm8593_vm12 }
 0x255   : > { %vm8596_vm15 = vmmov %vm8593_vm12 }
 0x256   : > { %4014 = vmatpush1.bf16.msra.mxu1 %v5961_v35 }
 0x257   : > { %5453 = vmatpush3.bf16.msra.mxu0 %v5960_v18  ;;  %4015 = vmatprep.subr.bf16.mxu1 %v6014_v6 }
 0x258   : > { %5454 = vmatprep.subr.bf16.mxu0 %v5962_v56 }
 0x25a   : > { %4016 = vmatpush1.bf16.msra.mxu1 %v5964_v33 }
 0x25b   : > { %5455 = vmatpush3.bf16.msra.mxu0 %v5963_v42  ;;  %4017 = vmatprep.subr.bf16.mxu1 %v6014_v6 }
 0x25c   : > { %5456 = vmatprep.subr.bf16.mxu0 %v5965_v19 }
 0x25e   : > { %4018 = vmatpush1.bf16.msra.mxu1 %v5967_v13 }
 0x25f   : > { %5457 = vmatpush3.bf16.msra.mxu0 %v5966_v57  ;;  %4019 = vmatprep.subr.bf16.mxu1 %v6014_v6 }
 0x260   : > { %5458 = vmatprep.subr.bf16.mxu0 %v5968_v27 }
 0x262   : > { %4020 = vmatpush1.bf16.msra.mxu1 %v5970_v48 }
 0x263   : > { %5459 = vmatpush3.bf16.msra.mxu0 %v5969_v62  ;;  %4021 = vmatprep.subr.bf16.mxu1 %v6014_v6 }
 0x264   : > { %5460 = vmatprep.subr.bf16.mxu0 %v5971_v32 }
 0x266   : > { %4022 = vmatpush1.bf16.msra.mxu1 %v5973_v11 }
 0x267   : > { %5461 = vmatpush3.bf16.msra.mxu0 %v5972_v40  ;;  %4023 = vmatprep.subr.bf16.mxu1 %v6014_v6 }
 0x268   : > { %5462 = vmatprep.subr.bf16.mxu0 %v5974_v4 }
 0x26a   : > { %4024 = vmatpush1.bf16.msra.mxu1 %v5976_v31 }
 0x26b   : > { %5463 = vmatpush3.bf16.msra.mxu0 %v5975_v15  ;;  %4025 = vmatprep.subr.bf16.mxu1 %v6014_v6 }
 0x26e   : > { %4026 = vmatpush1.bf16.msra.mxu1 %v5977_v41  ;;  %4003 = vmatmul.mubr.bf16.vlgmr.msra.gmra.mrb[8].mxu0 %v7365_v54  ;;  %v4070_v54 = vld [vmem:[%s8512_s2] sm:$0xff] }
 0x26f   : > { %4027 = vmatprep.subr.bf16.mxu1 %v6014_v6  ;;  %v4077_v46 = vrot.slane %v4070_v54, %v4076_v47  ;;  %v4081_v37 = vrot.slane %v4070_v54, %v4080_v36  ;;  %v4085_v55 = vrot.slane %v4070_v54, %v4084_v60  ;;  %v4089_v50 = vrot.slane %v4070_v54, %v4088_v0 }
 0x270   : > { %v4093_v6 = vrot.slane %v4070_v54, %v4092_v21  ;;  %v4101_v33 = vrot.slane %v4070_v54, %v4100_v29  ;;  %v4105_v57 = vrot.slane %v4070_v54, %v4104_v39 }
 0x272   : > { %4028 = vmatpush1.bf16.msra.mxu1 %v3624_v34 }
 0x275   : > { %4044 = vmatmul.mubr.bf16.vlgmr.msra.gmra.mrb[8].mxu1 %v7502_v49  ;;  %v4096_v49 = vsub.s32 5, %v4075_v14 }
 0x277   : > { %v4097_v61 = vrot.slane %v4070_v54, %v4096_v49 }
 0x2ac   : > { %v3789_v23 = vpop.f32.mrb[0].mxu1 }
 0x2ad   : > { %v3791_v52 = vpop.f32.mrb[1].mxu1  ;;  %v4054_v45 = vmax.f32 %v3789_v23, 0.0 }
 0x2ae   : > { %v3793_v63 = vpop.f32.mrb[2].mxu1  ;;  %v4055_v30 = vmax.f32 %v3791_v52, 0.0 }
 0x2af   : > { %v3795_v3 = vpop.f32.mrb[3].mxu1  ;;  %v4121_v58 = vmul.f32 %v4085_v55, %v4054_v45  ;;  %v4063_v2 = vmax.f32 %v3793_v63, 0.0 }
 0x2b0   : > { %v3703_v25 = vpop.f32.mrb[0].mxu0  ;;  %v4122_v26 = vmul.f32 %v4089_v50, %v4055_v30  ;;  %v4064_v44 = vmax.f32 %v3795_v3, 0.0 }
 0x2b1   : > { %v4052_v43 = vmax.f32 %v3703_v25, 0.0  ;;  %v3705_v51 = vpop.f32.mrb[1].mxu0  ;;  %v4130_v22 = vmul.f32 %v4085_v55, %v4063_v2 }
 0x2b2   : > { %v4053_v17 = vmax.f32 %v3705_v51, 0.0  ;;  %v3707_v10 = vpop.f32.mrb[2].mxu0  ;;  %v4131_v1 = vmul.f32 %v4089_v50, %v4064_v44 }
 0x2b3   : > { %v4119_v24 = vmul.f32 %v4077_v46, %v4052_v43  ;;  %v3709_v28 = vpop.f32.mrb[3].mxu0  ;;  %v4061_v9 = vmax.f32 %v3707_v10, 0.0 }
 0x2b4   : > { %v4120_v38 = vmul.f32 %v4081_v37, %v4053_v17  ;;  %v4062_v59 = vmax.f32 %v3709_v28, 0.0 }
 0x2b5   : > { %4176 = vrot.lane.b32.xlu1 %v4119_v24, %s6016_s9  ;;  %v4128_v12 = vmul.f32 %v4077_v46, %v4061_v9 }
 0x2b6   : > { %4178 = vrot.lane.b32.xlu0 %v4120_v38, %s6016_s9  ;;  %v4129_v53 = vmul.f32 %v4081_v37, %v4062_v59 }
 0x2b9   : > { %4180 = vrot.lane.b32.xlu1 %v4121_v58, %s6016_s9 }
 0x2ba   : > { %4182 = vrot.lane.b32.xlu0 %v4122_v26, %s6016_s9 }
 0x2bd   : > { %4196 = vrot.lane.b32.xlu1 %v4129_v53, %s6016_s9 }
 0x2be   : > { %4194 = vrot.lane.b32.xlu0 %v4128_v12, %s6016_s9 }
 0x2c1   : > { %4200 = vrot.lane.b32.xlu1 %v4131_v1, %s6016_s9 }
 0x2c2   : > { %4198 = vrot.lane.b32.xlu0 %v4130_v22, %s6016_s9 }
 0x321   : > { %v3875_v8 = vpop.f32.mrb[4].mxu0 }
 0x322   : > { %v4056_v5 = vmax.f32 %v3875_v8, 0.0  ;;  %v3877_v35 = vpop.f32.mrb[5].mxu0 }
 0x323   : > { %v4057_v18 = vmax.f32 %v3877_v35, 0.0  ;;  %v3879_v56 = vpop.f32.mrb[6].mxu0 }
 0x324   : > { %v4123_v42 = vmul.f32 %v4093_v6, %v4056_v5  ;;  %v3881_v19 = vpop.f32.mrb[7].mxu0  ;;  %v3961_v13 = vpop.f32.mrb[4].mxu1  ;;  %v4065_v34 = vmax.f32 %v3879_v56, 0.0 }
 0x325   : > { %v4124_v27 = vmul.f32 %v4097_v61, %v4057_v18  ;;  %v4058_v48 = vmax.f32 %v3961_v13, 0.0  ;;  %v3963_v62 = vpop.f32.mrb[5].mxu1  ;;  %v4066_v15 = vmax.f32 %v3881_v19, 0.0 }
 0x326   : > { %v4059_v32 = vmax.f32 %v3963_v62, 0.0  ;;  %4184 = vrot.lane.b32.xlu1 %v4123_v42, %s6016_s9  ;;  %v3965_v11 = vpop.f32.mrb[6].mxu1  ;;  %v4132_v54 = vmul.f32 %v4093_v6, %v4065_v34  ;;  %v5425_v6 = vld [vmem:[%s8512_s2 + $0x8] ss:$0 sm:$0xff] }
 0x327   : > { %v4125_v40 = vmul.f32 %v4101_v33, %v4058_v48  ;;  %4186 = vrot.lane.b32.xlu0 %v4124_v27, %s6016_s9  ;;  %v3967_v4 = vpop.f32.mrb[7].mxu1  ;;  %v4177_v31 = vpop.permute.xlu1 %4176  ;;  %v4133_v47 = vmul.f32 %v4097_v61, %v4066_v15  ;;  %v4067_v63 = vmax.f32 %v3965_v11, 0.0 }
 0x328   : > { %v4126_v41 = vmul.f32 %v4105_v57, %v4059_v32  ;;  %4250 = vst.msk [vmem:[#allocation3] sm:$0xff] %vm4249_vm1, %v4177_v31  ;;  %v4179_v7 = vpop.permute.xlu0 %4178  ;;  %v4068_v23 = vmax.f32 %v3967_v4, 0.0 }
 0x329   : > { %v7531_v20 = vsel %vm4212_vm3, %v4177_v31, %v4179_v7  ;;  %v4134_v25 = vmul.f32 %v4101_v33, %v4067_v63 }
 0x32a   : > { %4188 = vrot.lane.b32.xlu1 %v4125_v40, %s6016_s9  ;;  %v4135_v46 = vmul.f32 %v4105_v57, %v4068_v23 }
 0x32b   : > { %4190 = vrot.lane.b32.xlu0 %v4126_v41, %s6016_s9  ;;  %v4181_v14 = vpop.permute.xlu1 %4180 }
 0x32c   : > { %v7536_v36 = vsel %vm4212_vm3, %v4179_v7, %v4181_v14  ;;  %v7538_v52 = vpop.permute.xlu0 %4182 }
 0x32d   : > { %v7542_v60 = vsel %vm4212_vm3, %v4181_v14, %v7538_v52 }
 0x32e   : > { %4204 = vrot.lane.b32.xlu1 %v4133_v47, %s6016_s9  ;;  %v5519_v24 = vpack.i.bf16 %v7542_v60, %v7536_v36 }
 0x32f   : > { %4202 = vrot.lane.b32.xlu0 %v4132_v54, %s6016_s9  ;;  %v4197_v3 = vpop.permute.xlu1 %4196  ;;  %v7550_v43 = vld [vmem:[#allocation3] sm:$0xff] }
 0x330   : > { %v4195_v0 = vpop.permute.xlu0 %4194  ;;  %v5514_v10 = vpack.i.bf16 %v7531_v20, %v7550_v43 }
 0x331   : > { %v7547_v37 = vsel %vm4212_vm3, %v4195_v0, %v4197_v3  ;;  %4261 = vst.msk [vmem:[#allocation3 + $0x50] sm:$0xff] %vm4249_vm1, %v4195_v0  ;;  %vm8599_vm1 = vmmov %vm8593_vm12 }
 0x332   : > { %4208 = vrot.lane.b32.xlu1 %v4135_v46, %s6016_s9  ;;  %vm8601_vm8 = vmmov %vm8599_vm1 }
 0x333   : > { %4206 = vrot.lane.b32.xlu0 %v4134_v25, %s6016_s9  ;;  %v7554_v51 = vpop.permute.xlu1 %4200 }
 0x334   : > { %v4199_v17 = vpop.permute.xlu0 %4198 }
 0x335   : > { %v7559_v45 = vsel %vm4212_vm3, %v4197_v3, %v4199_v17  ;;  %v7563_v55 = vsel %vm4212_vm3, %v4199_v17, %v7554_v51 }
 0x336   : > { %5515 = vrot.lane.b32.xlu1 %v5514_v10, %s5999_s18  ;;  %v5599_v1 = vpack.i.bf16 %v7559_v45, %v7547_v37  ;;  %v7591_v21 = vpack.i.bf16 %v7563_v55, %v7559_v45 }
 0x337   : > { %5520 = vrot.lane.b32.xlu0 %v5519_v24, %s5999_s18 }
 0x338   : > { %v7586_v22 = vld [vmem:[#allocation3 + $0x50] sm:$0xff] }
 0x339   : > { %v7595_v49 = vpack.i.bf16 %v7547_v37, %v7586_v22 }
 0x33a   : > { %5530 = vrot.lane.b32.xlu1 %v5519_v24, %s6000_s19 }
 0x33b   : > { %5525 = vrot.lane.b32.xlu0 %v5514_v10, %s6000_s19 }
 0x33e   : > { %5535 = vrot.lane.b32.xlu1 %v5514_v10, %s6002_s21 }
 0x33f   : > { %5540 = vrot.lane.b32.xlu0 %v5519_v24, %s6002_s21 }
 0x341   : > { %v5464_v28 = vpop.f32.mrb[8].mxu0 }
 0x342   : > { %5545 = vrot.lane.b32.xlu1 %v5514_v10, %s6003_s22  ;;  %v5465_v30 = vpop.f32.mrb[9].mxu0 }
 0x343   : > { %5550 = vrot.lane.b32.xlu0 %v5519_v24, %s6003_s22  ;;  %v5466_v50 = vadd.f32 %v5465_v30, %v5464_v28  ;;  %v5467_v38 = vpop.f32.mrb[10].mxu0 }
 0x344   : > { %v5468_v58 = vpop.f32.mrb[11].mxu0 }
 0x345   : > { %v5469_v59 = vadd.f32 %v5468_v58, %v5467_v38 }
 0x346   : > { %5555 = vrot.lane.b32.xlu1 %v5514_v10, %s6004_s23 }
 0x347   : > { %5560 = vrot.lane.b32.xlu0 %v5519_v24, %s6004_s23 }
 0x348   : > { %v4045_v26 = vpop.f32.mrb[8].mxu1 }
 0x349   : > { %v4046_v9 = vadd.f32 %v5466_v50, %v4045_v26  ;;  %v4047_v44 = vpop.f32.mrb[9].mxu1 }
 0x34a   : > { %5565 = vrot.lane.b32.xlu1 %v5514_v10, %s6006_s25  ;;  %v4048_v53 = vpop.f32.mrb[10].mxu1 }
 0x34b   : > { %5570 = vrot.lane.b32.xlu0 %v5519_v24, %s6006_s25  ;;  %v4049_v2 = vadd.f32 %v5469_v59, %v4048_v53  ;;  %v4050_v12 = vpop.f32.mrb[11].mxu1  ;;  %v4060_v29 = vmax.f32 %v4046_v9, 0.0 }
 0x34d   : > { %v4069_v39 = vmax.f32 %v4049_v2, 0.0  ;;  %v4127_v8 = vmul.f32 %v5425_v6, %v4060_v29 }
 0x34e   : > { %5575 = vrot.lane.b32.xlu1 %v5514_v10, %s6007_s26 }
 0x34f   : > { %5580 = vrot.lane.b32.xlu0 %v5519_v24, %s6007_s26  ;;  %v4136_v16 = vmul.f32 %v5425_v6, %v4069_v39 }
 0x352   : > { %5585 = vrot.lane.b32.xlu1 %v5514_v10, %s6008_s29 }
 0x353   : > { %5590 = vrot.lane.b32.xlu0 %v5519_v24, %s6008_s29 }
 0x356   : > { %5600 = vrot.lane.b32.xlu1 %v5599_v1, %s6000_s19 }
 0x357   : > { %5595 = vrot.lane.b32.xlu0 %v5599_v1, %s5999_s18 }
 0x35a   : > { %5610 = vrot.lane.b32.xlu1 %v7591_v21, %s6002_s21 }
 0x35b   : > { %5605 = vrot.lane.b32.xlu0 %v7595_v49, %s6002_s21 }
 0x35e   : > { %5620 = vrot.lane.b32.xlu1 %v7591_v21, %s6003_s22 }
 0x35f   : > { %5615 = vrot.lane.b32.xlu0 %v7595_v49, %s6003_s22 }
 0x362   : > { %5630 = vrot.lane.b32.xlu1 %v7591_v21, %s6004_s23 }
 0x363   : > { %5625 = vrot.lane.b32.xlu0 %v7595_v49, %s6004_s23 }
 0x366   : > { %5640 = vrot.lane.b32.xlu1 %v7591_v21, %s6006_s25 }
 0x367   : > { %5635 = vrot.lane.b32.xlu0 %v7595_v49, %s6006_s25 }
 0x36a   : > { %5650 = vrot.lane.b32.xlu1 %v7591_v21, %s6007_s26 }
 0x36b   : > { %5645 = vrot.lane.b32.xlu0 %v7595_v49, %s6007_s26 }
 0x36e   : > { %4192 = vrot.lane.b32.xlu1 %v4127_v8, %s6016_s9 }
 0x36f   : > { %4210 = vrot.lane.b32.xlu0 %v4136_v16, %s6016_s9 }
 0x398   : > { %v4185_v61 = vpop.permute.xlu1 %4184 }
 0x399   : > { %v7626_v5 = vsel %vm4212_vm3, %v7538_v52, %v4185_v61  ;;  %v4187_v35 = vpop.permute.xlu0 %4186 }
 0x39a   : > { %v7629_v18 = vsel %vm4212_vm3, %v4185_v61, %v4187_v35 }
 0x39b   : > { %v7633_v56 = vpack.i.bf16 %v7629_v18, %v7626_v5 }
 0x39c   : > { %v4189_v33 = vpop.permute.xlu1 %4188 }
 0x39d   : > { %v7636_v42 = vsel %vm4212_vm3, %v4187_v35, %v4189_v33  ;;  %v7638_v19 = vpop.permute.xlu0 %4190  ;;  %5655 = vrot.lane.b32.xlu1 %v7633_v56, %s5999_s18 }
 0x39e   : > { %v7644_v13 = vsel %vm4212_vm3, %v4189_v33, %v7638_v19 }
 0x39f   : > { %v7648_v57 = vpack.i.bf16 %v7644_v13, %v7636_v42 }
 0x3a0   : > { %v4205_v27 = vpop.permute.xlu1 %4204 }
 0x3a1   : > { %v4203_v48 = vpop.permute.xlu0 %4202  ;;  %5660 = vrot.lane.b32.xlu0 %v7648_v57, %s5999_s18  ;;  %5670 = vrot.lane.b32.xlu1 %v7648_v57, %s6000_s19 }
 0x3a2   : > { %v7656_v62 = vsel %vm4212_vm3, %v7554_v51, %v4203_v48  ;;  %v7659_v32 = vsel %vm4212_vm3, %v4203_v48, %v4205_v27 }
 0x3a3   : > { %v5724_v44 = vpack.i.bf16 %v7656_v62, %v7563_v55 }
 0x3a4   : > { %v7661_v11 = vpop.permute.xlu1 %4208 }
 0x3a5   : > { %v4207_v40 = vpop.permute.xlu0 %4206  ;;  %5665 = vrot.lane.b32.xlu0 %v7633_v56, %s6000_s19  ;;  %5675 = vrot.lane.b32.xlu1 %v7633_v56, %s6002_s21 }
 0x3a6   : > { %v7668_v4 = vsel %vm4212_vm3, %v4205_v27, %v4207_v40  ;;  %v7672_v31 = vsel %vm4212_vm3, %v4207_v40, %v7661_v11 }
 0x3a7   : > { %4267 = vst [vmem:[#allocation3 + $0x80] sm:$0xff] %v7668_v4  ;;  %4268 = vst [vmem:[#allocation3 + $0x88] sm:$0xff] %v7672_v31 }
 0x3a8   : > { %v5516_v15 = vpop.permute.xlu1 %5515 }
 0x3a9   : > { %v7676_v41 = vpop.permute.xlu0 %5520  ;;  %5680 = vrot.lane.b32.xlu0 %v7648_v57, %s6002_s21  ;;  %5685 = vrot.lane.b32.xlu1 %v7633_v56, %s6003_s22  ;;  %v5518_v25 = vunpack.i.h.bf16 %v5516_v15  ;;  %v5517_v51 = vunpack.i.l.bf16 %v5516_v15 }
 0x3aa   : > { %v5523_v7 = vunpack.i.h.bf16 %v7676_v41  ;;  %v5522_v34 = vunpack.i.l.bf16 %v7676_v41 }
 0x3ab   : > { %v4344_v38 = vsel %vm220_vm2, %v5517_v51, %v5518_v25 }
 0x3ac   : > { %v4346_v14 = vsel %vm220_vm2, %v5522_v34, %v5523_v7  ;;  %v7687_v47 = vpop.permute.xlu1 %5530  ;;  %v4345_v53 = vsel %vm220_vm2, %v5518_v25, %v5522_v34  ;;  %v4378_v29 = vmax.f32 %v7550_v43, %v4344_v38  ;;  %v5739_v43 = vpack.i.bf16 %v7668_v4, %v7659_v32 }
 0x3ad   : > { %v4380_v23 = vmax.f32 %v7536_v36, %v4346_v14  ;;  %v5533_v52 = vunpack.i.h.bf16 %v7687_v47  ;;  %v5532_v54 = vunpack.i.l.bf16 %v7687_v47  ;;  %v5526_v63 = vpop.permute.xlu0 %5525  ;;  %5690 = vrot.lane.b32.xlu0 %v7648_v57, %s6003_s22  ;;  %5695 = vrot.lane.b32.xlu1 %v7633_v56, %s6004_s23  ;;  %v4379_v27 = vmax.f32 %v7531_v20, %v4345_v53 }
 0x3ae   : > { %v5528_v24 = vunpack.i.h.bf16 %v5526_v63  ;;  %v5527_v28 = vunpack.i.l.bf16 %v5526_v63 }
 0x3af   : > { %v4435_v3 = vsel %vm8593_vm12, %v5532_v54, %v5533_v52  ;;  %vm8602_vm12 = vmmov %vm8599_vm1 }
 0x3b0   : > { %v4469_v46 = vmax.f32 %v4380_v23, %v4435_v3  ;;  %v5536_v0 = vpop.permute.xlu1 %5535  ;;  %v4433_v2 = vsel %vm8594_vm13, %v5527_v28, %v5528_v24  ;;  %v4434_v61 = vsel %vm8595_vm14, %v5528_v24, %v5532_v54  ;;  %vm8603_vm13 = vmmov %vm8599_vm1 }
 0x3b1   : > { %v7699_v36 = vpop.permute.xlu0 %5540  ;;  %5700 = vrot.lane.b32.xlu0 %v7648_v57, %s6004_s23  ;;  %5705 = vrot.lane.b32.xlu1 %v7633_v56, %s6006_s25  ;;  %v5538_v12 = vunpack.i.h.bf16 %v5536_v0  ;;  %v5537_v1 = vunpack.i.l.bf16 %v5536_v0  ;;  %v4467_v48 = vmax.f32 %v4378_v29, %v4433_v2  ;;  %v4468_v63 = vmax.f32 %v4379_v27, %v4434_v61  ;;  %vm8607_vm14 = vmmov %vm8599_vm1 }
 0x3b2   : > { %v5543_v17 = vunpack.i.h.bf16 %v7699_v36  ;;  %v5542_v10 = vunpack.i.l.bf16 %v7699_v36 }
 0x3b3   : > { %v4530_v34 = vsel %vm673_vm5, %v5537_v1, %v5538_v12 }
 0x3b4   : > { %v4532_v30 = vsel %vm673_vm5, %v5542_v10, %v5543_v17  ;;  %v5546_v50 = vpop.permute.xlu1 %5545  ;;  %v4531_v14 = vsel %vm673_vm5, %v5538_v12, %v5542_v10  ;;  %v4566_v10 = vmax.f32 %v4467_v48, %v4530_v34  ;;  %v7772_v34 = vpack.i.bf16 %v7659_v32, %v7656_v62 }
 0x3b5   : > { %v4568_v58 = vmax.f32 %v4469_v46, %v4532_v30  ;;  %v7711_v59 = vpop.permute.xlu0 %5550  ;;  %5710 = vrot.lane.b32.xlu0 %v7648_v57, %s6006_s25  ;;  %5715 = vrot.lane.b32.xlu1 %v7633_v56, %s6007_s26  ;;  %v5548_v6 = vunpack.i.h.bf16 %v5546_v50  ;;  %v5547_v39 = vunpack.i.l.bf16 %v5546_v50  ;;  %v4567_v30 = vmax.f32 %v4468_v63, %v4531_v14 }
 0x3b6   : > { %v5553_v26 = vunpack.i.h.bf16 %v7711_v59  ;;  %v5552_v9 = vunpack.i.l.bf16 %v7711_v59 }
 0x3b7   : > { %v4625_v3 = vsel %vm762_vm6, %v5547_v39, %v5548_v6 }
 0x3b8   : > { %v4627_v8 = vsel %vm762_vm6, %v5552_v9, %v5553_v26  ;;  %v5556_v16 = vpop.permute.xlu1 %5555  ;;  %v4626_v20 = vsel %vm762_vm6, %v5548_v6, %v5552_v9  ;;  %v7754_v9 = vpack.i.bf16 %v7672_v31, %v7668_v4  ;;  %v4661_v53 = vmax.f32 %v4566_v10, %v4625_v3 }
 0x3b9   : > { %v4663_v35 = vmax.f32 %v4568_v58, %v4627_v8  ;;  %v7728_v33 = vpop.permute.xlu0 %5560  ;;  %5720 = vrot.lane.b32.xlu0 %v7648_v57, %s6007_s26  ;;  %5725 = vrot.lane.b32.xlu1 %v5724_v44, %s5999_s18  ;;  %v5558_v23 = vunpack.i.h.bf16 %v5556_v16  ;;  %v5557_v54 = vunpack.i.l.bf16 %v5556_v16  ;;  %v4662_v2 = vmax.f32 %v4567_v30, %v4626_v20 }
 0x3ba   : > { %v5563_v40 = vunpack.i.h.bf16 %v7728_v33  ;;  %v5562_v15 = vunpack.i.l.bf16 %v7728_v33 }
 0x3bb   : > { %v4720_v58 = vsel %vm851_vm7, %v5557_v54, %v5558_v23 }
 0x3bc   : > { %v4722_v46 = vsel %vm851_vm7, %v5562_v15, %v5563_v40  ;;  %v5566_v0 = vpop.permute.xlu1 %5565  ;;  %v4721_v12 = vsel %vm851_vm7, %v5558_v23, %v5562_v15  ;;  %v4756_v4 = vmax.f32 %v4661_v53, %v4720_v58 }
 0x3bd   : > { %v4758_v25 = vmax.f32 %v4663_v35, %v4722_v46  ;;  %v5568_v51 = vunpack.i.h.bf16 %v5566_v0  ;;  %v5567_v24 = vunpack.i.l.bf16 %v5566_v0  ;;  %v7745_v28 = vpop.permute.xlu0 %5570  ;;  %5730 = vrot.lane.b32.xlu0 %v5724_v44, %s6000_s19  ;;  %5740 = vrot.lane.b32.xlu1 %v5739_v43, %s6000_s19  ;;  %v4757_v48 = vmax.f32 %v4662_v2, %v4721_v12 }
 0x3be   : > { %v5573_v50 = vunpack.i.h.bf16 %v7745_v28  ;;  %v5572_v38 = vunpack.i.l.bf16 %v7745_v28 }
 0x3bf   : > { %v4815_v29 = vsel %vm1293_vm9, %v5567_v24, %v5568_v51 }
 0x3c0   : > { %v4817_v44 = vsel %vm1293_vm9, %v5572_v38, %v5573_v50  ;;  %v5576_v1 = vpop.permute.xlu1 %5575  ;;  %v4816_v61 = vsel %vm1293_vm9, %v5568_v51, %v5572_v38  ;;  %v4851_v14 = vmax.f32 %v4756_v4, %v4815_v29 }
 0x3c1   : > { %v4853_v6 = vmax.f32 %v4758_v25, %v4817_v44  ;;  %v5578_v39 = vunpack.i.h.bf16 %v5576_v1  ;;  %v5577_v8 = vunpack.i.l.bf16 %v5576_v1  ;;  %v7761_v16 = vpop.permute.xlu0 %5580  ;;  %5735 = vrot.lane.b32.xlu0 %v5739_v43, %s5999_s18  ;;  %5750 = vrot.lane.b32.xlu1 %v7754_v9, %s6002_s21  ;;  %v4852_v63 = vmax.f32 %v4757_v48, %v4816_v61 }
 0x3c2   : > { %v5583_v35 = vunpack.i.h.bf16 %v7761_v16  ;;  %v5582_v27 = vunpack.i.l.bf16 %v7761_v16 }
 0x3c3   : > { %v4910_v15 = vsel %vm1382_vm10, %v5577_v8, %v5578_v39 }
 0x3c4   : > { %v4911_v43 = vsel %vm1382_vm10, %v5578_v39, %v5582_v27  ;;  %v4912_v23 = vsel %vm1382_vm10, %v5582_v27, %v5583_v35  ;;  %v5586_v54 = vpop.permute.xlu1 %5585  ;;  %v4946_v25 = vmax.f32 %v4851_v14, %v4910_v15 }
 0x3c5   : > { %v4948_v3 = vmax.f32 %v4853_v6, %v4912_v23  ;;  %v5588_v46 = vunpack.i.h.bf16 %v5586_v54  ;;  %v5587_v0 = vunpack.i.l.bf16 %v5586_v54  ;;  %v7778_v20 = vpop.permute.xlu0 %5590  ;;  %5745 = vrot.lane.b32.xlu0 %v7772_v34, %s6002_s21  ;;  %5760 = vrot.lane.b32.xlu1 %v7754_v9, %s6003_s22  ;;  %v4947_v10 = vmax.f32 %v4852_v63, %v4911_v43 }
 0x3c6   : > { %v8534_v51 = vunpack.i.h.bf16 %v7778_v20  ;;  %v5592_v24 = vunpack.i.l.bf16 %v7778_v20 }
 0x3c7   : > { %v5005_v30 = vsel %vm1471_vm11, %v5587_v0, %v5588_v46 }
 0x3c8   : > { %v5041_v38 = vmax.f32 %v4946_v25, %v5005_v30  ;;  %v5006_v58 = vsel %vm1471_vm11, %v5588_v46, %v5592_v24  ;;  %v5007_v53 = vsel %vm1471_vm11, %v5592_v24, %v8534_v51  ;;  %v7792_v2 = vpop.permute.xlu1 %5600 }
 0x3c9   : > { %v5042_v12 = vmax.f32 %v4947_v10, %v5006_v58  ;;  %v7794_v44 = vmax.f32 %v4948_v3, %v5007_v53  ;;  %v7796_v1 = vpop.permute.xlu0 %5595  ;;  %5755 = vrot.lane.b32.xlu0 %v7772_v34, %s6003_s22  ;;  %5770 = vrot.lane.b32.xlu1 %v7754_v9, %s6004_s23  ;;  %v5603_v29 = vunpack.i.h.bf16 %v7792_v2  ;;  %v8535_v6 = vunpack.i.l.bf16 %v7792_v2 }
 0x3ca   : > { %v5598_v39 = vunpack.i.h.bf16 %v7796_v1  ;;  %v8536_v8 = vunpack.i.l.bf16 %v7796_v1 }
 0x3cb   : > { %v5438_v4 = vpack.c.bf16 %v5042_v12, %v5041_v38  ;;  %v4442_v43 = vsel %vm8596_vm15, %v8535_v6, %v5603_v29  ;;  %vm8624_vm15 = vmmov %vm8599_vm1 }
 0x3cc   : > { %v4353_v61 = vsel %vm220_vm2, %v8536_v8, %v5598_v39  ;;  %v7816_v27 = vpop.permute.xlu1 %5610 }
 0x3cd   : > { %5115 = vst [vmem:[%s7805_s16] sm:$0xff] %v5438_v4  ;;  %v4388_v48 = vmax.f32 %v7547_v37, %v4353_v61  ;;  %v8546_v15 = vunpack.i.l.bf16 %v7816_v27  ;;  %v7821_v14 = vpop.permute.xlu0 %5605  ;;  %5765 = vrot.lane.b32.xlu0 %v7772_v34, %s6004_s23  ;;  %5780 = vrot.lane.b32.xlu1 %v7754_v9, %s6006_s25 }
 0x3ce   : > { %v8541_v23 = vunpack.i.h.bf16 %v7821_v14 }
 0x3cf   : > { %v4477_v54 = vmax.f32 %v4388_v48, %v4442_v43 }
 0x3d0   : > { %v4540_v37 = vsel %vm673_vm5, %v8541_v23, %v8546_v15  ;;  %v7838_v63 = vpop.permute.xlu1 %5620 }
 0x3d1   : > { %v4576_v3 = vmax.f32 %v4477_v54, %v4540_v37  ;;  %v8545_v46 = vunpack.i.l.bf16 %v7838_v63  ;;  %v7841_v0 = vpop.permute.xlu0 %5615  ;;  %5775 = vrot.lane.b32.xlu0 %v7772_v34, %s6006_s25  ;;  %5790 = vrot.lane.b32.xlu1 %v7754_v9, %s6007_s26 }
 0x3d2   : > { %v8539_v25 = vunpack.i.h.bf16 %v7841_v0 }
 0x3d4   : > { %v4635_v24 = vsel %vm762_vm6, %v8539_v25, %v8545_v46  ;;  %v7853_v10 = vpop.permute.xlu1 %5630 }
 0x3d5   : > { %v4671_v30 = vmax.f32 %v4576_v3, %v4635_v24  ;;  %v8544_v38 = vunpack.i.l.bf16 %v7853_v10  ;;  %v7856_v58 = vpop.permute.xlu0 %5625  ;;  %5785 = vrot.lane.b32.xlu0 %v7772_v34, %s6007_s26 }
 0x3d6   : > { %v8538_v53 = vunpack.i.h.bf16 %v7856_v58 }
 0x3d8   : > { %v4730_v12 = vsel %vm851_vm7, %v8538_v53, %v8544_v38  ;;  %v7866_v4 = vpop.permute.xlu1 %5640 }
 0x3d9   : > { %v4766_v61 = vmax.f32 %v4671_v30, %v4730_v12  ;;  %v8543_v48 = vunpack.i.l.bf16 %v7866_v4  ;;  %v7869_v43 = vpop.permute.xlu0 %5635 }
 0x3da   : > { %v8537_v54 = vunpack.i.h.bf16 %v7869_v43 }
 0x3dc   : > { %v4825_v37 = vsel %vm1293_vm9, %v8537_v54, %v8543_v48  ;;  %v7877_v3 = vpop.permute.xlu1 %5650 }
 0x3dd   : > { %v7879_v24 = vmax.f32 %v4766_v61, %v4825_v37  ;;  %v8542_v51 = vunpack.i.l.bf16 %v7877_v3  ;;  %v7882_v6 = vpop.permute.xlu0 %5645 }
 0x3de   : > { %v8540_v30 = vunpack.i.h.bf16 %v7882_v6 }
 0x3df   : > { %8597 = vst [vmem:[#allocation4_spill] sm:$0xff] %v7879_v24 }
 0x3e0   : > { %v7890_v12 = vsel %vm1382_vm10, %v8540_v30, %v8542_v51  ;;  %v4193_v8 = vpop.permute.xlu1 %4192 }
 0x3e1   : > { %8598 = vst [vmem:[#allocation5_spill] sm:$0xff] %v7890_v12  ;;  %v7896_v61 = vsel %vm4212_vm3, %v7638_v19, %v4193_v8  ;;  %4260 = vst.msk [vmem:[#allocation3 + $0x48] sm:$0xff] %vm4259_vm4, %v4193_v8  ;;  %v4211_v37 = vpop.permute.xlu0 %4210 }
 0x3e2   : > { %v7900_v53 = vsel %vm4212_vm3, %v7661_v11, %v4211_v37  ;;  %4270 = vst.msk [vmem:[#allocation3 + $0x98] sm:$0xff] %vm4259_vm4, %v4211_v37  ;;  %v5799_v25 = vpack.i.bf16 %v7586_v22, %v7896_v61  ;;  %vm8600_vm3 = vmmov %vm8599_vm1 }
 0x3e3   : > { %v5864_v11 = vpack.i.bf16 %v7900_v53, %v7672_v31  ;;  %vm8625_vm4 = vmmov %vm8599_vm1 }
 0x3e4   : > { %5800 = vrot.lane.b32.xlu0 %v5799_v25, %s6000_s19  ;;  %5795 = vrot.lane.b32.xlu1 %v5799_v25, %s5999_s18 }
 0x3e8   : > { %5840 = vrot.lane.b32.xlu0 %v7648_v57, %s6008_s29  ;;  %v4485_v54 = vld [vmem:[#allocation3 + $0x48] sm:$0xff] }
 0x3e9   : > { %v5804_v19 = vpack.i.bf16 %v4485_v54, %v7896_v61  ;;  %v4486_v8 = vld [vmem:[#allocation3 + $0x98] sm:$0xff] }
 0x3ea   : > { %v5869_v57 = vpack.i.bf16 %v4486_v8, %v7900_v53 }
 0x3eb   : > { %5805 = vrot.lane.b32.xlu1 %v5804_v19, %s6002_s21 }
 0x3ec   : > { %5850 = vrot.lane.b32.xlu0 %v7595_v49, %s6008_s29 }
 0x3ef   : > { %5810 = vrot.lane.b32.xlu1 %v5804_v19, %s6003_s22 }
 0x3f0   : > { %5860 = vrot.lane.b32.xlu0 %v7772_v34, %s6008_s29 }
 0x3f3   : > { %5815 = vrot.lane.b32.xlu1 %v5804_v19, %s6004_s23 }
 0x3f4   : > { %5865 = vrot.lane.b32.xlu0 %v5864_v11, %s6000_s19 }
 0x3f7   : > { %5820 = vrot.lane.b32.xlu1 %v5804_v19, %s6006_s25 }
 0x3f8   : > { %5870 = vrot.lane.b32.xlu0 %v5869_v57, %s6002_s21 }
 0x3fb   : > { %5825 = vrot.lane.b32.xlu1 %v5804_v19, %s6007_s26 }
 0x3fc   : > { %5875 = vrot.lane.b32.xlu0 %v5869_v57, %s6003_s22 }
 0x3ff   : > { %5830 = vrot.lane.b32.xlu1 %v5864_v11, %s5999_s18 }
 0x400   : > { %5880 = vrot.lane.b32.xlu0 %v5869_v57, %s6004_s23 }
 0x403   : > { %5835 = vrot.lane.b32.xlu1 %v7633_v56, %s6008_s29 }
 0x404   : > { %5885 = vrot.lane.b32.xlu0 %v5869_v57, %s6006_s25 }
 0x407   : > { %5845 = vrot.lane.b32.xlu1 %v5804_v19, %s6008_s29 }
 0x408   : > { %5890 = vrot.lane.b32.xlu0 %v5869_v57, %s6007_s26 }
 0x40b   : > { %5855 = vrot.lane.b32.xlu1 %v7591_v21, %s6008_s29 }
 0x40c   : > { %5900 = vrot.lane.b32.xlu0 %v5869_v57, %s6008_s29 }
 0x40f   : > { %5895 = vrot.lane.b32.xlu1 %v7754_v9, %s6008_s29  ;;  %v5656_v49 = vpop.permute.xlu1 %5655 }
 0x410   : > { %v5657_v31 = vunpack.i.l.bf16 %v5656_v49  ;;  %v5658_v34 = vunpack.i.h.bf16 %v5656_v49 }
 0x412   : > { %v4347_v56 = vsel %vm220_vm2, %v5523_v7, %v5657_v31  ;;  %v4348_v9 = vsel %vm220_vm2, %v5657_v31, %v5658_v34 }
 0x413   : > { %v7939_v25 = vpop.permute.xlu0 %5660  ;;  %v7941_v54 = vpop.permute.xlu1 %5670  ;;  %v4381_v31 = vmax.f32 %v7542_v60, %v4347_v56 }
 0x414   : > { %v8553_v37 = vunpack.i.h.bf16 %v7939_v25  ;;  %v5662_v21 = vunpack.i.l.bf16 %v7939_v25  ;;  %v8547_v19 = vunpack.i.h.bf16 %v7941_v54  ;;  %v5672_v11 = vunpack.i.l.bf16 %v7941_v54 }
 0x416   : > { %v4349_v8 = vsel %vm220_vm2, %v5658_v34, %v5662_v21  ;;  %v4350_v41 = vsel %vm220_vm2, %v5662_v21, %v8553_v37  ;;  %v4439_v57 = vsel %vm8599_vm1, %v5672_v11, %v8547_v19  ;;  %v4382_v34 = vmax.f32 %v7626_v5, %v4348_v9 }
 0x417   : > { %v4384_v7 = vmax.f32 %v7636_v42, %v4350_v41  ;;  %v5666_v49 = vpop.permute.xlu0 %5665  ;;  %v5676_v30 = vpop.permute.xlu1 %5675  ;;  %v4383_v46 = vmax.f32 %v7629_v18, %v4349_v8  ;;  %v8605_v37 = vunpack.i.l.bf16 %v7838_v63 }
 0x418   : > { %v5668_v23 = vunpack.i.h.bf16 %v5666_v49  ;;  %v5667_v51 = vunpack.i.l.bf16 %v5666_v49  ;;  %v5678_v48 = vunpack.i.h.bf16 %v5676_v30  ;;  %v5677_v38 = vunpack.i.l.bf16 %v5676_v30 }
 0x419   : > { %v4473_v15 = vmax.f32 %v4384_v7, %v4439_v57 }
 0x41a   : > { %v4436_v42 = vsel %vm8600_vm3, %v5533_v52, %v5667_v51  ;;  %v4437_v21 = vsel %vm8601_vm8, %v5667_v51, %v5668_v23  ;;  %v4438_v41 = vsel %vm8602_vm12, %v5668_v23, %v5672_v11  ;;  %v4533_v49 = vsel %vm673_vm5, %v5543_v17, %v5677_v38  ;;  %vm8632_vm3 = vmmov %vm8599_vm1 }
 0x41b   : > { %v4470_v30 = vmax.f32 %v4381_v31, %v4436_v42  ;;  %v4471_v19 = vmax.f32 %v4382_v34, %v4437_v21  ;;  %v4472_v60 = vmax.f32 %v4383_v46, %v4438_v41  ;;  %v4534_v5 = vsel %vm673_vm5, %v5677_v38, %v5678_v48  ;;  %v7968_v56 = vpop.permute.xlu0 %5680  ;;  %v5686_v18 = vpop.permute.xlu1 %5685  ;;  %vm8647_vm8 = vmmov %vm8599_vm1 }
 0x41c   : > { %v8552_v47 = vunpack.i.h.bf16 %v7968_v56  ;;  %v5682_v52 = vunpack.i.l.bf16 %v7968_v56  ;;  %v5688_v9 = vunpack.i.h.bf16 %v5686_v18  ;;  %v5687_v51 = vunpack.i.l.bf16 %v5686_v18  ;;  %vm8648_vm12 = vmmov %vm8599_vm1 }
 0x41d   : > { %v4569_v8 = vmax.f32 %v4470_v30, %v4533_v49  ;;  %v4570_v23 = vmax.f32 %v4471_v19, %v4534_v5 }
 0x41e   : > { %v4535_v36 = vsel %vm673_vm5, %v5678_v48, %v5682_v52  ;;  %v4536_v17 = vsel %vm673_vm5, %v5682_v52, %v8552_v47  ;;  %v4628_v46 = vsel %vm762_vm6, %v5553_v26, %v5687_v51  ;;  %v4629_v38 = vsel %vm762_vm6, %v5687_v51, %v5688_v9 }
 0x41f   : > { %v4571_v11 = vmax.f32 %v4472_v60, %v4535_v36  ;;  %v4572_v7 = vmax.f32 %v4473_v15, %v4536_v17  ;;  %v4664_v57 = vmax.f32 %v4569_v8, %v4628_v46  ;;  %v7980_v31 = vmax.f32 %v4570_v23, %v4629_v38  ;;  %v7982_v34 = vpop.permute.xlu0 %5690  ;;  %v7984_v19 = vpop.permute.xlu1 %5695 }
 0x420   : > { %v8551_v48 = vunpack.i.h.bf16 %v7982_v34  ;;  %v5692_v42 = vunpack.i.l.bf16 %v7982_v34  ;;  %v5697_v21 = vunpack.i.l.bf16 %v7984_v19 }
 0x422   : > { %v4630_v59 = vsel %vm762_vm6, %v5688_v9, %v5692_v42  ;;  %v4631_v26 = vsel %vm762_vm6, %v5692_v42, %v8551_v48  ;;  %v4723_v15 = vsel %vm851_vm7, %v5563_v40, %v5697_v21  ;;  %v5633_v48 = vunpack.i.h.bf16 %v7853_v10 }
 0x423   : > { %v7998_v41 = vmax.f32 %v4571_v11, %v4630_v59  ;;  %v4667_v49 = vmax.f32 %v4572_v7, %v4631_v26  ;;  %v4759_v30 = vmax.f32 %v4664_v57, %v4723_v15  ;;  %v8000_v60 = vpop.permute.xlu0 %5700  ;;  %v8002_v5 = vpop.permute.xlu1 %5705 }
 0x424   : > { %v8550_v18 = vunpack.i.h.bf16 %v8000_v60  ;;  %v5702_v52 = vunpack.i.l.bf16 %v8000_v60  ;;  %v8558_v9 = vunpack.i.l.bf16 %v8002_v5 }
 0x426   : > { %v4726_v33 = vsel %vm851_vm7, %v5702_v52, %v8550_v18  ;;  %v4818_v40 = vsel %vm1293_vm9, %v5573_v50, %v8558_v9 }
 0x427   : > { %v4762_v51 = vmax.f32 %v4667_v49, %v4726_v33  ;;  %v8017_v8 = vmax.f32 %v4759_v30, %v4818_v40  ;;  %v8019_v23 = vpop.permute.xlu0 %5710  ;;  %v8021_v36 = vpop.permute.xlu1 %5715  ;;  %v5613_v33 = vunpack.i.h.bf16 %v7816_v27  ;;  %v8604_v49 = vunpack.i.l.bf16 %v7816_v27 }
 0x428   : > { %v8549_v17 = vunpack.i.h.bf16 %v8019_v23  ;;  %v8556_v46 = vunpack.i.l.bf16 %v8019_v23  ;;  %v8555_v38 = vunpack.i.l.bf16 %v8021_v36 }
 0x429   : > { %v4541_v18 = vsel %vm673_vm5, %v8604_v49, %v5613_v33  ;;  %v8606_v49 = vunpack.i.l.bf16 %v7853_v10 }
 0x42a   : > { %v4821_v28 = vsel %vm1293_vm9, %v8556_v46, %v8549_v17  ;;  %v8036_v50 = vsel %vm1382_vm10, %v5583_v35, %v8555_v38  ;;  %v5653_v46 = vunpack.i.h.bf16 %v7877_v3 }
 0x42b   : > { %v8038_v11 = vmax.f32 %v4762_v51, %v4821_v28  ;;  %v8042_v57 = vpop.permute.xlu0 %5720  ;;  %v8044_v42 = vpop.permute.xlu1 %5725  ;;  %v5623_v28 = vunpack.i.h.bf16 %v7838_v63  ;;  %v4731_v38 = vsel %vm851_vm7, %v8606_v49, %v5633_v48 }
 0x42c   : > { %v8548_v59 = vunpack.i.h.bf16 %v8042_v57  ;;  %v8554_v26 = vunpack.i.l.bf16 %v8042_v57  ;;  %v5727_v15 = vunpack.i.l.bf16 %v8044_v42  ;;  %v8557_v7 = vunpack.i.h.bf16 %v8044_v42 }
 0x42e   : > { %v8054_v16 = vsel %vm1382_vm10, %v8554_v26, %v8548_v59  ;;  %v4354_v35 = vsel %vm220_vm2, %v5598_v39, %v5727_v15  ;;  %v4636_v26 = vsel %vm762_vm6, %v8605_v37, %v5623_v28 }
 0x42f   : > { %v8061_v30 = vpop.permute.xlu0 %5730  ;;  %v4389_v51 = vmax.f32 %v7559_v45, %v4354_v35  ;;  %v8078_v45 = vpop.permute.xlu1 %5740 }
 0x430   : > { %v5732_v40 = vunpack.i.l.bf16 %v8061_v30  ;;  %v8564_v47 = vunpack.i.h.bf16 %v8061_v30 }
 0x432   : > { %v4443_v59 = vsel %vm8603_vm13, %v5603_v29, %v5732_v40  ;;  %v5643_v29 = vunpack.i.h.bf16 %v7866_v4  ;;  %v4444_v63 = vsel %vm8607_vm14, %v5732_v40, %v8564_v47  ;;  %v8610_v40 = vunpack.i.l.bf16 %v7877_v3 }
 0x433   : > { %v4478_v39 = vmax.f32 %v4389_v51, %v4443_v59  ;;  %v8071_v17 = vpop.permute.xlu0 %5735  ;;  %v4355_v59 = vsel %vm220_vm2, %v5727_v15, %v8557_v7  ;;  %v8608_v15 = vunpack.i.l.bf16 %v7866_v4  ;;  %v5718_v47 = vunpack.i.h.bf16 %v8021_v36 }
 0x435   : > { %v4577_v35 = vmax.f32 %v4478_v39, %v4541_v18  ;;  %v4390_v18 = vmax.f32 %v7563_v55, %v4355_v59  ;;  %v8113_v55 = vsel %vm1382_vm10, %v8610_v40, %v5653_v46 }
 0x436   : > { %8611 = vst [vmem:[#allocation7_spill] sm:$0xff] %v8113_v55 }
 0x437   : > { %v4672_v27 = vmax.f32 %v4577_v35, %v4636_v26  ;;  %v8087_v51 = vpop.permute.xlu0 %5745  ;;  %v4826_v26 = vsel %vm1293_vm9, %v8608_v15, %v5643_v29  ;;  %v8101_v35 = vpop.permute.xlu1 %5750  ;;  %v4479_v49 = vmax.f32 %v4390_v18, %v4444_v63 }
 0x438   : > { %v8563_v37 = vunpack.i.l.bf16 %v8087_v51 }
 0x439   : > { %v4767_v39 = vmax.f32 %v4672_v27, %v4731_v38 }
 0x43a   : > { %v4542_v10 = vsel %vm673_vm5, %v5613_v33, %v8563_v37  ;;  %v5647_v37 = vunpack.i.l.bf16 %v7882_v6 }
 0x43b   : > { %v8106_v7 = vpop.permute.xlu0 %5755  ;;  %v8108_v9 = vmax.f32 %v4767_v39, %v4826_v26  ;;  %v4578_v38 = vmax.f32 %v4479_v49, %v4542_v10  ;;  %v8123_v18 = vpop.permute.xlu1 %5760 }
 0x43c   : > { %v8562_v4 = vunpack.i.l.bf16 %v8106_v7 }
 0x43d   : > { %8609 = vst [vmem:[#allocation6_spill] sm:$0xff] %v8108_v9  ;;  %v8613_v9 = vunpack.i.h.bf16 %v7841_v0 }
 0x43e   : > { %v4637_v33 = vsel %vm762_vm6, %v5623_v28, %v8562_v4 }
 0x43f   : > { %v4673_v27 = vmax.f32 %v4578_v38, %v4637_v33  ;;  %v8121_v63 = vpop.permute.xlu0 %5765  ;;  %v8132_v49 = vpop.permute.xlu1 %5770 }
 0x440   : > { %v8560_v3 = vunpack.i.l.bf16 %v8121_v63 }
 0x442   : > { %v4732_v39 = vsel %vm851_vm7, %v5633_v48, %v8560_v3  ;;  %v5737_v3 = vunpack.i.l.bf16 %v8071_v17 }
 0x443   : > { %v4768_v15 = vmax.f32 %v4673_v27, %v4732_v39  ;;  %v8129_v26 = vpop.permute.xlu0 %5775  ;;  %v5698_v39 = vunpack.i.h.bf16 %v7984_v19  ;;  %v8150_v59 = vpop.permute.xlu1 %5780  ;;  %v8614_v19 = vunpack.i.l.bf16 %v8002_v5 }
 0x444   : > { %v8559_v10 = vunpack.i.l.bf16 %v8129_v26 }
 0x445   : > { %v4724_v27 = vsel %vm851_vm7, %v5697_v21, %v5698_v39  ;;  %v4725_v4 = vsel %vm851_vm7, %v5698_v39, %v5702_v52  ;;  %v8615_v52 = vunpack.i.l.bf16 %v8019_v23 }
 0x446   : > { %v4827_v28 = vsel %vm1293_vm9, %v5643_v29, %v8559_v10  ;;  %v5607_v29 = vunpack.i.l.bf16 %v7821_v14  ;;  %v8612_v10 = vunpack.i.h.bf16 %v7821_v14  ;;  %v4760_v14 = vmax.f32 %v7980_v31, %v4724_v27 }
 0x447   : > { %v8137_v40 = vmax.f32 %v4768_v15, %v4827_v28  ;;  %v8139_v38 = vpop.permute.xlu0 %5785  ;;  %v5617_v15 = vunpack.i.l.bf16 %v7841_v0  ;;  %v5708_v28 = vunpack.i.h.bf16 %v8002_v5  ;;  %v8183_v24 = vpop.permute.xlu1 %5790  ;;  %v8569_v31 = vunpack.i.h.bf16 %v8078_v45 }
 0x448   : > { %v8561_v33 = vunpack.i.l.bf16 %v8139_v38  ;;  %v8170_v55 = vsel %vm673_vm5, %v5607_v29, %v8612_v10  ;;  %v4761_v10 = vmax.f32 %v7998_v41, %v4725_v4  ;;  %v8616_v29 = vunpack.i.h.bf16 %v8044_v42 }
 0x449   : > { %v8175_v12 = vsel %vm762_vm6, %v5617_v15, %v8613_v9  ;;  %v4819_v21 = vsel %vm1293_vm9, %v8614_v19, %v5708_v28  ;;  %v4820_v39 = vsel %vm1293_vm9, %v5708_v28, %v8615_v52  ;;  %v8617_v9 = vunpack.i.h.bf16 %v8071_v17 }
 0x44a   : > { %v8145_v48 = vsel %vm1382_vm10, %v5653_v46, %v8561_v33  ;;  %v5627_v46 = vunpack.i.l.bf16 %v7856_v58  ;;  %v5637_v33 = vunpack.i.l.bf16 %v7869_v43  ;;  %v4356_v0 = vsel %vm220_vm2, %v8616_v29, %v5737_v3 }
 0x44b   : > { %v4357_v5 = vsel %vm220_vm2, %v5737_v3, %v8617_v9  ;;  %v8618_v15 = vunpack.i.h.bf16 %v7856_v58  ;;  %v8619_v28 = vunpack.i.h.bf16 %v7869_v43  ;;  %v5742_v41 = vunpack.i.l.bf16 %v8078_v45 }
 0x44c   : > { %v8620_v42 = vunpack.i.h.bf16 %v7882_v6  ;;  %v8210_v3 = vmax.f32 %v4760_v14, %v4819_v21  ;;  %v8212_v58 = vmax.f32 %v4761_v10, %v4820_v39  ;;  %v8621_v27 = vunpack.i.l.bf16 %v8021_v36 }
 0x44d   : > { %v8196_v19 = vsel %vm851_vm7, %v5627_v46, %v8618_v15  ;;  %v8201_v52 = vsel %vm1293_vm9, %v5637_v33, %v8619_v28  ;;  %v8622_v33 = vunpack.i.l.bf16 %v8042_v57  ;;  %v4391_v29 = vmax.f32 %v7656_v62, %v4356_v0 }
 0x44e   : > { %v8208_v4 = vsel %vm1382_vm10, %v5647_v37, %v8620_v42  ;;  %v8217_v43 = vsel %vm1382_vm10, %v8621_v27, %v5718_v47  ;;  %v4392_v6 = vmax.f32 %v7659_v32, %v4357_v5  ;;  %v5748_v37 = vunpack.i.h.bf16 %v8087_v51 }
 0x44f   : > { %v8222_v46 = vsel %vm1382_vm10, %v5718_v47, %v8622_v33  ;;  %v8623_v47 = vunpack.i.h.bf16 %v8061_v30  ;;  %v4446_v32 = vsel %vm8625_vm4, %v5742_v41, %v8569_v31  ;;  %v5752_v5 = vunpack.i.l.bf16 %v8101_v35 }
 0x450   : > { %v5762_v28 = vunpack.i.l.bf16 %v8123_v18  ;;  %v8626_v42 = vunpack.i.l.bf16 %v7796_v1  ;;  %v8627_v30 = vunpack.i.h.bf16 %v7939_v25  ;;  %v4481_v15 = vmax.f32 %v4392_v6, %v4446_v32 }
 0x451   : > { %v4445_v62 = vsel %vm8624_vm15, %v8623_v47, %v5742_v41  ;;  %v5758_v47 = vunpack.i.h.bf16 %v8106_v7  ;;  %v8628_v14 = vunpack.i.l.bf16 %v8087_v51  ;;  %v4950_v51 = vmax.f32 %v8210_v3, %v8217_v43 }
 0x453   : > { %v4543_v1 = vsel %vm673_vm5, %v8628_v14, %v5748_v37 }
 0x456   : > { %v8227_v21 = vpop.permute.xlu0 %5800  ;;  %v8229_v39 = vpop.permute.xlu1 %5795 }
 0x457   : > { %v5803_v36 = vunpack.i.h.bf16 %v8227_v21  ;;  %v5798_v10 = vunpack.i.h.bf16 %v8229_v39  ;;  %v5797_v9 = vunpack.i.l.bf16 %v8229_v39  ;;  %v4480_v39 = vmax.f32 %v4391_v29, %v4445_v62 }
 0x458   : > { %v8631_v29 = vunpack.i.h.bf16 %v7941_v54  ;;  %v5772_v54 = vunpack.i.l.bf16 %v8132_v49 }
 0x459   : > { %v4352_v27 = vsel %vm220_vm2, %v5798_v10, %v8626_v42  ;;  %v4351_v33 = vsel %vm220_vm2, %v8627_v30, %v5797_v9  ;;  %v8629_v10 = vunpack.i.l.bf16 %v7792_v2  ;;  %v8630_v42 = vunpack.i.l.bf16 %v8227_v21 }
 0x45a   : > { %v4387_v41 = vmax.f32 %v7586_v22, %v4352_v27  ;;  %v4385_v31 = vmax.f32 %v7644_v13, %v4351_v33  ;;  %v8254_v0 = vpop.permute.xlu0 %5840  ;;  %v4544_v22 = vsel %vm673_vm5, %v5748_v37, %v5752_v5  ;;  %v5768_v13 = vunpack.i.h.bf16 %v8121_v63 }
 0x45b   : > { %v4441_v25 = vsel %vm8599_vm1, %v5803_v36, %v8629_v10  ;;  %v4440_v62 = vsel %vm8632_vm3, %v8631_v29, %v8630_v42  ;;  %v8633_v36 = vunpack.i.h.bf16 %v8101_v35  ;;  %v8634_v37 = vunpack.i.l.bf16 %v8106_v7 }
 0x45c   : > { %v4476_v27 = vmax.f32 %v4387_v41, %v4441_v25  ;;  %v4474_v6 = vmax.f32 %v4385_v31, %v4440_v62  ;;  %v4639_v31 = vsel %vm762_vm6, %v5758_v47, %v5762_v28  ;;  %v4579_v25 = vmax.f32 %v4480_v39, %v4543_v1 }
 0x45d   : > { %v8276_v14 = vsel %vm673_vm5, %v5752_v5, %v8633_v36  ;;  %v5806_v32 = vpop.permute.xlu1 %5805  ;;  %v4638_v30 = vsel %vm762_vm6, %v8634_v37, %v5758_v47  ;;  %v4580_v42 = vmax.f32 %v4481_v15, %v4544_v22  ;;  %v8635_v29 = vunpack.i.h.bf16 %v8123_v18 }
 0x45e   : > { %v4575_v33 = vmax.f32 %v4476_v27, %v8170_v55  ;;  %v5807_v41 = vunpack.i.l.bf16 %v5806_v32  ;;  %v8284_v10 = vpop.permute.xlu0 %5850  ;;  %v5778_v62 = vunpack.i.h.bf16 %v8129_v26  ;;  %v8636_v7 = vunpack.i.l.bf16 %v8121_v63 }
 0x45f   : > { %v8289_v5 = vsel %vm762_vm6, %v5762_v28, %v8635_v29  ;;  %v4734_v47 = vsel %vm851_vm7, %v5768_v13, %v5772_v54  ;;  %v8637_v27 = vunpack.i.h.bf16 %v7968_v56  ;;  %v4674_v15 = vmax.f32 %v4579_v25, %v4638_v30 }
 0x460   : > { %v4733_v36 = vsel %vm851_vm7, %v8636_v7, %v5768_v13  ;;  %v4670_v55 = vmax.f32 %v4575_v33, %v8175_v12  ;;  %v4675_v1 = vmax.f32 %v4580_v42, %v4639_v31  ;;  %v5773_v22 = vunpack.i.h.bf16 %v8132_v49 }
 0x461   : > { %v4537_v39 = vsel %vm673_vm5, %v8637_v27, %v5807_v41  ;;  %v5811_v37 = vpop.permute.xlu1 %5810  ;;  %v8573_v29 = vunpack.i.h.bf16 %v8150_v59  ;;  %v5782_v63 = vunpack.i.l.bf16 %v8150_v59  ;;  %v4769_v12 = vmax.f32 %v4674_v15, %v4733_v36 }
 0x462   : > { %v4573_v28 = vmax.f32 %v4474_v6, %v4537_v39  ;;  %v4765_v7 = vmax.f32 %v4670_v55, %v8196_v19  ;;  %v5812_v2 = vunpack.i.l.bf16 %v5811_v37  ;;  %v8304_v13 = vpop.permute.xlu0 %5860  ;;  %v4770_v33 = vmax.f32 %v4675_v1, %v4734_v47 }
 0x463   : > { %v8638_v56 = vunpack.i.l.bf16 %v8129_v26  ;;  %v5788_v31 = vunpack.i.h.bf16 %v8139_v38  ;;  %v4829_v6 = vsel %vm1293_vm9, %v5778_v62, %v5782_v63  ;;  %v5808_v25 = vunpack.i.h.bf16 %v5806_v32 }
 0x464   : > { %v4860_v42 = vmax.f32 %v4765_v7, %v8201_v52  ;;  %v8639_v27 = vunpack.i.h.bf16 %v7982_v34  ;;  %v5792_v55 = vunpack.i.l.bf16 %v8183_v24  ;;  %v4386_v36 = vmax.f32 %v7896_v61, %v5797_v9 }
 0x465   : > { %v4828_v30 = vsel %vm1293_vm9, %v8638_v56, %v5778_v62  ;;  %v8572_v47 = vunpack.i.h.bf16 %v8254_v0  ;;  %v5816_v39 = vpop.permute.xlu1 %5815  ;;  %v5842_v15 = vunpack.i.l.bf16 %v8254_v0  ;;  %v5813_v62 = vunpack.i.h.bf16 %v5811_v37 }
 0x466   : > { %v4632_v19 = vsel %vm762_vm6, %v8639_v27, %v5812_v2  ;;  %v4955_v1 = vmax.f32 %v4860_v42, %v8208_v4  ;;  %v5817_v32 = vunpack.i.l.bf16 %v5816_v39  ;;  %v8320_v56 = vpop.permute.xlu0 %5865  ;;  %v8322_v52 = vmax.f32 %v4769_v12, %v4828_v30 }
 0x467   : > { %v4668_v26 = vmax.f32 %v4573_v28, %v4632_v19  ;;  %v8324_v34 = vmax.f32 %v4770_v33, %v4829_v6  ;;  %v8571_v7 = vunpack.i.h.bf16 %v8183_v24  ;;  %v8640_v61 = vunpack.i.l.bf16 %v8139_v38 }
 0x468   : > { %v8333_v28 = vsel %vm1382_vm10, %v5788_v31, %v5792_v55  ;;  %v4538_v4 = vsel %vm673_vm5, %v5807_v41, %v5808_v25  ;;  %v5818_v37 = vunpack.i.h.bf16 %v5816_v39  ;;  %v8641_v42 = vunpack.i.h.bf16 %v8000_v60 }
 0x469   : > { %v8330_v9 = vsel %vm1382_vm10, %v8640_v61, %v5788_v31  ;;  %v8642_v33 = vunpack.i.l.bf16 %v8227_v21  ;;  %v8570_v6 = vunpack.i.h.bf16 %v8284_v10  ;;  %v5852_v38 = vunpack.i.l.bf16 %v8284_v10  ;;  %v5821_v19 = vpop.permute.xlu1 %5820 }
 0x46a   : > { %v4727_v12 = vsel %vm851_vm7, %v8641_v42, %v5817_v32  ;;  %v5011_v41 = vsel %vm1471_vm11, %v5842_v15, %v8572_v47  ;;  %v4633_v31 = vsel %vm762_vm6, %v5812_v2, %v5813_v62  ;;  %v5823_v60 = vunpack.i.h.bf16 %v5821_v19  ;;  %v5871_v39 = vpop.permute.xlu0 %5870 }
 0x46b   : > { %v4475_v30 = vmax.f32 %v4386_v36, %v8642_v33  ;;  %v4763_v27 = vmax.f32 %v4668_v26, %v4727_v12  ;;  %v5822_v25 = vunpack.i.l.bf16 %v5821_v19  ;;  %v8352_v21 = vsel %vm851_vm7, %v5772_v54, %v5773_v22 }
 0x46c   : > { %v8357_v36 = vsel %vm1293_vm9, %v5782_v63, %v8573_v29  ;;  %v8362_v26 = vsel %vm1382_vm10, %v5792_v55, %v8571_v7  ;;  %v4728_v54 = vsel %vm851_vm7, %v5817_v32, %v5818_v37  ;;  %v8643_v42 = vunpack.i.h.bf16 %v8019_v23 }
 0x46d   : > { %v4574_v61 = vmax.f32 %v4475_v30, %v4538_v4  ;;  %v8644_v63 = vmax.f32 %v8038_v11, %v8054_v16  ;;  %v5014_v55 = vsel %vm1471_vm11, %v5852_v38, %v8570_v6  ;;  %v5826_v19 = vpop.permute.xlu1 %5825  ;;  %v5867_v62 = vunpack.i.l.bf16 %v8320_v56 }
 0x46e   : > { %v4822_v12 = vsel %vm1293_vm9, %v8643_v42, %v5822_v25  ;;  %v4823_v32 = vsel %vm1293_vm9, %v5822_v25, %v5823_v60  ;;  %v5828_v23 = vunpack.i.h.bf16 %v5826_v19  ;;  %v5827_v37 = vunpack.i.l.bf16 %v5826_v19  ;;  %v5876_v42 = vpop.permute.xlu0 %5875 }
 0x46f   : > { %v8375_v33 = vmax.f32 %v8644_v63, %v5011_v41  ;;  %v4669_v4 = vmax.f32 %v4574_v61, %v4633_v31  ;;  %v8380_v30 = vmax.f32 %v4763_v27, %v4822_v12  ;;  %v5868_v11 = vunpack.i.h.bf16 %v8320_v56 }
 0x470   : > { %v5873_v16 = vunpack.i.h.bf16 %v5871_v39  ;;  %v5872_v41 = vunpack.i.l.bf16 %v5871_v39  ;;  %v8645_v38 = vunpack.i.h.bf16 %v8042_v57  ;;  %v8392_v31 = vsel %vm1382_vm10, %v5827_v37, %v5828_v23 }
 0x471   : > { %v4764_v2 = vmax.f32 %v4669_v4, %v4728_v54  ;;  %v5877_v61 = vunpack.i.l.bf16 %v5876_v42  ;;  %v5878_v54 = vunpack.i.h.bf16 %v5876_v42  ;;  %v5831_v39 = vpop.permute.xlu1 %5830  ;;  %v8399_v12 = vmax.f32 %v4955_v1, %v5014_v55 }
 0x472   : > { %v8389_v27 = vsel %vm1382_vm10, %v8645_v38, %v5827_v37  ;;  %v8646_v57 = vunpack.i.h.bf16 %v8078_v45  ;;  %v5833_v19 = vunpack.i.h.bf16 %v5831_v39  ;;  %v5832_v38 = vunpack.i.l.bf16 %v5831_v39  ;;  %v5881_v23 = vpop.permute.xlu0 %5880 }
 0x473   : > { %v8395_v25 = vmax.f32 %v4764_v2, %v4823_v32  ;;  %v4448_v37 = vsel %vm8648_vm12, %v5867_v62, %v5868_v11  ;;  %v8649_v63 = vunpack.i.h.bf16 %v8101_v35  ;;  %v4547_v32 = vsel %vm673_vm5, %v5872_v41, %v5873_v16  ;;  %v5990_v16 = vld [vmem:[#allocation3 + $0x88] sm:$0xff] }
 0x474   : > { %v4447_v4 = vsel %vm8647_vm8, %v8646_v57, %v5867_v62  ;;  %v8650_v1 = vunpack.i.h.bf16 %v8123_v18  ;;  %v4395_v55 = vmax.f32 %v7900_v53, %v5833_v19  ;;  %v8651_v39 = vunpack.i.h.bf16 %v8071_v17 }
 0x475   : > { %v4546_v2 = vsel %vm673_vm5, %v8649_v63, %v5872_v41  ;;  %v4954_v42 = vmax.f32 %v8395_v25, %v8392_v31  ;;  %v4359_v62 = vsel %vm220_vm2, %v5832_v38, %v5833_v19  ;;  %v4642_v35 = vsel %vm762_vm6, %v5877_v61, %v5878_v54  ;;  %v5989_v63 = vld [vmem:[#allocation3 + $0x80] sm:$0xff]  ;;  %v5836_v31 = vpop.permute.xlu1 %5835 }
 0x476   : > { %v4641_v45 = vsel %vm762_vm6, %v8650_v1, %v5877_v61  ;;  %v4358_v57 = vsel %vm220_vm2, %v8651_v39, %v5832_v38  ;;  %v4394_v41 = vmax.f32 %v5990_v16, %v4359_v62  ;;  %v5883_v7 = vunpack.i.h.bf16 %v5881_v23  ;;  %v5886_v56 = vpop.permute.xlu0 %5885 }
 0x477   : > { %v4393_v6 = vmax.f32 %v5989_v63, %v4358_v57  ;;  %v4484_v25 = vmax.f32 %v4395_v55, %v5868_v11  ;;  %v5882_v18 = vunpack.i.l.bf16 %v5881_v23  ;;  %v5838_v60 = vunpack.i.h.bf16 %v5836_v31 }
 0x478   : > { %v5837_v1 = vunpack.i.l.bf16 %v5836_v31  ;;  %v4483_v47 = vmax.f32 %v4394_v41, %v4448_v37  ;;  %v5888_v17 = vunpack.i.h.bf16 %v5886_v56  ;;  %v5887_v29 = vunpack.i.l.bf16 %v5886_v56 }
 0x479   : > { %v4482_v53 = vmax.f32 %v4393_v6, %v4447_v4  ;;  %v4583_v39 = vmax.f32 %v4484_v25, %v4547_v32  ;;  %v5010_v61 = vsel %vm1471_vm11, %v5838_v60, %v5842_v15  ;;  %v8652_v54 = vunpack.i.h.bf16 %v7778_v20  ;;  %v5846_v37 = vpop.permute.xlu1 %5845 }
 0x47a   : > { %v5009_v38 = vsel %vm1471_vm11, %v5837_v1, %v5838_v60  ;;  %v4582_v23 = vmax.f32 %v4483_v47, %v4546_v2  ;;  %v8653_v6 = vmax.f32 %v8017_v8, %v8036_v50  ;;  %v4736_v20 = vsel %vm851_vm7, %v5773_v22, %v5882_v18  ;;  %v5891_v8 = vpop.permute.xlu0 %5890 }
 0x47b   : > { %v5008_v19 = vsel %vm1471_vm11, %v8652_v54, %v5837_v1  ;;  %v4581_v11 = vmax.f32 %v4482_v53, %v8276_v14  ;;  %v5045_v56 = vmax.f32 %v4950_v51, %v5009_v38  ;;  %v4678_v15 = vmax.f32 %v4583_v39, %v4642_v35 }
 0x47c   : > { %v5044_v4 = vmax.f32 %v8653_v6, %v5008_v19  ;;  %v4737_v60 = vsel %vm851_vm7, %v5882_v18, %v5883_v7  ;;  %v8654_v14 = vmax.f32 %v8212_v58, %v8222_v46  ;;  %v4677_v2 = vmax.f32 %v4582_v23, %v4641_v45 }
 0x47d   : > { %v4676_v50 = vmax.f32 %v4581_v11, %v8289_v5  ;;  %v5848_v43 = vunpack.i.h.bf16 %v5846_v37  ;;  %v4773_v51 = vmax.f32 %v4678_v15, %v4737_v60  ;;  %v5847_v55 = vunpack.i.l.bf16 %v5846_v37  ;;  %v5856_v62 = vpop.permute.xlu1 %5855  ;;  %v8665_v37 = vld [vmem:[#allocation6_spill] sm:$0xff]  ;;  %v8666_v15 = vld [vmem:[#allocation7_spill] sm:$0xff] }
 0x47e   : > { %v5046_v47 = vmax.f32 %v8654_v14, %v5010_v61  ;;  %v5439_v3 = vpack.c.bf16 %v5044_v4, %v7794_v44  ;;  %v5893_v49 = vunpack.i.h.bf16 %v5891_v8  ;;  %v4772_v57 = vmax.f32 %v4677_v2, %v4736_v20  ;;  %v5901_v16 = vpop.permute.xlu0 %5900 }
 0x47f   : > { %v8655_v22 = vunpack.i.h.bf16 %v8150_v59  ;;  %v4832_v58 = vsel %vm1293_vm9, %v5887_v29, %v5888_v17  ;;  %v5892_v46 = vunpack.i.l.bf16 %v5891_v8  ;;  %v8656_v45 = vunpack.i.h.bf16 %v8254_v0 }
 0x480   : > { %v5440_v32 = vpack.c.bf16 %v5046_v47, %v5045_v56  ;;  %5116 = vst [vmem:[%s7805_s16 + $0x8] sm:$0xff] %v5439_v3  ;;  %v4868_v5 = vmax.f32 %v4773_v51, %v4832_v58  ;;  %v5013_v35 = vsel %vm1471_vm11, %v5847_v55, %v5848_v43  ;;  %v5858_v63 = vunpack.i.h.bf16 %v5856_v62 }
 0x481   : > { %v4831_v7 = vsel %vm1293_vm9, %v8655_v22, %v5887_v29  ;;  %v5012_v44 = vsel %vm1471_vm11, %v8656_v45, %v5847_v55  ;;  %v8657_v59 = vmax.f32 %v8380_v30, %v8389_v27  ;;  %v5049_v25 = vmax.f32 %v4954_v42, %v5013_v35  ;;  %v5896_v42 = vpop.permute.xlu1 %5895 }
 0x482   : > { %5117 = vst [vmem:[%s7805_s16 + $0x10] sm:$0xff] %v5440_v32  ;;  %v4867_v41 = vmax.f32 %v4772_v57, %v4831_v7  ;;  %v4771_v29 = vmax.f32 %v4676_v50, %v8352_v21  ;;  %v4927_v18 = vsel %vm1382_vm10, %v5892_v46, %v5893_v49  ;;  %v8658_v0 = vunpack.i.l.bf16 %v8304_v13 }
 0x483   : > { %v5048_v31 = vmax.f32 %v8657_v59, %v5012_v44  ;;  %v5857_v53 = vunpack.i.l.bf16 %v5856_v62  ;;  %v5903_v17 = vunpack.i.h.bf16 %v5901_v16  ;;  %v5442_v61 = vpack.c.bf16 %v5049_v25, %v5049_v25 }
 0x484   : > { %v5017_v1 = vsel %vm1471_vm11, %v5858_v63, %v8658_v0  ;;  %v8659_v54 = vunpack.i.h.bf16 %v8183_v24  ;;  %v4963_v27 = vmax.f32 %v4868_v5, %v4927_v18  ;;  %v8660_v19 = vunpack.i.h.bf16 %v8284_v10  ;;  %v8663_v24 = vld [vmem:[#allocation5_spill] sm:$0xff] }
 0x485   : > { %v5441_v39 = vpack.c.bf16 %v5048_v31, %v8375_v33  ;;  %v5016_v38 = vsel %vm1471_vm11, %v5857_v53, %v5858_v63  ;;  %v8661_v11 = vmax.f32 %v8137_v40, %v8145_v48  ;;  %v5902_v6 = vunpack.i.l.bf16 %v5901_v16  ;;  %5119 = vst.msk [vmem:[%s7805_s16 + $0x20] sm:$0xf] %vm181_vm0, %v5442_v61  ;;  %v8662_v33 = vld [vmem:[#allocation4_spill] sm:$0xff] }
 0x486   : > { %v4926_v30 = vsel %vm1382_vm10, %v8659_v54, %v5892_v46  ;;  %v5015_v21 = vsel %vm1471_vm11, %v8660_v19, %v5857_v53  ;;  %v8664_v4 = vmax.f32 %v8662_v33, %v8663_v24  ;;  %v8667_v20 = vmax.f32 %v8665_v37, %v8666_v15 }
 0x487   : > { %v5053_v23 = vmax.f32 %v8661_v11, %v5017_v1  ;;  %5118 = vst [vmem:[%s7805_s16 + $0x18] sm:$0xff] %v5441_v39  ;;  %v5898_v60 = vunpack.i.h.bf16 %v5896_v42  ;;  %v5897_v14 = vunpack.i.l.bf16 %v5896_v42  ;;  %v8668_v47 = vunpack.i.h.bf16 %v8304_v13 }
 0x488   : > { %v5051_v56 = vmax.f32 %v8664_v4, %v5015_v21  ;;  %v5052_v10 = vmax.f32 %v8667_v20, %v5016_v38  ;;  %v8669_v40 = vmov %v8658_v0  ;;  %v4962_v8 = vmax.f32 %v4867_v41, %v4926_v30 }
 0x489   : > { %v5018_v48 = vsel %vm1471_vm11, %v8669_v40, %v8668_v47  ;;  %v5022_v50 = vsel %vm1471_vm11, %v5902_v6, %v5903_v17  ;;  %v4866_v2 = vmax.f32 %v4771_v29, %v8357_v36  ;;  %v5021_v32 = vsel %vm1471_vm11, %v5898_v60, %v5902_v6 }
 0x48a   : > { %v5443_v3 = vpack.c.bf16 %v5051_v56, %v8399_v12  ;;  %v5444_v43 = vpack.c.bf16 %v5053_v23, %v5052_v10  ;;  %v5058_v51 = vmax.f32 %v4963_v27, %v5022_v50  ;;  %v8670_v49 = vmov %v8668_v47 }
 0x48b   : > { %v4961_v55 = vmax.f32 %v4866_v2, %v8362_v26  ;;  %v5019_v57 = vsel %vm1471_vm11, %v8670_v49, %v5897_v14  ;;  %v5020_v22 = vsel %vm1471_vm11, %v5897_v14, %v5898_v60  ;;  %v5057_v7 = vmax.f32 %v4962_v8, %v5021_v32 }
 0x48c   : > { %v8671_v36 = vmax.f32 %v8322_v52, %v8330_v9  ;;  %5120 = vst [vmem:[%s7805_s16 + $0x24] sm:$0xff] %v5443_v3  ;;  %5121 = vst [vmem:[%s7805_s16 + $0x2c] sm:$0xff] %v5444_v43  ;;  %v5447_v12 = vpack.c.bf16 %v5058_v51, %v5058_v51  ;;  %v8672_v46 = vmax.f32 %v8324_v34, %v8333_v28 }
 0x48d   : > { %v5056_v5 = vmax.f32 %v4961_v55, %v5020_v22 }
 0x48e   : > { %v5054_v58 = vmax.f32 %v8671_v36, %v5018_v48  ;;  %v5055_v62 = vmax.f32 %v8672_v46, %v5019_v57  ;;  %5124 = vst.msk [vmem:[%s7805_s16 + $0x44] sm:$0xf] %vm181_vm0, %v5447_v12 }
 0x48f   : > { %v5446_v26 = vpack.c.bf16 %v5057_v7, %v5056_v5 }
 0x490   : > { %v5445_v13 = vpack.c.bf16 %v5055_v62, %v5054_v58 }
 0x491   : > { %5123 = vst [vmem:[%s7805_s16 + $0x3c] sm:$0xff] %v5446_v26 }
 0x492   : > { %5122 = vst [vmem:[%s7805_s16 + $0x34] sm:$0xff] %v5445_v13 }
 0x493 PF: > { %s13_s12 = sadd.s32 1, %s5997_s12  }
 0x494   : > { %p10_p4 = scmp.ge.s32.totalorder %s13_s12, 4  }
 0x496   :  { %12 = sbr.rel (!%p10_p4) target bundleno = 1 (0x1), region = 62 }

// kernel: resnet_forward.8
= control target key start
LH: loop header
LB: loop body
LE: loop exit
PB: predicated region body
PF: predicated region fallthrough
CT: control target
= control target key end

     0   :  { %s2079_s24 = smov 0   ;;  %s2402_s0 = inlined_call_operand.vmem [shape: bf16[2,128,64], index: 0, kind: input, shape index: {}]   ;;  %s2403_s1 = inlined_call_operand.vmem [shape: bf16[16,128], index: 1, kind: input, shape index: {}]   ;;  %s2404_s2 = inlined_call_operand.vmem [shape: bf16[16,144], index: 2, kind: input, shape index: {}]   ;;  %s2405_s3 = inlined_call_operand.vmem [shape: bf16[256,16], index: 3, kind: input, shape index: {}]   ;;  %s2406_s4 = inlined_call_operand.vmem [shape: bf16[2,16], index: 4, kind: input, shape index: {}]   ;;  %s2407_s5 = inlined_call_operand.vmem [shape: bf16[256,128], index: 5, kind: input, shape index: {}]   ;;  %s2408_s6 = inlined_call_operand.vmem [shape: bf16[64,16], index: 6, kind: input, shape index: {}]   ;;  %s2409_s7 = inlined_call_operand.vmem [shape: bf16[2,256,16], index: 7, kind: output, shape index: {}]  }
   0x1 LB: > { %s1572_s25 = sadd.s32 4294967295, %s2020_s24   ;;  %p1576_p0 = scmp.ge.s32.totalorder %s2020_s24, 1  ;;  %s2020_s24 = sphi %s2079_s24, %s17_s24  }
   0x2   : > { %p237_p1 = scmp.lt.s32.totalorder %s2020_s24, 3 }
   0x4   : > { %p238_p2 = pnand %p1576_p0, %p237_p1 }
   0x5   : > { %v1966_v0 = vld [vmem:[%s2408_s6] sm:$0xff] (!%p238_p2)   ;;  %p269_p3 = scmp.lt.s32.totalorder (!%p238_p2), %s1572_s25, 1  ;;  %v1967_v1 = vld [vmem:[%s2408_s6 + $0x8] sm:$0xff] (!%p238_p2)   ;;  %v1968_v2 = vld [vmem:[%s2408_s6 + $0x10] sm:$0xff] (!%p238_p2)   ;;  %vm368_vm0 = vcmask (!%p238_p2), 523264   ;;  %v2022_v12 = vmov (!%p238_p2), 0.0   ;;  %v563_v38 = vlaneseq (!%p238_p2) }
   0x6   : > { %241 = sbr.rel (%p238_p2) target bundleno = 1265 (0x4f1), region = 48  ;;  %1783 = vmatprep.subr.bf16.mxu0 (!%p238_p2), %v1966_v0  ;;  %v1969_v4 = vld [vmem:[%s2408_s6 + $0x18] sm:$0xff] (!%p238_p2)   ;;  %1807 = vmatprep.subr.bf16.mxu1 (!%p238_p2), %v2022_v12  ;;  %vm2023_vm1 = vmmov (!%p238_p2), 0   ;;  %v1978_v37 = vld [vmem:[%s2403_s1] sm:$0xff] (!%p238_p2)   ;;  %s2024_s19 = smov (!%p238_p2), 4   ;;  %vm550_vm2 = vcmask (!%p238_p2), 211968  }
   0x7   : > { %1784 = vmatpush3.bf16.msra.mxu0 (!%p238_p2), %v1966_v0  ;;  %1823 = vmatprep.mubr.msk.bf16.mxu1 (!%p238_p2), %vm2023_vm1, %v2022_v12  ;;  %v564_v39 = vshrl.u32 (!%p238_p2), %v563_v38, 7  ;;  %v558_v40 = vld [vmem:[%s2406_s4] sm:$0x1] (!%p238_p2)  ;;  %s2025_s20 = smov (!%p238_p2), 6   ;;  %s2026_s21 = smov (!%p238_p2), 10   ;;  %v2027_v47 = vmov (!%p238_p2), 0  }
   0x8   : > { %1785 = vmatprep.subr.bf16.mxu0 (!%p238_p2), %v1967_v1  ;;  %v561_v41 = vpack.i.b16 (!%p238_p2), %v558_v40, %v558_v40  ;;  %v577_v44 = vshrl.u32 (!%p238_p2), %v558_v40, 16  ;;  %551 = vst.msk [vmem:[#allocation2] sm:$0xff] (!%p238_p2), %vm550_vm2, %v2027_v47  ;;  %s2028_s22 = smov (!%p238_p2), 5   ;;  %s2029_s23 = smov (!%p238_p2), 2   ;;  %vm556_vm3 = vcmask (!%p238_p2), 171048   ;;  %vm568_vm4 = vcmask (!%p238_p2), 130048  }
   0x9   : > { %v565_v42 = vsub.s32 (!%p238_p2), 0, %v564_v39  ;;  %s2030_s26 = smov (!%p238_p2), 8   ;;  %s2031_s27 = smov (!%p238_p2), 127   ;;  %v2010_v38 = vld [vmem:[%s2407_s5 + $0x70] sm:$0xff] (!%p238_p2)   ;;  %v2012_v39 = vld [vmem:[%s2407_s5 + $0x78] sm:$0xff] (!%p238_p2)   ;;  %vm1484_vm5 = vcmask (!%p238_p2), 125952  }
   0xa   : > { %v578_v45 = vpack.i.b16 (!%p238_p2), %v577_v44, %v577_v44  ;;  %s2032_s28 = smov (!%p238_p2), 126   ;;  %s2033_s29 = smov (!%p238_p2), 124  }
   0xb   : > { %1786 = vmatpush3.bf16.msra.mxu0 (!%p238_p2), %v1967_v1  ;;  %v566_v43 = vrot.slane (!%p238_p2), %v561_v41, %v565_v42  ;;  %s2034_s30 = smov (!%p238_p2), 123   ;;  %s2035_s8 = smov (!%p238_p2), 122  }
   0xc   : > { %1787 = vmatprep.subr.bf16.mxu0 (!%p238_p2), %v1968_v2  ;;  %v583_v46 = vrot.slane (!%p238_p2), %v578_v45, %v565_v42  ;;  %s2037_s10 = smov (!%p238_p2), 119   ;;  %s2038_s11 = smov (!%p238_p2), 118  }
   0xd   : > { %s2411_s25 = smov (!%p269_p3, %s1572_s25), 1  ;;  %596 = vrot.lane.b32.xlu1 %v566_v43, %s2024_s19 }
   0xe   : > { %s1687_s9 = sshll.u32 %s2411_s25, 6  ;;  %s1688_s17 = sshll.u32 %s2411_s25, 7 }
   0xf   : > { %s273_s12 = scalar_lea.vmem %s2402_s0, %s1687_s9  ;;  %1788 = vmatpush3.bf16.msra.mxu0 %v1968_v2  ;;  %s2036_s9 = smov 120  }
  0x10   : > { %v1970_v3 = vld [vmem:[%s273_s12] sm:$0xff]   ;;  %1789 = vmatprep.subr.bf16.mxu0 %v1969_v4  ;;  %v1971_v5 = vld [vmem:[%s273_s12 + $0x8] sm:$0xff]   ;;  %v1972_v6 = vld [vmem:[%s273_s12 + $0x10] sm:$0xff]  }
  0x11   : > { %1791 = vmatprep.mubr.msk.bf16.mxu0 %vm368_vm0, %v1970_v3  ;;  %v1973_v7 = vld [vmem:[%s273_s12 + $0x18] sm:$0xff]   ;;  %v1974_v8 = vld [vmem:[%s273_s12 + $0x20] sm:$0xff]   ;;  %v1975_v9 = vld [vmem:[%s273_s12 + $0x28] sm:$0xff]   ;;  %612 = vrot.lane.b32.xlu1 %v583_v46, %s2025_s20  ;;  %s2309_s20 = scalar_lea.vmem %s2409_s7, %s1688_s17 }
  0x12   : > { %v1976_v10 = vld [vmem:[%s273_s12 + $0x30] sm:$0xff]   ;;  %v1977_v11 = vld [vmem:[%s273_s12 + $0x38] sm:$0xff]  }
  0x13   : > { %1790 = vmatpush3.bf16.msra.mxu0 %v1969_v4 }
  0x14   : > { %670 = vmatprep.subr.bf16.mxu0 %v2027_v47 }
  0x15   : > { %638 = vrot.lane.b32.xlu1 %v583_v46, %s2026_s21 }
  0x16   : > { %1792 = vmatmul.mubr.msk.bf16.vlgmr.msra.gmra.mrb[0].mxu0 %vm368_vm0, %v1971_v5  ;;  %v1981_v5 = vld [vmem:[%s2404_s2 + $0x4] ss:$8 sps:$4 sm:$0xff]  }
  0x17   : > { %1795 = vmatprep.mubr.msk.bf16.mxu0 %vm368_vm0, %v1972_v6 }
  0x1e   : > { %1796 = vmatmul.mubr.msk.bf16.gmra.mrb[4].mxu0 %vm368_vm0, %v1973_v7 }
  0x1f   : > { %1799 = vmatprep.mubr.msk.bf16.mxu0 %vm368_vm0, %v1974_v8 }
  0x26   : > { %1800 = vmatmul.mubr.msk.bf16.gmra.mrb[8].mxu0 %vm368_vm0, %v1975_v9 }
  0x27   : > { %1803 = vmatprep.mubr.msk.bf16.mxu0 %vm368_vm0, %v1976_v10 }
  0x2e   : > { %1804 = vmatmul.mubr.msk.bf16.gmra.mrb[12].mxu0 %vm368_vm0, %v1977_v11 }
  0x2f   : > { %1604 = vmatprep.mubr.msk.bf16.mxu0 %vm568_vm4, %v1981_v5 }
  0x7f   : > { %v597_v56 = vpop.permute.xlu1 %596 }
  0x83   : > { %v613_v62 = vpop.permute.xlu1 %612 }
  0x87   : > { %v639_v2 = vpop.permute.xlu1 %638 }
  0xe9   : > { %v1793_v13 = vpop.f32.mrb[0].mxu0 }
  0xea   : > { %v427_v14 = vpop.f32.mrb[1].mxu0 }
  0xeb   : > { %v1794_v15 = vpop.f32.mrb[2].mxu0 }
  0xec   : > { %v491_v16 = vpack.c.bf16 %v1794_v15, %v1793_v13  ;;  %v430_v17 = vpop.f32.mrb[3].mxu0 }
  0xed   : > { %v490_v18 = vpack.c.bf16 %v430_v17, %v427_v14 }
  0xef   : > { %1808 = vmatpush3.bf16.msra.mxu1 %v490_v18 }
  0xf0   : > { %1809 = vmatprep.subr.bf16.mxu1 %v2022_v12 }
  0xf1   : > { %v1797_v19 = vpop.f32.mrb[4].mxu0 }
  0xf2   : > { %v443_v20 = vpop.f32.mrb[5].mxu0 }
  0xf3   : > { %v1798_v21 = vpop.f32.mrb[6].mxu0  ;;  %1810 = vmatpush3.bf16.msra.mxu1 %v491_v16 }
  0xf4   : > { %v493_v22 = vpack.c.bf16 %v1798_v21, %v1797_v19  ;;  %v446_v23 = vpop.f32.mrb[7].mxu0  ;;  %1811 = vmatprep.subr.bf16.mxu1 %v2022_v12 }
  0xf5   : > { %v492_v24 = vpack.c.bf16 %v446_v23, %v443_v20  ;;  %v1982_v23 = vld [vmem:[%s2407_s5] sm:$0xff]  }
  0xf7   : > { %1812 = vmatpush3.bf16.msra.mxu1 %v492_v24 }
  0xf8   : > { %1813 = vmatprep.subr.bf16.mxu1 %v2022_v12 }
  0xf9   : > { %v1801_v25 = vpop.f32.mrb[8].mxu0 }
  0xfa   : > { %v459_v26 = vpop.f32.mrb[9].mxu0 }
  0xfb   : > { %v1802_v27 = vpop.f32.mrb[10].mxu0  ;;  %1814 = vmatpush3.bf16.msra.mxu1 %v493_v22 }
  0xfc   : > { %v495_v28 = vpack.c.bf16 %v1802_v27, %v1801_v25  ;;  %v462_v29 = vpop.f32.mrb[11].mxu0  ;;  %1815 = vmatprep.subr.bf16.mxu1 %v2022_v12  ;;  %v1983_v25 = vld [vmem:[%s2405_s3] sm:$0xff]   ;;  %v1988_v27 = vld [vmem:[%s2407_s5 + $0x18] sm:$0xff]  }
  0xfd   : > { %v494_v30 = vpack.c.bf16 %v462_v29, %v459_v26  ;;  %v1986_v26 = vld [vmem:[%s2407_s5 + $0x10] sm:$0xff]   ;;  %v1992_v29 = vld [vmem:[%s2407_s5 + $0x28] sm:$0xff]  }
  0xff   : > { %1816 = vmatpush3.bf16.msra.mxu1 %v494_v30 }
 0x100   : > { %1817 = vmatprep.subr.bf16.mxu1 %v2022_v12 }
 0x101   : > { %v1805_v31 = vpop.f32.mrb[12].mxu0 }
 0x102   : > { %v475_v32 = vpop.f32.mrb[13].mxu0 }
 0x103   : > { %v1806_v33 = vpop.f32.mrb[14].mxu0  ;;  %1818 = vmatpush3.bf16.msra.mxu1 %v495_v28 }
 0x104   : > { %v497_v34 = vpack.c.bf16 %v1806_v33, %v1805_v31  ;;  %v478_v35 = vpop.f32.mrb[15].mxu0  ;;  %1819 = vmatprep.subr.bf16.mxu1 %v2022_v12  ;;  %v1996_v31 = vld [vmem:[%s2407_s5 + $0x38] sm:$0xff]   ;;  %v2000_v33 = vld [vmem:[%s2407_s5 + $0x48] sm:$0xff]  }
 0x105   : > { %v496_v36 = vpack.c.bf16 %v478_v35, %v475_v32  ;;  %v1998_v32 = vld [vmem:[%s2407_s5 + $0x40] sm:$0xff]   ;;  %v2004_v35 = vld [vmem:[%s2407_s5 + $0x58] sm:$0xff]  }
 0x107   : > { %1820 = vmatpush3.bf16.msra.mxu1 %v496_v36 }
 0x108   : > { %1821 = vmatprep.subr.bf16.mxu1 %v2022_v12 }
 0x10b   : > { %1822 = vmatpush3.bf16.msra.mxu1 %v497_v34 }
 0x10c   : > { %1827 = vmatprep.subr.bf16.mxu1 %v490_v18 }
 0x10e   : > { %1824 = vmatmul.mubr.bf16.vlgmr.msra.gmra.mrb[0].mxu1 %v1978_v37  ;;  %v2008_v37 = vld [vmem:[%s2407_s5 + $0x68] sm:$0xff]  }
 0x10f   : > { %1828 = vmatpush3.bf16.msra.mxu1 %v490_v18  ;;  %1843 = vmatprep.mubr.bf16.mxu1 %v1982_v23 }
 0x110   : > { %1829 = vmatprep.subr.bf16.mxu1 %v491_v16 }
 0x113   : > { %1830 = vmatpush3.bf16.msra.mxu1 %v491_v16 }
 0x114   : > { %1831 = vmatprep.subr.bf16.mxu1 %v492_v24 }
 0x117   : > { %1832 = vmatpush3.bf16.msra.mxu1 %v492_v24  ;;  %v1984_v24 = vld [vmem:[%s2407_s5 + $0x8] sm:$0xff]  }
 0x118   : > { %1833 = vmatprep.subr.bf16.mxu1 %v493_v22 }
 0x11b   : > { %1834 = vmatpush3.bf16.msra.mxu1 %v493_v22  ;;  %v1979_v22 = vld [vmem:[%s2404_s2] ss:$8 sps:$4 sm:$0xff]  }
 0x11c   : > { %1835 = vmatprep.subr.bf16.mxu1 %v494_v30 }
 0x11f   : > { %1836 = vmatpush3.bf16.msra.mxu1 %v494_v30  ;;  %v1994_v30 = vld [vmem:[%s2407_s5 + $0x30] sm:$0xff]  }
 0x120   : > { %1837 = vmatprep.subr.bf16.mxu1 %v495_v28 }
 0x123   : > { %1838 = vmatpush3.bf16.msra.mxu1 %v495_v28  ;;  %v1990_v28 = vld [vmem:[%s2407_s5 + $0x20] sm:$0xff]  }
 0x124   : > { %1839 = vmatprep.subr.bf16.mxu1 %v496_v36 }
 0x127   : > { %1840 = vmatpush3.bf16.msra.mxu1 %v496_v36  ;;  %v2006_v36 = vld [vmem:[%s2407_s5 + $0x60] sm:$0xff]  }
 0x128   : > { %1841 = vmatprep.subr.bf16.mxu1 %v497_v34 }
 0x12b   : > { %1842 = vmatpush3.bf16.msra.mxu1 %v497_v34  ;;  %v2002_v34 = vld [vmem:[%s2407_s5 + $0x50] sm:$0xff]  }
 0x12e   : > { %1844 = vmatmul.mubr.bf16.vlgmr.msra.gmra.mrb[4].mxu1 %v1984_v24 }
 0x12f   : > { %1847 = vmatprep.mubr.bf16.mxu1 %v1986_v26 }
 0x136   : > { %1848 = vmatmul.mubr.bf16.gmra.mrb[8].mxu1 %v1988_v27 }
 0x137   : > { %1851 = vmatprep.mubr.bf16.mxu1 %v1990_v28 }
 0x13e   : > { %1852 = vmatmul.mubr.bf16.gmra.mrb[12].mxu1 %v1992_v29 }
 0x13f   : > { %1855 = vmatprep.mubr.bf16.mxu1 %v1994_v30 }
 0x146   : > { %1856 = vmatmul.mubr.bf16.gmra.mrb[16].mxu1 %v1996_v31 }
 0x147   : > { %1859 = vmatprep.mubr.bf16.mxu1 %v1998_v32 }
 0x14e   : > { %1860 = vmatmul.mubr.bf16.gmra.mrb[20].mxu1 %v2000_v33 }
 0x14f   : > { %1863 = vmatprep.mubr.bf16.mxu1 %v2002_v34 }
 0x156   : > { %1864 = vmatmul.mubr.bf16.gmra.mrb[24].mxu1 %v2004_v35 }
 0x157   : > { %1867 = vmatprep.mubr.bf16.mxu1 %v2006_v36 }
 0x15e   : > { %1868 = vmatmul.mubr.bf16.gmra.mrb[28].mxu1 %v2008_v37 }
 0x15f   : > { %1871 = vmatprep.mubr.bf16.mxu1 %v2010_v38 }
 0x166   : > { %1872 = vmatmul.mubr.bf16.gmra.mrb[32].mxu1 %v2012_v39 }
 0x1e1   : > { %v540_v48 = vpop.f32.mrb[0].mxu1 }
 0x1e2   : > { %v1825_v49 = vpop.f32.mrb[1].mxu1  ;;  %v547_v51 = vmax.f32 %v540_v48, 0.0  ;;  %v1987_v48 = vld [vmem:[%s2405_s3 + $0x10] sm:$0xff]  }
 0x1e3   : > { %v543_v50 = vpop.f32.mrb[2].mxu1  ;;  %v1989_v49 = vld [vmem:[%s2405_s3 + $0x18] sm:$0xff]  }
 0x1e4   : > { %v548_v52 = vmax.f32 %v543_v50, 0.0  ;;  %v1826_v53 = vpop.f32.mrb[3].mxu1  ;;  %v1991_v50 = vld [vmem:[%s2405_s3 + $0x20] sm:$0xff]  }
 0x1e5   : > { %v1997_v53 = vld [vmem:[%s2405_s3 + $0x38] sm:$0xff]  }
 0x1e6   : > { %v549_v54 = vpack.c.bf16 %v548_v52, %v547_v51  ;;  %v1993_v51 = vld [vmem:[%s2405_s3 + $0x28] sm:$0xff]   ;;  %v1995_v52 = vld [vmem:[%s2405_s3 + $0x30] sm:$0xff]  }
 0x1e8   : > { %553 = vrot.lane.b32.xlu0 %v549_v54, %s2028_s22  ;;  %v1999_v54 = vld [vmem:[%s2405_s3 + $0x40] sm:$0xff]  }
 0x1ec   : > { %585 = vrot.lane.b32.xlu0 %v583_v46, %s2029_s23 }
 0x1f0   : > { %622 = vrot.lane.b32.xlu0 %v566_v43, %s2030_s26 }
 0x25a   : > { %v554_v55 = vpop.permute.xlu0 %553 }
 0x25b   : > { %557 = vst.msk [vmem:[#allocation2] sm:$0xff] %vm556_vm3, %v554_v55  ;;  %v2001_v55 = vld [vmem:[%s2405_s3 + $0x48] sm:$0xff]  }
 0x25e   : > { %v586_v58 = vpop.permute.xlu0 %585 }
 0x262   : > { %v559_v57 = vld [vmem:[#allocation2] sm:$0xff]  ;;  %v623_v63 = vpop.permute.xlu0 %622 }
 0x263   : > { %v567_v59 = vmul.bf16 %v566_v43, %v559_v57  ;;  %v588_v60 = vmul.bf16 %v586_v58, %v559_v57  ;;  %572 = vrot.lane.b32.xlu0 %v559_v57, %s2031_s27  ;;  %v599_v61 = vmul.bf16 %v597_v56, %v559_v57  ;;  %v615_v0 = vmul.bf16 %v613_v62, %v559_v57  ;;  %v2003_v56 = vld [vmem:[%s2405_s3 + $0x50] sm:$0xff]   ;;  %v2007_v58 = vld [vmem:[%s2405_s3 + $0x60] sm:$0xff]   ;;  %v1845_v62 = vpop.f32.mrb[4].mxu1 }
 0x264   : > { %v625_v1 = vmul.bf16 %v623_v63, %v559_v57  ;;  %v641_v4 = vmul.bf16 %v639_v2, %v559_v57  ;;  %v908_v63 = vpop.f32.mrb[5].mxu1 }
 0x265   : > { %590 = vrot.lane.b32.xlu1 %v588_v60, %s2032_s28  ;;  %569 = vst.msk [vmem:[#allocation3] sm:$0xff] %vm568_vm4, %v567_v59  ;;  %v2009_v59 = vld [vmem:[%s2405_s3 + $0x68] sm:$0xff]   ;;  %v2011_v60 = vld [vmem:[%s2405_s3 + $0x70] sm:$0xff]  }
 0x267   : > { %601 = vrot.lane.b32.xlu0 %v599_v61, %s2033_s29  ;;  %v2013_v61 = vld [vmem:[%s2405_s3 + $0x78] sm:$0xff]  }
 0x269   : > { %607 = vrot.lane.b32.xlu1 %v559_v57, %s2034_s30 }
 0x26b   : > { %617 = vrot.lane.b32.xlu0 %v615_v0, %s2035_s8  ;;  %v1846_v0 = vpop.f32.mrb[6].mxu1 }
 0x26c   : > { %v649_v3 = vld [vmem:[#allocation3] sm:$0xff] }
 0x26d   : > { %671 = vmatpush1.bf16.msra.mxu0 %v649_v3  ;;  %627 = vrot.lane.b32.xlu1 %v625_v1, %s2036_s9  ;;  %v911_v1 = vpop.f32.mrb[7].mxu1 }
 0x26e   : > { %672 = vmatprep.subr.bf16.mxu0 %v2027_v47  ;;  %v1849_v2 = vpop.f32.mrb[8].mxu1 }
 0x26f   : > { %633 = vrot.lane.b32.xlu0 %v559_v57, %s2037_s10  ;;  %v2005_v57 = vld [vmem:[%s2405_s3 + $0x58] sm:$0xff]   ;;  %v924_v3 = vpop.f32.mrb[9].mxu1 }
 0x271   : > { %643 = vrot.lane.b32.xlu1 %v641_v4, %s2038_s11  ;;  %v1850_v4 = vpop.f32.mrb[10].mxu1 }
 0x272   : > { %v927_v5 = vpop.f32.mrb[11].mxu1 }
 0x2d5   : > { %v573_v6 = vpop.permute.xlu0 %572 }
 0x2d6   : > { %575 = vst.msk [vmem:[#allocation3 + $0x8] sm:$0xff] %vm568_vm4, %v573_v6  ;;  %v2257_v6 = vpop.f32.mrb[12].mxu1 }
 0x2d7   : > { %v591_v7 = vpop.permute.xlu1 %590 }
 0x2d8   : > { %593 = vst.msk [vmem:[#allocation3 + $0x10] sm:$0xff] %vm568_vm4, %v591_v7  ;;  %v2259_v7 = vpop.f32.mrb[13].mxu1 }
 0x2d9   : > { %v602_v8 = vpop.permute.xlu0 %601 }
 0x2da   : > { %604 = vst.msk [vmem:[#allocation3 + $0x18] sm:$0xff] %vm568_vm4, %v602_v8  ;;  %v2261_v8 = vpop.f32.mrb[14].mxu1 }
 0x2db   : > { %v608_v9 = vpop.permute.xlu1 %607 }
 0x2dc   : > { %610 = vst.msk [vmem:[#allocation3 + $0x20] sm:$0xff] %vm568_vm4, %v608_v9  ;;  %v2263_v9 = vpop.f32.mrb[15].mxu1 }
 0x2dd   : > { %v618_v10 = vpop.permute.xlu0 %617  ;;  %v650_v11 = vld [vmem:[#allocation3 + $0x8] sm:$0xff] }
 0x2de   : > { %620 = vst.msk [vmem:[#allocation3 + $0x28] sm:$0xff] %vm568_vm4, %v618_v10  ;;  %673 = vmatpush1.bf16.msra.mxu0 %v650_v11  ;;  %v2265_v10 = vpop.f32.mrb[16].mxu1 }
 0x2df   : > { %v628_v12 = vpop.permute.xlu1 %627  ;;  %674 = vmatprep.subr.bf16.mxu0 %v2027_v47  ;;  %v651_v14 = vld [vmem:[#allocation3 + $0x10] sm:$0xff]  ;;  %v2267_v11 = vpop.f32.mrb[17].mxu1 }
 0x2e0   : > { %630 = vst.msk [vmem:[#allocation3 + $0x30] sm:$0xff] %vm568_vm4, %v628_v12  ;;  %v2269_v12 = vpop.f32.mrb[18].mxu1 }
 0x2e1   : > { %v634_v13 = vpop.permute.xlu0 %633  ;;  %v652_v16 = vld [vmem:[#allocation3 + $0x18] sm:$0xff] }
 0x2e2   : > { %636 = vst.msk [vmem:[#allocation3 + $0x38] sm:$0xff] %vm568_vm4, %v634_v13  ;;  %675 = vmatpush1.bf16.msra.mxu0 %v651_v14  ;;  %v2271_v13 = vpop.f32.mrb[19].mxu1 }
 0x2e3   : > { %v644_v15 = vpop.permute.xlu1 %643  ;;  %676 = vmatprep.subr.bf16.mxu0 %v2027_v47  ;;  %v653_v17 = vld [vmem:[#allocation3 + $0x20] sm:$0xff]  ;;  %v2273_v14 = vpop.f32.mrb[20].mxu1 }
 0x2e4   : > { %646 = vst.msk [vmem:[#allocation3 + $0x40] sm:$0xff] %vm568_vm4, %v644_v15  ;;  %v2275_v15 = vpop.f32.mrb[21].mxu1 }
 0x2e5   : > { %v654_v18 = vld [vmem:[#allocation3 + $0x28] sm:$0xff] }
 0x2e6   : > { %677 = vmatpush1.bf16.msra.mxu0 %v652_v16  ;;  %v2277_v16 = vpop.f32.mrb[22].mxu1 }
 0x2e7   : > { %678 = vmatprep.subr.bf16.mxu0 %v2027_v47  ;;  %v655_v19 = vld [vmem:[#allocation3 + $0x30] sm:$0xff] }
 0x2e9   : > { %v656_v20 = vld [vmem:[#allocation3 + $0x38] sm:$0xff] }
 0x2ea   : > { %679 = vmatpush1.bf16.msra.mxu0 %v653_v17  ;;  %v2279_v17 = vpop.f32.mrb[23].mxu1 }
 0x2eb   : > { %680 = vmatprep.subr.bf16.mxu0 %v2027_v47  ;;  %v657_v21 = vld [vmem:[#allocation3 + $0x40] sm:$0xff] }
 0x2ee   : > { %681 = vmatpush1.bf16.msra.mxu0 %v654_v18  ;;  %v2281_v18 = vpop.f32.mrb[24].mxu1 }
 0x2ef   : > { %682 = vmatprep.subr.bf16.mxu0 %v2027_v47 }
 0x2f2   : > { %683 = vmatpush1.bf16.msra.mxu0 %v655_v19  ;;  %v2283_v19 = vpop.f32.mrb[25].mxu1 }
 0x2f3   : > { %684 = vmatprep.subr.bf16.mxu0 %v2027_v47 }
 0x2f6   : > { %685 = vmatpush1.bf16.msra.mxu0 %v656_v20  ;;  %v2285_v20 = vpop.f32.mrb[26].mxu1 }
 0x2f7   : > { %686 = vmatprep.subr.bf16.mxu0 %v2027_v47  ;;  %v1985_v47 = vld [vmem:[%s2405_s3 + $0x8] sm:$0xff]  }
 0x2fa   : > { %687 = vmatpush1.bf16.msra.mxu0 %v657_v21  ;;  %v2287_v21 = vpop.f32.mrb[27].mxu1 }
 0x2fd   : > { %703 = vmatmul.mubr.bf16.vlgmr.msra.gmra.mrb[16].mxu0 %v1979_v22  ;;  %v2289_v22 = vpop.f32.mrb[28].mxu1 }
 0x2fe   : > { %1877 = vmatprep.mubr.msk.bf16.mxu0 %vm568_vm4, %v1983_v25  ;;  %v2291_v23 = vpop.f32.mrb[29].mxu1 }
 0x2ff   : > { %v2293_v24 = vpop.f32.mrb[30].mxu1 }
 0x300   : > { %v2295_v25 = vpop.f32.mrb[31].mxu1 }
 0x301   : > { %v2297_v26 = vpop.f32.mrb[32].mxu1 }
 0x302   : > { %v2299_v27 = vpop.f32.mrb[33].mxu1 }
 0x303   : > { %v2301_v28 = vpop.f32.mrb[34].mxu1 }
 0x304   : > { %v2303_v29 = vpop.f32.mrb[35].mxu1 }
 0x3d0   : > { %v704_v40 = vpop.f32.mrb[16].mxu0 }
 0x3d1   : > { %v706_v41 = vpop.f32.mrb[17].mxu0  ;;  %v711_v43 = vmax.f32 %v704_v40, 0.0 }
 0x3d2   : > { %v707_v42 = vpop.f32.mrb[18].mxu0 }
 0x3d3   : > { %v712_v44 = vmax.f32 %v707_v42, 0.0  ;;  %v709_v45 = vpop.f32.mrb[19].mxu0 }
 0x3d5   : > { %v713_v46 = vpack.c.bf16 %v712_v44, %v711_v43 }
 0x3d7   : > { %1875 = vmatprep.subr.bf16.mxu0 %v713_v46 }
 0x3d8   : > { %1876 = vmatpush3.bf16.msra.mxu0 %v713_v46 }
 0x3db   : > { %1878 = vmatmul.mubr.msk.bf16.vlgmr.msra.gmra.mrb[20].mxu0 %vm568_vm4, %v1985_v47 }
 0x3dc   : > { %1881 = vmatprep.mubr.msk.bf16.mxu0 %vm568_vm4, %v1987_v48 }
 0x3e3   : > { %1882 = vmatmul.mubr.msk.bf16.gmra.mrb[24].mxu0 %vm568_vm4, %v1989_v49 }
 0x3e4   : > { %1885 = vmatprep.mubr.msk.bf16.mxu0 %vm568_vm4, %v1991_v50 }
 0x3eb   : > { %1886 = vmatmul.mubr.msk.bf16.gmra.mrb[28].mxu0 %vm568_vm4, %v1993_v51 }
 0x3ec   : > { %1889 = vmatprep.mubr.msk.bf16.mxu0 %vm568_vm4, %v1995_v52 }
 0x3f3   : > { %1890 = vmatmul.mubr.msk.bf16.gmra.mrb[32].mxu0 %vm568_vm4, %v1997_v53 }
 0x3f4   : > { %1893 = vmatprep.mubr.msk.bf16.mxu0 %vm568_vm4, %v1999_v54 }
 0x3fb   : > { %1894 = vmatmul.mubr.msk.bf16.gmra.mrb[36].mxu0 %vm568_vm4, %v2001_v55 }
 0x3fc   : > { %1897 = vmatprep.mubr.msk.bf16.mxu0 %vm568_vm4, %v2003_v56 }
 0x403   : > { %1898 = vmatmul.mubr.msk.bf16.gmra.mrb[40].mxu0 %vm568_vm4, %v2005_v57 }
 0x404   : > { %1901 = vmatprep.mubr.msk.bf16.mxu0 %vm568_vm4, %v2007_v58 }
 0x40b   : > { %1902 = vmatmul.mubr.msk.bf16.gmra.mrb[44].mxu0 %vm568_vm4, %v2009_v59 }
 0x40c   : > { %1905 = vmatprep.mubr.msk.bf16.mxu0 %vm568_vm4, %v2011_v60 }
 0x413   : > { %1906 = vmatmul.mubr.msk.bf16.gmra.mrb[48].mxu0 %vm568_vm4, %v2013_v61 }
 0x4ae   : > { %v1879_v30 = vpop.f32.mrb[20].mxu0 }
 0x4af   : > { %v1206_v31 = vadd.f32 %v1879_v30, %v1845_v62  ;;  %v1197_v32 = vpop.f32.mrb[21].mxu0 }
 0x4b0   : > { %v1198_v33 = vadd.f32 %v1197_v32, %v908_v63  ;;  %v1880_v34 = vpop.f32.mrb[22].mxu0 }
 0x4b1   : > { %v1326_v35 = vmax.f32 %v1206_v31, 0.0  ;;  %v1209_v36 = vadd.f32 %v1880_v34, %v1846_v0  ;;  %v1200_v37 = vpop.f32.mrb[23].mxu0 }
 0x4b2   : > { %v1324_v38 = vmax.f32 %v1198_v33, 0.0  ;;  %v1201_v39 = vadd.f32 %v1200_v37, %v911_v1 }
 0x4b3   : > { %v1691_v40 = vpack.c.bf16 %v1326_v35, %v1326_v35  ;;  %v1327_v41 = vmax.f32 %v1209_v36, 0.0 }
 0x4b4   : > { %v1689_v42 = vpack.c.bf16 %v1324_v38, %v1324_v38  ;;  %v1325_v43 = vmax.f32 %v1201_v39, 0.0 }
 0x4b5   : > { %1487 = vst.msk [vmem:[%s2309_s20 + $0x8] sm:$0xf] %vm1484_vm5, %v1691_v40  ;;  %v1692_v44 = vpack.c.bf16 %v1327_v41, %v1327_v41 }
 0x4b6   : > { %1485 = vst.msk [vmem:[%s2309_s20] sm:$0xf] %vm1484_vm5, %v1689_v42  ;;  %v1690_v45 = vpack.c.bf16 %v1325_v43, %v1325_v43  ;;  %v1883_v46 = vpop.f32.mrb[24].mxu0 }
 0x4b7   : > { %1488 = vst.msk [vmem:[%s2309_s20 + $0xc] sm:$0xf] %vm1484_vm5, %v1692_v44  ;;  %v1222_v47 = vadd.f32 %v1883_v46, %v1849_v2  ;;  %v1213_v48 = vpop.f32.mrb[25].mxu0 }
 0x4b8   : > { %1486 = vst.msk [vmem:[%s2309_s20 + $0x4] sm:$0xf] %vm1484_vm5, %v1690_v45  ;;  %v1214_v49 = vadd.f32 %v1213_v48, %v924_v3  ;;  %v1884_v50 = vpop.f32.mrb[26].mxu0 }
 0x4b9   : > { %v1330_v51 = vmax.f32 %v1222_v47, 0.0  ;;  %v1225_v52 = vadd.f32 %v1884_v50, %v1850_v4  ;;  %v1216_v53 = vpop.f32.mrb[27].mxu0 }
 0x4ba   : > { %v1328_v54 = vmax.f32 %v1214_v49, 0.0  ;;  %v1217_v55 = vadd.f32 %v1216_v53, %v927_v5 }
 0x4bb   : > { %v1695_v56 = vpack.c.bf16 %v1330_v51, %v1330_v51  ;;  %v1331_v57 = vmax.f32 %v1225_v52, 0.0 }
 0x4bc   : > { %v1693_v58 = vpack.c.bf16 %v1328_v54, %v1328_v54  ;;  %v1329_v59 = vmax.f32 %v1217_v55, 0.0 }
 0x4bd   : > { %1491 = vst.msk [vmem:[%s2309_s20 + $0x18] sm:$0xf] %vm1484_vm5, %v1695_v56  ;;  %v1696_v60 = vpack.c.bf16 %v1331_v57, %v1331_v57 }
 0x4be   : > { %1489 = vst.msk [vmem:[%s2309_s20 + $0x10] sm:$0xf] %vm1484_vm5, %v1693_v58  ;;  %v1694_v61 = vpack.c.bf16 %v1329_v59, %v1329_v59  ;;  %v1887_v62 = vpop.f32.mrb[28].mxu0 }
 0x4bf   : > { %1492 = vst.msk [vmem:[%s2309_s20 + $0x1c] sm:$0xf] %vm1484_vm5, %v1696_v60  ;;  %v1238_v63 = vadd.f32 %v1887_v62, %v2257_v6  ;;  %v1229_v0 = vpop.f32.mrb[29].mxu0 }
 0x4c0   : > { %1490 = vst.msk [vmem:[%s2309_s20 + $0x14] sm:$0xf] %vm1484_vm5, %v1694_v61  ;;  %v1230_v1 = vadd.f32 %v1229_v0, %v2259_v7  ;;  %v1888_v2 = vpop.f32.mrb[30].mxu0 }
 0x4c1   : > { %v1334_v3 = vmax.f32 %v1238_v63, 0.0  ;;  %v1241_v4 = vadd.f32 %v1888_v2, %v2261_v8  ;;  %v1232_v5 = vpop.f32.mrb[31].mxu0 }
 0x4c2   : > { %v1332_v30 = vmax.f32 %v1230_v1, 0.0  ;;  %v1233_v31 = vadd.f32 %v1232_v5, %v2263_v9 }
 0x4c3   : > { %v1699_v32 = vpack.c.bf16 %v1334_v3, %v1334_v3  ;;  %v1335_v33 = vmax.f32 %v1241_v4, 0.0 }
 0x4c4   : > { %v1697_v34 = vpack.c.bf16 %v1332_v30, %v1332_v30  ;;  %v1333_v6 = vmax.f32 %v1233_v31, 0.0 }
 0x4c5   : > { %1495 = vst.msk [vmem:[%s2309_s20 + $0x28] sm:$0xf] %vm1484_vm5, %v1699_v32  ;;  %v1700_v35 = vpack.c.bf16 %v1335_v33, %v1335_v33 }
 0x4c6   : > { %1493 = vst.msk [vmem:[%s2309_s20 + $0x20] sm:$0xf] %vm1484_vm5, %v1697_v34  ;;  %v1698_v7 = vpack.c.bf16 %v1333_v6, %v1333_v6  ;;  %v1891_v36 = vpop.f32.mrb[32].mxu0 }
 0x4c7   : > { %1496 = vst.msk [vmem:[%s2309_s20 + $0x2c] sm:$0xf] %vm1484_vm5, %v1700_v35  ;;  %v1254_v8 = vadd.f32 %v1891_v36, %v2265_v10  ;;  %v1245_v37 = vpop.f32.mrb[33].mxu0 }
 0x4c8   : > { %1494 = vst.msk [vmem:[%s2309_s20 + $0x24] sm:$0xf] %vm1484_vm5, %v1698_v7  ;;  %v1246_v9 = vadd.f32 %v1245_v37, %v2267_v11  ;;  %v1892_v38 = vpop.f32.mrb[34].mxu0 }
 0x4c9   : > { %v1338_v39 = vmax.f32 %v1254_v8, 0.0  ;;  %v1257_v40 = vadd.f32 %v1892_v38, %v2269_v12  ;;  %v1248_v41 = vpop.f32.mrb[35].mxu0 }
 0x4ca   : > { %v1336_v42 = vmax.f32 %v1246_v9, 0.0  ;;  %v1249_v43 = vadd.f32 %v1248_v41, %v2271_v13 }
 0x4cb   : > { %v1703_v44 = vpack.c.bf16 %v1338_v39, %v1338_v39  ;;  %v1339_v45 = vmax.f32 %v1257_v40, 0.0 }
 0x4cc   : > { %v1701_v46 = vpack.c.bf16 %v1336_v42, %v1336_v42  ;;  %v1337_v10 = vmax.f32 %v1249_v43, 0.0 }
 0x4cd   : > { %1499 = vst.msk [vmem:[%s2309_s20 + $0x38] sm:$0xf] %vm1484_vm5, %v1703_v44  ;;  %v1704_v47 = vpack.c.bf16 %v1339_v45, %v1339_v45 }
 0x4ce   : > { %1497 = vst.msk [vmem:[%s2309_s20 + $0x30] sm:$0xf] %vm1484_vm5, %v1701_v46  ;;  %v1702_v11 = vpack.c.bf16 %v1337_v10, %v1337_v10  ;;  %v1895_v48 = vpop.f32.mrb[36].mxu0 }
 0x4cf   : > { %1500 = vst.msk [vmem:[%s2309_s20 + $0x3c] sm:$0xf] %vm1484_vm5, %v1704_v47  ;;  %v1270_v12 = vadd.f32 %v1895_v48, %v2273_v14  ;;  %v1261_v49 = vpop.f32.mrb[37].mxu0 }
 0x4d0   : > { %1498 = vst.msk [vmem:[%s2309_s20 + $0x34] sm:$0xf] %vm1484_vm5, %v1702_v11  ;;  %v1262_v13 = vadd.f32 %v1261_v49, %v2275_v15  ;;  %v1896_v50 = vpop.f32.mrb[38].mxu0 }
 0x4d1   : > { %v1342_v51 = vmax.f32 %v1270_v12, 0.0  ;;  %v1273_v52 = vadd.f32 %v1896_v50, %v2277_v16  ;;  %v1264_v53 = vpop.f32.mrb[39].mxu0 }
 0x4d2   : > { %v1340_v54 = vmax.f32 %v1262_v13, 0.0  ;;  %v1265_v55 = vadd.f32 %v1264_v53, %v2279_v17 }
 0x4d3   : > { %v1707_v56 = vpack.c.bf16 %v1342_v51, %v1342_v51  ;;  %v1343_v57 = vmax.f32 %v1273_v52, 0.0 }
 0x4d4   : > { %v1705_v58 = vpack.c.bf16 %v1340_v54, %v1340_v54  ;;  %v1341_v14 = vmax.f32 %v1265_v55, 0.0 }
 0x4d5   : > { %1503 = vst.msk [vmem:[%s2309_s20 + $0x48] sm:$0xf] %vm1484_vm5, %v1707_v56  ;;  %v1708_v59 = vpack.c.bf16 %v1343_v57, %v1343_v57 }
 0x4d6   : > { %1501 = vst.msk [vmem:[%s2309_s20 + $0x40] sm:$0xf] %vm1484_vm5, %v1705_v58  ;;  %v1706_v15 = vpack.c.bf16 %v1341_v14, %v1341_v14  ;;  %v1899_v60 = vpop.f32.mrb[40].mxu0 }
 0x4d7   : > { %1504 = vst.msk [vmem:[%s2309_s20 + $0x4c] sm:$0xf] %vm1484_vm5, %v1708_v59  ;;  %v1286_v16 = vadd.f32 %v1899_v60, %v2281_v18  ;;  %v1277_v61 = vpop.f32.mrb[41].mxu0 }
 0x4d8   : > { %1502 = vst.msk [vmem:[%s2309_s20 + $0x44] sm:$0xf] %vm1484_vm5, %v1706_v15  ;;  %v1278_v17 = vadd.f32 %v1277_v61, %v2283_v19  ;;  %v1900_v62 = vpop.f32.mrb[42].mxu0 }
 0x4d9   : > { %v1346_v63 = vmax.f32 %v1286_v16, 0.0  ;;  %v1289_v0 = vadd.f32 %v1900_v62, %v2285_v20  ;;  %v1280_v1 = vpop.f32.mrb[43].mxu0 }
 0x4da   : > { %v1344_v2 = vmax.f32 %v1278_v17, 0.0  ;;  %v1281_v3 = vadd.f32 %v1280_v1, %v2287_v21 }
 0x4db   : > { %v1711_v4 = vpack.c.bf16 %v1346_v63, %v1346_v63  ;;  %v1347_v5 = vmax.f32 %v1289_v0, 0.0 }
 0x4dc   : > { %v1709_v30 = vpack.c.bf16 %v1344_v2, %v1344_v2  ;;  %v1345_v18 = vmax.f32 %v1281_v3, 0.0 }
 0x4dd   : > { %1507 = vst.msk [vmem:[%s2309_s20 + $0x58] sm:$0xf] %vm1484_vm5, %v1711_v4  ;;  %v1712_v31 = vpack.c.bf16 %v1347_v5, %v1347_v5 }
 0x4de   : > { %1505 = vst.msk [vmem:[%s2309_s20 + $0x50] sm:$0xf] %vm1484_vm5, %v1709_v30  ;;  %v1710_v19 = vpack.c.bf16 %v1345_v18, %v1345_v18  ;;  %v1903_v32 = vpop.f32.mrb[44].mxu0 }
 0x4df   : > { %1508 = vst.msk [vmem:[%s2309_s20 + $0x5c] sm:$0xf] %vm1484_vm5, %v1712_v31  ;;  %v1302_v20 = vadd.f32 %v1903_v32, %v2289_v22  ;;  %v1293_v33 = vpop.f32.mrb[45].mxu0 }
 0x4e0   : > { %1506 = vst.msk [vmem:[%s2309_s20 + $0x54] sm:$0xf] %vm1484_vm5, %v1710_v19  ;;  %v1294_v21 = vadd.f32 %v1293_v33, %v2291_v23  ;;  %v1904_v34 = vpop.f32.mrb[46].mxu0 }
 0x4e1   : > { %v1350_v6 = vmax.f32 %v1302_v20, 0.0  ;;  %v1305_v35 = vadd.f32 %v1904_v34, %v2293_v24  ;;  %v1296_v7 = vpop.f32.mrb[47].mxu0 }
 0x4e2   : > { %v1348_v36 = vmax.f32 %v1294_v21, 0.0  ;;  %v1297_v8 = vadd.f32 %v1296_v7, %v2295_v25 }
 0x4e3   : > { %v1715_v37 = vpack.c.bf16 %v1350_v6, %v1350_v6  ;;  %v1351_v9 = vmax.f32 %v1305_v35, 0.0 }
 0x4e4   : > { %v1713_v38 = vpack.c.bf16 %v1348_v36, %v1348_v36  ;;  %v1349_v22 = vmax.f32 %v1297_v8, 0.0 }
 0x4e5   : > { %1511 = vst.msk [vmem:[%s2309_s20 + $0x68] sm:$0xf] %vm1484_vm5, %v1715_v37  ;;  %v1716_v39 = vpack.c.bf16 %v1351_v9, %v1351_v9 }
 0x4e6   : > { %1509 = vst.msk [vmem:[%s2309_s20 + $0x60] sm:$0xf] %vm1484_vm5, %v1713_v38  ;;  %v1714_v23 = vpack.c.bf16 %v1349_v22, %v1349_v22  ;;  %v1907_v40 = vpop.f32.mrb[48].mxu0 }
 0x4e7   : > { %1512 = vst.msk [vmem:[%s2309_s20 + $0x6c] sm:$0xf] %vm1484_vm5, %v1716_v39  ;;  %v1318_v24 = vadd.f32 %v1907_v40, %v2297_v26  ;;  %v1309_v41 = vpop.f32.mrb[49].mxu0 }
 0x4e8   : > { %1510 = vst.msk [vmem:[%s2309_s20 + $0x64] sm:$0xf] %vm1484_vm5, %v1714_v23  ;;  %v1310_v25 = vadd.f32 %v1309_v41, %v2299_v27  ;;  %v1908_v42 = vpop.f32.mrb[50].mxu0 }
 0x4e9   : > { %v1354_v43 = vmax.f32 %v1318_v24, 0.0  ;;  %v1321_v44 = vadd.f32 %v1908_v42, %v2301_v28  ;;  %v1312_v45 = vpop.f32.mrb[51].mxu0 }
 0x4ea   : > { %v1352_v46 = vmax.f32 %v1310_v25, 0.0  ;;  %v1313_v10 = vadd.f32 %v1312_v45, %v2303_v29 }
 0x4eb   : > { %v1719_v47 = vpack.c.bf16 %v1354_v43, %v1354_v43  ;;  %v1355_v11 = vmax.f32 %v1321_v44, 0.0 }
 0x4ec   : > { %v1717_v48 = vpack.c.bf16 %v1352_v46, %v1352_v46  ;;  %v1353_v26 = vmax.f32 %v1313_v10, 0.0 }
 0x4ed   : > { %1515 = vst.msk [vmem:[%s2309_s20 + $0x78] sm:$0xf] %vm1484_vm5, %v1719_v47  ;;  %v1720_v12 = vpack.c.bf16 %v1355_v11, %v1355_v11 }
 0x4ee   : > { %1513 = vst.msk [vmem:[%s2309_s20 + $0x70] sm:$0xf] %vm1484_vm5, %v1717_v48  ;;  %v1718_v49 = vpack.c.bf16 %v1353_v26, %v1353_v26 }
 0x4ef   : > { %1516 = vst.msk [vmem:[%s2309_s20 + $0x7c] sm:$0xf] %vm1484_vm5, %v1720_v12 }
 0x4f0   : > { %1514 = vst.msk [vmem:[%s2309_s20 + $0x74] sm:$0xf] %vm1484_vm5, %v1718_v49 }
 0x4f1 PF: > { %s17_s24 = sadd.s32 1, %s2020_s24  }
 0x4f2   : > { %p14_p4 = scmp.ge.s32.totalorder %s17_s24, 4  }
 0x4f4   :  { %16 = sbr.rel (!%p14_p4) target bundleno = 1 (0x1), region = 78 }

// kernel: resnet_forward.9
= control target key start
LH: loop header
LB: loop body
LE: loop exit
PB: predicated region body
PF: predicated region fallthrough
CT: control target
= control target key end

     0   :  { %s3557_s24 = smov 0   ;;  %s4424_s0 = inlined_call_operand.vmem [shape: bf16[2,256,16], index: 0, kind: input, shape index: {}]   ;;  %s4425_s1 = inlined_call_operand.vmem [shape: bf16[32,256], index: 1, kind: input, shape index: {}]   ;;  %s4426_s2 = inlined_call_operand.vmem [shape: bf16[32,288], index: 2, kind: input, shape index: {}]   ;;  %s4427_s3 = inlined_call_operand.vmem [shape: bf16[512,32], index: 3, kind: input, shape index: {}]   ;;  %s4428_s4 = inlined_call_operand.vmem [shape: bf16[2,4], index: 4, kind: input, shape index: {}]   ;;  %s4429_s5 = inlined_call_operand.vmem [shape: bf16[512,256], index: 5, kind: input, shape index: {}]   ;;  %s4430_s6 = inlined_call_operand.vmem [shape: bf16[16,4], index: 6, kind: input, shape index: {}]   ;;  %s4431_s7 = inlined_call_operand.vmem [shape: bf16[2,512,4], index: 7, kind: output, shape index: {}]  }
   0x1 LB: > { %s2753_s25 = sadd.s32 4294967295, %s3504_s24   ;;  %p2757_p0 = scmp.ge.s32.totalorder %s3504_s24, 1  ;;  %s3504_s24 = sphi %s3557_s24, %s17_s24  }
   0x2   : > { %p237_p1 = scmp.lt.s32.totalorder %s3504_s24, 3 }
   0x4   : > { %p238_p2 = pnand %p2757_p0, %p237_p1 }
   0x6   : > { %241 = sbr.rel (%p238_p2) target bundleno = 1381 (0x565), region = 48 }
   0xd   : > { %v3339_v0 = vld [vmem:[%s4430_s6] sm:$0xff]   ;;  %p269_p3 = scmp.lt.s32.totalorder %s2753_s25, 1  ;;  %vm400_vm0 = vcmask 130048   ;;  %s3506_s19 = smov 4   ;;  %vm705_vm1 = vcmask 80896   ;;  %vm716_vm2 = vcmask 56344  }
   0xe   : > { %3178 = vmatprep.subr.bf16.mxu0 %v3339_v0  ;;  %v3358_v17 = vld [vmem:[%s4425_s1 + $0x4] ss:$8 sps:$4 sm:$0xff]   ;;  %s3507_s20 = smov 2   ;;  %s3509_s21 = smov 3   ;;  %vm731_vm3 = vcmask 31744   ;;  %vm920_vm4 = vcmask 261120  }
   0xf   : > { %s4447_s25 = smov (!%p269_p3, %s2753_s25), 1  ;;  %3179 = vmatpush3.bf16.msra.mxu0 %v3339_v0  ;;  %682 = vmatprep.mubr.bf16.mxu1 %v3358_v17  ;;  %s3510_s22 = smov 6   ;;  %vm2633_vm5 = vcmask 27648  }
  0x10   : > { %s3001_s28 = sshll.u32 %s4447_s25, 7  ;;  %s3511_s23 = smov 125  }
  0x11   : > { %s3574_s8 = scalar_lea.vmem %s4424_s0, %s3001_s28  ;;  %s3512_s26 = smov 124  }
  0x12   : > { %v3340_v1 = vld [vmem:[%s3574_s8] sm:$0xff]   ;;  %v3341_v2 = vld [vmem:[%s3574_s8 + $0x8] sm:$0xff]   ;;  %v3342_v3 = vld [vmem:[%s3574_s8 + $0x10] sm:$0xff]   ;;  %s3513_s27 = smov 127   ;;  %s3514_s28 = smov 126  }
  0x13   : > { %3180 = vmatprep.mubr.msk.bf16.mxu0 %vm400_vm0, %v3340_v1  ;;  %v3343_v4 = vld [vmem:[%s3574_s8 + $0x18] sm:$0xff]   ;;  %v3344_v5 = vld [vmem:[%s3574_s8 + $0x20] sm:$0xff]   ;;  %v3345_v6 = vld [vmem:[%s3574_s8 + $0x28] sm:$0xff]   ;;  %s3515_s29 = smov 123   ;;  %s3516_s9 = smov 122  }
  0x14   : > { %3181 = vmatmul.mubr.msk.bf16.vlgmr.msra.gmra.mrb[0].mxu0 %vm400_vm0, %v3341_v2  ;;  %v3346_v7 = vld [vmem:[%s3574_s8 + $0x30] sm:$0xff]   ;;  %v3347_v8 = vld [vmem:[%s3574_s8 + $0x38] sm:$0xff]   ;;  %v3348_v9 = vld [vmem:[%s3574_s8 + $0x40] sm:$0xff]  }
  0x15   : > { %3184 = vmatprep.mubr.msk.bf16.mxu0 %vm400_vm0, %v3342_v3  ;;  %v3349_v10 = vld [vmem:[%s3574_s8 + $0x48] sm:$0xff]   ;;  %v3350_v11 = vld [vmem:[%s3574_s8 + $0x50] sm:$0xff]   ;;  %v3351_v12 = vld [vmem:[%s3574_s8 + $0x58] sm:$0xff]  }
  0x16   : > { %v3352_v13 = vld [vmem:[%s3574_s8 + $0x60] sm:$0xff]   ;;  %v3353_v14 = vld [vmem:[%s3574_s8 + $0x68] sm:$0xff]   ;;  %v3354_v15 = vld [vmem:[%s3574_s8 + $0x70] sm:$0xff]  }
  0x17   : > { %v3355_v16 = vld [vmem:[%s3574_s8 + $0x78] sm:$0xff]   ;;  %v3356_v2 = vld [vmem:[%s4425_s1] ss:$8 sps:$4 sm:$0xff]  }
  0x18   : > { %v3359_v3 = vld [vmem:[%s4425_s1 + $0x14] ss:$8 sps:$4 sm:$0xff]  }
  0x1c   : > { %3185 = vmatmul.mubr.msk.bf16.gmra.mrb[4].mxu0 %vm400_vm0, %v3343_v4  ;;  %v3361_v4 = vld [vmem:[%s4425_s1 + $0x10] ss:$8 sps:$4 sm:$0xff]  }
  0x1d   : > { %3188 = vmatprep.mubr.msk.bf16.mxu0 %vm400_vm0, %v3344_v5  ;;  %v725_v5 = vlaneseq }
  0x24   : > { %3189 = vmatmul.mubr.msk.bf16.gmra.mrb[8].mxu0 %vm400_vm0, %v3345_v6  ;;  %v719_v6 = vld [vmem:[%s4428_s4] sm:$0x1] }
  0x25   : > { %3192 = vmatprep.mubr.msk.bf16.mxu0 %vm400_vm0, %v3346_v7  ;;  %v726_v7 = vshrl.u32 %v725_v5, 7 }
  0x2c   : > { %3193 = vmatmul.mubr.msk.bf16.gmra.mrb[12].mxu0 %vm400_vm0, %v3347_v8  ;;  %v748_v8 = vshrl.u32 %v719_v6, 16 }
  0x2d   : > { %3196 = vmatprep.mubr.msk.bf16.mxu0 %vm400_vm0, %v3348_v9  ;;  %v727_v9 = vsub.s32 0, %v726_v7 }
  0x34   : > { %3197 = vmatmul.mubr.msk.bf16.gmra.mrb[16].mxu0 %vm400_vm0, %v3349_v10  ;;  %v749_v10 = vpack.i.b16 %v748_v8, %v748_v8 }
  0x35   : > { %3200 = vmatprep.mubr.msk.bf16.mxu0 %vm400_vm0, %v3350_v11 }
  0x36   : > { %v754_v11 = vrot.slane %v749_v10, %v727_v9 }
  0x38   : > { %803 = vrot.lane.b32.xlu1 %v754_v11, %s3506_s19 }
  0x3c   : > { %3201 = vmatmul.mubr.msk.bf16.gmra.mrb[20].mxu0 %vm400_vm0, %v3351_v12  ;;  %v723_v12 = vpack.i.b16 %v719_v6, %v719_v6  ;;  %v3365_v6 = vld [vmem:[%s4426_s2 + $0x8] ss:$12 sps:$4 sm:$0xff]  }
  0x3d   : > { %3204 = vmatprep.mubr.msk.bf16.mxu0 %vm400_vm0, %v3352_v13 }
  0x3e   : > { %v728_v13 = vrot.slane %v723_v12, %v727_v9 }
  0x40   : > { %820 = vrot.lane.b32.xlu1 %v728_v13, %s3506_s19 }
  0x44   : > { %3205 = vmatmul.mubr.msk.bf16.gmra.mrb[24].mxu0 %vm400_vm0, %v3353_v14  ;;  %774 = vrot.lane.b32.xlu1 %v728_v13, %s3507_s20  ;;  %v3508_v14 = vmov 0  }
  0x45   : > { %3208 = vmatprep.mubr.msk.bf16.mxu0 %vm400_vm0, %v3354_v15  ;;  %706 = vst.msk [vmem:[#allocation2] sm:$0xff] %vm705_vm1, %v3508_v14  ;;  %707 = vst.msk [vmem:[#allocation2 + $0x8] sm:$0xff] %vm705_vm1, %v3508_v14 }
  0x4c   : > { %3209 = vmatmul.mubr.msk.bf16.gmra.mrb[28].mxu0 %vm400_vm0, %v3355_v16 }
  0x4d   : > { %3216 = vmatprep.mubr.msk.bf16.mxu0 %vm920_vm4, %v3365_v6  ;;  %v3390_v6 = vld [vmem:[%s4429_s5 + $0x50] ss:$8 sps:$4 sm:$0xff]  }
  0xe7   : > { %v3182_v18 = vpop.f32.mrb[0].mxu0 }
  0xe8   : > { %v483_v19 = vpop.f32.mrb[1].mxu0 }
  0xe9   : > { %v3183_v20 = vpop.f32.mrb[2].mxu0 }
  0xea   : > { %v3611_v21 = vpack.c.bf16 %v3183_v20, %v3182_v18  ;;  %v486_v22 = vpop.f32.mrb[3].mxu0 }
  0xeb   : > { %v3613_v23 = vpack.c.bf16 %v486_v22, %v483_v19 }
  0xef   : > { %v3186_v24 = vpop.f32.mrb[4].mxu0 }
  0xf0   : > { %v499_v25 = vpop.f32.mrb[5].mxu0 }
  0xf1   : > { %v3187_v26 = vpop.f32.mrb[6].mxu0 }
  0xf2   : > { %v3615_v27 = vpack.c.bf16 %v3187_v26, %v3186_v24  ;;  %v502_v28 = vpop.f32.mrb[7].mxu0 }
  0xf3   : > { %v3617_v29 = vpack.c.bf16 %v502_v28, %v499_v25 }
  0xf7   : > { %v3190_v30 = vpop.f32.mrb[8].mxu0 }
  0xf8   : > { %v515_v31 = vpop.f32.mrb[9].mxu0 }
  0xf9   : > { %v3191_v32 = vpop.f32.mrb[10].mxu0 }
  0xfa   : > { %v3619_v33 = vpack.c.bf16 %v3191_v32, %v3190_v30  ;;  %v518_v34 = vpop.f32.mrb[11].mxu0 }
  0xfb   : > { %v3621_v35 = vpack.c.bf16 %v518_v34, %v515_v31 }
  0xff   : > { %v3194_v36 = vpop.f32.mrb[12].mxu0 }
 0x100   : > { %v531_v37 = vpop.f32.mrb[13].mxu0 }
 0x101   : > { %v3195_v38 = vpop.f32.mrb[14].mxu0 }
 0x102   : > { %v3623_v39 = vpack.c.bf16 %v3195_v38, %v3194_v36  ;;  %v534_v40 = vpop.f32.mrb[15].mxu0 }
 0x103   : > { %v3625_v41 = vpack.c.bf16 %v534_v40, %v531_v37 }
 0x107   : > { %v3198_v42 = vpop.f32.mrb[16].mxu0 }
 0x108   : > { %v547_v43 = vpop.f32.mrb[17].mxu0 }
 0x109   : > { %v3199_v44 = vpop.f32.mrb[18].mxu0 }
 0x10a   : > { %v3627_v45 = vpack.c.bf16 %v3199_v44, %v3198_v42  ;;  %v550_v46 = vpop.f32.mrb[19].mxu0 }
 0x10b   : > { %v3629_v47 = vpack.c.bf16 %v550_v46, %v547_v43  ;;  %v804_v46 = vpop.permute.xlu1 %803 }
 0x10d   : > { %3084 = vmatprep.subr.bf16.mxu1 %v3629_v47 }
 0x10e   : > { %3085 = vmatpush3.bf16.msra.mxu1 %v3613_v23 }
 0x10f   : > { %v3202_v48 = vpop.f32.mrb[20].mxu0  ;;  %3086 = vmatprep.subr.bf16.mxu1 %v3627_v45 }
 0x110   : > { %v563_v49 = vpop.f32.mrb[21].mxu0 }
 0x111   : > { %v3203_v50 = vpop.f32.mrb[22].mxu0 }
 0x112   : > { %v3634_v51 = vpack.c.bf16 %v3203_v50, %v3202_v48  ;;  %v566_v52 = vpop.f32.mrb[23].mxu0  ;;  %3087 = vmatpush3.bf16.msra.mxu1 %v3611_v21 }
 0x113   : > { %v3637_v53 = vpack.c.bf16 %v566_v52, %v563_v49 }
 0x115   : > { %3088 = vmatprep.subr.bf16.mxu1 %v3637_v53 }
 0x116   : > { %3089 = vmatpush3.bf16.msra.mxu1 %v3617_v29 }
 0x117   : > { %v3206_v54 = vpop.f32.mrb[24].mxu0  ;;  %3090 = vmatprep.subr.bf16.mxu1 %v3634_v51 }
 0x118   : > { %v579_v55 = vpop.f32.mrb[25].mxu0 }
 0x119   : > { %v3207_v56 = vpop.f32.mrb[26].mxu0 }
 0x11a   : > { %v3642_v57 = vpack.c.bf16 %v3207_v56, %v3206_v54  ;;  %v582_v58 = vpop.f32.mrb[27].mxu0  ;;  %3091 = vmatpush3.bf16.msra.mxu1 %v3615_v27  ;;  %v821_v54 = vpop.permute.xlu1 %820 }
 0x11b   : > { %v3645_v59 = vpack.c.bf16 %v582_v58, %v579_v55 }
 0x11d   : > { %3092 = vmatprep.subr.bf16.mxu1 %v3645_v59 }
 0x11e   : > { %3093 = vmatpush3.bf16.msra.mxu1 %v3621_v35 }
 0x11f   : > { %v3210_v60 = vpop.f32.mrb[28].mxu0  ;;  %3094 = vmatprep.subr.bf16.mxu1 %v3642_v57 }
 0x120   : > { %v595_v61 = vpop.f32.mrb[29].mxu0 }
 0x121   : > { %v3211_v62 = vpop.f32.mrb[30].mxu0 }
 0x122   : > { %v3650_v63 = vpack.c.bf16 %v3211_v62, %v3210_v60  ;;  %v598_v0 = vpop.f32.mrb[31].mxu0  ;;  %3095 = vmatpush3.bf16.msra.mxu1 %v3619_v33  ;;  %v775_v62 = vpop.permute.xlu1 %774 }
 0x123   : > { %v3653_v1 = vpack.c.bf16 %v598_v0, %v595_v61 }
 0x125   : > { %3096 = vmatprep.subr.bf16.mxu1 %v3653_v1 }
 0x126   : > { %3097 = vmatpush3.bf16.msra.mxu1 %v3625_v41 }
 0x127   : > { %3098 = vmatprep.subr.bf16.mxu1 %v3650_v63 }
 0x12a   : > { %3099 = vmatpush3.bf16.msra.mxu1 %v3623_v39 }
 0x12d   : > { %683 = vmatmul.mubr.bf16.vlgmr.msra.gmra.mrb[0].mxu1 %v3356_v2 }
 0x12e   : > { %690 = vmatprep.mubr.bf16.mxu1 %v3359_v3  ;;  %v3364_v3 = vld [vmem:[%s4426_s2 + $0x4] ss:$12 sps:$4 sm:$0xff]  }
 0x135   : > { %691 = vmatmul.mubr.bf16.gmra.mrb[4].mxu1 %v3361_v4 }
 0x136   : > { %959 = vmatprep.mubr.bf16.mxu1 %v3364_v3  ;;  %v3388_v3 = vld [vmem:[%s4429_s5 + $0x54] ss:$8 sps:$4 sm:$0xff]  }
 0x200   : > { %v3100_v15 = vpop.f32.mrb[0].mxu1 }
 0x201   : > { %v3101_v16 = vpop.f32.mrb[1].mxu1 }
 0x202   : > { %v3102_v17 = vadd.f32 %v3101_v16, %v3100_v15  ;;  %v3103_v18 = vpop.f32.mrb[2].mxu1 }
 0x203   : > { %v3104_v19 = vpop.f32.mrb[3].mxu1 }
 0x204   : > { %v3105_v20 = vadd.f32 %v3104_v19, %v3103_v18  ;;  %v699_v22 = vmax.f32 %v3102_v17, 0.0 }
 0x206   : > { %v700_v24 = vmax.f32 %v3105_v20, 0.0 }
 0x208   : > { %v3106_v25 = vpop.f32.mrb[4].mxu1  ;;  %v703_v26 = vpack.c.bf16 %v700_v24, %v699_v22 }
 0x209   : > { %v3107_v28 = vpop.f32.mrb[5].mxu1 }
 0x20a   : > { %v3108_v30 = vadd.f32 %v3107_v28, %v3106_v25  ;;  %v3109_v31 = vpop.f32.mrb[6].mxu1  ;;  %710 = vrot.lane.b32.xlu0 %v703_v26, %s3509_s21 }
 0x20b   : > { %v3110_v32 = vpop.f32.mrb[7].mxu1 }
 0x20c   : > { %v3111_v34 = vadd.f32 %v3110_v32, %v3109_v31  ;;  %v701_v36 = vmax.f32 %v3108_v30, 0.0 }
 0x20e   : > { %v702_v37 = vmax.f32 %v3111_v34, 0.0 }
 0x210   : > { %v704_v38 = vpack.c.bf16 %v702_v37, %v701_v36 }
 0x212   : > { %712 = vrot.lane.b32.xlu0 %v704_v38, %s3509_s21 }
 0x216   : > { %756 = vrot.lane.b32.xlu0 %v754_v11, %s3507_s20 }
 0x21a   : > { %849 = vrot.lane.b32.xlu0 %v754_v11, %s3510_s22 }
 0x27c   : > { %v711_v40 = vpop.permute.xlu0 %710 }
 0x27d   : > { %717 = vst.msk [vmem:[#allocation2] sm:$0xff] %vm716_vm2, %v711_v40 }
 0x284   : > { %v720_v42 = vld [vmem:[#allocation2] sm:$0xff]  ;;  %v713_v43 = vpop.permute.xlu0 %712 }
 0x285   : > { %v729_v44 = vmul.bf16 %v728_v13, %v720_v42  ;;  %718 = vst.msk [vmem:[#allocation2 + $0x8] sm:$0xff] %vm716_vm2, %v713_v43  ;;  %793 = vrot.lane.b32.xlu1 %v720_v42, %s3511_s23  ;;  %v806_v48 = vmul.bf16 %v804_v46, %v720_v42  ;;  %v823_v55 = vmul.bf16 %v821_v54, %v720_v42 }
 0x286   : > { %v777_v0 = vmul.bf16 %v775_v62, %v720_v42 }
 0x287   : > { %732 = vst.msk [vmem:[#allocation3] sm:$0xff] %vm731_vm3, %v729_v44 }
 0x288   : > { %v757_v56 = vpop.permute.xlu0 %756 }
 0x289   : > { %810 = vrot.lane.b32.xlu1 %v806_v48, %s3512_s26  ;;  %v759_v60 = vmul.bf16 %v757_v56, %v720_v42 }
 0x28c   : > { %v721_v49 = vld [vmem:[#allocation2 + $0x8] sm:$0xff]  ;;  %v850_v2 = vpop.permute.xlu0 %849 }
 0x28d   : > { %v730_v50 = vmul.bf16 %v728_v13, %v721_v49  ;;  %795 = vrot.lane.b32.xlu0 %v721_v49, %s3511_s23  ;;  %v807_v52 = vmul.bf16 %v804_v46, %v721_v49  ;;  %v824_v58 = vmul.bf16 %v821_v54, %v721_v49  ;;  %v760_v61 = vmul.bf16 %v757_v56, %v721_v49  ;;  %v3362_v54 = vld [vmem:[%s4426_s2] ss:$12 sps:$4 sm:$0xff]   ;;  %v3367_v56 = vld [vmem:[%s4426_s2 + $0x1c] ss:$12 sps:$4 sm:$0xff]   ;;  %s3002_s23 = sshll.u32 %s4447_s25, 8 }
 0x28e   : > { %v852_v4 = vmul.bf16 %v850_v2, %v720_v42  ;;  %v778_v5 = vmul.bf16 %v775_v62, %v721_v49  ;;  %v853_v7 = vmul.bf16 %v850_v2, %v721_v49  ;;  %v872_v12 = vld [vmem:[#allocation3] sm:$0xff]  ;;  %v3384_v2 = vld [vmem:[%s4429_s5 + $0x40] ss:$8 sps:$4 sm:$0xff]  }
 0x28f   : > { %733 = vst.msk [vmem:[#allocation3 + $0x8] sm:$0xff] %vm731_vm3, %v730_v50  ;;  %812 = vrot.lane.b32.xlu1 %v807_v52, %s3512_s26  ;;  %v3387_v62 = vld [vmem:[%s4429_s5 + $0x74] ss:$8 sps:$4 sm:$0xff]  }
 0x291   : > { %738 = vrot.lane.b32.xlu0 %v720_v42, %s3513_s27 }
 0x293   : > { %827 = vrot.lane.b32.xlu1 %v823_v55, %s3512_s26 }
 0x295   : > { %740 = vrot.lane.b32.xlu0 %v721_v49, %s3513_s27 }
 0x296   : > { %v873_v19 = vld [vmem:[#allocation3 + $0x8] sm:$0xff] }
 0x297   : > { %829 = vrot.lane.b32.xlu1 %v824_v58, %s3512_s26  ;;  %v3366_v58 = vld [vmem:[%s4426_s2 + $0x20] ss:$12 sps:$4 sm:$0xff]  }
 0x299   : > { %763 = vrot.lane.b32.xlu0 %v759_v60, %s3514_s28  ;;  %v3372_v60 = vld [vmem:[%s4429_s5 + $0x4] ss:$8 sps:$4 sm:$0xff]  }
 0x29b   : > { %839 = vrot.lane.b32.xlu1 %v720_v42, %s3515_s29 }
 0x29d   : > { %765 = vrot.lane.b32.xlu0 %v760_v61, %s3514_s28  ;;  %v3369_v61 = vld [vmem:[%s4426_s2 + $0x18] ss:$12 sps:$4 sm:$0xff]  }
 0x29f   : > { %841 = vrot.lane.b32.xlu1 %v721_v49, %s3515_s29 }
 0x2a1   : > { %781 = vrot.lane.b32.xlu0 %v777_v0, %s3514_s28  ;;  %v3412_v0 = vld [vmem:[%s4429_s5 + $0xc4] ss:$8 sps:$4 sm:$0xff]  }
 0x2a3   : > { %856 = vrot.lane.b32.xlu1 %v852_v4, %s3516_s9  ;;  %v3414_v4 = vld [vmem:[%s4429_s5 + $0xc0] ss:$8 sps:$4 sm:$0xff]  }
 0x2a5   : > { %783 = vrot.lane.b32.xlu0 %v778_v5, %s3514_s28  ;;  %v3417_v5 = vld [vmem:[%s4429_s5 + $0xd4] ss:$8 sps:$4 sm:$0xff]   ;;  %s4218_s28 = scalar_lea.vmem %s4431_s7, %s3002_s23 }
 0x2a9   : > { %858 = vrot.lane.b32.xlu0 %v853_v7, %s3516_s9  ;;  %v3394_v7 = vld [vmem:[%s4429_s5 + $0x64] ss:$8 sps:$4 sm:$0xff]  }
 0x2f7   : > { %v794_v8 = vpop.permute.xlu1 %793 }
 0x2f8   : > { %799 = vst.msk [vmem:[#allocation3 + $0x40] sm:$0xff] %vm731_vm3, %v794_v8  ;;  %v3419_v8 = vld [vmem:[%s4429_s5 + $0xd0] ss:$8 sps:$4 sm:$0xff]  }
 0x2fb   : > { %v811_v9 = vpop.permute.xlu1 %810 }
 0x2fc   : > { %816 = vst.msk [vmem:[#allocation3 + $0x50] sm:$0xff] %vm731_vm3, %v811_v9  ;;  %v3422_v9 = vld [vmem:[%s4429_s5 + $0xe4] ss:$8 sps:$4 sm:$0xff]  }
 0x2ff   : > { %v796_v10 = vpop.permute.xlu0 %795  ;;  %v880_v11 = vld [vmem:[#allocation3 + $0x40] sm:$0xff] }
 0x300   : > { %800 = vst.msk [vmem:[#allocation3 + $0x48] sm:$0xff] %vm731_vm3, %v796_v10  ;;  %3112 = vmatprep.subr.bf16.mxu1 %v880_v11  ;;  %v3396_v10 = vld [vmem:[%s4429_s5 + $0x60] ss:$8 sps:$4 sm:$0xff]  }
 0x301   : > { %3113 = vmatpush3.bf16.msra.mxu1 %v872_v12  ;;  %v813_v13 = vpop.permute.xlu1 %812  ;;  %v3400_v11 = vld [vmem:[%s4427_s3] sm:$0xff]  }
 0x302   : > { %817 = vst.msk [vmem:[#allocation3 + $0x58] sm:$0xff] %vm731_vm3, %v813_v13  ;;  %v3424_v12 = vld [vmem:[%s4429_s5 + $0xe0] ss:$8 sps:$4 sm:$0xff]   ;;  %v3427_v13 = vld [vmem:[%s4429_s5 + $0xf4] ss:$8 sps:$4 sm:$0xff]  }
 0x303   : > { %v739_v15 = vpop.permute.xlu0 %738  ;;  %v882_v20 = vld [vmem:[#allocation3 + $0x50] sm:$0xff] }
 0x304   : > { %744 = vst.msk [vmem:[#allocation3 + $0x10] sm:$0xff] %vm731_vm3, %v739_v15  ;;  %v3429_v15 = vld [vmem:[%s4429_s5 + $0xf0] ss:$8 sps:$4 sm:$0xff]  }
 0x305   : > { %v828_v16 = vpop.permute.xlu1 %827 }
 0x306   : > { %833 = vst.msk [vmem:[#allocation3 + $0x60] sm:$0xff] %vm731_vm3, %v828_v16  ;;  %v3432_v16 = vld [vmem:[%s4429_s5 + $0x104] ss:$8 sps:$4 sm:$0xff]  }
 0x307   : > { %v741_v17 = vpop.permute.xlu0 %740  ;;  %v881_v18 = vld [vmem:[#allocation3 + $0x48] sm:$0xff] }
 0x308   : > { %745 = vst.msk [vmem:[#allocation3 + $0x18] sm:$0xff] %vm731_vm3, %v741_v17  ;;  %3114 = vmatprep.subr.bf16.mxu1 %v881_v18  ;;  %v3434_v17 = vld [vmem:[%s4429_s5 + $0x100] ss:$8 sps:$4 sm:$0xff]   ;;  %v3437_v18 = vld [vmem:[%s4429_s5 + $0x114] ss:$8 sps:$4 sm:$0xff]  }
 0x309   : > { %3115 = vmatpush3.bf16.msra.mxu1 %v873_v19  ;;  %v830_v22 = vpop.permute.xlu1 %829  ;;  %v883_v26 = vld [vmem:[#allocation3 + $0x58] sm:$0xff]  ;;  %v3439_v19 = vld [vmem:[%s4429_s5 + $0x110] ss:$8 sps:$4 sm:$0xff]  }
 0x30a   : > { %3116 = vmatprep.subr.bf16.mxu1 %v882_v20  ;;  %834 = vst.msk [vmem:[#allocation3 + $0x68] sm:$0xff] %vm731_vm3, %v830_v22  ;;  %v3442_v20 = vld [vmem:[%s4429_s5 + $0x124] ss:$8 sps:$4 sm:$0xff]   ;;  %v3444_v22 = vld [vmem:[%s4429_s5 + $0x120] ss:$8 sps:$4 sm:$0xff]  }
 0x30b   : > { %v764_v24 = vpop.permute.xlu0 %763  ;;  %v874_v25 = vld [vmem:[#allocation3 + $0x10] sm:$0xff] }
 0x30c   : > { %769 = vst.msk [vmem:[#allocation3 + $0x20] sm:$0xff] %vm731_vm3, %v764_v24  ;;  %v3447_v24 = vld [vmem:[%s4429_s5 + $0x134] ss:$8 sps:$4 sm:$0xff]  }
 0x30d   : > { %3117 = vmatpush3.bf16.msra.mxu1 %v874_v25  ;;  %v840_v28 = vpop.permute.xlu1 %839  ;;  %v884_v32 = vld [vmem:[#allocation3 + $0x60] sm:$0xff] }
 0x30e   : > { %3118 = vmatprep.subr.bf16.mxu1 %v883_v26  ;;  %845 = vst.msk [vmem:[#allocation3 + $0x70] sm:$0xff] %vm731_vm3, %v840_v28  ;;  %v3449_v25 = vld [vmem:[%s4429_s5 + $0x130] ss:$8 sps:$4 sm:$0xff]   ;;  %v3450_v26 = vld [vmem:[%s4429_s5 + $0x144] ss:$8 sps:$4 sm:$0xff]  }
 0x30f   : > { %v766_v30 = vpop.permute.xlu0 %765  ;;  %v875_v31 = vld [vmem:[#allocation3 + $0x18] sm:$0xff] }
 0x310   : > { %770 = vst.msk [vmem:[#allocation3 + $0x28] sm:$0xff] %vm731_vm3, %v766_v30  ;;  %v3453_v28 = vld [vmem:[%s4429_s5 + $0x140] ss:$8 sps:$4 sm:$0xff]   ;;  %v3455_v30 = vld [vmem:[%s4429_s5 + $0x154] ss:$8 sps:$4 sm:$0xff]  }
 0x311   : > { %3119 = vmatpush3.bf16.msra.mxu1 %v875_v31  ;;  %v842_v34 = vpop.permute.xlu1 %841  ;;  %v885_v38 = vld [vmem:[#allocation3 + $0x68] sm:$0xff] }
 0x312   : > { %3120 = vmatprep.subr.bf16.mxu1 %v884_v32  ;;  %846 = vst.msk [vmem:[#allocation3 + $0x78] sm:$0xff] %vm731_vm3, %v842_v34  ;;  %v3457_v31 = vld [vmem:[%s4429_s5 + $0x150] ss:$8 sps:$4 sm:$0xff]   ;;  %v3458_v32 = vld [vmem:[%s4429_s5 + $0x164] ss:$8 sps:$4 sm:$0xff]  }
 0x313   : > { %v782_v36 = vpop.permute.xlu0 %781  ;;  %v876_v37 = vld [vmem:[#allocation3 + $0x20] sm:$0xff]  ;;  %v3461_v34 = vld [vmem:[%s4429_s5 + $0x160] ss:$8 sps:$4 sm:$0xff]  }
 0x314   : > { %787 = vst.msk [vmem:[#allocation3 + $0x30] sm:$0xff] %vm731_vm3, %v782_v36  ;;  %v3463_v36 = vld [vmem:[%s4429_s5 + $0x174] ss:$8 sps:$4 sm:$0xff]  }
 0x315   : > { %3121 = vmatpush3.bf16.msra.mxu1 %v876_v37  ;;  %v857_v40 = vpop.permute.xlu1 %856  ;;  %v886_v44 = vld [vmem:[#allocation3 + $0x70] sm:$0xff]  ;;  %v3465_v37 = vld [vmem:[%s4429_s5 + $0x170] ss:$8 sps:$4 sm:$0xff]  }
 0x316   : > { %3122 = vmatprep.subr.bf16.mxu1 %v885_v38  ;;  %862 = vst.msk [vmem:[#allocation3 + $0x80] sm:$0xff] %vm731_vm3, %v857_v40  ;;  %v3466_v38 = vld [vmem:[%s4429_s5 + $0x184] ss:$8 sps:$4 sm:$0xff]   ;;  %v3469_v40 = vld [vmem:[%s4429_s5 + $0x180] ss:$8 sps:$4 sm:$0xff]  }
 0x317   : > { %v784_v42 = vpop.permute.xlu0 %783  ;;  %v877_v43 = vld [vmem:[#allocation3 + $0x28] sm:$0xff] }
 0x318   : > { %788 = vst.msk [vmem:[#allocation3 + $0x38] sm:$0xff] %vm731_vm3, %v784_v42  ;;  %v3471_v42 = vld [vmem:[%s4429_s5 + $0x194] ss:$8 sps:$4 sm:$0xff]  }
 0x319   : > { %3123 = vmatpush3.bf16.msra.mxu1 %v877_v43  ;;  %v887_v49 = vld [vmem:[#allocation3 + $0x78] sm:$0xff]  ;;  %v3473_v43 = vld [vmem:[%s4429_s5 + $0x190] ss:$8 sps:$4 sm:$0xff]  }
 0x31a   : > { %3124 = vmatprep.subr.bf16.mxu1 %v886_v44  ;;  %v3474_v44 = vld [vmem:[%s4429_s5 + $0x1a4] ss:$8 sps:$4 sm:$0xff]  }
 0x31b   : > { %v859_v46 = vpop.permute.xlu0 %858  ;;  %v878_v48 = vld [vmem:[#allocation3 + $0x30] sm:$0xff] }
 0x31c   : > { %863 = vst.msk [vmem:[#allocation3 + $0x88] sm:$0xff] %vm731_vm3, %v859_v46 }
 0x31d   : > { %3125 = vmatpush3.bf16.msra.mxu1 %v878_v48  ;;  %v888_v50 = vld [vmem:[#allocation3 + $0x80] sm:$0xff] }
 0x31e   : > { %3126 = vmatprep.subr.bf16.mxu1 %v887_v49  ;;  %3212 = vmatprep.subr.bf16.mxu0 %v888_v50  ;;  %v3477_v49 = vld [vmem:[%s4429_s5 + $0x1a0] ss:$8 sps:$4 sm:$0xff]  }
 0x31f   : > { %v879_v52 = vld [vmem:[#allocation3 + $0x38] sm:$0xff]  ;;  %3213 = vmatpush3.bf16.msra.mxu0 %v888_v50 }
 0x321   : > { %3127 = vmatpush3.bf16.msra.mxu1 %v879_v52 }
 0x322   : > { %3288 = vmatprep.subr.bf16.mxu1 %v3508_v14 }
 0x323   : > { %v889_v55 = vld [vmem:[#allocation3 + $0x88] sm:$0xff] }
 0x324   : > { %960 = vmatmul.mubr.bf16.vlgmr.msra.gmra.mrb[8].mxu1 %v3362_v54  ;;  %3214 = vmatprep.subr.bf16.mxu0 %v889_v55  ;;  %v3479_v54 = vld [vmem:[%s4429_s5 + $0x1b4] ss:$8 sps:$4 sm:$0xff]  }
 0x325   : > { %3215 = vmatpush3.bf16.msra.mxu0 %v889_v55  ;;  %3304 = vmatpush1.bf16.msra.mxu1 %v3613_v23 }
 0x326   : > { %1479 = vmatprep.subr.bf16.mxu0 %v3508_v14  ;;  %3289 = vmatprep.subr.bf16.mxu1 %v3508_v14 }
 0x327   : > { %967 = vmatprep.mubr.bf16.mxu1 %v3367_v56 }
 0x328   : > { %3217 = vmatmul.mubr.msk.bf16.vlgmr.msra.gmra.mrb[32].mxu0 %vm920_vm4, %v3366_v58 }
 0x329   : > { %1480 = vmatpush1.bf16.msra.mxu0 %v3613_v23  ;;  %3305 = vmatpush1.bf16.msra.mxu1 %v3611_v21  ;;  %v3391_v23 = vld [vmem:[%s4429_s5 + $0x84] ss:$8 sps:$4 sm:$0xff]  }
 0x32a   : > { %1481 = vmatprep.subr.bf16.mxu0 %v3508_v14  ;;  %3290 = vmatprep.subr.bf16.mxu1 %v3508_v14 }
 0x32b   : > { %1511 = vmatprep.mubr.bf16.mxu0 %v3372_v60 }
 0x32c   : > { %968 = vmatmul.mubr.bf16.gmra.mrb[12].mxu1 %v3369_v61 }
 0x32d   : > { %1482 = vmatpush1.bf16.msra.mxu0 %v3611_v21  ;;  %3306 = vmatpush1.bf16.msra.mxu1 %v3617_v29  ;;  %v3385_v21 = vld [vmem:[%s4429_s5 + $0x70] ss:$8 sps:$4 sm:$0xff]  }
 0x32e   : > { %1483 = vmatprep.subr.bf16.mxu0 %v3508_v14  ;;  %3291 = vmatprep.subr.bf16.mxu1 %v3508_v14 }
 0x32f   : > { %1567 = vmatprep.mubr.bf16.mxu1 %v3387_v62 }
 0x331   : > { %1484 = vmatpush1.bf16.msra.mxu0 %v3617_v29  ;;  %3307 = vmatpush1.bf16.msra.mxu1 %v3615_v27  ;;  %v3373_v29 = vld [vmem:[%s4429_s5 + $0x14] ss:$8 sps:$4 sm:$0xff]  }
 0x332   : > { %1485 = vmatprep.subr.bf16.mxu0 %v3508_v14  ;;  %3292 = vmatprep.subr.bf16.mxu1 %v3508_v14 }
 0x335   : > { %1486 = vmatpush1.bf16.msra.mxu0 %v3615_v27  ;;  %3308 = vmatpush1.bf16.msra.mxu1 %v3621_v35  ;;  %v3370_v27 = vld [vmem:[%s4429_s5] ss:$8 sps:$4 sm:$0xff]  }
 0x336   : > { %1487 = vmatprep.subr.bf16.mxu0 %v3508_v14  ;;  %3293 = vmatprep.subr.bf16.mxu1 %v3508_v14 }
 0x339   : > { %1488 = vmatpush1.bf16.msra.mxu0 %v3621_v35  ;;  %3309 = vmatpush1.bf16.msra.mxu1 %v3619_v33  ;;  %v3397_v35 = vld [vmem:[%s4429_s5 + $0x94] ss:$8 sps:$4 sm:$0xff]  }
 0x33a   : > { %1489 = vmatprep.subr.bf16.mxu0 %v3508_v14  ;;  %3294 = vmatprep.subr.bf16.mxu1 %v3508_v14 }
 0x33d   : > { %1490 = vmatpush1.bf16.msra.mxu0 %v3619_v33  ;;  %3310 = vmatpush1.bf16.msra.mxu1 %v3625_v41  ;;  %v3393_v33 = vld [vmem:[%s4429_s5 + $0x80] ss:$8 sps:$4 sm:$0xff]  }
 0x33e   : > { %1491 = vmatprep.subr.bf16.mxu0 %v3508_v14  ;;  %3295 = vmatprep.subr.bf16.mxu1 %v3508_v14 }
 0x341   : > { %1492 = vmatpush1.bf16.msra.mxu0 %v3625_v41  ;;  %3311 = vmatpush1.bf16.msra.mxu1 %v3623_v39  ;;  %v3376_v41 = vld [vmem:[%s4429_s5 + $0x24] ss:$8 sps:$4 sm:$0xff]  }
 0x342   : > { %1493 = vmatprep.subr.bf16.mxu0 %v3508_v14  ;;  %3296 = vmatprep.subr.bf16.mxu1 %v3508_v14 }
 0x345   : > { %1494 = vmatpush1.bf16.msra.mxu0 %v3623_v39  ;;  %3312 = vmatpush1.bf16.msra.mxu1 %v3629_v47  ;;  %v3375_v39 = vld [vmem:[%s4429_s5 + $0x10] ss:$8 sps:$4 sm:$0xff]  }
 0x346   : > { %1495 = vmatprep.subr.bf16.mxu0 %v3508_v14  ;;  %3297 = vmatprep.subr.bf16.mxu1 %v3508_v14 }
 0x349   : > { %1496 = vmatpush1.bf16.msra.mxu0 %v3629_v47  ;;  %3313 = vmatpush1.bf16.msra.mxu1 %v3627_v45  ;;  %v3402_v47 = vld [vmem:[%s4429_s5 + $0xa4] ss:$8 sps:$4 sm:$0xff]  }
 0x34a   : > { %1497 = vmatprep.subr.bf16.mxu0 %v3508_v14  ;;  %3298 = vmatprep.subr.bf16.mxu1 %v3508_v14 }
 0x34d   : > { %1498 = vmatpush1.bf16.msra.mxu0 %v3627_v45  ;;  %3314 = vmatpush1.bf16.msra.mxu1 %v3637_v53  ;;  %v3399_v45 = vld [vmem:[%s4429_s5 + $0x90] ss:$8 sps:$4 sm:$0xff]  }
 0x34e   : > { %1499 = vmatprep.subr.bf16.mxu0 %v3508_v14  ;;  %3299 = vmatprep.subr.bf16.mxu1 %v3508_v14 }
 0x351   : > { %1500 = vmatpush1.bf16.msra.mxu0 %v3637_v53  ;;  %3315 = vmatpush1.bf16.msra.mxu1 %v3634_v51  ;;  %v3379_v53 = vld [vmem:[%s4429_s5 + $0x34] ss:$8 sps:$4 sm:$0xff]  }
 0x352   : > { %1501 = vmatprep.subr.bf16.mxu0 %v3508_v14  ;;  %3300 = vmatprep.subr.bf16.mxu1 %v3508_v14 }
 0x355   : > { %1502 = vmatpush1.bf16.msra.mxu0 %v3634_v51  ;;  %3316 = vmatpush1.bf16.msra.mxu1 %v3645_v59  ;;  %v3378_v51 = vld [vmem:[%s4429_s5 + $0x20] ss:$8 sps:$4 sm:$0xff]  }
 0x356   : > { %1503 = vmatprep.subr.bf16.mxu0 %v3508_v14  ;;  %3301 = vmatprep.subr.bf16.mxu1 %v3508_v14 }
 0x359   : > { %1504 = vmatpush1.bf16.msra.mxu0 %v3645_v59  ;;  %3317 = vmatpush1.bf16.msra.mxu1 %v3642_v57  ;;  %v3407_v59 = vld [vmem:[%s4429_s5 + $0xb4] ss:$8 sps:$4 sm:$0xff]  }
 0x35a   : > { %1505 = vmatprep.subr.bf16.mxu0 %v3508_v14  ;;  %3302 = vmatprep.subr.bf16.mxu1 %v3508_v14 }
 0x35d   : > { %1506 = vmatpush1.bf16.msra.mxu0 %v3642_v57  ;;  %3318 = vmatpush1.bf16.msra.mxu1 %v3653_v1  ;;  %v3404_v57 = vld [vmem:[%s4429_s5 + $0xa0] ss:$8 sps:$4 sm:$0xff]  }
 0x35e   : > { %1507 = vmatprep.subr.bf16.mxu0 %v3508_v14  ;;  %3303 = vmatprep.subr.bf16.mxu1 %v3508_v14 }
 0x361   : > { %1508 = vmatpush1.bf16.msra.mxu0 %v3653_v1  ;;  %3319 = vmatpush1.bf16.msra.mxu1 %v3650_v63  ;;  %v3382_v1 = vld [vmem:[%s4429_s5 + $0x44] ss:$8 sps:$4 sm:$0xff]  }
 0x362   : > { %1509 = vmatprep.subr.bf16.mxu0 %v3508_v14  ;;  %v3409_v14 = vld [vmem:[%s4429_s5 + $0xb0] ss:$8 sps:$4 sm:$0xff]  }
 0x364   : > { %1568 = vmatmul.mubr.bf16.vlgmr.msra.gmra.mrb[16].mxu1 %v3385_v21 }
 0x365   : > { %1510 = vmatpush1.bf16.msra.mxu0 %v3650_v63  ;;  %1575 = vmatprep.mubr.bf16.mxu1 %v3391_v23  ;;  %v3381_v63 = vld [vmem:[%s4429_s5 + $0x30] ss:$8 sps:$4 sm:$0xff]  }
 0x368   : > { %1512 = vmatmul.mubr.bf16.vlgmr.msra.gmra.mrb[36].mxu0 %v3370_v27 }
 0x369   : > { %1519 = vmatprep.mubr.bf16.mxu0 %v3373_v29 }
 0x36c   : > { %1576 = vmatmul.mubr.bf16.gmra.mrb[20].mxu1 %v3393_v33  ;;  %v3481_v33 = vld [vmem:[%s4429_s5 + $0x1b0] ss:$8 sps:$4 sm:$0xff]  }
 0x36d   : > { %1583 = vmatprep.mubr.bf16.mxu1 %v3397_v35 }
 0x370   : > { %1520 = vmatmul.mubr.bf16.gmra.mrb[40].mxu0 %v3375_v39 }
 0x371   : > { %1527 = vmatprep.mubr.bf16.mxu0 %v3376_v41 }
 0x374   : > { %1584 = vmatmul.mubr.bf16.gmra.mrb[24].mxu1 %v3399_v45 }
 0x375   : > { %1591 = vmatprep.mubr.bf16.mxu1 %v3402_v47  ;;  %v3482_v47 = vld [vmem:[%s4429_s5 + $0x1c4] ss:$8 sps:$4 sm:$0xff]  }
 0x378   : > { %1528 = vmatmul.mubr.bf16.gmra.mrb[44].mxu0 %v3378_v51 }
 0x379   : > { %1535 = vmatprep.mubr.bf16.mxu0 %v3379_v53 }
 0x37c   : > { %1592 = vmatmul.mubr.bf16.gmra.mrb[28].mxu1 %v3404_v57 }
 0x37d   : > { %1599 = vmatprep.mubr.bf16.mxu1 %v3407_v59 }
 0x380   : > { %1536 = vmatmul.mubr.bf16.gmra.mrb[48].mxu0 %v3381_v63 }
 0x381   : > { %1543 = vmatprep.mubr.bf16.mxu0 %v3382_v1 }
 0x384   : > { %1600 = vmatmul.mubr.bf16.gmra.mrb[32].mxu1 %v3409_v14 }
 0x385   : > { %1607 = vmatprep.mubr.bf16.mxu1 %v3412_v0  ;;  %v3485_v0 = vld [vmem:[%s4429_s5 + $0x1c0] ss:$8 sps:$4 sm:$0xff]  }
 0x388   : > { %1544 = vmatmul.mubr.bf16.gmra.mrb[52].mxu0 %v3384_v2 }
 0x389   : > { %1551 = vmatprep.mubr.bf16.mxu0 %v3388_v3  ;;  %v3487_v3 = vld [vmem:[%s4429_s5 + $0x1d4] ss:$8 sps:$4 sm:$0xff]  }
 0x38c   : > { %1608 = vmatmul.mubr.bf16.gmra.mrb[36].mxu1 %v3414_v4  ;;  %v3401_v4 = vld [vmem:[%s4427_s3 + $0x8] sm:$0xff]  }
 0x38d   : > { %1615 = vmatprep.mubr.bf16.mxu1 %v3417_v5  ;;  %v3405_v5 = vld [vmem:[%s4427_s3 + $0x10] sm:$0xff]  }
 0x390   : > { %1552 = vmatmul.mubr.bf16.gmra.mrb[56].mxu0 %v3390_v6  ;;  %v3489_v6 = vld [vmem:[%s4429_s5 + $0x1d0] ss:$8 sps:$4 sm:$0xff]  }
 0x391   : > { %1559 = vmatprep.mubr.bf16.mxu0 %v3394_v7  ;;  %v3490_v7 = vld [vmem:[%s4429_s5 + $0x1e4] ss:$8 sps:$4 sm:$0xff]  }
 0x394   : > { %1616 = vmatmul.mubr.bf16.gmra.mrb[40].mxu1 %v3419_v8  ;;  %v3406_v8 = vld [vmem:[%s4427_s3 + $0x18] sm:$0xff]  }
 0x395   : > { %1623 = vmatprep.mubr.bf16.mxu1 %v3422_v9  ;;  %v3410_v9 = vld [vmem:[%s4427_s3 + $0x20] sm:$0xff]  }
 0x398   : > { %1560 = vmatmul.mubr.bf16.gmra.mrb[60].mxu0 %v3396_v10  ;;  %v3493_v10 = vld [vmem:[%s4429_s5 + $0x1e0] ss:$8 sps:$4 sm:$0xff]  }
 0x399   : > { %3224 = vmatprep.mubr.msk.bf16.mxu0 %vm920_vm4, %v3400_v11  ;;  %v3495_v11 = vld [vmem:[%s4429_s5 + $0x1f4] ss:$8 sps:$4 sm:$0xff]  }
 0x39c   : > { %1624 = vmatmul.mubr.bf16.gmra.mrb[44].mxu1 %v3424_v12  ;;  %v3411_v12 = vld [vmem:[%s4427_s3 + $0x28] sm:$0xff]  }
 0x39d   : > { %1631 = vmatprep.mubr.bf16.mxu1 %v3427_v13  ;;  %v3415_v13 = vld [vmem:[%s4427_s3 + $0x30] sm:$0xff]  }
 0x3a4   : > { %1632 = vmatmul.mubr.bf16.gmra.mrb[48].mxu1 %v3429_v15  ;;  %v3497_v15 = vld [vmem:[%s4429_s5 + $0x1f0] ss:$8 sps:$4 sm:$0xff]  }
 0x3a5   : > { %1639 = vmatprep.mubr.bf16.mxu1 %v3432_v16  ;;  %v3416_v16 = vld [vmem:[%s4427_s3 + $0x38] sm:$0xff]  }
 0x3ac   : > { %1640 = vmatmul.mubr.bf16.gmra.mrb[52].mxu1 %v3434_v17  ;;  %v3420_v17 = vld [vmem:[%s4427_s3 + $0x40] sm:$0xff]  }
 0x3ad   : > { %1647 = vmatprep.mubr.bf16.mxu1 %v3437_v18  ;;  %v3421_v18 = vld [vmem:[%s4427_s3 + $0x48] sm:$0xff]  }
 0x3b4   : > { %1648 = vmatmul.mubr.bf16.gmra.mrb[56].mxu1 %v3439_v19  ;;  %v3425_v19 = vld [vmem:[%s4427_s3 + $0x50] sm:$0xff]  }
 0x3b5   : > { %1655 = vmatprep.mubr.bf16.mxu1 %v3442_v20  ;;  %v3426_v20 = vld [vmem:[%s4427_s3 + $0x58] sm:$0xff]  }
 0x3bc   : > { %1656 = vmatmul.mubr.bf16.gmra.mrb[60].mxu1 %v3444_v22  ;;  %v3430_v22 = vld [vmem:[%s4427_s3 + $0x60] sm:$0xff]  }
 0x3bd   : > { %1663 = vmatprep.mubr.bf16.mxu1 %v3447_v24 }
 0x3c4   : > { %1664 = vmatmul.mubr.bf16.gmra.mrb[64].mxu1 %v3449_v25 }
 0x3c5   : > { %1671 = vmatprep.mubr.bf16.mxu1 %v3450_v26 }
 0x3cc   : > { %1672 = vmatmul.mubr.bf16.gmra.mrb[68].mxu1 %v3453_v28 }
 0x3cd   : > { %1679 = vmatprep.mubr.bf16.mxu1 %v3455_v30  ;;  %v3431_v30 = vld [vmem:[%s4427_s3 + $0x68] sm:$0xff]  }
 0x3d4   : > { %1680 = vmatmul.mubr.bf16.gmra.mrb[72].mxu1 %v3457_v31 }
 0x3d5   : > { %1687 = vmatprep.mubr.bf16.mxu1 %v3458_v32  ;;  %v3435_v32 = vld [vmem:[%s4427_s3 + $0x70] sm:$0xff]  }
 0x3dc   : > { %1688 = vmatmul.mubr.bf16.gmra.mrb[76].mxu1 %v3461_v34 }
 0x3dd   : > { %1695 = vmatprep.mubr.bf16.mxu1 %v3463_v36 }
 0x3e4   : > { %1696 = vmatmul.mubr.bf16.gmra.mrb[80].mxu1 %v3465_v37 }
 0x3e5   : > { %1703 = vmatprep.mubr.bf16.mxu1 %v3466_v38 }
 0x3ec   : > { %1704 = vmatmul.mubr.bf16.gmra.mrb[84].mxu1 %v3469_v40 }
 0x3ed   : > { %1711 = vmatprep.mubr.bf16.mxu1 %v3471_v42 }
 0x3f4   : > { %1712 = vmatmul.mubr.bf16.gmra.mrb[88].mxu1 %v3473_v43 }
 0x3f5   : > { %1719 = vmatprep.mubr.bf16.mxu1 %v3474_v44  ;;  %v3436_v44 = vld [vmem:[%s4427_s3 + $0x78] sm:$0xff]  }
 0x3f7   : > { %v3128_v46 = vpop.f32.mrb[8].mxu1 }
 0x3f8   : > { %v3129_v48 = vpop.f32.mrb[9].mxu1 }
 0x3f9   : > { %v3130_v50 = vadd.f32 %v3129_v48, %v3128_v46  ;;  %v3131_v52 = vpop.f32.mrb[10].mxu1  ;;  %v3440_v48 = vld [vmem:[%s4427_s3 + $0x80] sm:$0xff]  }
 0x3fa   : > { %v3132_v55 = vpop.f32.mrb[11].mxu1 }
 0x3fb   : > { %v3218_v56 = vpop.f32.mrb[32].mxu0  ;;  %v3133_v58 = vadd.f32 %v3132_v55, %v3131_v52 }
 0x3fc   : > { %v1010_v60 = vpop.f32.mrb[33].mxu0  ;;  %1720 = vmatmul.mubr.bf16.gmra.mrb[92].mxu1 %v3477_v49 }
 0x3fd   : > { %v1011_v61 = vadd.f32 %v3130_v50, %v1010_v60  ;;  %v3219_v62 = vpop.f32.mrb[34].mxu0  ;;  %1727 = vmatprep.mubr.bf16.mxu1 %v3479_v54  ;;  %v3441_v60 = vld [vmem:[%s4427_s3 + $0x88] sm:$0xff]  }
 0x3fe   : > { %v1013_v21 = vpop.f32.mrb[35].mxu0 }
 0x3ff   : > { %v3134_v23 = vpop.f32.mrb[12].mxu1  ;;  %v1014_v27 = vadd.f32 %v3133_v58, %v1013_v21  ;;  %v1025_v35 = vmax.f32 %v1011_v61, 0.0 }
 0x400   : > { %v3135_v29 = vpop.f32.mrb[13].mxu1 }
 0x401   : > { %v3136_v39 = vadd.f32 %v3135_v29, %v3134_v23  ;;  %v1026_v41 = vmax.f32 %v1014_v27, 0.0  ;;  %v3137_v45 = vpop.f32.mrb[14].mxu1 }
 0x402   : > { %v3138_v51 = vpop.f32.mrb[15].mxu1 }
 0x403   : > { %v1019_v53 = vadd.f32 %v3218_v56, %v3136_v39  ;;  %v1029_v57 = vpack.c.bf16 %v1026_v41, %v1025_v35  ;;  %v3139_v59 = vadd.f32 %v3138_v51, %v3137_v45  ;;  %v3446_v41 = vld [vmem:[%s4427_s3 + $0x98] sm:$0xff]  }
 0x404   : > { %1728 = vmatmul.mubr.bf16.gmra.mrb[96].mxu1 %v3481_v33 }
 0x405   : > { %v1022_v63 = vadd.f32 %v3219_v62, %v3139_v59  ;;  %3220 = vmatprep.subr.bf16.mxu0 %v1029_v57  ;;  %1735 = vmatprep.mubr.bf16.mxu1 %v3482_v47  ;;  %v1027_v1 = vmax.f32 %v1019_v53, 0.0  ;;  %v3445_v62 = vld [vmem:[%s4427_s3 + $0x90] sm:$0xff]   ;;  %v3452_v47 = vld [vmem:[%s4427_s3 + $0xa0] sm:$0xff]  }
 0x406   : > { %3221 = vmatpush3.bf16.msra.mxu0 %v1029_v57 }
 0x407   : > { %v1028_v14 = vmax.f32 %v1022_v63, 0.0 }
 0x409   : > { %v1030_v2 = vpack.c.bf16 %v1028_v14, %v1027_v1 }
 0x40b   : > { %3222 = vmatprep.subr.bf16.mxu0 %v1030_v2 }
 0x40c   : > { %3223 = vmatpush3.bf16.msra.mxu0 %v1030_v2  ;;  %1736 = vmatmul.mubr.bf16.gmra.mrb[100].mxu1 %v3485_v0  ;;  %v3454_v0 = vld [vmem:[%s4427_s3 + $0xa8] sm:$0xff]  }
 0x40d   : > { %1743 = vmatprep.mubr.bf16.mxu1 %v3487_v3  ;;  %v3460_v3 = vld [vmem:[%s4427_s3 + $0xb0] sm:$0xff]  }
 0x40f   : > { %3225 = vmatmul.mubr.msk.bf16.vlgmr.msra.gmra.mrb[64].mxu0 %vm920_vm4, %v3401_v4 }
 0x410   : > { %3228 = vmatprep.mubr.msk.bf16.mxu0 %vm920_vm4, %v3405_v5 }
 0x414   : > { %1744 = vmatmul.mubr.bf16.gmra.mrb[104].mxu1 %v3489_v6 }
 0x415   : > { %1751 = vmatprep.mubr.bf16.mxu1 %v3490_v7 }
 0x417   : > { %3229 = vmatmul.mubr.msk.bf16.gmra.mrb[68].mxu0 %vm920_vm4, %v3406_v8 }
 0x418   : > { %3232 = vmatprep.mubr.msk.bf16.mxu0 %vm920_vm4, %v3410_v9 }
 0x41c   : > { %1752 = vmatmul.mubr.bf16.gmra.mrb[108].mxu1 %v3493_v10 }
 0x41d   : > { %1759 = vmatprep.mubr.bf16.mxu1 %v3495_v11  ;;  %v3462_v11 = vld [vmem:[%s4427_s3 + $0xb8] sm:$0xff]  }
 0x41f   : > { %3233 = vmatmul.mubr.msk.bf16.gmra.mrb[72].mxu0 %vm920_vm4, %v3411_v12 }
 0x420   : > { %3236 = vmatprep.mubr.msk.bf16.mxu0 %vm920_vm4, %v3415_v13  ;;  %v3468_v13 = vld [vmem:[%s4427_s3 + $0xc0] sm:$0xff]  }
 0x424   : > { %1760 = vmatmul.mubr.bf16.gmra.mrb[112].mxu1 %v3497_v15 }
 0x427   : > { %3237 = vmatmul.mubr.msk.bf16.gmra.mrb[76].mxu0 %vm920_vm4, %v3416_v16 }
 0x428   : > { %3240 = vmatprep.mubr.msk.bf16.mxu0 %vm920_vm4, %v3420_v17 }
 0x42f   : > { %3241 = vmatmul.mubr.msk.bf16.gmra.mrb[80].mxu0 %vm920_vm4, %v3421_v18 }
 0x430   : > { %3244 = vmatprep.mubr.msk.bf16.mxu0 %vm920_vm4, %v3425_v19 }
 0x437   : > { %3245 = vmatmul.mubr.msk.bf16.gmra.mrb[84].mxu0 %vm920_vm4, %v3426_v20  ;;  %v4018_v24 = vpop.f32.mrb[16].mxu1 }
 0x438   : > { %3248 = vmatprep.mubr.msk.bf16.mxu0 %vm920_vm4, %v3430_v22  ;;  %v1571_v25 = vpop.f32.mrb[17].mxu1 }
 0x439   : > { %v4021_v26 = vpop.f32.mrb[18].mxu1  ;;  %v3470_v25 = vld [vmem:[%s4427_s3 + $0xc8] sm:$0xff]  }
 0x43a   : > { %v1574_v28 = vpop.f32.mrb[19].mxu1 }
 0x43b   : > { %v4026_v31 = vpop.f32.mrb[36].mxu0 }
 0x43c   : > { %v1515_v34 = vpop.f32.mrb[37].mxu0 }
 0x43d   : > { %v4031_v36 = vpop.f32.mrb[38].mxu0 }
 0x43e   : > { %v1518_v37 = vpop.f32.mrb[39].mxu0 }
 0x43f   : > { %3249 = vmatmul.mubr.msk.bf16.gmra.mrb[88].mxu0 %vm920_vm4, %v3431_v30  ;;  %v4034_v38 = vpop.f32.mrb[20].mxu1  ;;  %v3476_v30 = vld [vmem:[%s4427_s3 + $0xd0] sm:$0xff]  }
 0x440   : > { %3252 = vmatprep.mubr.msk.bf16.mxu0 %vm920_vm4, %v3435_v32  ;;  %v1579_v40 = vpop.f32.mrb[21].mxu1 }
 0x441   : > { %v4037_v42 = vpop.f32.mrb[22].mxu1 }
 0x442   : > { %v1582_v43 = vpop.f32.mrb[23].mxu1 }
 0x443   : > { %v4042_v46 = vpop.f32.mrb[40].mxu0 }
 0x444   : > { %v1523_v49 = vpop.f32.mrb[41].mxu0 }
 0x445   : > { %v4047_v50 = vpop.f32.mrb[42].mxu0  ;;  %v3478_v49 = vld [vmem:[%s4427_s3 + $0xd8] sm:$0xff]  }
 0x446   : > { %v1526_v52 = vpop.f32.mrb[43].mxu0 }
 0x447   : > { %3253 = vmatmul.mubr.msk.bf16.gmra.mrb[92].mxu0 %vm920_vm4, %v3436_v44  ;;  %v4050_v54 = vpop.f32.mrb[24].mxu1  ;;  %v3484_v52 = vld [vmem:[%s4427_s3 + $0xe0] sm:$0xff]  }
 0x448   : > { %3256 = vmatprep.mubr.msk.bf16.mxu0 %vm920_vm4, %v3440_v48  ;;  %v1587_v55 = vpop.f32.mrb[25].mxu1 }
 0x449   : > { %v4053_v56 = vpop.f32.mrb[26].mxu1 }
 0x44a   : > { %v1590_v58 = vpop.f32.mrb[27].mxu1 }
 0x44b   : > { %v4058_v61 = vpop.f32.mrb[44].mxu0 }
 0x44c   : > { %v1531_v21 = vpop.f32.mrb[45].mxu0 }
 0x44d   : > { %v4063_v23 = vpop.f32.mrb[46].mxu0  ;;  %v3486_v21 = vld [vmem:[%s4427_s3 + $0xe8] sm:$0xff]  }
 0x44e   : > { %v1534_v27 = vpop.f32.mrb[47].mxu0 }
 0x44f   : > { %3257 = vmatmul.mubr.msk.bf16.gmra.mrb[96].mxu0 %vm920_vm4, %v3441_v60  ;;  %v4066_v29 = vpop.f32.mrb[28].mxu1  ;;  %v3492_v27 = vld [vmem:[%s4427_s3 + $0xf0] sm:$0xff]  }
 0x450   : > { %3260 = vmatprep.mubr.msk.bf16.mxu0 %vm920_vm4, %v3445_v62  ;;  %v1595_v33 = vpop.f32.mrb[29].mxu1 }
 0x451   : > { %v4069_v35 = vpop.f32.mrb[30].mxu1 }
 0x452   : > { %v1598_v39 = vpop.f32.mrb[31].mxu1 }
 0x453   : > { %v4074_v45 = vpop.f32.mrb[48].mxu0 }
 0x454   : > { %v1539_v51 = vpop.f32.mrb[49].mxu0 }
 0x455   : > { %v4079_v53 = vpop.f32.mrb[50].mxu0  ;;  %v3494_v51 = vld [vmem:[%s4427_s3 + $0xf8] sm:$0xff]  }
 0x456   : > { %v1542_v57 = vpop.f32.mrb[51].mxu0 }
 0x457   : > { %3261 = vmatmul.mubr.msk.bf16.gmra.mrb[100].mxu0 %vm920_vm4, %v3446_v41  ;;  %v4082_v59 = vpop.f32.mrb[32].mxu1 }
 0x458   : > { %3264 = vmatprep.mubr.msk.bf16.mxu0 %vm920_vm4, %v3452_v47  ;;  %v1603_v63 = vpop.f32.mrb[33].mxu1 }
 0x459   : > { %v4085_v1 = vpop.f32.mrb[34].mxu1 }
 0x45a   : > { %v1606_v14 = vpop.f32.mrb[35].mxu1 }
 0x45b   : > { %v4090_v2 = vpop.f32.mrb[52].mxu0 }
 0x45c   : > { %v1547_v4 = vpop.f32.mrb[53].mxu0 }
 0x45d   : > { %v4095_v5 = vpop.f32.mrb[54].mxu0 }
 0x45e   : > { %v1550_v6 = vpop.f32.mrb[55].mxu0 }
 0x45f   : > { %3265 = vmatmul.mubr.msk.bf16.gmra.mrb[104].mxu0 %vm920_vm4, %v3454_v0  ;;  %v4098_v7 = vpop.f32.mrb[36].mxu1 }
 0x460   : > { %3268 = vmatprep.mubr.msk.bf16.mxu0 %vm920_vm4, %v3460_v3  ;;  %v1611_v8 = vpop.f32.mrb[37].mxu1 }
 0x461   : > { %v4101_v9 = vpop.f32.mrb[38].mxu1 }
 0x462   : > { %v1614_v10 = vpop.f32.mrb[39].mxu1 }
 0x463   : > { %v4106_v12 = vpop.f32.mrb[56].mxu0 }
 0x464   : > { %v1555_v15 = vpop.f32.mrb[57].mxu0 }
 0x465   : > { %v4111_v16 = vpop.f32.mrb[58].mxu0 }
 0x466   : > { %v1558_v17 = vpop.f32.mrb[59].mxu0 }
 0x467   : > { %3269 = vmatmul.mubr.msk.bf16.gmra.mrb[108].mxu0 %vm920_vm4, %v3462_v11  ;;  %v4114_v18 = vpop.f32.mrb[40].mxu1 }
 0x468   : > { %3272 = vmatprep.mubr.msk.bf16.mxu0 %vm920_vm4, %v3468_v13  ;;  %v1619_v19 = vpop.f32.mrb[41].mxu1 }
 0x469   : > { %v4117_v20 = vpop.f32.mrb[42].mxu1 }
 0x46a   : > { %v1622_v22 = vpop.f32.mrb[43].mxu1 }
 0x46b   : > { %v4122_v28 = vpop.f32.mrb[60].mxu0 }
 0x46c   : > { %v1563_v32 = vpop.f32.mrb[61].mxu0 }
 0x46d   : > { %v4127_v34 = vpop.f32.mrb[62].mxu0 }
 0x46e   : > { %v1566_v37 = vpop.f32.mrb[63].mxu0 }
 0x46f   : > { %3273 = vmatmul.mubr.msk.bf16.gmra.mrb[112].mxu0 %vm920_vm4, %v3470_v25  ;;  %v4130_v40 = vpop.f32.mrb[44].mxu1 }
 0x470   : > { %3276 = vmatprep.mubr.msk.bf16.mxu0 %vm920_vm4, %v3476_v30  ;;  %v1627_v43 = vpop.f32.mrb[45].mxu1 }
 0x471   : > { %v4133_v44 = vpop.f32.mrb[46].mxu1 }
 0x472   : > { %v1630_v48 = vpop.f32.mrb[47].mxu1 }
 0x477   : > { %3277 = vmatmul.mubr.msk.bf16.gmra.mrb[116].mxu0 %vm920_vm4, %v3478_v49  ;;  %v4142_v55 = vpop.f32.mrb[48].mxu1 }
 0x478   : > { %3280 = vmatprep.mubr.msk.bf16.mxu0 %vm920_vm4, %v3484_v52  ;;  %v1635_v58 = vpop.f32.mrb[49].mxu1 }
 0x479   : > { %v4145_v60 = vpop.f32.mrb[50].mxu1 }
 0x47a   : > { %v1638_v62 = vpop.f32.mrb[51].mxu1 }
 0x47f   : > { %3281 = vmatmul.mubr.msk.bf16.gmra.mrb[120].mxu0 %vm920_vm4, %v3486_v21  ;;  %v4154_v33 = vpop.f32.mrb[52].mxu1 }
 0x480   : > { %3284 = vmatprep.mubr.msk.bf16.mxu0 %vm920_vm4, %v3492_v27  ;;  %v1643_v39 = vpop.f32.mrb[53].mxu1 }
 0x481   : > { %v4157_v41 = vpop.f32.mrb[54].mxu1 }
 0x482   : > { %v1646_v47 = vpop.f32.mrb[55].mxu1 }
 0x487   : > { %3285 = vmatmul.mubr.msk.bf16.gmra.mrb[124].mxu0 %vm920_vm4, %v3494_v51  ;;  %v4163_v57 = vpop.f32.mrb[56].mxu1 }
 0x488   : > { %v1651_v63 = vpop.f32.mrb[57].mxu1 }
 0x489   : > { %v4165_v14 = vpop.f32.mrb[58].mxu1 }
 0x48a   : > { %v1654_v0 = vpop.f32.mrb[59].mxu1 }
 0x48f   : > { %v4167_v3 = vpop.f32.mrb[60].mxu1 }
 0x490   : > { %v1659_v4 = vpop.f32.mrb[61].mxu1 }
 0x491   : > { %v4169_v6 = vpop.f32.mrb[62].mxu1 }
 0x492   : > { %v1662_v8 = vpop.f32.mrb[63].mxu1 }
 0x497   : > { %v4171_v10 = vpop.f32.mrb[64].mxu1 }
 0x498   : > { %v1667_v11 = vpop.f32.mrb[65].mxu1 }
 0x499   : > { %v4173_v13 = vpop.f32.mrb[66].mxu1 }
 0x49a   : > { %v1670_v15 = vpop.f32.mrb[67].mxu1 }
 0x49f   : > { %v4175_v17 = vpop.f32.mrb[68].mxu1 }
 0x4a0   : > { %v1675_v19 = vpop.f32.mrb[69].mxu1 }
 0x4a1   : > { %v4177_v22 = vpop.f32.mrb[70].mxu1 }
 0x4a2   : > { %v1678_v25 = vpop.f32.mrb[71].mxu1 }
 0x4a7   : > { %v4179_v30 = vpop.f32.mrb[72].mxu1 }
 0x4a8   : > { %v1683_v32 = vpop.f32.mrb[73].mxu1 }
 0x4a9   : > { %v4181_v37 = vpop.f32.mrb[74].mxu1 }
 0x4aa   : > { %v1686_v43 = vpop.f32.mrb[75].mxu1 }
 0x4af   : > { %v4183_v48 = vpop.f32.mrb[76].mxu1 }
 0x4b0   : > { %v1691_v49 = vpop.f32.mrb[77].mxu1 }
 0x4b1   : > { %v4185_v52 = vpop.f32.mrb[78].mxu1 }
 0x4b2   : > { %v1694_v58 = vpop.f32.mrb[79].mxu1 }
 0x4b7   : > { %v4187_v62 = vpop.f32.mrb[80].mxu1 }
 0x4b8   : > { %v1699_v21 = vpop.f32.mrb[81].mxu1 }
 0x4b9   : > { %v4189_v27 = vpop.f32.mrb[82].mxu1 }
 0x4ba   : > { %v1702_v39 = vpop.f32.mrb[83].mxu1 }
 0x4bf   : > { %v4191_v47 = vpop.f32.mrb[84].mxu1 }
 0x4c0   : > { %v1707_v51 = vpop.f32.mrb[85].mxu1 }
 0x4c1   : > { %v4193_v63 = vpop.f32.mrb[86].mxu1 }
 0x4c2   : > { %4432 = vst [vmem:[#allocation4_spill] sm:$0xff] %v4193_v63  ;;  %v1710_v0 = vpop.f32.mrb[87].mxu1 }
 0x4c7   : > { %v4195_v4 = vpop.f32.mrb[88].mxu1 }
 0x4c8   : > { %v1715_v8 = vpop.f32.mrb[89].mxu1 }
 0x4c9   : > { %v4197_v11 = vpop.f32.mrb[90].mxu1 }
 0x4ca   : > { %4433 = vst [vmem:[#allocation5_spill] sm:$0xff] %v4197_v11  ;;  %v1718_v15 = vpop.f32.mrb[91].mxu1 }
 0x4cf   : > { %v4199_v19 = vpop.f32.mrb[92].mxu1 }
 0x4d0   : > { %4434 = vst [vmem:[#allocation6_spill] sm:$0xff] %v4199_v19  ;;  %v1723_v25 = vpop.f32.mrb[93].mxu1 }
 0x4d1   : > { %v4201_v32 = vpop.f32.mrb[94].mxu1 }
 0x4d2   : > { %4435 = vst [vmem:[#allocation7_spill] sm:$0xff] %v4201_v32  ;;  %v1726_v43 = vpop.f32.mrb[95].mxu1 }
 0x4d7   : > { %v4203_v49 = vpop.f32.mrb[96].mxu1 }
 0x4d8   : > { %4436 = vst [vmem:[#allocation8_spill] sm:$0xff] %v4203_v49  ;;  %v1731_v58 = vpop.f32.mrb[97].mxu1 }
 0x4d9   : > { %v4205_v21 = vpop.f32.mrb[98].mxu1 }
 0x4da   : > { %v1734_v39 = vpop.f32.mrb[99].mxu1 }
 0x4df   : > { %v4207_v51 = vpop.f32.mrb[100].mxu1 }
 0x4e0   : > { %4437 = vst [vmem:[#allocation9_spill] sm:$0xff] %v4207_v51  ;;  %v1739_v0 = vpop.f32.mrb[101].mxu1 }
 0x4e1   : > { %v4209_v8 = vpop.f32.mrb[102].mxu1 }
 0x4e2   : > { %4438 = vst [vmem:[#allocation10_spill] sm:$0xff] %v4209_v8  ;;  %v3226_v63 = vpop.f32.mrb[64].mxu0  ;;  %v1742_v11 = vpop.f32.mrb[103].mxu1 }
 0x4e3   : > { %v2067_v15 = vadd.f32 %v3226_v63, %v4042_v46  ;;  %v2058_v25 = vpop.f32.mrb[65].mxu0 }
 0x4e4   : > { %v2059_v32 = vadd.f32 %v2058_v25, %v4026_v31  ;;  %v3227_v43 = vpop.f32.mrb[66].mxu0 }
 0x4e5   : > { %v2315_v19 = vmax.f32 %v2067_v15, 0.0  ;;  %v2070_v58 = vadd.f32 %v3227_v43, %v4047_v50  ;;  %v2061_v49 = vpop.f32.mrb[67].mxu0 }
 0x4e6   : > { %v2313_v11 = vmax.f32 %v2059_v32, 0.0  ;;  %v2062_v46 = vadd.f32 %v2061_v49, %v4031_v36 }
 0x4e7   : > { %v3005_v63 = vpack.c.bf16 %v2315_v19, %v2315_v19  ;;  %v2316_v31 = vmax.f32 %v2070_v58, 0.0  ;;  %v4221_v39 = vpop.f32.mrb[104].mxu1 }
 0x4e8   : > { %v3003_v0 = vpack.c.bf16 %v2313_v11, %v2313_v11  ;;  %v2314_v50 = vmax.f32 %v2062_v46, 0.0  ;;  %v1747_v15 = vpop.f32.mrb[105].mxu1 }
 0x4e9   : > { %2636 = vst.msk [vmem:[%s4218_s28 + $0x8] sm:$0xf] %vm2633_vm5, %v3005_v63  ;;  %v3006_v25 = vpack.c.bf16 %v2316_v31, %v2316_v31  ;;  %v4225_v43 = vpop.f32.mrb[106].mxu1 }
 0x4ea   : > { %2634 = vst.msk [vmem:[%s4218_s28] sm:$0xf] %vm2633_vm5, %v3003_v0  ;;  %v3004_v8 = vpack.c.bf16 %v2314_v50, %v2314_v50  ;;  %v3230_v51 = vpop.f32.mrb[68].mxu0  ;;  %v1750_v32 = vpop.f32.mrb[107].mxu1 }
 0x4eb   : > { %2637 = vst.msk [vmem:[%s4218_s28 + $0xc] sm:$0xf] %vm2633_vm5, %v3006_v25  ;;  %v2083_v36 = vadd.f32 %v3230_v51, %v4074_v45  ;;  %v2074_v19 = vpop.f32.mrb[69].mxu0 }
 0x4ec   : > { %2635 = vst.msk [vmem:[%s4218_s28 + $0x4] sm:$0xf] %vm2633_vm5, %v3004_v8  ;;  %v2075_v49 = vadd.f32 %v2074_v19, %v4058_v61  ;;  %v3231_v58 = vpop.f32.mrb[70].mxu0 }
 0x4ed   : > { %v2319_v11 = vmax.f32 %v2083_v36, 0.0  ;;  %v2086_v46 = vadd.f32 %v3231_v58, %v4079_v53  ;;  %v2077_v63 = vpop.f32.mrb[71].mxu0 }
 0x4ee   : > { %v2317_v31 = vmax.f32 %v2075_v49, 0.0  ;;  %v2078_v0 = vadd.f32 %v2077_v63, %v4063_v23 }
 0x4ef   : > { %v3009_v50 = vpack.c.bf16 %v2319_v11, %v2319_v11  ;;  %v2320_v15 = vmax.f32 %v2086_v46, 0.0  ;;  %v4237_v45 = vpop.f32.mrb[108].mxu1 }
 0x4f0   : > { %v3007_v51 = vpack.c.bf16 %v2317_v31, %v2317_v31  ;;  %v2318_v25 = vmax.f32 %v2078_v0, 0.0  ;;  %v1755_v8 = vpop.f32.mrb[109].mxu1 }
 0x4f1   : > { %2640 = vst.msk [vmem:[%s4218_s28 + $0x18] sm:$0xf] %vm2633_vm5, %v3009_v50  ;;  %v3010_v61 = vpack.c.bf16 %v2320_v15, %v2320_v15  ;;  %v4241_v32 = vpop.f32.mrb[110].mxu1 }
 0x4f2   : > { %2638 = vst.msk [vmem:[%s4218_s28 + $0x10] sm:$0xf] %vm2633_vm5, %v3007_v51  ;;  %v3008_v53 = vpack.c.bf16 %v2318_v25, %v2318_v25  ;;  %v3234_v36 = vpop.f32.mrb[72].mxu0  ;;  %v1758_v19 = vpop.f32.mrb[111].mxu1 }
 0x4f3   : > { %2641 = vst.msk [vmem:[%s4218_s28 + $0x1c] sm:$0xf] %vm2633_vm5, %v3010_v61  ;;  %v2099_v23 = vadd.f32 %v3234_v36, %v4106_v12  ;;  %v2090_v49 = vpop.f32.mrb[73].mxu0 }
 0x4f4   : > { %2639 = vst.msk [vmem:[%s4218_s28 + $0x14] sm:$0xf] %vm2633_vm5, %v3008_v53  ;;  %v2091_v58 = vadd.f32 %v2090_v49, %v4090_v2  ;;  %v3235_v11 = vpop.f32.mrb[74].mxu0 }
 0x4f5   : > { %v2323_v46 = vmax.f32 %v2099_v23, 0.0  ;;  %v2102_v63 = vadd.f32 %v3235_v11, %v4111_v16  ;;  %v2093_v31 = vpop.f32.mrb[75].mxu0 }
 0x4f6   : > { %v2321_v0 = vmax.f32 %v2091_v58, 0.0  ;;  %v2094_v50 = vadd.f32 %v2093_v31, %v4095_v5 }
 0x4f7   : > { %v3013_v15 = vpack.c.bf16 %v2323_v46, %v2323_v46  ;;  %v2324_v51 = vmax.f32 %v2102_v63, 0.0  ;;  %v4253_v12 = vpop.f32.mrb[112].mxu1 }
 0x4f8   : > { %v3011_v25 = vpack.c.bf16 %v2321_v0, %v2321_v0  ;;  %v2322_v8 = vmax.f32 %v2094_v50, 0.0  ;;  %v1763_v61 = vpop.f32.mrb[113].mxu1 }
 0x4f9   : > { %2644 = vst.msk [vmem:[%s4218_s28 + $0x28] sm:$0xf] %vm2633_vm5, %v3013_v15  ;;  %v3014_v2 = vpack.c.bf16 %v2324_v51, %v2324_v51  ;;  %v4257_v53 = vpop.f32.mrb[114].mxu1 }
 0x4fa   : > { %2642 = vst.msk [vmem:[%s4218_s28 + $0x20] sm:$0xf] %vm2633_vm5, %v3011_v25  ;;  %v3012_v16 = vpack.c.bf16 %v2322_v8, %v2322_v8  ;;  %v3238_v36 = vpop.f32.mrb[76].mxu0  ;;  %v1766_v19 = vpop.f32.mrb[115].mxu1 }
 0x4fb   : > { %2645 = vst.msk [vmem:[%s4218_s28 + $0x2c] sm:$0xf] %vm2633_vm5, %v3014_v2  ;;  %v2115_v5 = vadd.f32 %v3238_v36, %v4018_v24  ;;  %v2106_v23 = vpop.f32.mrb[77].mxu0 }
 0x4fc   : > { %2643 = vst.msk [vmem:[%s4218_s28 + $0x24] sm:$0xf] %vm2633_vm5, %v3012_v16  ;;  %v2107_v49 = vadd.f32 %v2106_v23, %v4122_v28  ;;  %v3239_v58 = vpop.f32.mrb[78].mxu0 }
 0x4fd   : > { %v2327_v11 = vmax.f32 %v2115_v5, 0.0  ;;  %v2118_v46 = vadd.f32 %v3239_v58, %v4021_v26  ;;  %v2109_v63 = vpop.f32.mrb[79].mxu0 }
 0x4fe   : > { %v2325_v31 = vmax.f32 %v2107_v49, 0.0  ;;  %v2110_v0 = vadd.f32 %v2109_v63, %v4127_v34 }
 0x4ff   : > { %v3017_v50 = vpack.c.bf16 %v2327_v11, %v2327_v11  ;;  %v2328_v15 = vmax.f32 %v2118_v46, 0.0 }
 0x500   : > { %v3015_v51 = vpack.c.bf16 %v2325_v31, %v2325_v31  ;;  %v2326_v24 = vmax.f32 %v2110_v0, 0.0 }
 0x501   : > { %2648 = vst.msk [vmem:[%s4218_s28 + $0x38] sm:$0xf] %vm2633_vm5, %v3017_v50  ;;  %v3018_v25 = vpack.c.bf16 %v2328_v15, %v2328_v15 }
 0x502   : > { %2646 = vst.msk [vmem:[%s4218_s28 + $0x30] sm:$0xf] %vm2633_vm5, %v3015_v51  ;;  %v3016_v28 = vpack.c.bf16 %v2326_v24, %v2326_v24  ;;  %v3242_v8 = vpop.f32.mrb[80].mxu0 }
 0x503   : > { %2649 = vst.msk [vmem:[%s4218_s28 + $0x3c] sm:$0xf] %vm2633_vm5, %v3018_v25  ;;  %v2131_v26 = vadd.f32 %v3242_v8, %v4050_v54  ;;  %v2122_v61 = vpop.f32.mrb[81].mxu0 }
 0x504   : > { %2647 = vst.msk [vmem:[%s4218_s28 + $0x34] sm:$0xf] %vm2633_vm5, %v3016_v28  ;;  %v2123_v34 = vadd.f32 %v2122_v61, %v4034_v38  ;;  %v3243_v2 = vpop.f32.mrb[82].mxu0 }
 0x505   : > { %v2331_v16 = vmax.f32 %v2131_v26, 0.0  ;;  %v2134_v36 = vadd.f32 %v3243_v2, %v4053_v56  ;;  %v2125_v19 = vpop.f32.mrb[83].mxu0 }
 0x506   : > { %v2329_v5 = vmax.f32 %v2123_v34, 0.0  ;;  %v2126_v23 = vadd.f32 %v2125_v19, %v4037_v42 }
 0x507   : > { %v3021_v49 = vpack.c.bf16 %v2331_v16, %v2331_v16  ;;  %v2332_v58 = vmax.f32 %v2134_v36, 0.0 }
 0x508   : > { %v3019_v11 = vpack.c.bf16 %v2329_v5, %v2329_v5  ;;  %v2330_v54 = vmax.f32 %v2126_v23, 0.0 }
 0x509   : > { %2652 = vst.msk [vmem:[%s4218_s28 + $0x48] sm:$0xf] %vm2633_vm5, %v3021_v49  ;;  %v3022_v46 = vpack.c.bf16 %v2332_v58, %v2332_v58 }
 0x50a   : > { %2650 = vst.msk [vmem:[%s4218_s28 + $0x40] sm:$0xf] %vm2633_vm5, %v3019_v11  ;;  %v3020_v38 = vpack.c.bf16 %v2330_v54, %v2330_v54  ;;  %v3246_v63 = vpop.f32.mrb[84].mxu0 }
 0x50b   : > { %2653 = vst.msk [vmem:[%s4218_s28 + $0x4c] sm:$0xf] %vm2633_vm5, %v3022_v46  ;;  %v2147_v56 = vadd.f32 %v3246_v63, %v4082_v59  ;;  %v2138_v31 = vpop.f32.mrb[85].mxu0 }
 0x50c   : > { %2651 = vst.msk [vmem:[%s4218_s28 + $0x44] sm:$0xf] %vm2633_vm5, %v3020_v38  ;;  %v2139_v42 = vadd.f32 %v2138_v31, %v4066_v29  ;;  %v3247_v0 = vpop.f32.mrb[86].mxu0 }
 0x50d   : > { %v2335_v50 = vmax.f32 %v2147_v56, 0.0  ;;  %v2150_v15 = vadd.f32 %v3247_v0, %v4085_v1  ;;  %v2141_v51 = vpop.f32.mrb[87].mxu0 }
 0x50e   : > { %v2333_v24 = vmax.f32 %v2139_v42, 0.0  ;;  %v2142_v25 = vadd.f32 %v2141_v51, %v4069_v35 }
 0x50f   : > { %v3025_v28 = vpack.c.bf16 %v2335_v50, %v2335_v50  ;;  %v2336_v8 = vmax.f32 %v2150_v15, 0.0 }
 0x510   : > { %v3023_v26 = vpack.c.bf16 %v2333_v24, %v2333_v24  ;;  %v2334_v59 = vmax.f32 %v2142_v25, 0.0 }
 0x511   : > { %2656 = vst.msk [vmem:[%s4218_s28 + $0x58] sm:$0xf] %vm2633_vm5, %v3025_v28  ;;  %v3026_v61 = vpack.c.bf16 %v2336_v8, %v2336_v8 }
 0x512   : > { %2654 = vst.msk [vmem:[%s4218_s28 + $0x50] sm:$0xf] %vm2633_vm5, %v3023_v26  ;;  %v3024_v29 = vpack.c.bf16 %v2334_v59, %v2334_v59  ;;  %v3250_v34 = vpop.f32.mrb[88].mxu0 }
 0x513   : > { %2657 = vst.msk [vmem:[%s4218_s28 + $0x5c] sm:$0xf] %vm2633_vm5, %v3026_v61  ;;  %v2163_v1 = vadd.f32 %v3250_v34, %v4114_v18  ;;  %v2154_v2 = vpop.f32.mrb[89].mxu0 }
 0x514   : > { %2655 = vst.msk [vmem:[%s4218_s28 + $0x54] sm:$0xf] %vm2633_vm5, %v3024_v29  ;;  %v2155_v35 = vadd.f32 %v2154_v2, %v4098_v7  ;;  %v3251_v16 = vpop.f32.mrb[90].mxu0 }
 0x515   : > { %v2339_v36 = vmax.f32 %v2163_v1, 0.0  ;;  %v2166_v19 = vadd.f32 %v3251_v16, %v4117_v20  ;;  %v2157_v5 = vpop.f32.mrb[91].mxu0 }
 0x516   : > { %v2337_v23 = vmax.f32 %v2155_v35, 0.0  ;;  %v2158_v49 = vadd.f32 %v2157_v5, %v4101_v9 }
 0x517   : > { %v3029_v58 = vpack.c.bf16 %v2339_v36, %v2339_v36  ;;  %v2340_v11 = vmax.f32 %v2166_v19, 0.0 }
 0x518   : > { %v3027_v54 = vpack.c.bf16 %v2337_v23, %v2337_v23  ;;  %v2338_v18 = vmax.f32 %v2158_v49, 0.0 }
 0x519   : > { %2660 = vst.msk [vmem:[%s4218_s28 + $0x68] sm:$0xf] %vm2633_vm5, %v3029_v58  ;;  %v3030_v46 = vpack.c.bf16 %v2340_v11, %v2340_v11 }
 0x51a   : > { %2658 = vst.msk [vmem:[%s4218_s28 + $0x60] sm:$0xf] %vm2633_vm5, %v3027_v54  ;;  %v3028_v7 = vpack.c.bf16 %v2338_v18, %v2338_v18  ;;  %v3254_v38 = vpop.f32.mrb[92].mxu0 }
 0x51b   : > { %2661 = vst.msk [vmem:[%s4218_s28 + $0x6c] sm:$0xf] %vm2633_vm5, %v3030_v46  ;;  %v2179_v20 = vadd.f32 %v3254_v38, %v4142_v55  ;;  %v2170_v63 = vpop.f32.mrb[93].mxu0 }
 0x51c   : > { %2659 = vst.msk [vmem:[%s4218_s28 + $0x64] sm:$0xf] %vm2633_vm5, %v3028_v7  ;;  %v2171_v9 = vadd.f32 %v2170_v63, %v4130_v40  ;;  %v3255_v56 = vpop.f32.mrb[94].mxu0 }
 0x51d   : > { %v2343_v31 = vmax.f32 %v2179_v20, 0.0  ;;  %v2182_v42 = vadd.f32 %v3255_v56, %v4145_v60  ;;  %v2173_v0 = vpop.f32.mrb[95].mxu0 }
 0x51e   : > { %v2341_v50 = vmax.f32 %v2171_v9, 0.0  ;;  %v2174_v15 = vadd.f32 %v2173_v0, %v4133_v44 }
 0x51f   : > { %v3033_v51 = vpack.c.bf16 %v2343_v31, %v2343_v31  ;;  %v2344_v24 = vmax.f32 %v2182_v42, 0.0 }
 0x520   : > { %v3031_v25 = vpack.c.bf16 %v2341_v50, %v2341_v50  ;;  %v2342_v55 = vmax.f32 %v2174_v15, 0.0 }
 0x521   : > { %2664 = vst.msk [vmem:[%s4218_s28 + $0x78] sm:$0xf] %vm2633_vm5, %v3033_v51  ;;  %v3034_v28 = vpack.c.bf16 %v2344_v24, %v2344_v24 }
 0x522   : > { %2662 = vst.msk [vmem:[%s4218_s28 + $0x70] sm:$0xf] %vm2633_vm5, %v3031_v25  ;;  %v3032_v40 = vpack.c.bf16 %v2342_v55, %v2342_v55  ;;  %v3258_v8 = vpop.f32.mrb[96].mxu0 }
 0x523   : > { %2665 = vst.msk [vmem:[%s4218_s28 + $0x7c] sm:$0xf] %vm2633_vm5, %v3034_v28  ;;  %v2195_v60 = vadd.f32 %v3258_v8, %v4163_v57  ;;  %v2186_v26 = vpop.f32.mrb[97].mxu0 }
 0x524   : > { %2663 = vst.msk [vmem:[%s4218_s28 + $0x74] sm:$0xf] %vm2633_vm5, %v3032_v40  ;;  %v2187_v44 = vadd.f32 %v2186_v26, %v4154_v33  ;;  %v3259_v59 = vpop.f32.mrb[98].mxu0 }
 0x525   : > { %v2347_v61 = vmax.f32 %v2195_v60, 0.0  ;;  %v2198_v29 = vadd.f32 %v3259_v59, %v4165_v14  ;;  %v2189_v34 = vpop.f32.mrb[99].mxu0 }
 0x526   : > { %v2345_v1 = vmax.f32 %v2187_v44, 0.0  ;;  %v2190_v2 = vadd.f32 %v2189_v34, %v4157_v41 }
 0x527   : > { %v3037_v35 = vpack.c.bf16 %v2347_v61, %v2347_v61  ;;  %v2348_v16 = vmax.f32 %v2198_v29, 0.0 }
 0x528   : > { %v3035_v36 = vpack.c.bf16 %v2345_v1, %v2345_v1  ;;  %v2346_v57 = vmax.f32 %v2190_v2, 0.0 }
 0x529   : > { %2668 = vst.msk [vmem:[%s4218_s28 + $0x88] sm:$0xf] %vm2633_vm5, %v3037_v35  ;;  %v3038_v19 = vpack.c.bf16 %v2348_v16, %v2348_v16 }
 0x52a   : > { %2666 = vst.msk [vmem:[%s4218_s28 + $0x80] sm:$0xf] %vm2633_vm5, %v3035_v36  ;;  %v3036_v33 = vpack.c.bf16 %v2346_v57, %v2346_v57  ;;  %v3262_v5 = vpop.f32.mrb[100].mxu0 }
 0x52b   : > { %2669 = vst.msk [vmem:[%s4218_s28 + $0x8c] sm:$0xf] %vm2633_vm5, %v3038_v19  ;;  %v2202_v14 = vpop.f32.mrb[101].mxu0  ;;  %v2211_v23 = vadd.f32 %v3262_v5, %v4171_v10  ;;  %v4439_v5 = vld [vmem:[#allocation5_spill] sm:$0xff] }
 0x52c   : > { %2667 = vst.msk [vmem:[%s4218_s28 + $0x84] sm:$0xf] %vm2633_vm5, %v3036_v33  ;;  %v2203_v41 = vadd.f32 %v2202_v14, %v4167_v3  ;;  %v3263_v49 = vpop.f32.mrb[102].mxu0 }
 0x52d   : > { %v2351_v58 = vmax.f32 %v2211_v23, 0.0  ;;  %v2205_v11 = vpop.f32.mrb[103].mxu0  ;;  %v2214_v54 = vadd.f32 %v3263_v49, %v4173_v13 }
 0x52e   : > { %v2349_v18 = vmax.f32 %v2203_v41, 0.0  ;;  %v2206_v46 = vadd.f32 %v2205_v11, %v4169_v6  ;;  %v4440_v41 = vld [vmem:[#allocation4_spill] sm:$0xff] }
 0x52f   : > { %v3041_v7 = vpack.c.bf16 %v2351_v58, %v2351_v58  ;;  %v2352_v38 = vmax.f32 %v2214_v54, 0.0 }
 0x530   : > { %v3039_v20 = vpack.c.bf16 %v2349_v18, %v2349_v18  ;;  %v2350_v63 = vmax.f32 %v2206_v46, 0.0 }
 0x531   : > { %2672 = vst.msk [vmem:[%s4218_s28 + $0x98] sm:$0xf] %vm2633_vm5, %v3041_v7  ;;  %v3042_v10 = vpack.c.bf16 %v2352_v38, %v2352_v38  ;;  %v4441_v38 = vld [vmem:[#allocation8_spill] sm:$0xff] }
 0x532   : > { %2670 = vst.msk [vmem:[%s4218_s28 + $0x90] sm:$0xf] %vm2633_vm5, %v3039_v20  ;;  %v3040_v3 = vpack.c.bf16 %v2350_v63, %v2350_v63  ;;  %v3266_v9 = vpop.f32.mrb[104].mxu0  ;;  %v4442_v63 = vld [vmem:[#allocation6_spill] sm:$0xff] }
 0x533   : > { %2673 = vst.msk [vmem:[%s4218_s28 + $0x9c] sm:$0xf] %vm2633_vm5, %v3042_v10  ;;  %v2218_v56 = vpop.f32.mrb[105].mxu0  ;;  %v2227_v13 = vadd.f32 %v3266_v9, %v4179_v30 }
 0x534   : > { %2671 = vst.msk [vmem:[%s4218_s28 + $0x94] sm:$0xf] %vm2633_vm5, %v3040_v3  ;;  %v2219_v6 = vadd.f32 %v2218_v56, %v4175_v17  ;;  %v3267_v31 = vpop.f32.mrb[106].mxu0 }
 0x535   : > { %v2221_v42 = vpop.f32.mrb[107].mxu0  ;;  %v2355_v0 = vmax.f32 %v2227_v13, 0.0  ;;  %v2230_v50 = vadd.f32 %v3267_v31, %v4181_v37  ;;  %v4443_v31 = vld [vmem:[#allocation7_spill] sm:$0xff] }
 0x536   : > { %v2353_v15 = vmax.f32 %v2219_v6, 0.0  ;;  %v2222_v51 = vadd.f32 %v2221_v42, %v4177_v22 }
 0x537   : > { %v3045_v24 = vpack.c.bf16 %v2355_v0, %v2355_v0  ;;  %v2356_v25 = vmax.f32 %v2230_v50, 0.0 }
 0x538   : > { %v3043_v55 = vpack.c.bf16 %v2353_v15, %v2353_v15  ;;  %v2354_v28 = vmax.f32 %v2222_v51, 0.0 }
 0x539   : > { %2676 = vst.msk [vmem:[%s4218_s28 + $0xa8] sm:$0xf] %vm2633_vm5, %v3045_v24  ;;  %v3046_v30 = vpack.c.bf16 %v2356_v25, %v2356_v25 }
 0x53a   : > { %2674 = vst.msk [vmem:[%s4218_s28 + $0xa0] sm:$0xf] %vm2633_vm5, %v3043_v55  ;;  %v3044_v17 = vpack.c.bf16 %v2354_v28, %v2354_v28  ;;  %v3270_v40 = vpop.f32.mrb[108].mxu0 }
 0x53b   : > { %2677 = vst.msk [vmem:[%s4218_s28 + $0xac] sm:$0xf] %vm2633_vm5, %v3046_v30  ;;  %v2234_v8 = vpop.f32.mrb[109].mxu0  ;;  %v2243_v37 = vadd.f32 %v3270_v40, %v4187_v62  ;;  %v4444_v30 = vld [vmem:[#allocation9_spill] sm:$0xff] }
 0x53c   : > { %2675 = vst.msk [vmem:[%s4218_s28 + $0xa4] sm:$0xf] %vm2633_vm5, %v3044_v17  ;;  %v2235_v22 = vadd.f32 %v2234_v8, %v4183_v48  ;;  %v3271_v60 = vpop.f32.mrb[110].mxu0 }
 0x53d   : > { %v2237_v26 = vpop.f32.mrb[111].mxu0  ;;  %v2359_v44 = vmax.f32 %v2243_v37, 0.0  ;;  %v2246_v59 = vadd.f32 %v3271_v60, %v4189_v27 }
 0x53e   : > { %v2357_v61 = vmax.f32 %v2235_v22, 0.0  ;;  %v2238_v29 = vadd.f32 %v2237_v26, %v4185_v52  ;;  %v4445_v26 = vld [vmem:[#allocation10_spill] sm:$0xff] }
 0x53f   : > { %v3049_v34 = vpack.c.bf16 %v2359_v44, %v2359_v44  ;;  %v2360_v1 = vmax.f32 %v2246_v59, 0.0 }
 0x540   : > { %v3047_v2 = vpack.c.bf16 %v2357_v61, %v2357_v61  ;;  %v2358_v35 = vmax.f32 %v2238_v29, 0.0 }
 0x541   : > { %2680 = vst.msk [vmem:[%s4218_s28 + $0xb8] sm:$0xf] %vm2633_vm5, %v3049_v34  ;;  %v3050_v62 = vpack.c.bf16 %v2360_v1, %v2360_v1 }
 0x542   : > { %2678 = vst.msk [vmem:[%s4218_s28 + $0xb0] sm:$0xf] %vm2633_vm5, %v3047_v2  ;;  %v3048_v48 = vpack.c.bf16 %v2358_v35, %v2358_v35  ;;  %v3274_v16 = vpop.f32.mrb[112].mxu0 }
 0x543   : > { %2681 = vst.msk [vmem:[%s4218_s28 + $0xbc] sm:$0xf] %vm2633_vm5, %v3050_v62  ;;  %v2250_v36 = vpop.f32.mrb[113].mxu0  ;;  %v2259_v27 = vadd.f32 %v3274_v16, %v4195_v4 }
 0x544   : > { %2679 = vst.msk [vmem:[%s4218_s28 + $0xb4] sm:$0xf] %vm2633_vm5, %v3048_v48  ;;  %v2251_v52 = vadd.f32 %v2250_v36, %v4191_v47  ;;  %v3275_v57 = vpop.f32.mrb[114].mxu0 }
 0x545   : > { %v2253_v19 = vpop.f32.mrb[115].mxu0  ;;  %v2363_v33 = vmax.f32 %v2259_v27, 0.0  ;;  %v2262_v14 = vadd.f32 %v3275_v57, %v4439_v5 }
 0x546   : > { %v2361_v23 = vmax.f32 %v2251_v52, 0.0  ;;  %v2254_v49 = vadd.f32 %v2253_v19, %v4440_v41 }
 0x547   : > { %v3053_v58 = vpack.c.bf16 %v2363_v33, %v2363_v33  ;;  %v2364_v11 = vmax.f32 %v2262_v14, 0.0 }
 0x548   : > { %v3051_v54 = vpack.c.bf16 %v2361_v23, %v2361_v23  ;;  %v2362_v18 = vmax.f32 %v2254_v49, 0.0 }
 0x549   : > { %2684 = vst.msk [vmem:[%s4218_s28 + $0xc8] sm:$0xf] %vm2633_vm5, %v3053_v58  ;;  %v3054_v4 = vpack.c.bf16 %v2364_v11, %v2364_v11 }
 0x54a   : > { %2682 = vst.msk [vmem:[%s4218_s28 + $0xc0] sm:$0xf] %vm2633_vm5, %v3051_v54  ;;  %v3052_v47 = vpack.c.bf16 %v2362_v18, %v2362_v18  ;;  %v3278_v46 = vpop.f32.mrb[116].mxu0 }
 0x54b   : > { %2685 = vst.msk [vmem:[%s4218_s28 + $0xcc] sm:$0xf] %vm2633_vm5, %v3054_v4  ;;  %v2266_v7 = vpop.f32.mrb[117].mxu0  ;;  %v2275_v20 = vadd.f32 %v3278_v46, %v4441_v38 }
 0x54c   : > { %2683 = vst.msk [vmem:[%s4218_s28 + $0xc4] sm:$0xf] %vm2633_vm5, %v3052_v47  ;;  %v2267_v10 = vadd.f32 %v2266_v7, %v4442_v63  ;;  %v3279_v3 = vpop.f32.mrb[118].mxu0 }
 0x54d   : > { %v2269_v9 = vpop.f32.mrb[119].mxu0  ;;  %v2367_v56 = vmax.f32 %v2275_v20, 0.0  ;;  %v2278_v13 = vadd.f32 %v3279_v3, %v4205_v21 }
 0x54e   : > { %v2365_v6 = vmax.f32 %v2267_v10, 0.0  ;;  %v2270_v42 = vadd.f32 %v2269_v9, %v4443_v31 }
 0x54f   : > { %v3057_v0 = vpack.c.bf16 %v2367_v56, %v2367_v56  ;;  %v2368_v50 = vmax.f32 %v2278_v13, 0.0 }
 0x550   : > { %v3055_v15 = vpack.c.bf16 %v2365_v6, %v2365_v6  ;;  %v2366_v51 = vmax.f32 %v2270_v42, 0.0 }
 0x551   : > { %2688 = vst.msk [vmem:[%s4218_s28 + $0xd8] sm:$0xf] %vm2633_vm5, %v3057_v0  ;;  %v3058_v24 = vpack.c.bf16 %v2368_v50, %v2368_v50 }
 0x552   : > { %2686 = vst.msk [vmem:[%s4218_s28 + $0xd0] sm:$0xf] %vm2633_vm5, %v3055_v15  ;;  %v3056_v25 = vpack.c.bf16 %v2366_v51, %v2366_v51  ;;  %v3282_v55 = vpop.f32.mrb[120].mxu0 }
 0x553   : > { %2689 = vst.msk [vmem:[%s4218_s28 + $0xdc] sm:$0xf] %vm2633_vm5, %v3058_v24  ;;  %v2282_v28 = vpop.f32.mrb[121].mxu0  ;;  %v2291_v21 = vadd.f32 %v3282_v55, %v4221_v39 }
 0x554   : > { %2687 = vst.msk [vmem:[%s4218_s28 + $0xd4] sm:$0xf] %vm2633_vm5, %v3056_v25  ;;  %v2283_v17 = vadd.f32 %v2282_v28, %v4444_v30  ;;  %v3283_v40 = vpop.f32.mrb[122].mxu0 }
 0x555   : > { %v2285_v8 = vpop.f32.mrb[123].mxu0  ;;  %v2371_v37 = vmax.f32 %v2291_v21, 0.0  ;;  %v2294_v22 = vadd.f32 %v3283_v40, %v4225_v43 }
 0x556   : > { %v2369_v60 = vmax.f32 %v2283_v17, 0.0  ;;  %v2286_v44 = vadd.f32 %v2285_v8, %v4445_v26 }
 0x557   : > { %v3061_v59 = vpack.c.bf16 %v2371_v37, %v2371_v37  ;;  %v2372_v61 = vmax.f32 %v2294_v22, 0.0 }
 0x558   : > { %v3059_v29 = vpack.c.bf16 %v2369_v60, %v2369_v60  ;;  %v2370_v34 = vmax.f32 %v2286_v44, 0.0 }
 0x559   : > { %2692 = vst.msk [vmem:[%s4218_s28 + $0xe8] sm:$0xf] %vm2633_vm5, %v3061_v59  ;;  %v3062_v39 = vpack.c.bf16 %v2372_v61, %v2372_v61 }
 0x55a   : > { %2690 = vst.msk [vmem:[%s4218_s28 + $0xe0] sm:$0xf] %vm2633_vm5, %v3059_v29  ;;  %v3060_v1 = vpack.c.bf16 %v2370_v34, %v2370_v34  ;;  %v3286_v2 = vpop.f32.mrb[124].mxu0 }
 0x55b   : > { %2693 = vst.msk [vmem:[%s4218_s28 + $0xec] sm:$0xf] %vm2633_vm5, %v3062_v39  ;;  %v2298_v35 = vpop.f32.mrb[125].mxu0  ;;  %v2307_v43 = vadd.f32 %v3286_v2, %v4253_v12 }
 0x55c   : > { %2691 = vst.msk [vmem:[%s4218_s28 + $0xe4] sm:$0xf] %vm2633_vm5, %v3060_v1  ;;  %v2299_v62 = vadd.f32 %v2298_v35, %v4237_v45  ;;  %v3287_v48 = vpop.f32.mrb[126].mxu0 }
 0x55d   : > { %v2301_v16 = vpop.f32.mrb[127].mxu0  ;;  %v2375_v36 = vmax.f32 %v2307_v43, 0.0  ;;  %v2310_v27 = vadd.f32 %v3287_v48, %v4257_v53 }
 0x55e   : > { %v2373_v52 = vmax.f32 %v2299_v62, 0.0  ;;  %v2302_v57 = vadd.f32 %v2301_v16, %v4241_v32 }
 0x55f   : > { %v3065_v19 = vpack.c.bf16 %v2375_v36, %v2375_v36  ;;  %v2376_v33 = vmax.f32 %v2310_v27, 0.0 }
 0x560   : > { %v3063_v5 = vpack.c.bf16 %v2373_v52, %v2373_v52  ;;  %v2374_v14 = vmax.f32 %v2302_v57, 0.0 }
 0x561   : > { %2696 = vst.msk [vmem:[%s4218_s28 + $0xf8] sm:$0xf] %vm2633_vm5, %v3065_v19  ;;  %v3066_v12 = vpack.c.bf16 %v2376_v33, %v2376_v33 }
 0x562   : > { %2694 = vst.msk [vmem:[%s4218_s28 + $0xf0] sm:$0xf] %vm2633_vm5, %v3063_v5  ;;  %v3064_v23 = vpack.c.bf16 %v2374_v14, %v2374_v14 }
 0x563   : > { %2697 = vst.msk [vmem:[%s4218_s28 + $0xfc] sm:$0xf] %vm2633_vm5, %v3066_v12 }
 0x564   : > { %2695 = vst.msk [vmem:[%s4218_s28 + $0xf4] sm:$0xf] %vm2633_vm5, %v3064_v23 }
 0x565 PF: > { %s17_s24 = sadd.s32 1, %s3504_s24  }
 0x566   : > { %p14_p4 = scmp.ge.s32.totalorder %s17_s24, 4  }
 0x568   :  { %16 = sbr.rel (!%p14_p4) target bundleno = 1 (0x1), region = 78 }

</bundles_post_ra>
